<compile_context>
chip_gen: v7x
topology: tpu7x:2x2x1
jax: 0.10.0
libtpu: 0.0.40
codegen_flags: <defaults>
</compile_context>

<pallas_src>
import functools

import jax
import jax.numpy as jnp
from jax.experimental import pallas as pl
from jax.experimental.pallas import tpu as pltpu


def _round_up(x, m):
    return (x + m - 1) // m * m


def _pick_l_tile(L_out, pool, cap):
    """Largest L tile <= cap that divides L_out and keeps both the pre-pool and
    post-pool tile heights multiples of 8 sublanes.  Falls back to one full tile."""
    p = pool if pool > 1 else 1
    unit = 8 * p
    if L_out % unit == 0:
        t = (min(cap, L_out) // unit) * unit
        while t >= unit:
            if L_out % t == 0:
                return t
            t -= unit
    return L_out


def _conv_tile(xc_ref, xn_ref, w_ref, *, K):
    """Bias-free Conv1d output for one tile, accumulated in f32: (L_TILE, C_pad)."""
    L_tile, C_in = xc_ref.shape[1], xc_ref.shape[2]
    # Halo: the K-1 extra rows needed at the tile's right edge come from the block of
    # the next tile (same padded array, second BlockSpec with index li+1).
    x_halo = jnp.concatenate([xc_ref[0], xn_ref[0]], axis=0)           # (2*L_TILE, C_in)
    if C_in % 128 == 0:
        # Fused im2col: one MXU matmul with contraction depth K*C_in.
        cols = [x_halo[k:k + L_tile, :] for k in range(K)]             # sublane-shifted views
        im2col = jnp.concatenate(cols, axis=1)                         # (L_TILE, K*C_in), lane-aligned
        return jnp.dot(im2col, w_ref[...], preferred_element_type=jnp.float32)
    # Small / lane-unaligned C_in (e.g. first layer, C_in=4): K accumulated matmuls.
    w = w_ref[...]
    acc = jnp.zeros((L_tile, w.shape[-1]), jnp.float32)
    for k in range(K):                                                 # static unroll, K is small
        acc = acc + jnp.dot(x_halo[k:k + L_tile, :],
                            w[k * C_in:(k + 1) * C_in, :],
                            preferred_element_type=jnp.float32)
    return acc


def _conv_stats_kernel(xc_ref, xn_ref, w_ref, sum_ref, sumsq_ref, *, K):
    """Pass 1: conv tile -> per-channel sum and sum-of-squares (training-mode BN stats)."""
    y = _conv_tile(xc_ref, xn_ref, w_ref, K=K)                         # (L_TILE, C_pad) f32
    sum_ref[0, 0] = jnp.sum(y, axis=0, keepdims=True)                  # (1, C_pad)
    sumsq_ref[0, 0] = jnp.sum(y * y, axis=0, keepdims=True)            # (1, C_pad)


def _conv_bn_relu_pool_kernel(xc_ref, xn_ref, w_ref, scale_ref, shift_ref, out_ref,
                              *, K, pool):
    """Pass 2: conv tile (recomputed) -> folded BN affine -> ReLU -> MaxPool -> store."""
    y = _conv_tile(xc_ref, xn_ref, w_ref, K=K)                         # (L_TILE, C_pad) f32
    y = y * scale_ref[...] + shift_ref[...]                            # BN (+ absorbed conv bias)
    y = jnp.maximum(y, 0.0)                                            # ReLU
    if pool > 1:
        L_tile, C = y.shape
        Lp = L_tile // pool
        # MaxPool1d(kernel=stride=pool), floor truncation over length.
        y = jnp.max(y[:Lp * pool, :].reshape(Lp, pool, C), axis=1)
    out_ref[0] = y.astype(out_ref.dtype)                               # lane-dense (C_pad % 128 == 0)


@functools.partial(jax.jit,
                   static_argnames=("pool_size", "eps", "compute_dtype", "max_l_tile"))
def conv_layer_forward(x_ncl, conv_w, conv_b, bn_gamma, bn_beta, pool_size,
                       eps=1e-5, compute_dtype=None, max_l_tile=512):
    """Forward of `_conv_layer` for x in PyTorch NCL layout: (N, C_in, L) -> (N, C_out, L_final).

    compute_dtype: dtype used to stream activations/weights (jnp.bfloat16 halves HBM bytes);
      accumulation and BN math stay f32.
    max_l_tile: per-step tile height along L.  Sweep upward on v5e/v6e (128 MiB VMEM);
      keep it modest on v7x (64 MiB).  512 is safe everywhere for Basenji-sized C_out.
    """
    # TODO(synk): BatchNorm running-mean/var (momentum) buffer updates are a training-time
    # side effect and are not produced by this functional forward.
    N, C_in, L = x_ncl.shape
    C_out, _, K = conv_w.shape
    pad = K // 2
    L_out = L + 2 * pad - K + 1
    pool = int(pool_size)
    if compute_dtype is None:
        compute_dtype = x_ncl.dtype

    C_pad = _round_up(C_out, 128)                    # lane-dense (unmasked) output stores
    L_TILE = _pick_l_tile(L_out, pool, max_l_tile)
    if L_TILE < K - 1:
        raise ValueError("sequence too short for kernel_size")
    nl = L_out // L_TILE
    Lp_tile = L_TILE // pool if pool > 1 else L_TILE

    # ---------- glue: layout conversion + zero padding (plain XLA, done once) ----------
    x_nlc = jnp.transpose(x_ncl, (0, 2, 1)).astype(compute_dtype)       # (N, L, C_in)
    total_l = (nl + 1) * L_TILE                      # +1 tile so the last step's halo block exists
    x_pad = jnp.pad(x_nlc, ((0, 0), (pad, total_l - pad - L), (0, 0)))  # (N, total_l, C_in)

    # Weights (C_out, C_in, K) -> (K*C_in, C_pad); tap-k row-block holds w[:, :, k].T.
    w2 = jnp.transpose(conv_w, (2, 1, 0)).reshape(K * C_in, C_out)
    w2 = jnp.pad(w2, ((0, 0), (0, C_pad - C_out))).astype(compute_dtype)

    xc_spec = pl.BlockSpec((1, L_TILE, C_in), lambda n, li: (n, li, 0))
    xn_spec = pl.BlockSpec((1, L_TILE, C_in), lambda n, li: (n, li + 1, 0))
    w_spec = pl.BlockSpec((K * C_in, C_pad), lambda n, li: (0, 0))      # resident, fetched once
    vec_spec = pl.BlockSpec((1, C_pad), lambda n, li: (0, 0))
    grid = (N, nl)
    cparams = pltpu.CompilerParams(dimension_semantics=("parallel", "parallel"))

    # ---------- pass 1: conv + per-tile channel sums (training-mode BN statistics) ----------
    stats_spec = pl.BlockSpec((1, 1, 1, C_pad), lambda n, li: (n, li, 0, 0))
    stats_shape = jax.ShapeDtypeStruct((N, nl, 1, C_pad), jnp.float32)
    ch_sum, ch_sumsq = pl.pallas_call(
        functools.partial(_conv_stats_kernel, K=K),
        grid=grid,
        in_specs=[xc_spec, xn_spec, w_spec],
        out_specs=(stats_spec, stats_spec),
        out_shape=(stats_shape, stats_shape),
        compiler_params=cparams,
    )(x_pad, x_pad, w2)

    # ---------- tiny per-channel reduction + BN folding (plain XLA glue) ----------
    cnt = float(N * L_out)
    mean = jnp.sum(ch_sum, axis=(0, 1, 2)) / cnt                        # (C_pad,)
    var = jnp.sum(ch_sumsq, axis=(0, 1, 2)) / cnt - mean * mean
    var = jnp.maximum(var, 0.0)                      # guard E[x^2]-mean^2 cancellation
    inv = jax.lax.rsqrt(var + eps)
    gamma_p = jnp.pad(bn_gamma.astype(jnp.float32), (0, C_pad - C_out))
    beta_p = jnp.pad(bn_beta.astype(jnp.float32), (0, C_pad - C_out))
    scale = gamma_p * inv
    # NOTE: the Conv1d bias is absorbed exactly by training-mode BatchNorm
    # ((conv + b) - mean(conv + b) == conv - mean(conv)), so `conv_b` never reaches the
    # kernel; the output is nevertheless bit-for-bit the module's forward semantics.
    shift = beta_p - mean * scale
    scale = scale.reshape(1, C_pad)
    shift = shift.reshape(1, C_pad)

    # ---------- pass 2: conv (recomputed, memory-bound) + BN affine + ReLU + MaxPool ----------
    out_nlc = pl.pallas_call(
        functools.partial(_conv_bn_relu_pool_kernel, K=K, pool=pool),
        grid=grid,
        in_specs=[xc_spec, xn_spec, w_spec, vec_spec, vec_spec],
        out_specs=pl.BlockSpec((1, Lp_tile, C_pad), lambda n, li: (n, li, 0)),
        out_shape=jax.ShapeDtypeStruct((N, nl * Lp_tile, C_pad), x_ncl.dtype),
        compiler_params=cparams,
    )(x_pad, x_pad, w2, scale, shift)

    # ---------- glue: strip channel padding, back to PyTorch NCL ----------
    return jnp.transpose(out_nlc[:, :, :C_out], (0, 2, 1))


def _reference(x_ncl, conv_w, conv_b, bn_gamma, bn_beta, pool_size, eps=1e-5):
    """Pure-JAX reference mirroring the PyTorch forward (training-mode BN)."""
    K = conv_w.shape[-1]
    pad = K // 2
    y = jax.lax.conv_general_dilated(
        x_ncl, conv_w, window_strides=(1,), padding=[(pad, pad)],
        dimension_numbers=("NCH", "OIH", "NCH"))
    y = y + conv_b[None, :, None]
    mean = jnp.mean(y, axis=(0, 2), keepdims=True)
    var = jnp.mean((y - mean) ** 2, axis=(0, 2), keepdims=True)
    y = (y - mean) / jnp.sqrt(var + eps)
    y = y * bn_gamma[None, :, None] + bn_beta[None, :, None]
    y = jnp.maximum(y, 0.0)
    if pool_size > 0:
        N, C, Ly = y.shape
        Lp = Ly // pool_size
        y = y[:, :, :Lp * pool_size].reshape(N, C, Lp, pool_size).max(axis=-1)
    return y


def _run_case(name, key, N, C_in, L, filters_mul, K, pool, compute_dtype=None,
              max_l_tile=512, atol=2e-3, rtol=2e-3):
    C_out = int(C_in * filters_mul)
    kx, kw, kb, kg, kbt = jax.random.split(key, 5)
    x = jax.random.normal(kx, (N, C_in, L), jnp.float32)
    w = jax.random.normal(kw, (C_out, C_in, K), jnp.float32) * (1.0 / (C_in * K) ** 0.5)
    b = 0.1 * jax.random.normal(kb, (C_out,), jnp.float32)
    g = 1.0 + 0.1 * jax.random.normal(kg, (C_out,), jnp.float32)
    bt = 0.1 * jax.random.normal(kbt, (C_out,), jnp.float32)

    out = conv_layer_forward(x, w, b, g, bt, pool,
                             compute_dtype=compute_dtype, max_l_tile=max_l_tile)
    out = jax.block_until_ready(out)
    ref = _reference(x, w, b, g, bt, pool)
    assert out.shape == ref.shape, (name, out.shape, ref.shape)
    out32 = out.astype(jnp.float32)
    err = float(jnp.max(jnp.abs(out32 - ref)))
    assert jnp.allclose(out32, ref, atol=atol, rtol=rtol), (name, err)


if __name__ == "__main__":
    key = jax.random.PRNGKey(0)
    k1, k2, k3, k4 = jax.random.split(key, 4)

    # 1) Module's small config (C_in=4, filters_mul=2, K=5, pool=2): tap-loop conv path,
    #    2 length tiles, f32.
    _run_case("small_f32", k1, N=2, C_in=4, L=1024, filters_mul=2, K=5, pool=2)

    # 2) Lane-aligned channels (C_in=128): fused single-matmul im2col path, 2 length tiles.
    _run_case("aligned_f32", k2, N=2, C_in=128, L=512, filters_mul=1, K=5, pool=2,
              max_l_tile=256)

    # 3) pool_size = 0 branch (no MaxPool module).
    _run_case("nopool_f32", k3, N=2, C_in=4, L=96, filters_mul=2, K=5, pool=0)

    # 4) bf16 activation/weight streaming (f32 accumulation), loose tolerance vs f32 ref.
    _run_case("small_bf16", k4, N=2, C_in=4, L=1024, filters_mul=2, K=5, pool=2,
              compute_dtype=jnp.bfloat16, atol=0.1, rtol=0.1)

    print("KERNEL_OK")
</pallas_src>

<mosaic_0001>
module attributes {stable_mosaic.version = 11 : i64} {
  func.func @_conv_stats_kernel(%arg0: i32, %arg1: i32, %arg2: memref<1x512x4xf32, #tpu.memory_space<vmem>>, %arg3: memref<1x512x4xf32, #tpu.memory_space<vmem>>, %arg4: memref<20x128xf32, #tpu.memory_space<vmem>>, %arg5: memref<1x1x1x128xf32, #tpu.memory_space<vmem>>, %arg6: memref<1x1x1x128xf32, #tpu.memory_space<vmem>>) attributes {dimension_semantics = [#tpu.dimension_semantics<parallel>, #tpu.dimension_semantics<parallel>], iteration_bounds = array<i64: 2, 2>, scalar_prefetch = 0 : i64, scratch_operands = 0 : i64, tpu.core_type = #tpu.core_type<tc>, window_params = [{transform_indices = @transform_0, window_bounds = array<i64: 1, 512, 4>}, {transform_indices = @transform_1, window_bounds = array<i64: 1, 512, 4>}, {pipeline_mode = #tpu.pipeline_mode<synchronous>, transform_indices = @transform_2, window_bounds = array<i64: 20, 128>}, {transform_indices = @transform_3, window_bounds = array<i64: 1, 1, 1, 128>}, {transform_indices = @transform_4, window_bounds = array<i64: 1, 1, 1, 128>}]} {
    %c0 = arith.constant 0 : index
    %c0_0 = arith.constant 0 : index
    %c0_1 = arith.constant 0 : index
    %0 = vector.load %arg2[%c0, %c0_0, %c0_1] : memref<1x512x4xf32, #tpu.memory_space<vmem>>, vector<1x512x4xf32>
    %1 = vector.shape_cast %0 : vector<1x512x4xf32> to vector<512x4xf32>
    %c0_2 = arith.constant 0 : index
    %c0_3 = arith.constant 0 : index
    %c0_4 = arith.constant 0 : index
    %2 = vector.load %arg3[%c0_2, %c0_3, %c0_4] : memref<1x512x4xf32, #tpu.memory_space<vmem>>, vector<1x512x4xf32>
    %3 = vector.shape_cast %2 : vector<1x512x4xf32> to vector<512x4xf32>
    %4 = tpu.concatenate %1, %3 in 0 : vector<512x4xf32>, vector<512x4xf32> -> vector<1024x4xf32>
    %c0_5 = arith.constant 0 : index
    %c0_6 = arith.constant 0 : index
    %5 = vector.load %arg4[%c0_5, %c0_6] : memref<20x128xf32, #tpu.memory_space<vmem>>, vector<20x128xf32>
    %cst = arith.constant 0.000000e+00 : f32
    %6 = vector.broadcast %cst : f32 to vector<512x128xf32>
    %7 = vector.extract_strided_slice %4 {offsets = [0, 0], sizes = [512, 4], strides = [1, 1]} : vector<1024x4xf32> to vector<512x4xf32>
    %8 = vector.extract_strided_slice %5 {offsets = [0, 0], sizes = [4, 128], strides = [1, 1]} : vector<20x128xf32> to vector<4x128xf32>
    %cst_7 = arith.constant dense<0.000000e+00> : vector<512x128xf32>
    %9 = tpu.matmul %7, %8, %cst_7 {dimension_numbers = #tpu.dot_dimension_numbers<[1], [0], [0], [1], [0, 0, 1, 1], [], []>} : vector<512x4xf32>, vector<4x128xf32>, vector<512x128xf32> -> vector<512x128xf32>
    %10 = arith.addf %6, %9 : vector<512x128xf32>
    %11 = vector.extract_strided_slice %4 {offsets = [1, 0], sizes = [512, 4], strides = [1, 1]} : vector<1024x4xf32> to vector<512x4xf32>
    %12 = vector.extract_strided_slice %5 {offsets = [4, 0], sizes = [4, 128], strides = [1, 1]} : vector<20x128xf32> to vector<4x128xf32>
    %cst_8 = arith.constant dense<0.000000e+00> : vector<512x128xf32>
    %13 = tpu.matmul %11, %12, %cst_8 {dimension_numbers = #tpu.dot_dimension_numbers<[1], [0], [0], [1], [0, 0, 1, 1], [], []>} : vector<512x4xf32>, vector<4x128xf32>, vector<512x128xf32> -> vector<512x128xf32>
    %14 = arith.addf %10, %13 : vector<512x128xf32>
    %15 = vector.extract_strided_slice %4 {offsets = [2, 0], sizes = [512, 4], strides = [1, 1]} : vector<1024x4xf32> to vector<512x4xf32>
    %16 = vector.extract_strided_slice %5 {offsets = [8, 0], sizes = [4, 128], strides = [1, 1]} : vector<20x128xf32> to vector<4x128xf32>
    %cst_9 = arith.constant dense<0.000000e+00> : vector<512x128xf32>
    %17 = tpu.matmul %15, %16, %cst_9 {dimension_numbers = #tpu.dot_dimension_numbers<[1], [0], [0], [1], [0, 0, 1, 1], [], []>} : vector<512x4xf32>, vector<4x128xf32>, vector<512x128xf32> -> vector<512x128xf32>
    %18 = arith.addf %14, %17 : vector<512x128xf32>
    %19 = vector.extract_strided_slice %4 {offsets = [3, 0], sizes = [512, 4], strides = [1, 1]} : vector<1024x4xf32> to vector<512x4xf32>
    %20 = vector.extract_strided_slice %5 {offsets = [12, 0], sizes = [4, 128], strides = [1, 1]} : vector<20x128xf32> to vector<4x128xf32>
    %cst_10 = arith.constant dense<0.000000e+00> : vector<512x128xf32>
    %21 = tpu.matmul %19, %20, %cst_10 {dimension_numbers = #tpu.dot_dimension_numbers<[1], [0], [0], [1], [0, 0, 1, 1], [], []>} : vector<512x4xf32>, vector<4x128xf32>, vector<512x128xf32> -> vector<512x128xf32>
    %22 = arith.addf %18, %21 : vector<512x128xf32>
    %23 = vector.extract_strided_slice %4 {offsets = [4, 0], sizes = [512, 4], strides = [1, 1]} : vector<1024x4xf32> to vector<512x4xf32>
    %24 = vector.extract_strided_slice %5 {offsets = [16, 0], sizes = [4, 128], strides = [1, 1]} : vector<20x128xf32> to vector<4x128xf32>
    %cst_11 = arith.constant dense<0.000000e+00> : vector<512x128xf32>
    %25 = tpu.matmul %23, %24, %cst_11 {dimension_numbers = #tpu.dot_dimension_numbers<[1], [0], [0], [1], [0, 0, 1, 1], [], []>} : vector<512x4xf32>, vector<4x128xf32>, vector<512x128xf32> -> vector<512x128xf32>
    %26 = arith.addf %22, %25 : vector<512x128xf32>
    %cst_12 = arith.constant dense<0.000000e+00> : vector<128xf32>
    %27 = vector.multi_reduction <add>, %26, %cst_12 [0] : vector<512x128xf32> to vector<128xf32>
    %28 = vector.shape_cast %27 : vector<128xf32> to vector<1x128xf32>
    %c0_13 = arith.constant 0 : index
    %c0_14 = arith.constant 0 : index
    %c0_15 = arith.constant 0 : index
    %c0_16 = arith.constant 0 : index
    %29 = vector.load %arg5[%c0_13, %c0_14, %c0_15, %c0_16] : memref<1x1x1x128xf32, #tpu.memory_space<vmem>>, vector<1x1x1x128xf32>
    %30 = vector.shape_cast %29 : vector<1x1x1x128xf32> to vector<1x128xf32>
    %31 = vector.shape_cast %28 : vector<1x128xf32> to vector<1x1x1x128xf32>
    tpu.vector_store %arg5[%c0_13, %c0_14, %c0_15, %c0_16], %31 {strides = array<i32>} : memref<1x1x1x128xf32, #tpu.memory_space<vmem>>, vector<1x1x1x128xf32>,
    %32 = arith.mulf %26, %26 : vector<512x128xf32>
    %cst_17 = arith.constant dense<0.000000e+00> : vector<128xf32>
    %33 = vector.multi_reduction <add>, %32, %cst_17 [0] : vector<512x128xf32> to vector<128xf32>
    %34 = vector.shape_cast %33 : vector<128xf32> to vector<1x128xf32>
    %c0_18 = arith.constant 0 : index
    %c0_19 = arith.constant 0 : index
    %c0_20 = arith.constant 0 : index
    %c0_21 = arith.constant 0 : index
    %35 = vector.load %arg6[%c0_18, %c0_19, %c0_20, %c0_21] : memref<1x1x1x128xf32, #tpu.memory_space<vmem>>, vector<1x1x1x128xf32>
    %36 = vector.shape_cast %35 : vector<1x1x1x128xf32> to vector<1x128xf32>
    %37 = vector.shape_cast %34 : vector<1x128xf32> to vector<1x1x1x128xf32>
    tpu.vector_store %arg6[%c0_18, %c0_19, %c0_20, %c0_21], %37 {strides = array<i32>} : memref<1x1x1x128xf32, #tpu.memory_space<vmem>>, vector<1x1x1x128xf32>,
    return
  }
  func.func @transform_0(%arg0: i32, %arg1: i32) -> (i32, i32, i32) {
    %c0_i32 = arith.constant 0 : i32
    %c0_i32_0 = arith.constant 0 : i32
    return %arg0, %arg1, %c0_i32 : i32, i32, i32
  }
  func.func @transform_1(%arg0: i32, %arg1: i32) -> (i32, i32, i32) {
    %c1_i32 = arith.constant 1 : i32
    %0 = arith.addi %arg1, %c1_i32 : i32
    %c0_i32 = arith.constant 0 : i32
    %c0_i32_0 = arith.constant 0 : i32
    return %arg0, %0, %c0_i32 : i32, i32, i32
  }
  func.func @transform_2(%arg0: i32, %arg1: i32) -> (i32, i32) {
    %c0_i32 = arith.constant 0 : i32
    %c0_i32_0 = arith.constant 0 : i32
    %c0_i32_1 = arith.constant 0 : i32
    return %c0_i32, %c0_i32_0 : i32, i32
  }
  func.func @transform_3(%arg0: i32, %arg1: i32) -> (i32, i32, i32, i32) {
    %c0_i32 = arith.constant 0 : i32
    %c0_i32_0 = arith.constant 0 : i32
    %c0_i32_1 = arith.constant 0 : i32
    return %arg0, %arg1, %c0_i32, %c0_i32_0 : i32, i32, i32, i32
  }
  func.func @transform_4(%arg0: i32, %arg1: i32) -> (i32, i32, i32, i32) {
    %c0_i32 = arith.constant 0 : i32
    %c0_i32_0 = arith.constant 0 : i32
    %c0_i32_1 = arith.constant 0 : i32
    return %arg0, %arg1, %c0_i32, %c0_i32_0 : i32, i32, i32, i32
  }
}

module attributes {stable_mosaic.version = 11 : i64} {
  func.func @_conv_bn_relu_pool_kernel(%arg0: i32, %arg1: i32, %arg2: memref<1x512x4xf32, #tpu.memory_space<vmem>>, %arg3: memref<1x512x4xf32, #tpu.memory_space<vmem>>, %arg4: memref<20x128xf32, #tpu.memory_space<vmem>>, %arg5: memref<1x128xf32, #tpu.memory_space<vmem>>, %arg6: memref<1x128xf32, #tpu.memory_space<vmem>>, %arg7: memref<1x256x128xf32, #tpu.memory_space<vmem>>) attributes {dimension_semantics = [#tpu.dimension_semantics<parallel>, #tpu.dimension_semantics<parallel>], iteration_bounds = array<i64: 2, 2>, scalar_prefetch = 0 : i64, scratch_operands = 0 : i64, tpu.core_type = #tpu.core_type<tc>, window_params = [{transform_indices = @transform_0, window_bounds = array<i64: 1, 512, 4>}, {transform_indices = @transform_1, window_bounds = array<i64: 1, 512, 4>}, {pipeline_mode = #tpu.pipeline_mode<synchronous>, transform_indices = @transform_2, window_bounds = array<i64: 20, 128>}, {pipeline_mode = #tpu.pipeline_mode<synchronous>, transform_indices = @transform_3, window_bounds = array<i64: 1, 128>}, {pipeline_mode = #tpu.pipeline_mode<synchronous>, transform_indices = @transform_4, window_bounds = array<i64: 1, 128>}, {transform_indices = @transform_5, window_bounds = array<i64: 1, 256, 128>}]} {
    %c0 = arith.constant 0 : index
    %c0_0 = arith.constant 0 : index
    %c0_1 = arith.constant 0 : index
    %0 = vector.load %arg2[%c0, %c0_0, %c0_1] : memref<1x512x4xf32, #tpu.memory_space<vmem>>, vector<1x512x4xf32>
    %1 = vector.shape_cast %0 : vector<1x512x4xf32> to vector<512x4xf32>
    %c0_2 = arith.constant 0 : index
    %c0_3 = arith.constant 0 : index
    %c0_4 = arith.constant 0 : index
    %2 = vector.load %arg3[%c0_2, %c0_3, %c0_4] : memref<1x512x4xf32, #tpu.memory_space<vmem>>, vector<1x512x4xf32>
    %3 = vector.shape_cast %2 : vector<1x512x4xf32> to vector<512x4xf32>
    %4 = tpu.concatenate %1, %3 in 0 : vector<512x4xf32>, vector<512x4xf32> -> vector<1024x4xf32>
    %c0_5 = arith.constant 0 : index
    %c0_6 = arith.constant 0 : index
    %5 = vector.load %arg4[%c0_5, %c0_6] : memref<20x128xf32, #tpu.memory_space<vmem>>, vector<20x128xf32>
    %cst = arith.constant 0.000000e+00 : f32
    %6 = vector.broadcast %cst : f32 to vector<512x128xf32>
    %7 = vector.extract_strided_slice %4 {offsets = [0, 0], sizes = [512, 4], strides = [1, 1]} : vector<1024x4xf32> to vector<512x4xf32>
    %8 = vector.extract_strided_slice %5 {offsets = [0, 0], sizes = [4, 128], strides = [1, 1]} : vector<20x128xf32> to vector<4x128xf32>
    %cst_7 = arith.constant dense<0.000000e+00> : vector<512x128xf32>
    %9 = tpu.matmul %7, %8, %cst_7 {dimension_numbers = #tpu.dot_dimension_numbers<[1], [0], [0], [1], [0, 0, 1, 1], [], []>} : vector<512x4xf32>, vector<4x128xf32>, vector<512x128xf32> -> vector<512x128xf32>
    %10 = arith.addf %6, %9 : vector<512x128xf32>
    %11 = vector.extract_strided_slice %4 {offsets = [1, 0], sizes = [512, 4], strides = [1, 1]} : vector<1024x4xf32> to vector<512x4xf32>
    %12 = vector.extract_strided_slice %5 {offsets = [4, 0], sizes = [4, 128], strides = [1, 1]} : vector<20x128xf32> to vector<4x128xf32>
    %cst_8 = arith.constant dense<0.000000e+00> : vector<512x128xf32>
    %13 = tpu.matmul %11, %12, %cst_8 {dimension_numbers = #tpu.dot_dimension_numbers<[1], [0], [0], [1], [0, 0, 1, 1], [], []>} : vector<512x4xf32>, vector<4x128xf32>, vector<512x128xf32> -> vector<512x128xf32>
    %14 = arith.addf %10, %13 : vector<512x128xf32>
    %15 = vector.extract_strided_slice %4 {offsets = [2, 0], sizes = [512, 4], strides = [1, 1]} : vector<1024x4xf32> to vector<512x4xf32>
    %16 = vector.extract_strided_slice %5 {offsets = [8, 0], sizes = [4, 128], strides = [1, 1]} : vector<20x128xf32> to vector<4x128xf32>
    %cst_9 = arith.constant dense<0.000000e+00> : vector<512x128xf32>
    %17 = tpu.matmul %15, %16, %cst_9 {dimension_numbers = #tpu.dot_dimension_numbers<[1], [0], [0], [1], [0, 0, 1, 1], [], []>} : vector<512x4xf32>, vector<4x128xf32>, vector<512x128xf32> -> vector<512x128xf32>
    %18 = arith.addf %14, %17 : vector<512x128xf32>
    %19 = vector.extract_strided_slice %4 {offsets = [3, 0], sizes = [512, 4], strides = [1, 1]} : vector<1024x4xf32> to vector<512x4xf32>
    %20 = vector.extract_strided_slice %5 {offsets = [12, 0], sizes = [4, 128], strides = [1, 1]} : vector<20x128xf32> to vector<4x128xf32>
    %cst_10 = arith.constant dense<0.000000e+00> : vector<512x128xf32>
    %21 = tpu.matmul %19, %20, %cst_10 {dimension_numbers = #tpu.dot_dimension_numbers<[1], [0], [0], [1], [0, 0, 1, 1], [], []>} : vector<512x4xf32>, vector<4x128xf32>, vector<512x128xf32> -> vector<512x128xf32>
    %22 = arith.addf %18, %21 : vector<512x128xf32>
    %23 = vector.extract_strided_slice %4 {offsets = [4, 0], sizes = [512, 4], strides = [1, 1]} : vector<1024x4xf32> to vector<512x4xf32>
    %24 = vector.extract_strided_slice %5 {offsets = [16, 0], sizes = [4, 128], strides = [1, 1]} : vector<20x128xf32> to vector<4x128xf32>
    %cst_11 = arith.constant dense<0.000000e+00> : vector<512x128xf32>
    %25 = tpu.matmul %23, %24, %cst_11 {dimension_numbers = #tpu.dot_dimension_numbers<[1], [0], [0], [1], [0, 0, 1, 1], [], []>} : vector<512x4xf32>, vector<4x128xf32>, vector<512x128xf32> -> vector<512x128xf32>
    %26 = arith.addf %22, %25 : vector<512x128xf32>
    %c0_12 = arith.constant 0 : index
    %c0_13 = arith.constant 0 : index
    %27 = vector.load %arg5[%c0_12, %c0_13] : memref<1x128xf32, #tpu.memory_space<vmem>>, vector<1x128xf32>
    %28 = vector.broadcast %27 : vector<1x128xf32> to vector<512x128xf32>
    %29 = arith.mulf %26, %28 : vector<512x128xf32>
    %c0_14 = arith.constant 0 : index
    %c0_15 = arith.constant 0 : index
    %30 = vector.load %arg6[%c0_14, %c0_15] : memref<1x128xf32, #tpu.memory_space<vmem>>, vector<1x128xf32>
    %31 = vector.broadcast %30 : vector<1x128xf32> to vector<512x128xf32>
    %32 = arith.addf %29, %31 : vector<512x128xf32>
    %cst_16 = arith.constant 0.000000e+00 : f32
    %33 = vector.broadcast %cst_16 : f32 to vector<512x128xf32>
    %34 = arith.maximumf %32, %33 : vector<512x128xf32>
    %35 = vector.shape_cast %34 : vector<512x128xf32> to vector<256x2x128xf32>
    %cst_17 = arith.constant dense<0xFF800000> : vector<256x128xf32>
    %36 = vector.multi_reduction <maximumf>, %35, %cst_17 [1] : vector<256x2x128xf32> to vector<256x128xf32>
    %c0_18 = arith.constant 0 : index
    %c0_19 = arith.constant 0 : index
    %c0_20 = arith.constant 0 : index
    %37 = vector.load %arg7[%c0_18, %c0_19, %c0_20] : memref<1x256x128xf32, #tpu.memory_space<vmem>>, vector<1x256x128xf32>
    %38 = vector.shape_cast %37 : vector<1x256x128xf32> to vector<256x128xf32>
    %39 = vector.shape_cast %36 : vector<256x128xf32> to vector<1x256x128xf32>
    tpu.vector_store %arg7[%c0_18, %c0_19, %c0_20], %39 {strides = array<i32>} : memref<1x256x128xf32, #tpu.memory_space<vmem>>, vector<1x256x128xf32>,
    return
  }
  func.func @transform_0(%arg0: i32, %arg1: i32) -> (i32, i32, i32) {
    %c0_i32 = arith.constant 0 : i32
    %c0_i32_0 = arith.constant 0 : i32
    return %arg0, %arg1, %c0_i32 : i32, i32, i32
  }
  func.func @transform_1(%arg0: i32, %arg1: i32) -> (i32, i32, i32) {
    %c1_i32 = arith.constant 1 : i32
    %0 = arith.addi %arg1, %c1_i32 : i32
    %c0_i32 = arith.constant 0 : i32
    %c0_i32_0 = arith.constant 0 : i32
    return %arg0, %0, %c0_i32 : i32, i32, i32
  }
  func.func @transform_2(%arg0: i32, %arg1: i32) -> (i32, i32) {
    %c0_i32 = arith.constant 0 : i32
    %c0_i32_0 = arith.constant 0 : i32
    %c0_i32_1 = arith.constant 0 : i32
    return %c0_i32, %c0_i32_0 : i32, i32
  }
  func.func @transform_3(%arg0: i32, %arg1: i32) -> (i32, i32) {
    %c0_i32 = arith.constant 0 : i32
    %c0_i32_0 = arith.constant 0 : i32
    %c0_i32_1 = arith.constant 0 : i32
    return %c0_i32, %c0_i32_0 : i32, i32
  }
  func.func @transform_4(%arg0: i32, %arg1: i32) -> (i32, i32) {
    %c0_i32 = arith.constant 0 : i32
    %c0_i32_0 = arith.constant 0 : i32
    %c0_i32_1 = arith.constant 0 : i32
    return %c0_i32, %c0_i32_0 : i32, i32
  }
  func.func @transform_5(%arg0: i32, %arg1: i32) -> (i32, i32, i32) {
    %c0_i32 = arith.constant 0 : i32
    %c0_i32_0 = arith.constant 0 : i32
    return %arg0, %arg1, %c0_i32 : i32, i32, i32
  }
}

</mosaic_0001>

<bundles_post_ra>
// kernel: conv_layer_forward.2
= control target key start
LH: loop header
LB: loop body
LE: loop exit
PB: predicated region body
PF: predicated region fallthrough
CT: control target
= control target key end

     0   :  { %s5611_s15 = smov 0   ;;  %s5613_s16 = smov 0   ;;  %s6878_s0 = inlined_call_operand.vmem [shape: f32[2,1536,4], index: 0, kind: input, shape index: {}, may-alias: {0,1}]   ;;  %s6879_s1 = inlined_call_operand.vmem [shape: f32[2,1536,4], index: 1, kind: input, shape index: {}, may-alias: {0,1}]   ;;  %s6880_s2 = inlined_call_operand.vmem [shape: f32[20,128], index: 2, kind: input, shape index: {}]   ;;  %s6881_s3 = inlined_call_operand.vmem [shape: f32[2,2,1,128], index: 3, kind: output, shape index: {0}]   ;;  %s6882_s4 = inlined_call_operand.vmem [shape: f32[2,2,1,128], index: 4, kind: output, shape index: {1}]  }
   0x1   :  { %s5615_s17 = smov 0   ;;  %s5617_s18 = smov 0  }
   0x2   :  { %s5619_s19 = smov 0  }
   0x3 LB: > { %s24_s20 = sadd.s32 1, %s5576_s17  ;;  %s27_s21 = sadd.s32 1, %s5580_s18  ;;  %s5584_s19 = sphi %s5619_s19, %s15_s19   ;;  %s5580_s18 = sphi %s5617_s18, %s6944_s18   ;;  %s5576_s17 = sphi %s5615_s17, %s6943_s17   ;;  %s5572_s16 = sphi %s5613_s16, %s6942_s16   ;;  %s5568_s15 = sphi %s5611_s15, %s6941_s15  }
   0x4   : > { %p25_p0 = scmp.ge.s32.totalorder %s24_s20, 2  ;;  %p4067_p1 = scmp.ge.s32.totalorder %s5584_s19, 1 }
   0x5   : > { %p209_p2 = scmp.lt.s32.totalorder %s5584_s19, 5 }
   0x6   : > { %s6946_s20 = smov (%p25_p0, %s24_s20), 0  ;;  %s6948_s21 = smov (!%p25_p0, %s27_s21), %s5580_s18 }
   0x7   : > { %p210_p3 = pnand %p4067_p1, %p209_p2  ;;  %p29_p4 = scmp.ge.s32.totalorder %s6948_s21, 2 }
   0x9   : > { %s6950_s21 = smov (%p29_p4, %s6948_s21), 0  ;;  %213 = sbr.rel (%p210_p3) target bundleno = 579 (0x243), region = 32 }
  0x10   : > { %v359_v0 = vld [vmem:[%s6880_s2] sm:$0xff]  ;;  %vm688_vm0 = vcmask 1043456   ;;  %v5649_v1 = vld [vmem:[%s6880_s2 + $0x8] sm:$0xff]  ;;  %s4068_s26 = sshll.u32 %s5568_s15, 6  ;;  %p259_p5 = scmp.lt.s32.totalorder %s5572_s16, 1  ;;  %vm427_vm1 = vcmask 1046528  }
  0x11   : > { %v558_v2 = vrot.slane %v359_v0, 4  ;;  %4924 = vmatprep.subr.msk.mxu0 %vm688_vm0, %v5649_v1  ;;  %p261_p6 = scmp.lt.s32.totalorder %s4068_s26, 191  ;;  %v2431_v3 = vrot.slane %v5649_v1, 4  ;;  %s4402_s27 = sadd.s32 64, %s4068_s26  ;;  %vm559_vm2 = vcmask 31744   ;;  %vm1591_vm3 = vcmask 1045504  }
  0x12   : > { %4925 = vmatpush3.msk.msra.mxu0 %vm688_vm0, %v5649_v1  ;;  %s6952_s16 = smov (!%p259_p5, %s5572_s16), 1  ;;  %p272_p7 = scmp.lt.s32.totalorder %s4402_s27, 191  ;;  %v5720_v30 = vld [vmem:[%s6880_s2 + $0x10] sm:$0xf]  ;;  %vm2301_vm4 = vcmask 1044480  }
  0x13   : > { %4728 = vmatprep.subr.msk.mxu1 %vm688_vm0, %v558_v2  ;;  %s6954_s26 = smov (!%p261_p6, %s4068_s26), 191  ;;  %5022 = vmatprep.subr.msk.mxu0 %vm688_vm0, %v2431_v3  ;;  %s5476_s28 = smul.u32 192, %s6952_s16 }
  0x14   : > { %4729 = vmatpush3.msk.msra.mxu1 %vm688_vm0, %v558_v2  ;;  %s6956_s27 = smov (!%p272_p7, %s4402_s27), 191  ;;  %p282_p8 = scmp.lt.s32.totalorder %s5568_s15, 1 }
  0x15   : > { %4826 = vmatprep.subr.msk.mxu1 %vm688_vm0, %v359_v0  ;;  %s264_s29 = sadd.s32 %s5476_s28, %s6954_s26  ;;  %s5695_s8 = sadd.s32 %s5476_s28, %s6956_s27 }
  0x16   : > { %s4069_s30 = sshll.u32 %s264_s29, 3  ;;  %s4071_s11 = sshll.u32 %s5695_s8, 3 }
  0x17   : > { %s5667_s7 = scalar_lea.vmem %s6878_s0, %s4069_s30  ;;  %s277_s14 = scalar_lea.vmem %s6879_s1, %s4071_s11 }
  0x18   : > { %v5670_v4 = vld [vmem:[%s5667_s7] sm:$0xff]  ;;  %v5673_v5 = vld [vmem:[%s5667_s7 + $0x8] sm:$0xff]  ;;  %v5676_v6 = vld [vmem:[%s5667_s7 + $0x10] sm:$0xff]  ;;  %s6958_s15 = smov (!%p282_p8, %s5568_s15), 1  ;;  %s4072_s22 = sshll.u32 %s6952_s16, 1 }
  0x19   : > { %v428_v7 = vrot.slane %v5670_v4, 1  ;;  %v429_v8 = vrot.slane %v5673_v5, 1  ;;  %v1592_v9 = vrot.slane %v5670_v4, 2  ;;  %v1593_v10 = vrot.slane %v5673_v5, 2  ;;  %v5683_v11 = vld [vmem:[%s5667_s7 + $0x18] sm:$0xff]  ;;  %v5686_v12 = vld [vmem:[%s5667_s7 + $0x20] sm:$0xff]  ;;  %s285_s23 = sadd.s32 %s4072_s22, %s6958_s15 }
  0x1a   : > { %v431_v13 = vrot.slane %v5676_v6, 1  ;;  %v1595_v14 = vrot.slane %v5676_v6, 2  ;;  %v433_v15 = vrot.slane %v5683_v11, 1  ;;  %v1597_v16 = vrot.slane %v5683_v11, 2  ;;  %v5693_v17 = vld [vmem:[%s5667_s7 + $0x28] sm:$0xff]  ;;  %v5702_v22 = vld [vmem:[%s5667_s7 + $0x30] sm:$0xff]  ;;  %s286_s26 = scalar_lea.vmem %s6881_s3, %s285_s23  ;;  %s293_s29 = scalar_lea.vmem %s6882_s4, %s285_s23 }
  0x1b   : > { %v430_v18 = vsel %vm427_vm1, %v428_v7, %v429_v8  ;;  %v1594_v19 = vsel %vm1591_vm3, %v1592_v9, %v1593_v10  ;;  %v435_v20 = vrot.slane %v5686_v12, 1  ;;  %v1599_v21 = vrot.slane %v5686_v12, 2  ;;  %v5711_v27 = vld [vmem:[%s5667_s7 + $0x38] sm:$0xff]  ;;  %v5735_v39 = vld [vmem:[%s5667_s7 + $0x40] sm:$0xff]  ;;  %v5738_v40 = vld [vmem:[%s5667_s7 + $0x48] sm:$0xff] }
  0x1c   : > { %4730 = vmatprep.mubr.msk.f32.mxu1 %vm559_vm2, %v430_v18  ;;  %4926 = vmatprep.mubr.msk.f32.mxu0 %vm559_vm2, %v1594_v19  ;;  %v432_v23 = vsel %vm427_vm1, %v429_v8, %v431_v13  ;;  %v1596_v24 = vsel %vm1591_vm3, %v1593_v10, %v1595_v14  ;;  %v434_v25 = vsel %vm427_vm1, %v431_v13, %v433_v15  ;;  %v437_v26 = vrot.slane %v5693_v17, 1  ;;  %v5757_v49 = vld [vmem:[%s5667_s7 + $0x50] sm:$0xff]  ;;  %v5760_v50 = vld [vmem:[%s5667_s7 + $0x58] sm:$0xff]  ;;  %v5775_v59 = vld [vmem:[%s5667_s7 + $0x60] sm:$0xff] }
  0x1d   : > { %4731 = vmatmul.mubr.msk.f32.vlgmr.msra.gmra.mrb[0].mxu1 %vm559_vm2, %v432_v23  ;;  %4927 = vmatmul.mubr.msk.f32.vlgmr.msra.gmra.mrb[0].mxu0 %vm559_vm2, %v1596_v24  ;;  %v1598_v28 = vsel %vm1591_vm3, %v1595_v14, %v1597_v16  ;;  %v1601_v29 = vrot.slane %v5693_v17, 2  ;;  %v436_v31 = vsel %vm427_vm1, %v433_v15, %v435_v20  ;;  %v1600_v32 = vsel %vm1591_vm3, %v1597_v16, %v1599_v21  ;;  %v5778_v60 = vld [vmem:[%s5667_s7 + $0x68] sm:$0xff]  ;;  %v5793_v9 = vld [vmem:[%s5667_s7 + $0x70] sm:$0xff]  ;;  %v5796_v10 = vld [vmem:[%s5667_s7 + $0x78] sm:$0xff] }
  0x1e   : > { %4827 = vmatpush3.msk.msra.mxu1 %vm688_vm0, %v359_v0  ;;  %5023 = vmatpush3.msk.msra.mxu0 %vm688_vm0, %v2431_v3  ;;  %v439_v33 = vrot.slane %v5702_v22, 1  ;;  %v1603_v34 = vrot.slane %v5702_v22, 2  ;;  %v438_v35 = vsel %vm427_vm1, %v435_v20, %v437_v26  ;;  %v441_v37 = vrot.slane %v5711_v27, 1  ;;  %6904 = vst [vmem:[#allocation2_spill] sm:$0xff] %v5778_v60  ;;  %6905 = vst [vmem:[#allocation3_spill] sm:$0xff] %v5793_v9  ;;  %v5811_v23 = vld [vmem:[%s5667_s7 + $0x80] sm:$0xff] }
  0x1f   : > { %4733 = vmatprep.mubr.msk.f32.mxu1 %vm559_vm2, %v434_v25  ;;  %4929 = vmatprep.mubr.msk.f32.mxu0 %vm559_vm2, %v1598_v28  ;;  %v1602_v36 = vsel %vm1591_vm3, %v1599_v21, %v1601_v29  ;;  %v1605_v38 = vrot.slane %v5711_v27, 2  ;;  %v443_v43 = vrot.slane %v5735_v39, 1  ;;  %v1607_v44 = vrot.slane %v5735_v39, 2  ;;  %6906 = vst [vmem:[#allocation4_spill] sm:$0xff] %v5796_v10  ;;  %6907 = vst [vmem:[#allocation5_spill] sm:$0xff] %v5811_v23  ;;  %v5814_v24 = vld [vmem:[%s5667_s7 + $0x88] sm:$0xff] }
  0x20   : > { %5120 = vmatprep.subr.msk.mxu0 %vm688_vm0, %v5720_v30  ;;  %5218 = vmatprep.subr.msk.mxu1 %vm688_vm0, %v5649_v1  ;;  %v440_v41 = vsel %vm427_vm1, %v437_v26, %v439_v33  ;;  %v1604_v42 = vsel %vm1591_vm3, %v1601_v29, %v1603_v34  ;;  %v442_v45 = vsel %vm427_vm1, %v439_v33, %v441_v37  ;;  %v445_v47 = vrot.slane %v5738_v40, 1 }
  0x21   : > { %4734 = vmatmul.mubr.msk.f32.gmra.mrb[2].mxu1 %vm559_vm2, %v436_v31  ;;  %4930 = vmatmul.mubr.msk.f32.gmra.mrb[2].mxu0 %vm559_vm2, %v1600_v32  ;;  %v1606_v46 = vsel %vm1591_vm3, %v1603_v34, %v1605_v38  ;;  %v1609_v48 = vrot.slane %v5738_v40, 2  ;;  %v444_v51 = vsel %vm427_vm1, %v441_v37, %v443_v43  ;;  %v1608_v52 = vsel %vm1591_vm3, %v1605_v38, %v1607_v44 }
  0x22   : > { %4736 = vmatprep.mubr.msk.f32.mxu1 %vm559_vm2, %v438_v35  ;;  %4932 = vmatprep.mubr.msk.f32.mxu0 %vm559_vm2, %v1602_v36  ;;  %v447_v53 = vrot.slane %v5757_v49, 1  ;;  %v1611_v54 = vrot.slane %v5757_v49, 2  ;;  %v446_v55 = vsel %vm427_vm1, %v443_v43, %v445_v47  ;;  %v449_v57 = vrot.slane %v5760_v50, 1  ;;  %6908 = vst [vmem:[#allocation6_spill] sm:$0xff] %v5814_v24  ;;  %v5829_v35 = vld [vmem:[%s5667_s7 + $0x90] sm:$0xff]  ;;  %v5832_v36 = vld [vmem:[%s5667_s7 + $0x98] sm:$0xff] }
  0x23   : > { %v1610_v56 = vsel %vm1591_vm3, %v1607_v44, %v1609_v48  ;;  %v1613_v58 = vrot.slane %v5760_v50, 2  ;;  %v451_v63 = vrot.slane %v5775_v59, 1  ;;  %v1615_v0 = vrot.slane %v5775_v59, 2  ;;  %6909 = vst [vmem:[#allocation7_spill] sm:$0xff] %v5829_v35  ;;  %6910 = vst [vmem:[#allocation8_spill] sm:$0xff] %v5832_v36 }
  0x24   : > { %v448_v61 = vsel %vm427_vm1, %v445_v47, %v447_v53  ;;  %v1612_v62 = vsel %vm1591_vm3, %v1609_v48, %v1611_v54  ;;  %v450_v2 = vsel %vm427_vm1, %v447_v53, %v449_v57  ;;  %v453_v7 = vrot.slane %v5778_v60, 1  ;;  %v5847_v47 = vld [vmem:[%s5667_s7 + $0xa0] sm:$0xff]  ;;  %v5850_v48 = vld [vmem:[%s5667_s7 + $0xa8] sm:$0xff] }
  0x25   : > { %4737 = vmatmul.mubr.msk.f32.gmra.mrb[4].mxu1 %vm559_vm2, %v440_v41  ;;  %4933 = vmatmul.mubr.msk.f32.gmra.mrb[4].mxu0 %vm559_vm2, %v1604_v42  ;;  %v1614_v3 = vsel %vm1591_vm3, %v1611_v54, %v1613_v58  ;;  %v1617_v8 = vrot.slane %v5778_v60, 2  ;;  %v452_v13 = vsel %vm427_vm1, %v449_v57, %v451_v63  ;;  %v1616_v14 = vsel %vm1591_vm3, %v1613_v58, %v1615_v0 }
  0x26   : > { %4739 = vmatprep.mubr.msk.f32.mxu1 %vm559_vm2, %v442_v45  ;;  %4935 = vmatprep.mubr.msk.f32.mxu0 %vm559_vm2, %v1606_v46  ;;  %v455_v15 = vrot.slane %v5793_v9, 1  ;;  %v1619_v16 = vrot.slane %v5793_v9, 2  ;;  %v454_v18 = vsel %vm427_vm1, %v451_v63, %v453_v7  ;;  %v457_v20 = vrot.slane %v5796_v10, 1  ;;  %6911 = vst [vmem:[#allocation9_spill] sm:$0xff] %v5847_v47  ;;  %6912 = vst [vmem:[#allocation10_spill] sm:$0xff] %v5850_v48 }
  0x27   : > { %v1618_v19 = vsel %vm1591_vm3, %v1615_v0, %v1617_v8  ;;  %v1621_v21 = vrot.slane %v5796_v10, 2  ;;  %v459_v28 = vrot.slane %v5811_v23, 1  ;;  %v1623_v29 = vrot.slane %v5811_v23, 2 }
  0x28   : > { %v456_v25 = vsel %vm427_vm1, %v453_v7, %v455_v15  ;;  %v1620_v26 = vsel %vm1591_vm3, %v1617_v8, %v1619_v16  ;;  %v458_v31 = vsel %vm427_vm1, %v455_v15, %v457_v20  ;;  %v461_v33 = vrot.slane %v5814_v24, 1  ;;  %v5883_v15 = vld [vmem:[%s5667_s7 + $0xc0] sm:$0xff] }
  0x29   : > { %4740 = vmatmul.mubr.msk.f32.gmra.mrb[6].mxu1 %vm559_vm2, %v444_v51  ;;  %4936 = vmatmul.mubr.msk.f32.gmra.mrb[6].mxu0 %vm559_vm2, %v1608_v52  ;;  %v1622_v32 = vsel %vm1591_vm3, %v1619_v16, %v1621_v21  ;;  %v1625_v34 = vrot.slane %v5814_v24, 2  ;;  %v460_v37 = vsel %vm427_vm1, %v457_v20, %v459_v28  ;;  %v1624_v38 = vsel %vm1591_vm3, %v1621_v21, %v1623_v29  ;;  %v5886_v16 = vld [vmem:[%s5667_s7 + $0xc8] sm:$0xff] }
  0x2a   : > { %4742 = vmatprep.mubr.msk.f32.mxu1 %vm559_vm2, %v446_v55  ;;  %4938 = vmatprep.mubr.msk.f32.mxu0 %vm559_vm2, %v1610_v56  ;;  %v463_v41 = vrot.slane %v5829_v35, 1  ;;  %v1627_v42 = vrot.slane %v5829_v35, 2  ;;  %v462_v43 = vsel %vm427_vm1, %v459_v28, %v461_v33  ;;  %v465_v45 = vrot.slane %v5832_v36, 1  ;;  %6915 = vst [vmem:[#allocation13_spill] sm:$0xff] %v5883_v15  ;;  %6916 = vst [vmem:[#allocation14_spill] sm:$0xff] %v5886_v16 }
  0x2b   : > { %v1626_v44 = vsel %vm1591_vm3, %v1623_v29, %v1625_v34  ;;  %v1629_v46 = vrot.slane %v5832_v36, 2  ;;  %v467_v53 = vrot.slane %v5847_v47, 1  ;;  %v1631_v54 = vrot.slane %v5847_v47, 2 }
  0x2c   : > { %v464_v51 = vsel %vm427_vm1, %v461_v33, %v463_v41  ;;  %v1628_v52 = vsel %vm1591_vm3, %v1625_v34, %v1627_v42  ;;  %v466_v55 = vsel %vm427_vm1, %v463_v41, %v465_v45  ;;  %v469_v57 = vrot.slane %v5850_v48, 1  ;;  %v5915_v41 = vld [vmem:[%s5667_s7 + $0xe0] sm:$0xff] }
  0x2d   : > { %4743 = vmatmul.mubr.msk.f32.gmra.mrb[8].mxu1 %vm559_vm2, %v448_v61  ;;  %4939 = vmatmul.mubr.msk.f32.gmra.mrb[8].mxu0 %vm559_vm2, %v1612_v62  ;;  %v1630_v56 = vsel %vm1591_vm3, %v1627_v42, %v1629_v46  ;;  %v1633_v58 = vrot.slane %v5850_v48, 2  ;;  %v5865_v61 = vld [vmem:[%s5667_s7 + $0xb0] sm:$0xff]  ;;  %v5868_v62 = vld [vmem:[%s5667_s7 + $0xb8] sm:$0xff]  ;;  %v468_v63 = vsel %vm427_vm1, %v465_v45, %v467_v53  ;;  %v1632_v0 = vsel %vm1591_vm3, %v1629_v46, %v1631_v54  ;;  %v5922_v46 = vld [vmem:[%s5667_s7 + $0xe8] sm:$0xff] }
  0x2e   : > { %4745 = vmatprep.mubr.msk.f32.mxu1 %vm559_vm2, %v450_v2  ;;  %4941 = vmatprep.mubr.msk.f32.mxu0 %vm559_vm2, %v1614_v3  ;;  %6913 = vst [vmem:[#allocation11_spill] sm:$0xff] %v5865_v61  ;;  %6914 = vst [vmem:[#allocation12_spill] sm:$0xff] %v5868_v62  ;;  %v471_v2 = vrot.slane %v5865_v61, 1  ;;  %v1635_v3 = vrot.slane %v5865_v61, 2  ;;  %v470_v7 = vsel %vm427_vm1, %v467_v53, %v469_v57  ;;  %v475_v20 = vrot.slane %v5883_v15, 1 }
  0x2f   : > { %v1634_v8 = vsel %vm1591_vm3, %v1631_v54, %v1633_v58  ;;  %v1639_v21 = vrot.slane %v5883_v15, 2  ;;  %v477_v28 = vrot.slane %v5886_v16, 1  ;;  %v1641_v29 = vrot.slane %v5886_v16, 2  ;;  %6919 = vst [vmem:[#allocation17_spill] sm:$0xff] %v5915_v41  ;;  %6920 = vst [vmem:[#allocation18_spill] sm:$0xff] %v5922_v46 }
  0x30   : > { %v1647_v54 = vrot.slane %v5915_v41, 2 }
  0x31   : > { %4746 = vmatmul.mubr.msk.f32.gmra.mrb[10].mxu1 %vm559_vm2, %v452_v13  ;;  %4942 = vmatmul.mubr.msk.f32.gmra.mrb[10].mxu0 %vm559_vm2, %v1616_v14  ;;  %v473_v13 = vrot.slane %v5868_v62, 1  ;;  %v1637_v14 = vrot.slane %v5868_v62, 2  ;;  %v478_v42 = vsel %vm427_vm1, %v475_v20, %v477_v28 }
  0x32   : > { %4748 = vmatprep.mubr.msk.f32.mxu1 %vm559_vm2, %v454_v18  ;;  %4944 = vmatprep.mubr.msk.f32.mxu0 %vm559_vm2, %v1618_v19  ;;  %v472_v18 = vsel %vm427_vm1, %v469_v57, %v471_v2  ;;  %v1636_v19 = vsel %vm1591_vm3, %v1633_v58, %v1635_v3  ;;  %v485_v57 = vrot.slane %v5922_v46, 1  ;;  %v1649_v58 = vrot.slane %v5922_v46, 2 }
  0x33   : > { %v476_v33 = vsel %vm427_vm1, %v473_v13, %v475_v20  ;;  %v1640_v34 = vsel %vm1591_vm3, %v1637_v14, %v1639_v21 }
  0x35   : > { %4749 = vmatmul.mubr.msk.f32.gmra.mrb[12].mxu1 %vm559_vm2, %v456_v25  ;;  %4945 = vmatmul.mubr.msk.f32.gmra.mrb[12].mxu0 %vm559_vm2, %v1620_v26  ;;  %v474_v25 = vsel %vm427_vm1, %v471_v2, %v473_v13  ;;  %v1638_v26 = vsel %vm1591_vm3, %v1635_v3, %v1637_v14  ;;  %v5952_v14 = vld [vmem:[%s5667_s7 + $0x100] sm:$0xff] }
  0x36   : > { %4751 = vmatprep.mubr.msk.f32.mxu1 %vm559_vm2, %v458_v31  ;;  %4947 = vmatprep.mubr.msk.f32.mxu0 %vm559_vm2, %v1622_v32  ;;  %v5901_v31 = vld [vmem:[%s5667_s7 + $0xd0] sm:$0xff]  ;;  %v5904_v32 = vld [vmem:[%s5667_s7 + $0xd8] sm:$0xff] }
  0x37   : > { %6917 = vst [vmem:[#allocation15_spill] sm:$0xff] %v5901_v31  ;;  %6918 = vst [vmem:[#allocation16_spill] sm:$0xff] %v5904_v32  ;;  %v1645_v45 = vrot.slane %v5904_v32, 2 }
  0x39   : > { %4752 = vmatmul.mubr.msk.f32.gmra.mrb[14].mxu1 %vm559_vm2, %v460_v37  ;;  %4948 = vmatmul.mubr.msk.f32.gmra.mrb[14].mxu0 %vm559_vm2, %v1624_v38  ;;  %v479_v37 = vrot.slane %v5901_v31, 1  ;;  %v1643_v38 = vrot.slane %v5901_v31, 2  ;;  %v1648_v3 = vsel %vm1591_vm3, %v1645_v45, %v1647_v54 }
  0x3a   : > { %4754 = vmatprep.mubr.msk.f32.mxu1 %vm559_vm2, %v462_v43  ;;  %4950 = vmatprep.mubr.msk.f32.mxu0 %vm559_vm2, %v1626_v44  ;;  %v1642_v43 = vsel %vm1591_vm3, %v1639_v21, %v1641_v29  ;;  %v481_v44 = vrot.slane %v5904_v32, 1  ;;  %v5958_v21 = vld [vmem:[%s5667_s7 + $0x108] sm:$0xff] }
  0x3b   : > { %v1644_v53 = vsel %vm1591_vm3, %v1641_v29, %v1643_v38 }
  0x3d   : > { %4755 = vmatmul.mubr.msk.f32.gmra.mrb[16].mxu1 %vm559_vm2, %v464_v51  ;;  %4951 = vmatmul.mubr.msk.f32.gmra.mrb[16].mxu0 %vm559_vm2, %v1628_v52  ;;  %v483_v51 = vrot.slane %v5915_v41, 1  ;;  %v480_v52 = vsel %vm427_vm1, %v477_v28, %v479_v37 }
  0x3e   : > { %4757 = vmatprep.mubr.msk.f32.mxu1 %vm559_vm2, %v466_v55  ;;  %4953 = vmatprep.mubr.msk.f32.mxu0 %vm559_vm2, %v1630_v56  ;;  %v482_v55 = vsel %vm427_vm1, %v479_v37, %v481_v44  ;;  %v1646_v56 = vsel %vm1591_vm3, %v1643_v38, %v1645_v45  ;;  %v493_v37 = vrot.slane %v5958_v21, 1  ;;  %v2302_v38 = vrot.slane %v5670_v4, 3 }
  0x3f   : > { %v484_v2 = vsel %vm427_vm1, %v481_v44, %v483_v51  ;;  %v5977_v44 = vld [vmem:[%s5667_s7 + $0x118] sm:$0xff] }
  0x41   : > { %4758 = vmatmul.mubr.msk.f32.gmra.mrb[18].mxu1 %vm559_vm2, %v468_v63  ;;  %4954 = vmatmul.mubr.msk.f32.gmra.mrb[18].mxu0 %vm559_vm2, %v1632_v0  ;;  %v5937_v63 = vld [vmem:[%s5667_s7 + $0xf0] sm:$0xff]  ;;  %v5940_v0 = vld [vmem:[%s5667_s7 + $0xf8] sm:$0xff] }
  0x42   : > { %4760 = vmatprep.mubr.msk.f32.mxu1 %vm559_vm2, %v470_v7  ;;  %4956 = vmatprep.mubr.msk.f32.mxu0 %vm559_vm2, %v1634_v8  ;;  %v487_v7 = vrot.slane %v5937_v63, 1  ;;  %v1651_v8 = vrot.slane %v5937_v63, 2  ;;  %v489_v13 = vrot.slane %v5940_v0, 1  ;;  %v1653_v20 = vrot.slane %v5940_v0, 2 }
  0x44   : > { %v1652_v28 = vsel %vm1591_vm3, %v1649_v58, %v1651_v8  ;;  %v490_v29 = vsel %vm427_vm1, %v487_v7, %v489_v13 }
  0x45   : > { %4761 = vmatmul.mubr.msk.f32.gmra.mrb[20].mxu1 %vm559_vm2, %v472_v18  ;;  %4957 = vmatmul.mubr.msk.f32.gmra.mrb[20].mxu0 %vm559_vm2, %v1636_v19  ;;  %v486_v18 = vsel %vm427_vm1, %v483_v51, %v485_v57  ;;  %v1650_v19 = vsel %vm1591_vm3, %v1647_v54, %v1649_v58  ;;  %v2307_v58 = vrot.slane %v5683_v11, 3 }
  0x46   : > { %4763 = vmatprep.mubr.msk.f32.mxu1 %vm559_vm2, %v474_v25  ;;  %4959 = vmatprep.mubr.msk.f32.mxu0 %vm559_vm2, %v1638_v26  ;;  %v491_v25 = vrot.slane %v5952_v14, 1  ;;  %v488_v26 = vsel %vm427_vm1, %v485_v57, %v487_v7  ;;  %v5993_v57 = vld [vmem:[%s5667_s7 + $0x120] sm:$0xff] }
  0x48   : > { %v492_v45 = vsel %vm427_vm1, %v489_v13, %v491_v25  ;;  %v494_v54 = vsel %vm427_vm1, %v491_v25, %v493_v37  ;;  %v2309_v13 = vrot.slane %v5686_v12, 3  ;;  %v6011_v25 = vld [vmem:[%s5667_s7 + $0x130] sm:$0xff] }
  0x49   : > { %4764 = vmatmul.mubr.msk.f32.gmra.mrb[22].mxu1 %vm559_vm2, %v476_v33  ;;  %4960 = vmatmul.mubr.msk.f32.gmra.mrb[22].mxu0 %vm559_vm2, %v1640_v34  ;;  %v6883_v33 = vrot.slane %v5952_v14, 2  ;;  %v1654_v34 = vsel %vm1591_vm3, %v1651_v8, %v1653_v20  ;;  %v499_v8 = vrot.slane %v5993_v57, 1 }
  0x4a   : > { %4766 = vmatprep.mubr.msk.f32.mxu1 %vm559_vm2, %v478_v42  ;;  %4962 = vmatprep.mubr.msk.f32.mxu0 %vm559_vm2, %v1642_v43  ;;  %v2303_v42 = vrot.slane %v5673_v5, 3  ;;  %v5974_v43 = vld [vmem:[%s5667_s7 + $0x110] sm:$0xff] }
  0x4b   : > { %v1656_v51 = vsel %vm1591_vm3, %v1653_v20, %v6883_v33  ;;  %v2311_v20 = vrot.slane %v5693_v17, 3 }
  0x4d   : > { %4767 = vmatmul.mubr.msk.f32.gmra.mrb[24].mxu1 %vm559_vm2, %v480_v52  ;;  %4963 = vmatmul.mubr.msk.f32.gmra.mrb[24].mxu0 %vm559_vm2, %v1644_v53  ;;  %v495_v52 = vrot.slane %v5974_v43, 1  ;;  %v2305_v53 = vrot.slane %v5676_v6, 3 }
  0x4e   : > { %4769 = vmatprep.mubr.msk.f32.mxu1 %vm559_vm2, %v482_v55  ;;  %4965 = vmatprep.mubr.msk.f32.mxu0 %vm559_vm2, %v1646_v56  ;;  %v2304_v55 = vsel %vm2301_vm4, %v2302_v38, %v2303_v42  ;;  %v497_v56 = vrot.slane %v5977_v44, 1  ;;  %v2313_v38 = vrot.slane %v5702_v22, 3 }
  0x4f   : > { %v2306_v7 = vsel %vm2301_vm4, %v2303_v42, %v2305_v53 }
  0x51   : > { %4770 = vmatmul.mubr.msk.f32.gmra.mrb[26].mxu1 %vm559_vm2, %v484_v2  ;;  %4966 = vmatmul.mubr.msk.f32.gmra.mrb[26].mxu0 %vm559_vm2, %v1648_v3  ;;  %v5997_v2 = vld [vmem:[%s5667_s7 + $0x128] sm:$0xff]  ;;  %v496_v3 = vsel %vm427_vm1, %v493_v37, %v495_v52  ;;  %v503_v37 = vrot.slane %v6011_v25, 1 }
  0x52   : > { %4772 = vmatprep.mubr.msk.f32.mxu1 %vm559_vm2, %v486_v18  ;;  %4968 = vmatprep.mubr.msk.f32.mxu0 %vm559_vm2, %v1650_v19  ;;  %v498_v18 = vsel %vm427_vm1, %v495_v52, %v497_v56  ;;  %v501_v19 = vrot.slane %v5997_v2, 1  ;;  %v6032_v52 = vld [vmem:[%s5667_s7 + $0x140] sm:$0xff] }
  0x54   : > { %v502_v42 = vsel %vm427_vm1, %v499_v8, %v501_v19 }
  0x55   : > { %4773 = vmatmul.mubr.msk.f32.gmra.mrb[28].mxu1 %vm559_vm2, %v488_v26  ;;  %4969 = vmatmul.mubr.msk.f32.gmra.mrb[28].mxu0 %vm559_vm2, %v1652_v28  ;;  %v2308_v26 = vsel %vm2301_vm4, %v2305_v53, %v2307_v58  ;;  %v6015_v28 = vld [vmem:[%s5667_s7 + $0x138] sm:$0xff]  ;;  %v6035_v53 = vld [vmem:[%s5667_s7 + $0x148] sm:$0xff] }
  0x56   : > { %4775 = vmatprep.mubr.msk.f32.mxu1 %vm559_vm2, %v490_v29  ;;  %4971 = vmatprep.mubr.msk.f32.mxu0 %vm559_vm2, %v1654_v34  ;;  %v500_v29 = vsel %vm427_vm1, %v497_v56, %v499_v8  ;;  %v2310_v34 = vsel %vm2301_vm4, %v2307_v58, %v2309_v13  ;;  %v507_v56 = vrot.slane %v6032_v52, 1  ;;  %v2317_v58 = vrot.slane %v5735_v39, 3 }
  0x57   : > { %v509_v8 = vrot.slane %v6035_v53, 1 }
  0x59   : > { %4776 = vmatmul.mubr.msk.f32.gmra.mrb[30].mxu1 %vm559_vm2, %v492_v45  ;;  %4972 = vmatmul.mubr.msk.f32.gmra.mrb[30].mxu0 %vm559_vm2, %v1656_v51  ;;  %v2312_v45 = vsel %vm2301_vm4, %v2309_v13, %v2311_v20  ;;  %v505_v51 = vrot.slane %v6015_v28, 1  ;;  %v2319_v13 = vrot.slane %v5738_v40, 3 }
  0x5a   : > { %4778 = vmatprep.mubr.msk.f32.mxu1 %vm559_vm2, %v494_v54  ;;  %5024 = vmatprep.mubr.msk.f32.mxu0 %vm559_vm2, %v2304_v55  ;;  %v504_v54 = vsel %vm427_vm1, %v501_v19, %v503_v37  ;;  %v2314_v55 = vsel %vm2301_vm4, %v2311_v20, %v2313_v38 }
  0x5b   : > { %v508_v19 = vsel %vm427_vm1, %v505_v51, %v507_v56 }
  0x5d   : > { %4779 = vmatmul.mubr.msk.f32.gmra.mrb[32].mxu1 %vm559_vm2, %v496_v3  ;;  %5025 = vmatmul.mubr.msk.f32.vlgmr.msra.gmra.mrb[0].mxu0 %vm559_vm2, %v2306_v7  ;;  %v506_v3 = vsel %vm427_vm1, %v503_v37, %v505_v51  ;;  %v510_v37 = vsel %vm427_vm1, %v507_v56, %v509_v8 }
  0x5e   : > { %5121 = vmatpush3.msk.msra.mxu0 %vm688_vm0, %v5720_v30  ;;  %4781 = vmatprep.mubr.msk.f32.mxu1 %vm559_vm2, %v498_v18  ;;  %v2315_v30 = vrot.slane %v5711_v27, 3  ;;  %v6050_v18 = vld [vmem:[%s5667_s7 + $0x150] sm:$0xff] }
  0x5f   : > { %5027 = vmatprep.mubr.msk.f32.mxu0 %vm559_vm2, %v2308_v26  ;;  %v6053_v26 = vld [vmem:[%s5667_s7 + $0x158] sm:$0xff] }
  0x60   : > { %v2316_v7 = vsel %vm2301_vm4, %v2313_v38, %v2315_v30  ;;  %v2318_v20 = vsel %vm2301_vm4, %v2315_v30, %v2317_v58  ;;  %v2320_v38 = vsel %vm2301_vm4, %v2317_v58, %v2319_v13  ;;  %v2325_v58 = vrot.slane %v5775_v59, 3 }
  0x61   : > { %4782 = vmatmul.mubr.msk.f32.gmra.mrb[34].mxu1 %vm559_vm2, %v500_v29  ;;  %5028 = vmatmul.mubr.msk.f32.gmra.mrb[2].mxu0 %vm559_vm2, %v2310_v34  ;;  %v511_v29 = vrot.slane %v6050_v18, 1  ;;  %v2321_v34 = vrot.slane %v5757_v49, 3 }
  0x62   : > { %4784 = vmatprep.mubr.msk.f32.mxu1 %vm559_vm2, %v502_v42  ;;  %5030 = vmatprep.mubr.msk.f32.mxu0 %vm559_vm2, %v2312_v45  ;;  %v513_v42 = vrot.slane %v6053_v26, 1  ;;  %v2323_v45 = vrot.slane %v5760_v50, 3 }
  0x63   : > { %v512_v51 = vsel %vm427_vm1, %v509_v8, %v511_v29  ;;  %v2322_v30 = vsel %vm2301_vm4, %v2319_v13, %v2321_v34 }
  0x64   : > { %v2326_v13 = vsel %vm2301_vm4, %v2323_v45, %v2325_v58 }
  0x65   : > { %4785 = vmatmul.mubr.msk.f32.gmra.mrb[36].mxu1 %vm559_vm2, %v504_v54  ;;  %5031 = vmatmul.mubr.msk.f32.gmra.mrb[4].mxu0 %vm559_vm2, %v2314_v55  ;;  %v6068_v54 = vld [vmem:[%s5667_s7 + $0x160] sm:$0xff]  ;;  %v6071_v55 = vld [vmem:[%s5667_s7 + $0x168] sm:$0xff] }
  0x66   : > { %4787 = vmatprep.mubr.msk.f32.mxu1 %vm559_vm2, %v506_v3  ;;  %5033 = vmatprep.mubr.msk.f32.mxu0 %vm559_vm2, %v2316_v7  ;;  %v515_v56 = vrot.slane %v6068_v54, 1  ;;  %v514_v3 = vsel %vm427_vm1, %v511_v29, %v513_v42  ;;  %v2324_v7 = vsel %vm2301_vm4, %v2321_v34, %v2323_v45  ;;  %v2329_v34 = vrot.slane %v5793_v9, 3 }
  0x68   : > { %v516_v8 = vsel %vm427_vm1, %v513_v42, %v515_v56 }
  0x69   : > { %4788 = vmatmul.mubr.msk.f32.gmra.mrb[38].mxu1 %vm559_vm2, %v508_v19  ;;  %5034 = vmatmul.mubr.msk.f32.gmra.mrb[6].mxu0 %vm559_vm2, %v2318_v20  ;;  %v517_v19 = vrot.slane %v6071_v55, 1  ;;  %v2327_v20 = vrot.slane %v5778_v60, 3 }
  0x6a   : > { %4790 = vmatprep.mubr.msk.f32.mxu1 %vm559_vm2, %v510_v37  ;;  %5036 = vmatprep.mubr.msk.f32.mxu0 %vm559_vm2, %v2320_v38  ;;  %v6086_v37 = vld [vmem:[%s5667_s7 + $0x170] sm:$0xff]  ;;  %v6089_v38 = vld [vmem:[%s5667_s7 + $0x178] sm:$0xff] }
  0x6b   : > { %v519_v29 = vrot.slane %v6086_v37, 1  ;;  %v518_v33 = vsel %vm427_vm1, %v515_v56, %v517_v19  ;;  %v2328_v60 = vsel %vm2301_vm4, %v2325_v58, %v2327_v20  ;;  %v2330_v45 = vsel %vm2301_vm4, %v2327_v20, %v2329_v34 }
  0x6c   : > { %v2333_v58 = vrot.slane %v5811_v23, 3 }
  0x6d   : > { %4791 = vmatmul.mubr.msk.f32.gmra.mrb[40].mxu1 %vm559_vm2, %v512_v51  ;;  %5037 = vmatmul.mubr.msk.f32.gmra.mrb[8].mxu0 %vm559_vm2, %v2322_v30  ;;  %v521_v51 = vrot.slane %v6089_v38, 1  ;;  %v2331_v30 = vrot.slane %v5796_v10, 3  ;;  %v520_v42 = vsel %vm427_vm1, %v517_v19, %v519_v29 }
  0x6e   : > { %4793 = vmatprep.mubr.msk.f32.mxu1 %vm559_vm2, %v514_v3  ;;  %5039 = vmatprep.mubr.msk.f32.mxu0 %vm559_vm2, %v2324_v7  ;;  %v6104_v3 = vld [vmem:[%s5667_s7 + $0x180] sm:$0xff]  ;;  %v6107_v7 = vld [vmem:[%s5667_s7 + $0x188] sm:$0xff] }
  0x6f   : > { %v523_v56 = vrot.slane %v6104_v3, 1  ;;  %v522_v10 = vsel %vm427_vm1, %v519_v29, %v521_v51  ;;  %v2332_v9 = vsel %vm2301_vm4, %v2329_v34, %v2331_v30  ;;  %v2334_v20 = vsel %vm2301_vm4, %v2331_v30, %v2333_v58 }
  0x70   : > { %v2337_v34 = vrot.slane %v5829_v35, 3 }
  0x71   : > { %4794 = vmatmul.mubr.msk.f32.gmra.mrb[42].mxu1 %vm559_vm2, %v516_v8  ;;  %5040 = vmatmul.mubr.msk.f32.gmra.mrb[10].mxu0 %vm559_vm2, %v2326_v13  ;;  %v525_v8 = vrot.slane %v6107_v7, 1  ;;  %v2335_v13 = vrot.slane %v5814_v24, 3  ;;  %v524_v19 = vsel %vm427_vm1, %v521_v51, %v523_v56 }
  0x72   : > { %4796 = vmatprep.mubr.msk.f32.mxu1 %vm559_vm2, %v518_v33  ;;  %5042 = vmatprep.mubr.msk.f32.mxu0 %vm559_vm2, %v2328_v60  ;;  %v6122_v33 = vld [vmem:[%s5667_s7 + $0x190] sm:$0xff]  ;;  %v6125_v60 = vld [vmem:[%s5667_s7 + $0x198] sm:$0xff] }
  0x73   : > { %v527_v29 = vrot.slane %v6122_v33, 1  ;;  %v526_v24 = vsel %vm427_vm1, %v523_v56, %v525_v8  ;;  %v2336_v23 = vsel %vm2301_vm4, %v2333_v58, %v2335_v13  ;;  %v2338_v30 = vsel %vm2301_vm4, %v2335_v13, %v2337_v34 }
  0x74   : > { %v2341_v58 = vrot.slane %v5847_v47, 3 }
  0x75   : > { %4797 = vmatmul.mubr.msk.f32.gmra.mrb[44].mxu1 %vm559_vm2, %v520_v42  ;;  %5043 = vmatmul.mubr.msk.f32.gmra.mrb[12].mxu0 %vm559_vm2, %v2330_v45  ;;  %v529_v42 = vrot.slane %v6125_v60, 1  ;;  %v2339_v45 = vrot.slane %v5832_v36, 3  ;;  %v528_v51 = vsel %vm427_vm1, %v525_v8, %v527_v29 }
  0x76   : > { %4799 = vmatprep.mubr.msk.f32.mxu1 %vm559_vm2, %v522_v10  ;;  %5045 = vmatprep.mubr.msk.f32.mxu0 %vm559_vm2, %v2332_v9  ;;  %v6140_v10 = vld [vmem:[%s5667_s7 + $0x1a0] sm:$0xff]  ;;  %v6143_v9 = vld [vmem:[%s5667_s7 + $0x1a8] sm:$0xff] }
  0x77   : > { %v531_v56 = vrot.slane %v6140_v10, 1  ;;  %v530_v36 = vsel %vm427_vm1, %v527_v29, %v529_v42  ;;  %v2340_v35 = vsel %vm2301_vm4, %v2337_v34, %v2339_v45  ;;  %v2342_v13 = vsel %vm2301_vm4, %v2339_v45, %v2341_v58 }
  0x78   : > { %v2345_v34 = vrot.slane %v5865_v61, 3 }
  0x79   : > { %4800 = vmatmul.mubr.msk.f32.gmra.mrb[46].mxu1 %vm559_vm2, %v524_v19  ;;  %5046 = vmatmul.mubr.msk.f32.gmra.mrb[14].mxu0 %vm559_vm2, %v2334_v20  ;;  %v533_v19 = vrot.slane %v6143_v9, 1  ;;  %v2343_v20 = vrot.slane %v5850_v48, 3  ;;  %v532_v8 = vsel %vm427_vm1, %v529_v42, %v531_v56 }
  0x7a   : > { %4802 = vmatprep.mubr.msk.f32.mxu1 %vm559_vm2, %v526_v24  ;;  %5048 = vmatprep.mubr.msk.f32.mxu0 %vm559_vm2, %v2336_v23  ;;  %v6158_v24 = vld [vmem:[%s5667_s7 + $0x1b0] sm:$0xff]  ;;  %v6161_v23 = vld [vmem:[%s5667_s7 + $0x1b8] sm:$0xff] }
  0x7b   : > { %v535_v29 = vrot.slane %v6158_v24, 1  ;;  %v534_v48 = vsel %vm427_vm1, %v531_v56, %v533_v19  ;;  %v2344_v47 = vsel %vm2301_vm4, %v2341_v58, %v2343_v20  ;;  %v2346_v45 = vsel %vm2301_vm4, %v2343_v20, %v2345_v34 }
  0x7c   : > { %v2349_v58 = vrot.slane %v5883_v15, 3 }
  0x7d   : > { %4803 = vmatmul.mubr.msk.f32.gmra.mrb[48].mxu1 %vm559_vm2, %v528_v51  ;;  %5049 = vmatmul.mubr.msk.f32.gmra.mrb[16].mxu0 %vm559_vm2, %v2338_v30  ;;  %v537_v51 = vrot.slane %v6161_v23, 1  ;;  %v2347_v30 = vrot.slane %v5868_v62, 3  ;;  %v536_v42 = vsel %vm427_vm1, %v533_v19, %v535_v29 }
  0x7e   : > { %4805 = vmatprep.mubr.msk.f32.mxu1 %vm559_vm2, %v530_v36  ;;  %5051 = vmatprep.mubr.msk.f32.mxu0 %vm559_vm2, %v2340_v35  ;;  %v6176_v36 = vld [vmem:[%s5667_s7 + $0x1c0] sm:$0xff]  ;;  %v6179_v35 = vld [vmem:[%s5667_s7 + $0x1c8] sm:$0xff] }
  0x7f   : > { %v539_v56 = vrot.slane %v6176_v36, 1  ;;  %v538_v62 = vsel %vm427_vm1, %v535_v29, %v537_v51  ;;  %v2348_v61 = vsel %vm2301_vm4, %v2345_v34, %v2347_v30  ;;  %v2350_v20 = vsel %vm2301_vm4, %v2347_v30, %v2349_v58 }
  0x80   : > { %v2353_v34 = vrot.slane %v5901_v31, 3 }
  0x81   : > { %4806 = vmatmul.mubr.msk.f32.gmra.mrb[50].mxu1 %vm559_vm2, %v532_v8  ;;  %5052 = vmatmul.mubr.msk.f32.gmra.mrb[18].mxu0 %vm559_vm2, %v2342_v13  ;;  %v541_v8 = vrot.slane %v6179_v35, 1  ;;  %v2351_v13 = vrot.slane %v5886_v16, 3  ;;  %v540_v19 = vsel %vm427_vm1, %v537_v51, %v539_v56 }
  0x82   : > { %4808 = vmatprep.mubr.msk.f32.mxu1 %vm559_vm2, %v534_v48  ;;  %5054 = vmatprep.mubr.msk.f32.mxu0 %vm559_vm2, %v2344_v47  ;;  %v6194_v48 = vld [vmem:[%s5667_s7 + $0x1d0] sm:$0xff]  ;;  %v6197_v47 = vld [vmem:[%s5667_s7 + $0x1d8] sm:$0xff] }
  0x83   : > { %6921 = vst [vmem:[#allocation19_spill] sm:$0xff] %v6197_v47  ;;  %v543_v29 = vrot.slane %v6194_v48, 1  ;;  %v542_v16 = vsel %vm427_vm1, %v539_v56, %v541_v8  ;;  %v2352_v15 = vsel %vm2301_vm4, %v2349_v58, %v2351_v13  ;;  %v2354_v30 = vsel %vm2301_vm4, %v2351_v13, %v2353_v34 }
  0x84   : > { %v2357_v58 = vrot.slane %v5915_v41, 3  ;;  %v6251_v41 = vld [vmem:[%s277_s14] sm:$0xff] }
  0x85   : > { %4809 = vmatmul.mubr.msk.f32.gmra.mrb[52].mxu1 %vm559_vm2, %v536_v42  ;;  %5055 = vmatmul.mubr.msk.f32.gmra.mrb[20].mxu0 %vm559_vm2, %v2346_v45  ;;  %v545_v42 = vrot.slane %v6197_v47, 1  ;;  %v2355_v45 = vrot.slane %v5904_v32, 3  ;;  %v544_v51 = vsel %vm427_vm1, %v541_v8, %v543_v29  ;;  %v6231_v47 = vld [vmem:[%s5667_s7 + $0x1f0] sm:$0xff] }
  0x86   : > { %4811 = vmatprep.mubr.msk.f32.mxu1 %vm559_vm2, %v538_v62  ;;  %5057 = vmatprep.mubr.msk.f32.mxu0 %vm559_vm2, %v2348_v61  ;;  %v6212_v62 = vld [vmem:[%s5667_s7 + $0x1e0] sm:$0xff]  ;;  %v6215_v61 = vld [vmem:[%s5667_s7 + $0x1e8] sm:$0xff]  ;;  %v551_v13 = vrot.slane %v6231_v47, 1 }
  0x87   : > { %v547_v56 = vrot.slane %v6212_v62, 1  ;;  %v546_v32 = vsel %vm427_vm1, %v543_v29, %v545_v42  ;;  %v2356_v31 = vsel %vm2301_vm4, %v2353_v34, %v2355_v45  ;;  %v2358_v8 = vsel %vm2301_vm4, %v2355_v45, %v2357_v58 }
  0x88   : > { %v2361_v29 = vrot.slane %v5937_v63, 3  ;;  %v2365_v45 = vrot.slane %v5952_v14, 3 }
  0x89   : > { %4812 = vmatmul.mubr.msk.f32.gmra.mrb[54].mxu1 %vm559_vm2, %v540_v19  ;;  %5058 = vmatmul.mubr.msk.f32.gmra.mrb[22].mxu0 %vm559_vm2, %v2350_v20  ;;  %v549_v19 = vrot.slane %v6215_v61, 1  ;;  %v2359_v20 = vrot.slane %v5922_v46, 3 }
  0x8a   : > { %4814 = vmatprep.mubr.msk.f32.mxu1 %vm559_vm2, %v542_v16  ;;  %5060 = vmatprep.mubr.msk.f32.mxu0 %vm559_vm2, %v2352_v15  ;;  %v6234_v16 = vld [vmem:[%s5667_s7 + $0x1f8] sm:$0xff]  ;;  %v548_v15 = vsel %vm427_vm1, %v545_v42, %v547_v56  ;;  %v555_v42 = vrot.slane %v6251_v41, 1 }
  0x8b   : > { %v550_v34 = vsel %vm427_vm1, %v547_v56, %v549_v19  ;;  %v2360_v46 = vsel %vm2301_vm4, %v2357_v58, %v2359_v20 }
  0x8d   : > { %4815 = vmatmul.mubr.msk.f32.gmra.mrb[56].mxu1 %vm559_vm2, %v544_v51  ;;  %5061 = vmatmul.mubr.msk.f32.gmra.mrb[24].mxu0 %vm559_vm2, %v2354_v30  ;;  %v553_v51 = vrot.slane %v6234_v16, 1  ;;  %v2363_v30 = vrot.slane %v5940_v0, 3 }
  0x8e   : > { %4817 = vmatprep.mubr.msk.f32.mxu1 %vm559_vm2, %v546_v32  ;;  %5063 = vmatprep.mubr.msk.f32.mxu0 %vm559_vm2, %v2356_v31  ;;  %v552_v31 = vsel %vm427_vm1, %v549_v19, %v551_v13  ;;  %v2362_v32 = vsel %vm2301_vm4, %v2359_v20, %v2361_v29  ;;  %v2369_v20 = vrot.slane %v5974_v43, 3 }
  0x8f   : > { %v554_v56 = vsel %vm427_vm1, %v551_v13, %v553_v51  ;;  %v2364_v58 = vsel %vm2301_vm4, %v2361_v29, %v2363_v30  ;;  %v2366_v19 = vsel %vm2301_vm4, %v2363_v30, %v2365_v45  ;;  %v2371_v13 = vrot.slane %v5977_v44, 3 }
  0x91   : > { %4818 = vmatmul.mubr.msk.f32.gmra.mrb[58].mxu1 %vm559_vm2, %v548_v15  ;;  %5064 = vmatmul.mubr.msk.f32.gmra.mrb[26].mxu0 %vm559_vm2, %v2358_v8  ;;  %v2367_v15 = vrot.slane %v5958_v21, 3  ;;  %v2372_v30 = vsel %vm2301_vm4, %v2369_v20, %v2371_v13 }
  0x92   : > { %4820 = vmatprep.mubr.msk.f32.mxu1 %vm559_vm2, %v550_v34  ;;  %5066 = vmatprep.mubr.msk.f32.mxu0 %vm559_vm2, %v2360_v46  ;;  %v556_v46 = vsel %vm427_vm1, %v553_v51, %v555_v42  ;;  %v2373_v34 = vrot.slane %v5993_v57, 3  ;;  %v2375_v51 = vrot.slane %v5997_v2, 3  ;;  %v2379_v42 = vrot.slane %v6015_v28, 3 }
  0x93   : > { %v2368_v8 = vsel %vm2301_vm4, %v2365_v45, %v2367_v15  ;;  %v2370_v29 = vsel %vm2301_vm4, %v2367_v15, %v2369_v20  ;;  %v2383_v45 = vrot.slane %v6035_v53, 3  ;;  %v2395_v20 = vrot.slane %v6089_v38, 3 }
  0x95   : > { %4821 = vmatmul.mubr.msk.f32.gmra.mrb[60].mxu1 %vm559_vm2, %v552_v31  ;;  %5067 = vmatmul.mubr.msk.f32.gmra.mrb[28].mxu0 %vm559_vm2, %v2362_v32  ;;  %v2377_v31 = vrot.slane %v6011_v25, 3  ;;  %v2376_v32 = vsel %vm2301_vm4, %v2373_v34, %v2375_v51 }
  0x96   : > { %4823 = vmatprep.mubr.msk.f32.mxu1 %vm559_vm2, %v554_v56  ;;  %5069 = vmatprep.mubr.msk.f32.mxu0 %vm559_vm2, %v2364_v58  ;;  %v2387_v58 = vrot.slane %v6053_v26, 3 }
  0x99   : > { %4824 = vmatmul.mubr.msk.f32.gmra.mrb[62].mxu1 %vm559_vm2, %v556_v46  ;;  %5070 = vmatmul.mubr.msk.f32.gmra.mrb[30].mxu0 %vm559_vm2, %v2366_v19  ;;  %v2391_v46 = vrot.slane %v6071_v55, 3 }
  0x9a   : > { %4828 = vmatprep.mubr.msk.f32.mxu1 %vm559_vm2, %v5670_v4  ;;  %5072 = vmatprep.mubr.msk.f32.mxu0 %vm559_vm2, %v2368_v8  ;;  %v2374_v4 = vsel %vm2301_vm4, %v2371_v13, %v2373_v34  ;;  %v2399_v13 = vrot.slane %v6107_v7, 3  ;;  %v2401_v34 = vrot.slane %v6122_v33, 3 }
  0x9d   : > { %4829 = vmatmul.mubr.msk.f32.vlgmr.msra.gmra.mrb[0].mxu1 %vm559_vm2, %v5673_v5  ;;  %5073 = vmatmul.mubr.msk.f32.gmra.mrb[32].mxu0 %vm559_vm2, %v2370_v29  ;;  %v2381_v5 = vrot.slane %v6032_v52, 3  ;;  %v6922_v29 = vld [vmem:[#allocation2_spill] sm:$0xff] }
  0x9e   : > { %5219 = vmatpush3.msk.msra.mxu1 %vm688_vm0, %v5649_v1  ;;  %4831 = vmatprep.mubr.msk.f32.mxu1 %vm559_vm2, %v5676_v6  ;;  %v2378_v1 = vsel %vm2301_vm4, %v2375_v51, %v2377_v31  ;;  %v2380_v6 = vsel %vm2301_vm4, %v2377_v31, %v2379_v42  ;;  %v6925_v31 = vld [vmem:[#allocation5_spill] sm:$0xff] }
  0x9f   : > { %5075 = vmatprep.mubr.msk.f32.mxu0 %vm559_vm2, %v2372_v30  ;;  %v2384_v56 = vsel %vm2301_vm4, %v2381_v5, %v2383_v45  ;;  %v2403_v30 = vrot.slane %v6125_v60, 3 }
  0xa1   : > { %4832 = vmatmul.mubr.msk.f32.gmra.mrb[2].mxu1 %vm559_vm2, %v5683_v11  ;;  %5076 = vmatmul.mubr.msk.f32.gmra.mrb[34].mxu0 %vm559_vm2, %v2374_v4  ;;  %v2382_v11 = vsel %vm2301_vm4, %v2379_v42, %v2381_v5  ;;  %v6924_v4 = vld [vmem:[#allocation4_spill] sm:$0xff]  ;;  %v2405_v42 = vrot.slane %v6140_v10, 3  ;;  %v2407_v5 = vrot.slane %v6143_v9, 3 }
  0xa2   : > { %4834 = vmatprep.mubr.msk.f32.mxu1 %vm559_vm2, %v5686_v12  ;;  %5078 = vmatprep.mubr.msk.f32.mxu0 %vm559_vm2, %v2376_v32  ;;  %v2385_v12 = vrot.slane %v6050_v18, 3  ;;  %v2402_v32 = vsel %vm2301_vm4, %v2399_v13, %v2401_v34 }
  0xa4   : > { %v2388_v15 = vsel %vm2301_vm4, %v2385_v12, %v2387_v58 }
  0xa5   : > { %4835 = vmatmul.mubr.msk.f32.gmra.mrb[4].mxu1 %vm559_vm2, %v5693_v17  ;;  %5079 = vmatmul.mubr.msk.f32.gmra.mrb[36].mxu0 %vm559_vm2, %v2378_v1  ;;  %v2386_v17 = vsel %vm2301_vm4, %v2383_v45, %v2385_v12  ;;  %v2404_v1 = vsel %vm2301_vm4, %v2401_v34, %v2403_v30  ;;  %v6927_v45 = vld [vmem:[#allocation7_spill] sm:$0xff]  ;;  %v2409_v12 = vrot.slane %v6158_v24, 3 }
  0xa6   : > { %4837 = vmatprep.mubr.msk.f32.mxu1 %vm559_vm2, %v5702_v22  ;;  %5081 = vmatprep.mubr.msk.f32.mxu0 %vm559_vm2, %v2380_v6  ;;  %v2389_v22 = vrot.slane %v6068_v54, 3  ;;  %v6926_v6 = vld [vmem:[#allocation6_spill] sm:$0xff] }
  0xa8   : > { %v2392_v19 = vsel %vm2301_vm4, %v2389_v22, %v2391_v46 }
  0xa9   : > { %4838 = vmatmul.mubr.msk.f32.gmra.mrb[6].mxu1 %vm559_vm2, %v5711_v27  ;;  %5082 = vmatmul.mubr.msk.f32.gmra.mrb[38].mxu0 %vm559_vm2, %v2382_v11  ;;  %v2390_v27 = vsel %vm2301_vm4, %v2387_v58, %v2389_v22  ;;  %v2406_v11 = vsel %vm2301_vm4, %v2403_v30, %v2405_v42  ;;  %v2411_v58 = vrot.slane %v6161_v23, 3  ;;  %v6929_v22 = vld [vmem:[#allocation9_spill] sm:$0xff] }
  0xaa   : > { %4840 = vmatprep.mubr.msk.f32.mxu1 %vm559_vm2, %v5735_v39  ;;  %5084 = vmatprep.mubr.msk.f32.mxu0 %vm559_vm2, %v2384_v56  ;;  %v2393_v39 = vrot.slane %v6086_v37, 3  ;;  %v2408_v56 = vsel %vm2301_vm4, %v2405_v42, %v2407_v5 }
  0xac   : > { %v2396_v8 = vsel %vm2301_vm4, %v2393_v39, %v2395_v20 }
  0xad   : > { %4841 = vmatmul.mubr.msk.f32.gmra.mrb[8].mxu1 %vm559_vm2, %v5738_v40  ;;  %5085 = vmatmul.mubr.msk.f32.gmra.mrb[40].mxu0 %vm559_vm2, %v2386_v17  ;;  %v2394_v40 = vsel %vm2301_vm4, %v2391_v46, %v2393_v39  ;;  %v6928_v17 = vld [vmem:[#allocation8_spill] sm:$0xff]  ;;  %v2413_v46 = vrot.slane %v6176_v36, 3  ;;  %v2415_v39 = vrot.slane %v6179_v35, 3 }
  0xae   : > { %4843 = vmatprep.mubr.msk.f32.mxu1 %vm559_vm2, %v5757_v49  ;;  %5087 = vmatprep.mubr.msk.f32.mxu0 %vm559_vm2, %v2388_v15  ;;  %v2397_v49 = vrot.slane %v6104_v3, 3  ;;  %v2410_v15 = vsel %vm2301_vm4, %v2407_v5, %v2409_v12 }
  0xb0   : > { %v2400_v51 = vsel %vm2301_vm4, %v2397_v49, %v2399_v13  ;;  %v6932_v13 = vld [vmem:[#allocation19_spill] sm:$0xff] }
  0xb1   : > { %4844 = vmatmul.mubr.msk.f32.gmra.mrb[10].mxu1 %vm559_vm2, %v5760_v50  ;;  %5088 = vmatmul.mubr.msk.f32.gmra.mrb[42].mxu0 %vm559_vm2, %v2390_v27  ;;  %v6923_v50 = vld [vmem:[#allocation3_spill] sm:$0xff]  ;;  %v2412_v27 = vsel %vm2301_vm4, %v2409_v12, %v2411_v58 }
  0xb2   : > { %4846 = vmatprep.mubr.msk.f32.mxu1 %vm559_vm2, %v5775_v59  ;;  %5090 = vmatprep.mubr.msk.f32.mxu0 %vm559_vm2, %v2392_v19  ;;  %v2398_v59 = vsel %vm2301_vm4, %v2395_v20, %v2397_v49  ;;  %v6930_v19 = vld [vmem:[#allocation10_spill] sm:$0xff]  ;;  %v6931_v20 = vld [vmem:[#allocation11_spill] sm:$0xff]  ;;  %v2417_v49 = vrot.slane %v6194_v48, 3 }
  0xb4   : > { %v2418_v34 = vsel %vm2301_vm4, %v2415_v39, %v2417_v49 }
  0xb5   : > { %4847 = vmatmul.mubr.msk.f32.gmra.mrb[12].mxu1 %vm559_vm2, %v6922_v29  ;;  %5091 = vmatmul.mubr.msk.f32.gmra.mrb[44].mxu0 %vm559_vm2, %v2394_v40  ;;  %v2414_v40 = vsel %vm2301_vm4, %v2411_v58, %v2413_v46  ;;  %v2419_v29 = vrot.slane %v6932_v13, 3 }
  0xb6   : > { %4849 = vmatprep.mubr.msk.f32.mxu1 %vm559_vm2, %v6923_v50  ;;  %5093 = vmatprep.mubr.msk.f32.mxu0 %vm559_vm2, %v2396_v8  ;;  %v2416_v8 = vsel %vm2301_vm4, %v2413_v46, %v2415_v39  ;;  %v6933_v50 = vld [vmem:[#allocation12_spill] sm:$0xff] }
  0xb7   : > { %v2420_v30 = vsel %vm2301_vm4, %v2417_v49, %v2419_v29  ;;  %v5520_v49 = vld [vmem:[%s5667_s7 + $0x18] sm:$0xff] }
  0xb9   : > { %4850 = vmatmul.mubr.msk.f32.gmra.mrb[14].mxu1 %vm559_vm2, %v6924_v4  ;;  %5094 = vmatmul.mubr.msk.f32.gmra.mrb[46].mxu0 %vm559_vm2, %v2398_v59  ;;  %v6934_v59 = vld [vmem:[#allocation13_spill] sm:$0xff]  ;;  %v2423_v4 = vrot.slane %v6215_v61, 3 }
  0xba   : > { %4852 = vmatprep.mubr.msk.f32.mxu1 %vm559_vm2, %v6925_v31  ;;  %5096 = vmatprep.mubr.msk.f32.mxu0 %vm559_vm2, %v2400_v51  ;;  %v2421_v51 = vrot.slane %v6212_v62, 3  ;;  %v6935_v31 = vld [vmem:[#allocation14_spill] sm:$0xff] }
  0xbc   : > { %v2422_v42 = vsel %vm2301_vm4, %v2419_v29, %v2421_v51  ;;  %v2424_v5 = vsel %vm2301_vm4, %v2421_v51, %v2423_v4  ;;  %v5522_v51 = vld [vmem:[%s5667_s7 + $0x28] sm:$0xff] }
  0xbd   : > { %4853 = vmatmul.mubr.msk.f32.gmra.mrb[16].mxu1 %vm559_vm2, %v6926_v6  ;;  %5097 = vmatmul.mubr.msk.f32.gmra.mrb[48].mxu0 %vm559_vm2, %v2402_v32  ;;  %v6936_v32 = vld [vmem:[#allocation15_spill] sm:$0xff]  ;;  %v2427_v6 = vrot.slane %v6234_v16, 3 }
  0xbe   : > { %4855 = vmatprep.mubr.msk.f32.mxu1 %vm559_vm2, %v6927_v45  ;;  %5099 = vmatprep.mubr.msk.f32.mxu0 %vm559_vm2, %v2404_v1  ;;  %v2425_v1 = vrot.slane %v6231_v47, 3  ;;  %v6937_v45 = vld [vmem:[#allocation16_spill] sm:$0xff] }
  0xc0   : > { %v2426_v12 = vsel %vm2301_vm4, %v2423_v4, %v2425_v1  ;;  %v2428_v58 = vsel %vm2301_vm4, %v2425_v1, %v2427_v6  ;;  %v5524_v1 = vld [vmem:[%s5667_s7 + $0x38] sm:$0xff] }
  0xc1   : > { %4856 = vmatmul.mubr.msk.f32.gmra.mrb[18].mxu1 %vm559_vm2, %v6928_v17  ;;  %5100 = vmatmul.mubr.msk.f32.gmra.mrb[50].mxu0 %vm559_vm2, %v2406_v11  ;;  %v6938_v11 = vld [vmem:[#allocation17_spill] sm:$0xff]  ;;  %v5517_v17 = vld [vmem:[%s5667_s7] sm:$0xff] }
  0xc2   : > { %4858 = vmatprep.mubr.msk.f32.mxu1 %vm559_vm2, %v6929_v22  ;;  %5102 = vmatprep.mubr.msk.f32.mxu0 %vm559_vm2, %v2408_v56  ;;  %v2429_v56 = vrot.slane %v6251_v41, 3  ;;  %v3011_v22 = vrot.slane %v5517_v17, 4 }
  0xc4   : > { %v2430_v39 = vsel %vm2301_vm4, %v2427_v6, %v2429_v56  ;;  %v5526_v56 = vld [vmem:[%s5667_s7 + $0x48] sm:$0xff] }
  0xc5   : > { %4859 = vmatmul.mubr.msk.f32.gmra.mrb[20].mxu1 %vm559_vm2, %v6930_v19  ;;  %5103 = vmatmul.mubr.msk.f32.gmra.mrb[52].mxu0 %vm559_vm2, %v2410_v15  ;;  %v5518_v15 = vld [vmem:[%s5667_s7 + $0x8] sm:$0xff]  ;;  %v5519_v19 = vld [vmem:[%s5667_s7 + $0x10] sm:$0xff] }
  0xc6   : > { %4861 = vmatprep.mubr.msk.f32.mxu1 %vm559_vm2, %v6931_v20  ;;  %5105 = vmatprep.mubr.msk.f32.mxu0 %vm559_vm2, %v2412_v27  ;;  %v3012_v46 = vrot.slane %v5518_v15, 4  ;;  %v6939_v27 = vld [vmem:[#allocation18_spill] sm:$0xff]  ;;  %v3014_v20 = vrot.slane %v5519_v19, 4 }
  0xc8   : > { %v3015_v29 = vsel %vm688_vm0, %v3012_v46, %v3014_v20 }
  0xc9   : > { %4862 = vmatmul.mubr.msk.f32.gmra.mrb[22].mxu1 %vm559_vm2, %v6933_v50  ;;  %5106 = vmatmul.mubr.msk.f32.gmra.mrb[54].mxu0 %vm559_vm2, %v2414_v40  ;;  %v3013_v40 = vsel %vm688_vm0, %v3011_v22, %v3012_v46  ;;  %v5521_v50 = vld [vmem:[%s5667_s7 + $0x20] sm:$0xff]  ;;  %v5527_v22 = vld [vmem:[%s5667_s7 + $0x50] sm:$0xff] }
  0xca   : > { %4864 = vmatprep.mubr.msk.f32.mxu1 %vm559_vm2, %v6934_v59  ;;  %5108 = vmatprep.mubr.msk.f32.mxu0 %vm559_vm2, %v2416_v8  ;;  %v3016_v8 = vrot.slane %v5520_v49, 4  ;;  %v3018_v59 = vrot.slane %v5521_v50, 4  ;;  %v3030_v15 = vrot.slane %v5527_v22, 4 }
  0xcc   : > { %v3019_v4 = vsel %vm688_vm0, %v3016_v8, %v3018_v59 }
  0xcd   : > { %4865 = vmatmul.mubr.msk.f32.gmra.mrb[24].mxu1 %vm559_vm2, %v6935_v31  ;;  %5109 = vmatmul.mubr.msk.f32.gmra.mrb[56].mxu0 %vm559_vm2, %v2418_v34  ;;  %v3017_v34 = vsel %vm688_vm0, %v3014_v20, %v3016_v8  ;;  %v5523_v31 = vld [vmem:[%s5667_s7 + $0x30] sm:$0xff] }
  0xce   : > { %4867 = vmatprep.mubr.msk.f32.mxu1 %vm559_vm2, %v6936_v32  ;;  %5111 = vmatprep.mubr.msk.f32.mxu0 %vm559_vm2, %v2420_v30  ;;  %v3020_v30 = vrot.slane %v5522_v51, 4  ;;  %v3022_v32 = vrot.slane %v5523_v31, 4 }
  0xd0   : > { %v3023_v6 = vsel %vm688_vm0, %v3020_v30, %v3022_v32 }
  0xd1   : > { %4868 = vmatmul.mubr.msk.f32.gmra.mrb[26].mxu1 %vm559_vm2, %v6937_v45  ;;  %5112 = vmatmul.mubr.msk.f32.gmra.mrb[58].mxu0 %vm559_vm2, %v2422_v42  ;;  %v3021_v42 = vsel %vm688_vm0, %v3018_v59, %v3020_v30  ;;  %v5525_v45 = vld [vmem:[%s5667_s7 + $0x40] sm:$0xff] }
  0xd2   : > { %4870 = vmatprep.mubr.msk.f32.mxu1 %vm559_vm2, %v6938_v11  ;;  %5114 = vmatprep.mubr.msk.f32.mxu0 %vm559_vm2, %v2424_v5  ;;  %v3024_v5 = vrot.slane %v5524_v1, 4  ;;  %v3026_v11 = vrot.slane %v5525_v45, 4 }
  0xd4   : > { %v3027_v17 = vsel %vm688_vm0, %v3024_v5, %v3026_v11 }
  0xd5   : > { %4871 = vmatmul.mubr.msk.f32.gmra.mrb[28].mxu1 %vm559_vm2, %v6939_v27  ;;  %5115 = vmatmul.mubr.msk.f32.gmra.mrb[60].mxu0 %vm559_vm2, %v2426_v12  ;;  %v3025_v12 = vsel %vm688_vm0, %v3022_v32, %v3024_v5 }
  0xd6   : > { %4873 = vmatprep.mubr.msk.f32.mxu1 %vm559_vm2, %v5937_v63  ;;  %5117 = vmatprep.mubr.msk.f32.mxu0 %vm559_vm2, %v2428_v58  ;;  %v3028_v58 = vrot.slane %v5526_v56, 4 }
  0xd8   : > { %v3029_v46 = vsel %vm688_vm0, %v3026_v11, %v3028_v58  ;;  %v3031_v20 = vsel %vm688_vm0, %v3028_v58, %v3030_v15 }
  0xd9   : > { %4874 = vmatmul.mubr.msk.f32.gmra.mrb[30].mxu1 %vm559_vm2, %v5940_v0  ;;  %5118 = vmatmul.mubr.msk.f32.gmra.mrb[62].mxu0 %vm559_vm2, %v2430_v39  ;;  %v5528_v39 = vld [vmem:[%s5667_s7 + $0x58] sm:$0xff] }
  0xda   : > { %4876 = vmatprep.mubr.msk.f32.mxu1 %vm559_vm2, %v5952_v14  ;;  %5122 = vmatprep.mubr.msk.f32.mxu0 %vm559_vm2, %v3013_v40  ;;  %v3032_v19 = vrot.slane %v5528_v39, 4  ;;  %v5529_v40 = vld [vmem:[%s5667_s7 + $0x60] sm:$0xff] }
  0xdb   : > { %v3034_v49 = vrot.slane %v5529_v40, 4 }
  0xdc   : > { %v3033_v8 = vsel %vm688_vm0, %v3030_v15, %v3032_v19 }
  0xdd   : > { %4877 = vmatmul.mubr.msk.f32.gmra.mrb[32].mxu1 %vm559_vm2, %v5958_v21  ;;  %5123 = vmatmul.mubr.msk.f32.vlgmr.msra.gmra.mrb[0].mxu0 %vm559_vm2, %v3015_v29  ;;  %v5530_v29 = vld [vmem:[%s5667_s7 + $0x68] sm:$0xff]  ;;  %v3035_v59 = vsel %vm688_vm0, %v3032_v19, %v3034_v49 }
  0xde   : > { %4879 = vmatprep.mubr.msk.f32.mxu1 %vm559_vm2, %v5974_v43  ;;  %5125 = vmatprep.mubr.msk.f32.mxu0 %vm559_vm2, %v3017_v34  ;;  %v3036_v50 = vrot.slane %v5530_v29, 4  ;;  %v5531_v34 = vld [vmem:[%s5667_s7 + $0x70] sm:$0xff] }
  0xdf   : > { %v3038_v51 = vrot.slane %v5531_v34, 4 }
  0xe0   : > { %v3037_v30 = vsel %vm688_vm0, %v3034_v49, %v3036_v50 }
  0xe1   : > { %4880 = vmatmul.mubr.msk.f32.gmra.mrb[34].mxu1 %vm559_vm2, %v5977_v44  ;;  %5126 = vmatmul.mubr.msk.f32.gmra.mrb[2].mxu0 %vm559_vm2, %v3019_v4  ;;  %v5532_v4 = vld [vmem:[%s5667_s7 + $0x78] sm:$0xff]  ;;  %v3039_v32 = vsel %vm688_vm0, %v3036_v50, %v3038_v51 }
  0xe2   : > { %4882 = vmatprep.mubr.msk.f32.mxu1 %vm559_vm2, %v5993_v57  ;;  %5128 = vmatprep.mubr.msk.f32.mxu0 %vm559_vm2, %v3021_v42  ;;  %v3040_v31 = vrot.slane %v5532_v4, 4  ;;  %v5533_v42 = vld [vmem:[%s5667_s7 + $0x80] sm:$0xff] }
  0xe3   : > { %v3042_v1 = vrot.slane %v5533_v42, 4 }
  0xe4   : > { %v3041_v5 = vsel %vm688_vm0, %v3038_v51, %v3040_v31 }
  0xe5   : > { %4883 = vmatmul.mubr.msk.f32.gmra.mrb[36].mxu1 %vm559_vm2, %v5997_v2  ;;  %5129 = vmatmul.mubr.msk.f32.gmra.mrb[4].mxu0 %vm559_vm2, %v3023_v6  ;;  %v5534_v6 = vld [vmem:[%s5667_s7 + $0x88] sm:$0xff]  ;;  %v3043_v11 = vsel %vm688_vm0, %v3040_v31, %v3042_v1 }
  0xe6   : > { %4885 = vmatprep.mubr.msk.f32.mxu1 %vm559_vm2, %v6011_v25  ;;  %5131 = vmatprep.mubr.msk.f32.mxu0 %vm559_vm2, %v3025_v12  ;;  %v3044_v45 = vrot.slane %v5534_v6, 4  ;;  %v5535_v12 = vld [vmem:[%s5667_s7 + $0x90] sm:$0xff] }
  0xe7   : > { %v3046_v56 = vrot.slane %v5535_v12, 4 }
  0xe8   : > { %v3045_v58 = vsel %vm688_vm0, %v3042_v1, %v3044_v45 }
  0xe9   : > { %4886 = vmatmul.mubr.msk.f32.gmra.mrb[38].mxu1 %vm559_vm2, %v6015_v28  ;;  %5132 = vmatmul.mubr.msk.f32.gmra.mrb[6].mxu0 %vm559_vm2, %v3027_v17  ;;  %v5536_v17 = vld [vmem:[%s5667_s7 + $0x98] sm:$0xff]  ;;  %v3047_v15 = vsel %vm688_vm0, %v3044_v45, %v3046_v56 }
  0xea   : > { %4888 = vmatprep.mubr.msk.f32.mxu1 %vm559_vm2, %v6032_v52  ;;  %5134 = vmatprep.mubr.msk.f32.mxu0 %vm559_vm2, %v3029_v46  ;;  %v3048_v22 = vrot.slane %v5536_v17, 4  ;;  %v5537_v46 = vld [vmem:[%s5667_s7 + $0xa0] sm:$0xff] }
  0xeb   : > { %v3050_v39 = vrot.slane %v5537_v46, 4 }
  0xec   : > { %v3049_v19 = vsel %vm688_vm0, %v3046_v56, %v3048_v22 }
  0xed   : > { %4889 = vmatmul.mubr.msk.f32.gmra.mrb[40].mxu1 %vm559_vm2, %v6035_v53  ;;  %5135 = vmatmul.mubr.msk.f32.gmra.mrb[8].mxu0 %vm559_vm2, %v3031_v20  ;;  %v5538_v20 = vld [vmem:[%s5667_s7 + $0xa8] sm:$0xff]  ;;  %v3051_v49 = vsel %vm688_vm0, %v3048_v22, %v3050_v39 }
  0xee   : > { %4891 = vmatprep.mubr.msk.f32.mxu1 %vm559_vm2, %v6050_v18  ;;  %5137 = vmatprep.mubr.msk.f32.mxu0 %vm559_vm2, %v3033_v8  ;;  %v3052_v40 = vrot.slane %v5538_v20, 4  ;;  %v5539_v8 = vld [vmem:[%s5667_s7 + $0xb0] sm:$0xff]  ;;  %v3072_v20 = vrot.slane %v5940_v0, 4  ;;  %v3076_v0 = vrot.slane %v5958_v21, 4 }
  0xef   : > { %v3054_v29 = vrot.slane %v5539_v8, 4 }
  0xf0   : > { %v3053_v50 = vsel %vm688_vm0, %v3050_v39, %v3052_v40  ;;  %v3070_v39 = vrot.slane %v5937_v63, 4 }
  0xf1   : > { %4892 = vmatmul.mubr.msk.f32.gmra.mrb[42].mxu1 %vm559_vm2, %v6053_v26  ;;  %5138 = vmatmul.mubr.msk.f32.gmra.mrb[10].mxu0 %vm559_vm2, %v3035_v59  ;;  %v5540_v59 = vld [vmem:[%s5667_s7 + $0xb8] sm:$0xff]  ;;  %v3055_v51 = vsel %vm688_vm0, %v3052_v40, %v3054_v29  ;;  %v3074_v40 = vrot.slane %v5952_v14, 4 }
  0xf2   : > { %4894 = vmatprep.mubr.msk.f32.mxu1 %vm559_vm2, %v6068_v54  ;;  %5140 = vmatprep.mubr.msk.f32.mxu0 %vm559_vm2, %v3037_v30  ;;  %v3056_v34 = vrot.slane %v5540_v59, 4  ;;  %v5541_v30 = vld [vmem:[%s5667_s7 + $0xc0] sm:$0xff]  ;;  %v3073_v63 = vsel %vm688_vm0, %v3070_v39, %v3072_v20  ;;  %v6940_v59 = vrot.slane %v5952_v14, 2 }
  0xf3   : > { %v3058_v4 = vrot.slane %v5541_v30, 4  ;;  %v3075_v8 = vsel %vm688_vm0, %v3072_v20, %v3074_v40  ;;  %v3080_v30 = vrot.slane %v5977_v44, 4  ;;  %v1675_v20 = vrot.slane %v6050_v18, 2 }
  0xf4   : > { %v3057_v31 = vsel %vm688_vm0, %v3054_v29, %v3056_v34  ;;  %v1659_v29 = vrot.slane %v5974_v43, 2 }
  0xf5   : > { %4895 = vmatmul.mubr.msk.f32.gmra.mrb[44].mxu1 %vm559_vm2, %v6071_v55  ;;  %5141 = vmatmul.mubr.msk.f32.gmra.mrb[12].mxu0 %vm559_vm2, %v3039_v32  ;;  %v5542_v32 = vld [vmem:[%s5667_s7 + $0xc8] sm:$0xff]  ;;  %v3059_v1 = vsel %vm688_vm0, %v3056_v34, %v3058_v4  ;;  %v3077_v34 = vsel %vm688_vm0, %v3074_v40, %v3076_v0 }
  0xf6   : > { %4897 = vmatprep.mubr.msk.f32.mxu1 %vm559_vm2, %v6086_v37  ;;  %5143 = vmatprep.mubr.msk.f32.mxu0 %vm559_vm2, %v3041_v5  ;;  %v3060_v42 = vrot.slane %v5542_v32, 4  ;;  %v5543_v5 = vld [vmem:[%s5667_s7 + $0xd0] sm:$0xff] }
  0xf7   : > { %v3062_v6 = vrot.slane %v5543_v5, 4 }
  0xf8   : > { %v3061_v45 = vsel %vm688_vm0, %v3058_v4, %v3060_v42  ;;  %v1663_v4 = vrot.slane %v5993_v57, 2 }
  0xf9   : > { %4898 = vmatmul.mubr.msk.f32.gmra.mrb[46].mxu1 %vm559_vm2, %v6089_v38  ;;  %5144 = vmatmul.mubr.msk.f32.gmra.mrb[14].mxu0 %vm559_vm2, %v3043_v11  ;;  %v5544_v11 = vld [vmem:[%s5667_s7 + $0xd8] sm:$0xff]  ;;  %v3063_v56 = vsel %vm688_vm0, %v3060_v42, %v3062_v6  ;;  %v1665_v42 = vrot.slane %v5997_v2, 2 }
  0xfa   : > { %4900 = vmatprep.mubr.msk.f32.mxu1 %vm559_vm2, %v6104_v3  ;;  %5146 = vmatprep.mubr.msk.f32.mxu0 %vm559_vm2, %v3045_v58  ;;  %v3064_v12 = vrot.slane %v5544_v11, 4  ;;  %v5545_v58 = vld [vmem:[%s5667_s7 + $0xe0] sm:$0xff] }
  0xfb   : > { %v3066_v17 = vrot.slane %v5545_v58, 4  ;;  %v1666_v11 = vsel %vm1591_vm3, %v1663_v4, %v1665_v42 }
  0xfc   : > { %v3065_v22 = vsel %vm688_vm0, %v3062_v6, %v3064_v12  ;;  %v1667_v6 = vrot.slane %v6011_v25, 2 }
  0xfd   : > { %4901 = vmatmul.mubr.msk.f32.gmra.mrb[48].mxu1 %vm559_vm2, %v6107_v7  ;;  %5147 = vmatmul.mubr.msk.f32.gmra.mrb[16].mxu0 %vm559_vm2, %v3047_v15  ;;  %v3068_v15 = vrot.slane %v6939_v27, 4  ;;  %v3067_v46 = vsel %vm688_vm0, %v3064_v12, %v3066_v17  ;;  %v1669_v12 = vrot.slane %v6015_v28, 2 }
  0xfe   : > { %4903 = vmatprep.mubr.msk.f32.mxu1 %vm559_vm2, %v6122_v33  ;;  %5149 = vmatprep.mubr.msk.f32.mxu0 %vm559_vm2, %v3049_v19  ;;  %v1668_v58 = vsel %vm1591_vm3, %v1665_v42, %v1667_v6 }
  0xff   : > { %v3069_v19 = vsel %vm688_vm0, %v3066_v17, %v3068_v15  ;;  %v3071_v27 = vsel %vm688_vm0, %v3068_v15, %v3070_v39  ;;  %v1671_v17 = vrot.slane %v6032_v52, 2  ;;  %v1670_v15 = vsel %vm1591_vm3, %v1667_v6, %v1669_v12 }
 0x100   : > { %v3092_v39 = vrot.slane %v6035_v53, 4  ;;  %v1691_v6 = vrot.slane %v6122_v33, 2 }
 0x101   : > { %4904 = vmatmul.mubr.msk.f32.gmra.mrb[50].mxu1 %vm559_vm2, %v6125_v60  ;;  %5150 = vmatmul.mubr.msk.f32.gmra.mrb[18].mxu0 %vm559_vm2, %v3051_v49  ;;  %v1657_v49 = vrot.slane %v5958_v21, 2 }
 0x102   : > { %4906 = vmatprep.mubr.msk.f32.mxu1 %vm559_vm2, %v6140_v10  ;;  %5152 = vmatprep.mubr.msk.f32.mxu0 %vm559_vm2, %v3053_v50  ;;  %v3078_v50 = vrot.slane %v5974_v43, 4 }
 0x103   : > { %v1658_v21 = vsel %vm1591_vm3, %v6940_v59, %v1657_v49  ;;  %v1660_v43 = vsel %vm1591_vm3, %v1657_v49, %v1659_v29  ;;  %v3096_v49 = vrot.slane %v6053_v26, 4  ;;  %v1681_v59 = vrot.slane %v6071_v55, 2 }
 0x104   : > { %v3079_v14 = vsel %vm688_vm0, %v3076_v0, %v3078_v50 }
 0x105   : > { %4907 = vmatmul.mubr.msk.f32.gmra.mrb[52].mxu1 %vm559_vm2, %v6143_v9  ;;  %5153 = vmatmul.mubr.msk.f32.gmra.mrb[20].mxu0 %vm559_vm2, %v3055_v51  ;;  %v1661_v51 = vrot.slane %v5977_v44, 2  ;;  %v3081_v44 = vsel %vm688_vm0, %v3078_v50, %v3080_v30 }
 0x106   : > { %4909 = vmatprep.mubr.msk.f32.mxu1 %vm559_vm2, %v6158_v24  ;;  %5155 = vmatprep.mubr.msk.f32.mxu0 %vm559_vm2, %v3057_v31  ;;  %v3082_v31 = vrot.slane %v5993_v57, 4 }
 0x107   : > { %v1662_v32 = vsel %vm1591_vm3, %v1659_v29, %v1661_v51  ;;  %v1664_v5 = vsel %vm1591_vm3, %v1661_v51, %v1663_v4  ;;  %v3098_v29 = vrot.slane %v6068_v54, 4  ;;  %v1683_v51 = vrot.slane %v6086_v37, 2 }
 0x108   : > { %v3083_v57 = vsel %vm688_vm0, %v3080_v30, %v3082_v31  ;;  %v3102_v30 = vrot.slane %v6086_v37, 4  ;;  %v3104_v4 = vrot.slane %v6089_v38, 4 }
 0x109   : > { %4910 = vmatmul.mubr.msk.f32.gmra.mrb[54].mxu1 %vm559_vm2, %v6161_v23  ;;  %5156 = vmatmul.mubr.msk.f32.gmra.mrb[22].mxu0 %vm559_vm2, %v3059_v1  ;;  %v3084_v1 = vrot.slane %v5997_v2, 4 }
 0x10a   : > { %4912 = vmatprep.mubr.msk.f32.mxu1 %vm559_vm2, %v6176_v36  ;;  %5158 = vmatprep.mubr.msk.f32.mxu0 %vm559_vm2, %v3061_v45  ;;  %v3086_v45 = vrot.slane %v6011_v25, 4 }
 0x10b   : > { %v3085_v2 = vsel %vm688_vm0, %v3082_v31, %v3084_v1  ;;  %v1684_v31 = vsel %vm1591_vm3, %v1681_v59, %v1683_v51 }
 0x10c   : > { %v3087_v25 = vsel %vm688_vm0, %v3084_v1, %v3086_v45  ;;  %v1689_v1 = vrot.slane %v6107_v7, 2 }
 0x10d   : > { %4913 = vmatmul.mubr.msk.f32.gmra.mrb[56].mxu1 %vm559_vm2, %v6179_v35  ;;  %5159 = vmatmul.mubr.msk.f32.gmra.mrb[24].mxu0 %vm559_vm2, %v3063_v56  ;;  %v3088_v56 = vrot.slane %v6015_v28, 4 }
 0x10e   : > { %4915 = vmatprep.mubr.msk.f32.mxu1 %vm559_vm2, %v6194_v48  ;;  %5161 = vmatprep.mubr.msk.f32.mxu0 %vm559_vm2, %v3065_v22  ;;  %v3090_v22 = vrot.slane %v6032_v52, 4 }
 0x10f   : > { %v3089_v28 = vsel %vm688_vm0, %v3086_v45, %v3088_v56  ;;  %v3110_v45 = vrot.slane %v6122_v33, 4 }
 0x110   : > { %v3091_v52 = vsel %vm688_vm0, %v3088_v56, %v3090_v22  ;;  %v1692_v56 = vsel %vm1591_vm3, %v1689_v1, %v1691_v6 }
 0x111   : > { %4916 = vmatmul.mubr.msk.f32.gmra.mrb[58].mxu1 %vm559_vm2, %v6932_v13  ;;  %5162 = vmatmul.mubr.msk.f32.gmra.mrb[26].mxu0 %vm559_vm2, %v3067_v46  ;;  %v1673_v46 = vrot.slane %v6035_v53, 2  ;;  %v3093_v53 = vsel %vm688_vm0, %v3090_v22, %v3092_v39  ;;  %v1697_v22 = vrot.slane %v6143_v9, 2 }
 0x112   : > { %4918 = vmatprep.mubr.msk.f32.mxu1 %vm559_vm2, %v6212_v62  ;;  %5164 = vmatprep.mubr.msk.f32.mxu0 %vm559_vm2, %v3069_v19  ;;  %v1672_v19 = vsel %vm1591_vm3, %v1669_v12, %v1671_v17  ;;  %v3112_v12 = vrot.slane %v6125_v60, 4 }
 0x113   : > { %v1674_v40 = vsel %vm1591_vm3, %v1671_v17, %v1673_v46  ;;  %v1676_v0 = vsel %vm1591_vm3, %v1673_v46, %v1675_v20  ;;  %v1699_v46 = vrot.slane %v6158_v24, 2 }
 0x115   : > { %4919 = vmatmul.mubr.msk.f32.gmra.mrb[60].mxu1 %vm559_vm2, %v6215_v61  ;;  %5165 = vmatmul.mubr.msk.f32.gmra.mrb[28].mxu0 %vm559_vm2, %v3071_v27  ;;  %v3094_v27 = vrot.slane %v6050_v18, 4 }
 0x116   : > { %4921 = vmatprep.mubr.msk.f32.mxu1 %vm559_vm2, %v6231_v47  ;;  %5167 = vmatprep.mubr.msk.f32.mxu0 %vm559_vm2, %v3073_v63  ;;  %v1677_v63 = vrot.slane %v6053_v26, 2 }
 0x117   : > { %v3095_v18 = vsel %vm688_vm0, %v3092_v39, %v3094_v27  ;;  %v3097_v26 = vsel %vm688_vm0, %v3094_v27, %v3096_v49  ;;  %v3118_v39 = vrot.slane %v6158_v24, 4  ;;  %v1700_v27 = vsel %vm1591_vm3, %v1697_v22, %v1699_v46 }
 0x118   : > { %v1678_v50 = vsel %vm1591_vm3, %v1675_v20, %v1677_v63  ;;  %v3120_v20 = vrot.slane %v6161_v23, 4 }
 0x119   : > { %4922 = vmatmul.mubr.msk.f32.gmra.mrb[62].mxu1 %vm559_vm2, %v6234_v16  ;;  %5168 = vmatmul.mubr.msk.f32.gmra.mrb[30].mxu0 %vm559_vm2, %v3075_v8  ;;  %v1679_v8 = vrot.slane %v6068_v54, 2  ;;  %v3099_v54 = vsel %vm688_vm0, %v3096_v49, %v3098_v29  ;;  %v1705_v49 = vrot.slane %v6179_v35, 2 }
 0x11a   : > { %4974 = vmatprep.mubr.msk.f32.mxu1 %vm559_vm2, %v1658_v21  ;;  %5170 = vmatprep.mubr.msk.f32.mxu0 %vm559_vm2, %v3077_v34  ;;  %v3100_v21 = vrot.slane %v6071_v55, 4 }
 0x11b   : > { %v1680_v34 = vsel %vm1591_vm3, %v1677_v63, %v1679_v8 }
 0x11c   : > { %v3101_v55 = vsel %vm688_vm0, %v3098_v29, %v3100_v21  ;;  %v3103_v37 = vsel %vm688_vm0, %v3100_v21, %v3102_v30  ;;  %v3126_v29 = vrot.slane %v6194_v48, 4 }
 0x11d   : > { %4975 = vmatmul.mubr.msk.f32.vlgmr.msra.gmra.mrb[32].mxu1 %vm559_vm2, %v1660_v43  ;;  %5171 = vmatmul.mubr.msk.f32.gmra.mrb[32].mxu0 %vm559_vm2, %v3079_v14  ;;  %v1682_v43 = vsel %vm1591_vm3, %v1679_v8, %v1681_v59  ;;  %v1685_v14 = vrot.slane %v6089_v38, 2  ;;  %v3105_v38 = vsel %vm688_vm0, %v3102_v30, %v3104_v4  ;;  %v1707_v8 = vrot.slane %v6194_v48, 2 }
 0x11e   : > { %4977 = vmatprep.mubr.msk.f32.mxu1 %vm559_vm2, %v1662_v32  ;;  %5173 = vmatprep.mubr.msk.f32.mxu0 %vm559_vm2, %v3081_v44  ;;  %v1687_v32 = vrot.slane %v6104_v3, 2  ;;  %v3106_v44 = vrot.slane %v6104_v3, 4  ;;  %v3128_v59 = vrot.slane %v6932_v13, 4  ;;  %v1713_v30 = vrot.slane %v6215_v61, 2 }
 0x11f   : > { %v1686_v42 = vsel %vm1591_vm3, %v1683_v51, %v1685_v14  ;;  %v1708_v21 = vsel %vm1591_vm3, %v1705_v49, %v1707_v8 }
 0x120   : > { %v3107_v3 = vsel %vm688_vm0, %v3104_v4, %v3106_v44  ;;  %v3134_v4 = vrot.slane %v6231_v47, 4 }
 0x121   : > { %4978 = vmatmul.mubr.msk.f32.gmra.mrb[34].mxu1 %vm559_vm2, %v1664_v5  ;;  %5174 = vmatmul.mubr.msk.f32.gmra.mrb[34].mxu0 %vm559_vm2, %v3083_v57  ;;  %v3108_v5 = vrot.slane %v6107_v7, 4  ;;  %v1688_v57 = vsel %vm1591_vm3, %v1685_v14, %v1687_v32  ;;  %v1715_v14 = vrot.slane %v6231_v47, 2 }
 0x122   : > { %4980 = vmatprep.mubr.msk.f32.mxu1 %vm559_vm2, %v1666_v11  ;;  %5176 = vmatprep.mubr.msk.f32.mxu0 %vm559_vm2, %v3085_v2  ;;  %v1690_v11 = vsel %vm1591_vm3, %v1687_v32, %v1689_v1  ;;  %v1693_v2 = vrot.slane %v6125_v60, 2  ;;  %v3113_v60 = vsel %vm688_vm0, %v3110_v45, %v3112_v12  ;;  %v3136_v32 = vrot.slane %v6234_v16, 4 }
 0x123   : > { %v3109_v7 = vsel %vm688_vm0, %v3106_v44, %v3108_v5  ;;  %v3111_v33 = vsel %vm688_vm0, %v3108_v5, %v3110_v45  ;;  %v1716_v44 = vsel %vm1591_vm3, %v1713_v30, %v1715_v14 }
 0x124   : > { %v1694_v17 = vsel %vm1591_vm3, %v1691_v6, %v1693_v2 }
 0x125   : > { %4981 = vmatmul.mubr.msk.f32.gmra.mrb[36].mxu1 %vm559_vm2, %v1668_v58  ;;  %5177 = vmatmul.mubr.msk.f32.gmra.mrb[36].mxu0 %vm559_vm2, %v3087_v25  ;;  %v1695_v58 = vrot.slane %v6140_v10, 2  ;;  %v3114_v25 = vrot.slane %v6140_v10, 4 }
 0x126   : > { %4983 = vmatprep.mubr.msk.f32.mxu1 %vm559_vm2, %v1670_v15  ;;  %5179 = vmatprep.mubr.msk.f32.mxu0 %vm559_vm2, %v3089_v28  ;;  %v3116_v15 = vrot.slane %v6143_v9, 4 }
 0x127   : > { %v1696_v28 = vsel %vm1591_vm3, %v1693_v2, %v1695_v58  ;;  %v3115_v10 = vsel %vm688_vm0, %v3112_v12, %v3114_v25 }
 0x128   : > { %v3117_v9 = vsel %vm688_vm0, %v3114_v25, %v3116_v15  ;;  %v3119_v24 = vsel %vm688_vm0, %v3116_v15, %v3118_v39 }
 0x129   : > { %4984 = vmatmul.mubr.msk.f32.gmra.mrb[38].mxu1 %vm559_vm2, %v1672_v19  ;;  %5180 = vmatmul.mubr.msk.f32.gmra.mrb[38].mxu0 %vm559_vm2, %v3091_v52  ;;  %v1698_v19 = vsel %vm1591_vm3, %v1695_v58, %v1697_v22  ;;  %v1701_v52 = vrot.slane %v6161_v23, 2  ;;  %v3121_v23 = vsel %vm688_vm0, %v3118_v39, %v3120_v20 }
 0x12a   : > { %4986 = vmatprep.mubr.msk.f32.mxu1 %vm559_vm2, %v1674_v40  ;;  %5182 = vmatprep.mubr.msk.f32.mxu0 %vm559_vm2, %v3093_v53  ;;  %v1703_v40 = vrot.slane %v6176_v36, 2  ;;  %v3122_v53 = vrot.slane %v6176_v36, 4 }
 0x12b   : > { %v1702_v63 = vsel %vm1591_vm3, %v1699_v46, %v1701_v52 }
 0x12c   : > { %v3123_v36 = vsel %vm688_vm0, %v3120_v20, %v3122_v53 }
 0x12d   : > { %4987 = vmatmul.mubr.msk.f32.gmra.mrb[40].mxu1 %vm559_vm2, %v1676_v0  ;;  %5183 = vmatmul.mubr.msk.f32.gmra.mrb[40].mxu0 %vm559_vm2, %v3095_v18  ;;  %v3124_v0 = vrot.slane %v6179_v35, 4  ;;  %v1704_v18 = vsel %vm1591_vm3, %v1701_v52, %v1703_v40 }
 0x12e   : > { %4989 = vmatprep.mubr.msk.f32.mxu1 %vm559_vm2, %v1678_v50  ;;  %5185 = vmatprep.mubr.msk.f32.mxu0 %vm559_vm2, %v3097_v26  ;;  %v1706_v50 = vsel %vm1591_vm3, %v1703_v40, %v1705_v49  ;;  %v1709_v26 = vrot.slane %v6932_v13, 2  ;;  %v3129_v13 = vsel %vm688_vm0, %v3126_v29, %v3128_v59 }
 0x12f   : > { %v3125_v35 = vsel %vm688_vm0, %v3122_v53, %v3124_v0  ;;  %v3127_v48 = vsel %vm688_vm0, %v3124_v0, %v3126_v29 }
 0x130   : > { %v1710_v51 = vsel %vm1591_vm3, %v1707_v8, %v1709_v26 }
 0x131   : > { %4990 = vmatmul.mubr.msk.f32.gmra.mrb[42].mxu1 %vm559_vm2, %v1680_v34  ;;  %5186 = vmatmul.mubr.msk.f32.gmra.mrb[42].mxu0 %vm559_vm2, %v3099_v54  ;;  %v1711_v34 = vrot.slane %v6212_v62, 2  ;;  %v3130_v54 = vrot.slane %v6212_v62, 4 }
 0x132   : > { %4992 = vmatprep.mubr.msk.f32.mxu1 %vm559_vm2, %v1682_v43  ;;  %5188 = vmatprep.mubr.msk.f32.mxu0 %vm559_vm2, %v3101_v55  ;;  %v3132_v43 = vrot.slane %v6215_v61, 4 }
 0x133   : > { %v1712_v55 = vsel %vm1591_vm3, %v1709_v26, %v1711_v34  ;;  %v3131_v62 = vsel %vm688_vm0, %v3128_v59, %v3130_v54 }
 0x134   : > { %v3133_v61 = vsel %vm688_vm0, %v3130_v54, %v3132_v43  ;;  %v3135_v47 = vsel %vm688_vm0, %v3132_v43, %v3134_v4 }
 0x135   : > { %4993 = vmatmul.mubr.msk.f32.gmra.mrb[44].mxu1 %vm559_vm2, %v1684_v31  ;;  %5189 = vmatmul.mubr.msk.f32.gmra.mrb[44].mxu0 %vm559_vm2, %v3103_v37  ;;  %v1714_v31 = vsel %vm1591_vm3, %v1711_v34, %v1713_v30  ;;  %v1717_v37 = vrot.slane %v6234_v16, 2  ;;  %v3137_v16 = vsel %vm688_vm0, %v3134_v4, %v3136_v32 }
 0x136   : > { %4995 = vmatprep.mubr.msk.f32.mxu1 %vm559_vm2, %v1686_v42  ;;  %5191 = vmatprep.mubr.msk.f32.mxu0 %vm559_vm2, %v3105_v38  ;;  %v1719_v42 = vrot.slane %v6251_v41, 2  ;;  %v3138_v38 = vrot.slane %v6251_v41, 4 }
 0x137   : > { %v1718_v1 = vsel %vm1591_vm3, %v1715_v14, %v1717_v37 }
 0x138   : > { %v1720_v5 = vsel %vm1591_vm3, %v1717_v37, %v1719_v42 }
 0x139   : > { %4996 = vmatmul.mubr.msk.f32.gmra.mrb[46].mxu1 %vm559_vm2, %v1688_v57  ;;  %5192 = vmatmul.mubr.msk.f32.gmra.mrb[46].mxu0 %vm559_vm2, %v3107_v3  ;;  %v3139_v57 = vsel %vm688_vm0, %v3136_v32, %v3138_v38 }
 0x13a   : > { %4998 = vmatprep.mubr.msk.f32.mxu1 %vm559_vm2, %v1690_v11  ;;  %5194 = vmatprep.mubr.msk.f32.mxu0 %vm559_vm2, %v3109_v7 }
 0x13d   : > { %4999 = vmatmul.mubr.msk.f32.gmra.mrb[48].mxu1 %vm559_vm2, %v1692_v56  ;;  %5195 = vmatmul.mubr.msk.f32.gmra.mrb[48].mxu0 %vm559_vm2, %v3111_v33 }
 0x13e   : > { %5001 = vmatprep.mubr.msk.f32.mxu1 %vm559_vm2, %v1694_v17  ;;  %5197 = vmatprep.mubr.msk.f32.mxu0 %vm559_vm2, %v3113_v60 }
 0x141   : > { %5002 = vmatmul.mubr.msk.f32.gmra.mrb[50].mxu1 %vm559_vm2, %v1696_v28  ;;  %5198 = vmatmul.mubr.msk.f32.gmra.mrb[50].mxu0 %vm559_vm2, %v3115_v10 }
 0x142   : > { %5004 = vmatprep.mubr.msk.f32.mxu1 %vm559_vm2, %v1698_v19  ;;  %5200 = vmatprep.mubr.msk.f32.mxu0 %vm559_vm2, %v3117_v9 }
 0x145   : > { %5005 = vmatmul.mubr.msk.f32.gmra.mrb[52].mxu1 %vm559_vm2, %v1700_v27  ;;  %5201 = vmatmul.mubr.msk.f32.gmra.mrb[52].mxu0 %vm559_vm2, %v3119_v24 }
 0x146   : > { %5007 = vmatprep.mubr.msk.f32.mxu1 %vm559_vm2, %v1702_v63  ;;  %5203 = vmatprep.mubr.msk.f32.mxu0 %vm559_vm2, %v3121_v23 }
 0x149   : > { %5008 = vmatmul.mubr.msk.f32.gmra.mrb[54].mxu1 %vm559_vm2, %v1704_v18  ;;  %5204 = vmatmul.mubr.msk.f32.gmra.mrb[54].mxu0 %vm559_vm2, %v3123_v36 }
 0x14a   : > { %5010 = vmatprep.mubr.msk.f32.mxu1 %vm559_vm2, %v1706_v50  ;;  %5206 = vmatprep.mubr.msk.f32.mxu0 %vm559_vm2, %v3125_v35 }
 0x14d   : > { %5011 = vmatmul.mubr.msk.f32.gmra.mrb[56].mxu1 %vm559_vm2, %v1708_v21  ;;  %5207 = vmatmul.mubr.msk.f32.gmra.mrb[56].mxu0 %vm559_vm2, %v3127_v48 }
 0x14e   : > { %5013 = vmatprep.mubr.msk.f32.mxu1 %vm559_vm2, %v1710_v51  ;;  %5209 = vmatprep.mubr.msk.f32.mxu0 %vm559_vm2, %v3129_v13 }
 0x151   : > { %5014 = vmatmul.mubr.msk.f32.gmra.mrb[58].mxu1 %vm559_vm2, %v1712_v55  ;;  %5210 = vmatmul.mubr.msk.f32.gmra.mrb[58].mxu0 %vm559_vm2, %v3131_v62 }
 0x152   : > { %5016 = vmatprep.mubr.msk.f32.mxu1 %vm559_vm2, %v1714_v31  ;;  %5212 = vmatprep.mubr.msk.f32.mxu0 %vm559_vm2, %v3133_v61 }
 0x155   : > { %5017 = vmatmul.mubr.msk.f32.gmra.mrb[60].mxu1 %vm559_vm2, %v1716_v44  ;;  %5213 = vmatmul.mubr.msk.f32.gmra.mrb[60].mxu0 %vm559_vm2, %v3135_v47 }
 0x156   : > { %5019 = vmatprep.mubr.msk.f32.mxu1 %vm559_vm2, %v1718_v1  ;;  %5215 = vmatprep.mubr.msk.f32.mxu0 %vm559_vm2, %v3137_v16 }
 0x159   : > { %5020 = vmatmul.mubr.msk.f32.gmra.mrb[62].mxu1 %vm559_vm2, %v1720_v5  ;;  %5216 = vmatmul.mubr.msk.f32.gmra.mrb[62].mxu0 %vm559_vm2, %v3139_v57 }
 0x170   : > { %v4830_v41 = vpop.f32.mrb[0].mxu1 }
 0x171   : > { %v1272_v3 = vpop.f32.mrb[1].mxu1 }
 0x174   : > { %v4833_v6 = vpop.f32.mrb[2].mxu1 }
 0x175   : > { %v1282_v45 = vpop.f32.mrb[3].mxu1 }
 0x178   : > { %v4836_v11 = vpop.f32.mrb[4].mxu1 }
 0x179   : > { %v1292_v7 = vpop.f32.mrb[5].mxu1 }
 0x17c   : > { %v4839_v2 = vpop.f32.mrb[6].mxu1 }
 0x17d   : > { %v1302_v12 = vpop.f32.mrb[7].mxu1 }
 0x180   : > { %v4842_v56 = vpop.f32.mrb[8].mxu1 }
 0x181   : > { %v1312_v33 = vpop.f32.mrb[9].mxu1 }
 0x184   : > { %v6788_v58 = vpop.f32.mrb[10].mxu1 }
 0x185   : > { %v6790_v25 = vpop.f32.mrb[11].mxu1 }
 0x188   : > { %v6792_v17 = vpop.f32.mrb[12].mxu1 }
 0x189   : > { %v6794_v60 = vpop.f32.mrb[13].mxu1 }
 0x18c   : > { %v6796_v22 = vpop.f32.mrb[14].mxu1 }
 0x18d   : > { %v6798_v15 = vpop.f32.mrb[15].mxu1 }
 0x190   : > { %v6800_v28 = vpop.f32.mrb[16].mxu1 }
 0x191   : > { %v6802_v10 = vpop.f32.mrb[17].mxu1 }
 0x194   : > { %v6804_v46 = vpop.f32.mrb[18].mxu1 }
 0x195   : > { %v6806_v39 = vpop.f32.mrb[19].mxu1 }
 0x198   : > { %v6808_v19 = vpop.f32.mrb[20].mxu1 }
 0x199   : > { %v6810_v9 = vpop.f32.mrb[21].mxu1 }
 0x19c   : > { %v6812_v52 = vpop.f32.mrb[22].mxu1 }
 0x19d   : > { %v6814_v20 = vpop.f32.mrb[23].mxu1 }
 0x1a0   : > { %v6816_v27 = vpop.f32.mrb[24].mxu1 }
 0x1a1   : > { %v6818_v24 = vpop.f32.mrb[25].mxu1 }
 0x1a4   : > { %v6820_v40 = vpop.f32.mrb[26].mxu1 }
 0x1a5   : > { %v6822_v53 = vpop.f32.mrb[27].mxu1 }
 0x1a8   : > { %v6824_v63 = vpop.f32.mrb[28].mxu1 }
 0x1a9   : > { %v6826_v23 = vpop.f32.mrb[29].mxu1 }
 0x1ac   : > { %v6828_v49 = vpop.f32.mrb[30].mxu1 }
 0x1ad   : > { %v6830_v0 = vpop.f32.mrb[31].mxu1 }
 0x1b0   : > { %v5124_v18 = vpop.f32.mrb[0].mxu0 }
 0x1b1   : > { %v5220_v36 = vadd.f32 %v5124_v18, %v4830_v41  ;;  %v3337_v8 = vpop.f32.mrb[1].mxu0 }
 0x1b2   : > { %v5221_v29 = vadd.f32 %v3337_v8, %v1272_v3 }
 0x1b3   : > { %v3791_v50 = vmul.f32 %v5220_v36, %v5220_v36 }
 0x1b4   : > { %v3720_v35 = vadd.f32 %v5221_v29, %v5220_v36  ;;  %v3790_v26 = vmul.f32 %v5221_v29, %v5221_v29  ;;  %v5127_v59 = vpop.f32.mrb[2].mxu0 }
 0x1b5   : > { %v5222_v21 = vadd.f32 %v5127_v59, %v4833_v6  ;;  %v3347_v48 = vpop.f32.mrb[3].mxu0 }
 0x1b6   : > { %v3854_v34 = vadd.f32 %v3791_v50, %v3790_v26  ;;  %v5223_v54 = vadd.f32 %v3347_v48, %v1282_v45 }
 0x1b7   : > { %v3793_v62 = vmul.f32 %v5222_v21, %v5222_v21 }
 0x1b8   : > { %v3721_v51 = vadd.f32 %v5223_v54, %v3720_v35  ;;  %v3792_v13 = vmul.f32 %v5223_v54, %v5223_v54  ;;  %v5130_v30 = vpop.f32.mrb[4].mxu0 }
 0x1b9   : > { %v5224_v43 = vadd.f32 %v5130_v30, %v4836_v11  ;;  %v3357_v55 = vpop.f32.mrb[5].mxu0 }
 0x1ba   : > { %v3855_v14 = vadd.f32 %v3854_v34, %v3792_v13  ;;  %v5225_v4 = vadd.f32 %v3357_v55, %v1292_v7  ;;  %v3722_v31 = vadd.f32 %v5222_v21, %v3721_v51 }
 0x1bb   : > { %v3795_v38 = vmul.f32 %v5224_v43, %v5224_v43 }
 0x1bc   : > { %v3723_v61 = vadd.f32 %v5225_v4, %v3722_v31  ;;  %v3794_v37 = vmul.f32 %v5225_v4, %v5225_v4  ;;  %v3856_v32 = vadd.f32 %v3855_v14, %v3793_v62  ;;  %v5133_v44 = vpop.f32.mrb[6].mxu0 }
 0x1bd   : > { %v5226_v47 = vadd.f32 %v5133_v44, %v4839_v2  ;;  %v3367_v42 = vpop.f32.mrb[7].mxu0 }
 0x1be   : > { %v3857_v1 = vadd.f32 %v3856_v32, %v3794_v37  ;;  %v5227_v16 = vadd.f32 %v3367_v42, %v1302_v12  ;;  %v3724_v5 = vadd.f32 %v5224_v43, %v3723_v61 }
 0x1bf   : > { %v3797_v18 = vmul.f32 %v5226_v47, %v5226_v47 }
 0x1c0   : > { %v3725_v57 = vadd.f32 %v5227_v16, %v3724_v5  ;;  %v3796_v41 = vmul.f32 %v5227_v16, %v5227_v16  ;;  %v3858_v3 = vadd.f32 %v3857_v1, %v3795_v38  ;;  %v5136_v6 = vpop.f32.mrb[8].mxu0 }
 0x1c1   : > { %v5228_v45 = vadd.f32 %v5136_v6, %v4842_v56  ;;  %v3377_v11 = vpop.f32.mrb[9].mxu0 }
 0x1c2   : > { %v3859_v36 = vadd.f32 %v3858_v3, %v3796_v41  ;;  %v5229_v7 = vadd.f32 %v3377_v11, %v1312_v33  ;;  %v3726_v8 = vadd.f32 %v5226_v47, %v3725_v57 }
 0x1c3   : > { %v3799_v21 = vmul.f32 %v5228_v45, %v5228_v45 }
 0x1c4   : > { %v3727_v29 = vadd.f32 %v5229_v7, %v3726_v8  ;;  %v3798_v50 = vmul.f32 %v5229_v7, %v5229_v7  ;;  %v3860_v35 = vadd.f32 %v3859_v36, %v3797_v18  ;;  %v5139_v26 = vpop.f32.mrb[10].mxu0 }
 0x1c5   : > { %v5230_v2 = vadd.f32 %v5139_v26, %v6788_v58  ;;  %v3387_v59 = vpop.f32.mrb[11].mxu0 }
 0x1c6   : > { %v3861_v12 = vadd.f32 %v3860_v35, %v3798_v50  ;;  %v5231_v48 = vadd.f32 %v3387_v59, %v6790_v25  ;;  %v3728_v34 = vadd.f32 %v5228_v45, %v3727_v29 }
 0x1c7   : > { %v3801_v43 = vmul.f32 %v5230_v2, %v5230_v2 }
 0x1c8   : > { %v3729_v54 = vadd.f32 %v5231_v48, %v3728_v34  ;;  %v3800_v51 = vmul.f32 %v5231_v48, %v5231_v48  ;;  %v3862_v56 = vadd.f32 %v3861_v12, %v3799_v21  ;;  %v5142_v13 = vpop.f32.mrb[12].mxu0 }
 0x1c9   : > { %v5232_v30 = vadd.f32 %v5142_v13, %v6792_v17  ;;  %v3397_v33 = vpop.f32.mrb[13].mxu0 }
 0x1ca   : > { %v3863_v55 = vadd.f32 %v3862_v56, %v3800_v51  ;;  %v5233_v62 = vadd.f32 %v3397_v33, %v6794_v60  ;;  %v3730_v14 = vadd.f32 %v5230_v2, %v3729_v54 }
 0x1cb   : > { %v3803_v32 = vmul.f32 %v5232_v30, %v5232_v30 }
 0x1cc   : > { %v3731_v4 = vadd.f32 %v5233_v62, %v3730_v14  ;;  %v3802_v58 = vmul.f32 %v5233_v62, %v5233_v62  ;;  %v3864_v31 = vadd.f32 %v3863_v55, %v3801_v43  ;;  %v5145_v61 = vpop.f32.mrb[14].mxu0 }
 0x1cd   : > { %v5234_v37 = vadd.f32 %v5145_v61, %v6796_v22  ;;  %v3407_v25 = vpop.f32.mrb[15].mxu0 }
 0x1ce   : > { %v3865_v44 = vadd.f32 %v3864_v31, %v3802_v58  ;;  %v5235_v47 = vadd.f32 %v3407_v25, %v6798_v15  ;;  %v3732_v42 = vadd.f32 %v5232_v30, %v3731_v4 }
 0x1cf   : > { %v3805_v57 = vmul.f32 %v5234_v37, %v5234_v37 }
 0x1d0   : > { %v3733_v38 = vadd.f32 %v5235_v47, %v3732_v42  ;;  %v3804_v17 = vmul.f32 %v5235_v47, %v5235_v47  ;;  %v3866_v1 = vadd.f32 %v3865_v44, %v3803_v32  ;;  %v5148_v16 = vpop.f32.mrb[16].mxu0 }
 0x1d1   : > { %v5236_v5 = vadd.f32 %v5148_v16, %v6800_v28  ;;  %v3417_v60 = vpop.f32.mrb[17].mxu0 }
 0x1d2   : > { %v3867_v41 = vadd.f32 %v3866_v1, %v3804_v17  ;;  %v5237_v3 = vadd.f32 %v3417_v60, %v6802_v10  ;;  %v3734_v6 = vadd.f32 %v5234_v37, %v3733_v38 }
 0x1d3   : > { %v3807_v7 = vmul.f32 %v5236_v5, %v5236_v5 }
 0x1d4   : > { %v3735_v45 = vadd.f32 %v5237_v3, %v3734_v6  ;;  %v3806_v22 = vmul.f32 %v5237_v3, %v5237_v3  ;;  %v3868_v11 = vadd.f32 %v3867_v41, %v3805_v57  ;;  %v5151_v18 = vpop.f32.mrb[18].mxu0 }
 0x1d5   : > { %v5238_v36 = vadd.f32 %v5151_v18, %v6804_v46  ;;  %v3427_v15 = vpop.f32.mrb[19].mxu0 }
 0x1d6   : > { %v3869_v8 = vadd.f32 %v3868_v11, %v3806_v22  ;;  %v5239_v29 = vadd.f32 %v3427_v15, %v6806_v39  ;;  %v3736_v50 = vadd.f32 %v5236_v5, %v3735_v45 }
 0x1d7   : > { %v3809_v21 = vmul.f32 %v5238_v36, %v5238_v36 }
 0x1d8   : > { %v3737_v35 = vadd.f32 %v5239_v29, %v3736_v50  ;;  %v3808_v28 = vmul.f32 %v5239_v29, %v5239_v29  ;;  %v3870_v26 = vadd.f32 %v3869_v8, %v3807_v7  ;;  %v5154_v2 = vpop.f32.mrb[20].mxu0 }
 0x1d9   : > { %v5240_v59 = vadd.f32 %v5154_v2, %v6808_v19  ;;  %v3437_v10 = vpop.f32.mrb[21].mxu0 }
 0x1da   : > { %v3871_v12 = vadd.f32 %v3870_v26, %v3808_v28  ;;  %v5241_v48 = vadd.f32 %v3437_v10, %v6810_v9  ;;  %v3738_v34 = vadd.f32 %v5238_v36, %v3737_v35 }
 0x1db   : > { %v3811_v30 = vmul.f32 %v5240_v59, %v5240_v59 }
 0x1dc   : > { %v3739_v54 = vadd.f32 %v5241_v48, %v3738_v34  ;;  %v3810_v46 = vmul.f32 %v5241_v48, %v5241_v48  ;;  %v3872_v51 = vadd.f32 %v3871_v12, %v3809_v21  ;;  %v5157_v56 = vpop.f32.mrb[22].mxu0 }
 0x1dd   : > { %v5242_v13 = vadd.f32 %v5157_v56, %v6812_v52  ;;  %v3447_v39 = vpop.f32.mrb[23].mxu0 }
 0x1de   : > { %v3873_v33 = vadd.f32 %v3872_v51, %v3810_v46  ;;  %v5243_v43 = vadd.f32 %v3447_v39, %v6814_v20  ;;  %v3740_v55 = vadd.f32 %v5240_v59, %v3739_v54 }
 0x1df   : > { %v3813_v31 = vmul.f32 %v5242_v13, %v5242_v13 }
 0x1e0   : > { %v3741_v62 = vadd.f32 %v5243_v43, %v3740_v55  ;;  %v3812_v19 = vmul.f32 %v5243_v43, %v5243_v43  ;;  %v3874_v14 = vadd.f32 %v3873_v33, %v3811_v30  ;;  %v5160_v4 = vpop.f32.mrb[24].mxu0 }
 0x1e1   : > { %v5244_v58 = vadd.f32 %v5160_v4, %v6816_v27  ;;  %v3457_v9 = vpop.f32.mrb[25].mxu0 }
 0x1e2   : > { %v3875_v61 = vadd.f32 %v3874_v14, %v3812_v19  ;;  %v5245_v37 = vadd.f32 %v3457_v9, %v6818_v24  ;;  %v3742_v25 = vadd.f32 %v5242_v13, %v3741_v62 }
 0x1e3   : > { %v3815_v38 = vmul.f32 %v5244_v58, %v5244_v58 }
 0x1e4   : > { %v3743_v32 = vadd.f32 %v5245_v37, %v3742_v25  ;;  %v3814_v52 = vmul.f32 %v5245_v37, %v5245_v37  ;;  %v3876_v44 = vadd.f32 %v3875_v61, %v3813_v31  ;;  %v5163_v47 = vpop.f32.mrb[26].mxu0 }
 0x1e5   : > { %v5246_v42 = vadd.f32 %v5163_v47, %v6820_v40  ;;  %v3467_v20 = vpop.f32.mrb[27].mxu0 }
 0x1e6   : > { %v3877_v17 = vadd.f32 %v3876_v44, %v3814_v52  ;;  %v5247_v1 = vadd.f32 %v3467_v20, %v6822_v53  ;;  %v3744_v16 = vadd.f32 %v5244_v58, %v3743_v32 }
 0x1e7   : > { %v3817_v3 = vmul.f32 %v5246_v42, %v5246_v42 }
 0x1e8   : > { %v3745_v5 = vadd.f32 %v5247_v1, %v3744_v16  ;;  %v3816_v27 = vmul.f32 %v5247_v1, %v5247_v1  ;;  %v3878_v60 = vadd.f32 %v3877_v17, %v3815_v38  ;;  %v5166_v57 = vpop.f32.mrb[28].mxu0 }
 0x1e9   : > { %v5248_v41 = vadd.f32 %v5166_v57, %v6824_v63  ;;  %v3477_v24 = vpop.f32.mrb[29].mxu0 }
 0x1ea   : > { %v3879_v6 = vadd.f32 %v3878_v60, %v3816_v27  ;;  %v5249_v45 = vadd.f32 %v3477_v24, %v6826_v23  ;;  %v3746_v22 = vadd.f32 %v5246_v42, %v3745_v5 }
 0x1eb   : > { %v3819_v7 = vmul.f32 %v5248_v41, %v5248_v41 }
 0x1ec   : > { %v3747_v11 = vadd.f32 %v5249_v45, %v3746_v22  ;;  %v3818_v40 = vmul.f32 %v5249_v45, %v5249_v45  ;;  %v3880_v18 = vadd.f32 %v3879_v6, %v3817_v3  ;;  %v5169_v36 = vpop.f32.mrb[30].mxu0 }
 0x1ed   : > { %v5250_v15 = vadd.f32 %v5169_v36, %v6828_v49  ;;  %v3487_v53 = vpop.f32.mrb[31].mxu0 }
 0x1ee   : > { %v3881_v8 = vadd.f32 %v3880_v18, %v3818_v40  ;;  %v5251_v29 = vadd.f32 %v3487_v53, %v6830_v0  ;;  %v3748_v50 = vadd.f32 %v5248_v41, %v3747_v11 }
 0x1ef   : > { %v3821_v21 = vmul.f32 %v5250_v15, %v5250_v15 }
 0x1f0   : > { %v3749_v35 = vadd.f32 %v5251_v29, %v3748_v50  ;;  %v3820_v63 = vmul.f32 %v5251_v29, %v5251_v29  ;;  %v3882_v28 = vadd.f32 %v3881_v8, %v3819_v7  ;;  %v4976_v26 = vpop.f32.mrb[32].mxu1  ;;  %v5172_v2 = vpop.f32.mrb[32].mxu0 }
 0x1f1   : > { %v5252_v59 = vadd.f32 %v5172_v2, %v4976_v26  ;;  %v2078_v23 = vpop.f32.mrb[33].mxu1  ;;  %v3497_v10 = vpop.f32.mrb[33].mxu0 }
 0x1f2   : > { %v3883_v12 = vadd.f32 %v3882_v28, %v3820_v63  ;;  %v5253_v48 = vadd.f32 %v3497_v10, %v2078_v23  ;;  %v3750_v34 = vadd.f32 %v5250_v15, %v3749_v35 }
 0x1f3   : > { %v3823_v30 = vmul.f32 %v5252_v59, %v5252_v59 }
 0x1f4   : > { %v3751_v54 = vadd.f32 %v5253_v48, %v3750_v34  ;;  %v3822_v49 = vmul.f32 %v5253_v48, %v5253_v48  ;;  %v3884_v46 = vadd.f32 %v3883_v12, %v3821_v21  ;;  %v4979_v51 = vpop.f32.mrb[34].mxu1  ;;  %v5175_v56 = vpop.f32.mrb[34].mxu0 }
 0x1f5   : > { %v5254_v13 = vadd.f32 %v5175_v56, %v4979_v51  ;;  %v2088_v0 = vpop.f32.mrb[35].mxu1  ;;  %v3507_v39 = vpop.f32.mrb[35].mxu0 }
 0x1f6   : > { %v3885_v33 = vadd.f32 %v3884_v46, %v3822_v49  ;;  %v5255_v43 = vadd.f32 %v3507_v39, %v2088_v0  ;;  %v3752_v55 = vadd.f32 %v5252_v59, %v3751_v54 }
 0x1f7   : > { %v3825_v37 = vmul.f32 %v5254_v13, %v5254_v13 }
 0x1f8   : > { %v3753_v62 = vadd.f32 %v5255_v43, %v3752_v55  ;;  %v3824_v19 = vmul.f32 %v5255_v43, %v5255_v43  ;;  %v3886_v14 = vadd.f32 %v3885_v33, %v3823_v30  ;;  %v4982_v4 = vpop.f32.mrb[36].mxu1  ;;  %v5178_v58 = vpop.f32.mrb[36].mxu0 }
 0x1f9   : > { %v5256_v9 = vadd.f32 %v5178_v58, %v4982_v4  ;;  %v2098_v31 = vpop.f32.mrb[37].mxu1  ;;  %v3517_v61 = vpop.f32.mrb[37].mxu0 }
 0x1fa   : > { %v3887_v25 = vadd.f32 %v3886_v14, %v3824_v19  ;;  %v5257_v32 = vadd.f32 %v3517_v61, %v2098_v31  ;;  %v3754_v52 = vadd.f32 %v5254_v13, %v3753_v62 }
 0x1fb   : > { %v3827_v5 = vmul.f32 %v5256_v9, %v5256_v9 }
 0x1fc   : > { %v3755_v44 = vadd.f32 %v5257_v32, %v3754_v52  ;;  %v3826_v47 = vmul.f32 %v5257_v32, %v5257_v32  ;;  %v3888_v42 = vadd.f32 %v3887_v25, %v3825_v37  ;;  %v4985_v20 = vpop.f32.mrb[38].mxu1  ;;  %v5181_v38 = vpop.f32.mrb[38].mxu0 }
 0x1fd   : > { %v5258_v17 = vadd.f32 %v5181_v38, %v4985_v20  ;;  %v2108_v1 = vpop.f32.mrb[39].mxu1  ;;  %v3527_v16 = vpop.f32.mrb[39].mxu0 }
 0x1fe   : > { %v3889_v27 = vadd.f32 %v3888_v42, %v3826_v47  ;;  %v5259_v60 = vadd.f32 %v3527_v16, %v2108_v1  ;;  %v3756_v57 = vadd.f32 %v5256_v9, %v3755_v44 }
 0x1ff   : > { %v3829_v18 = vmul.f32 %v5258_v17, %v5258_v17 }
 0x200   : > { %v3757_v41 = vadd.f32 %v5259_v60, %v3756_v57  ;;  %v3828_v24 = vmul.f32 %v5259_v60, %v5259_v60  ;;  %v3890_v3 = vadd.f32 %v3889_v27, %v3827_v5  ;;  %v4988_v6 = vpop.f32.mrb[40].mxu1  ;;  %v5184_v45 = vpop.f32.mrb[40].mxu0 }
 0x201   : > { %v5260_v22 = vadd.f32 %v5184_v45, %v4988_v6  ;;  %v2118_v11 = vpop.f32.mrb[41].mxu1  ;;  %v3537_v40 = vpop.f32.mrb[41].mxu0 }
 0x202   : > { %v3891_v36 = vadd.f32 %v3890_v3, %v3828_v24  ;;  %v5261_v15 = vadd.f32 %v3537_v40, %v2118_v11  ;;  %v3758_v53 = vadd.f32 %v5258_v17, %v3757_v41 }
 0x203   : > { %v3831_v2 = vmul.f32 %v5260_v22, %v5260_v22 }
 0x204   : > { %v3759_v7 = vadd.f32 %v5261_v15, %v3758_v53  ;;  %v3830_v8 = vmul.f32 %v5261_v15, %v5261_v15  ;;  %v3892_v29 = vadd.f32 %v3891_v36, %v3829_v18  ;;  %v4991_v50 = vpop.f32.mrb[42].mxu1  ;;  %v5187_v35 = vpop.f32.mrb[42].mxu0 }
 0x205   : > { %v5262_v63 = vadd.f32 %v5187_v35, %v4991_v50  ;;  %v2128_v28 = vpop.f32.mrb[43].mxu1  ;;  %v3547_v26 = vpop.f32.mrb[43].mxu0 }
 0x206   : > { %v3893_v59 = vadd.f32 %v3892_v29, %v3830_v8  ;;  %v5263_v23 = vadd.f32 %v3547_v26, %v2128_v28  ;;  %v3760_v10 = vadd.f32 %v5260_v22, %v3759_v7 }
 0x207   : > { %v3833_v56 = vmul.f32 %v5262_v63, %v5262_v63 }
 0x208   : > { %v3761_v21 = vadd.f32 %v5263_v23, %v3760_v10  ;;  %v3832_v12 = vmul.f32 %v5263_v23, %v5263_v23  ;;  %v3894_v48 = vadd.f32 %v3893_v59, %v3831_v2  ;;  %v4994_v34 = vpop.f32.mrb[44].mxu1  ;;  %v5190_v54 = vpop.f32.mrb[44].mxu0 }
 0x209   : > { %v5264_v49 = vadd.f32 %v5190_v54, %v4994_v34  ;;  %v2138_v46 = vpop.f32.mrb[45].mxu1  ;;  %v3557_v51 = vpop.f32.mrb[45].mxu0 }
 0x20a   : > { %v3895_v13 = vadd.f32 %v3894_v48, %v3832_v12  ;;  %v5265_v0 = vadd.f32 %v3557_v51, %v2138_v46  ;;  %v3762_v39 = vadd.f32 %v5262_v63, %v3761_v21 }
 0x20b   : > { %v3835_v58 = vmul.f32 %v5264_v49, %v5264_v49 }
 0x20c   : > { %v3763_v30 = vadd.f32 %v5265_v0, %v3762_v39  ;;  %v3834_v33 = vmul.f32 %v5265_v0, %v5265_v0  ;;  %v3896_v43 = vadd.f32 %v3895_v13, %v3833_v56  ;;  %v4997_v55 = vpop.f32.mrb[46].mxu1  ;;  %v5193_v62 = vpop.f32.mrb[46].mxu0 }
 0x20d   : > { %v5266_v19 = vadd.f32 %v5193_v62, %v4997_v55  ;;  %v2148_v14 = vpop.f32.mrb[47].mxu1  ;;  %v3567_v4 = vpop.f32.mrb[47].mxu0 }
 0x20e   : > { %v3897_v9 = vadd.f32 %v3896_v43, %v3834_v33  ;;  %v5267_v31 = vadd.f32 %v3567_v4, %v2148_v14  ;;  %v3764_v61 = vadd.f32 %v5264_v49, %v3763_v30 }
 0x20f   : > { %v3837_v38 = vmul.f32 %v5266_v19, %v5266_v19 }
 0x210   : > { %v3765_v37 = vadd.f32 %v5267_v31, %v3764_v61  ;;  %v3836_v25 = vmul.f32 %v5267_v31, %v5267_v31  ;;  %v3898_v32 = vadd.f32 %v3897_v9, %v3835_v58  ;;  %v5000_v52 = vpop.f32.mrb[48].mxu1  ;;  %v5196_v44 = vpop.f32.mrb[48].mxu0 }
 0x211   : > { %v5268_v47 = vadd.f32 %v5196_v44, %v5000_v52  ;;  %v2158_v42 = vpop.f32.mrb[49].mxu1  ;;  %v3577_v20 = vpop.f32.mrb[49].mxu0 }
 0x212   : > { %v3899_v17 = vadd.f32 %v3898_v32, %v3836_v25  ;;  %v5269_v1 = vadd.f32 %v3577_v20, %v2158_v42  ;;  %v3766_v16 = vadd.f32 %v5266_v19, %v3765_v37 }
 0x213   : > { %v3839_v45 = vmul.f32 %v5268_v47, %v5268_v47 }
 0x214   : > { %v3767_v5 = vadd.f32 %v5269_v1, %v3766_v16  ;;  %v3838_v27 = vmul.f32 %v5269_v1, %v5269_v1  ;;  %v3900_v60 = vadd.f32 %v3899_v17, %v3837_v38  ;;  %v5003_v57 = vpop.f32.mrb[50].mxu1  ;;  %v5199_v41 = vpop.f32.mrb[50].mxu0 }
 0x215   : > { %v5270_v24 = vadd.f32 %v5199_v41, %v5003_v57  ;;  %v2168_v3 = vpop.f32.mrb[51].mxu1  ;;  %v3587_v6 = vpop.f32.mrb[51].mxu0 }
 0x216   : > { %v3901_v22 = vadd.f32 %v3900_v60, %v3838_v27  ;;  %v5271_v11 = vadd.f32 %v3587_v6, %v2168_v3  ;;  %v3768_v40 = vadd.f32 %v5268_v47, %v3767_v5 }
 0x217   : > { %v3841_v35 = vmul.f32 %v5270_v24, %v5270_v24 }
 0x218   : > { %v3769_v18 = vadd.f32 %v5271_v11, %v3768_v40  ;;  %v3840_v36 = vmul.f32 %v5271_v11, %v5271_v11  ;;  %v3902_v15 = vadd.f32 %v3901_v22, %v3839_v45  ;;  %v5006_v53 = vpop.f32.mrb[52].mxu1  ;;  %v5202_v7 = vpop.f32.mrb[52].mxu0 }
 0x219   : > { %v5272_v8 = vadd.f32 %v5202_v7, %v5006_v53  ;;  %v2178_v29 = vpop.f32.mrb[53].mxu1  ;;  %v3597_v50 = vpop.f32.mrb[53].mxu0 }
 0x21a   : > { %v3903_v63 = vadd.f32 %v3902_v15, %v3840_v36  ;;  %v5273_v28 = vadd.f32 %v3597_v50, %v2178_v29  ;;  %v3770_v26 = vadd.f32 %v5270_v24, %v3769_v18 }
 0x21b   : > { %v3843_v54 = vmul.f32 %v5272_v8, %v5272_v8 }
 0x21c   : > { %v3771_v2 = vadd.f32 %v5273_v28, %v3770_v26  ;;  %v3842_v59 = vmul.f32 %v5273_v28, %v5273_v28  ;;  %v3904_v23 = vadd.f32 %v3903_v63, %v3841_v35  ;;  %v5009_v10 = vpop.f32.mrb[54].mxu1  ;;  %v5205_v21 = vpop.f32.mrb[54].mxu0 }
 0x21d   : > { %v5274_v12 = vadd.f32 %v5205_v21, %v5009_v10  ;;  %v2188_v48 = vpop.f32.mrb[55].mxu1  ;;  %v3607_v34 = vpop.f32.mrb[55].mxu0 }
 0x21e   : > { %v3905_v49 = vadd.f32 %v3904_v23, %v3842_v59  ;;  %v5275_v46 = vadd.f32 %v3607_v34, %v2188_v48  ;;  %v3772_v51 = vadd.f32 %v5272_v8, %v3771_v2 }
 0x21f   : > { %v3845_v62 = vmul.f32 %v5274_v12, %v5274_v12 }
 0x220   : > { %v3773_v56 = vadd.f32 %v5275_v46, %v3772_v51  ;;  %v3844_v13 = vmul.f32 %v5275_v46, %v5275_v46  ;;  %v3906_v0 = vadd.f32 %v3905_v49, %v3843_v54  ;;  %v5012_v39 = vpop.f32.mrb[56].mxu1  ;;  %v5208_v30 = vpop.f32.mrb[56].mxu0 }
 0x221   : > { %v5276_v33 = vadd.f32 %v5208_v30, %v5012_v39  ;;  %v2198_v43 = vpop.f32.mrb[57].mxu1  ;;  %v3617_v55 = vpop.f32.mrb[57].mxu0 }
 0x222   : > { %v3907_v19 = vadd.f32 %v3906_v0, %v3844_v13  ;;  %v5277_v14 = vadd.f32 %v3617_v55, %v2198_v43  ;;  %v3774_v4 = vadd.f32 %v5274_v12, %v3773_v56 }
 0x223   : > { %v3847_v44 = vmul.f32 %v5276_v33, %v5276_v33 }
 0x224   : > { %v3775_v58 = vadd.f32 %v5277_v14, %v3774_v4  ;;  %v3846_v9 = vmul.f32 %v5277_v14, %v5277_v14  ;;  %v3908_v31 = vadd.f32 %v3907_v19, %v3845_v62  ;;  %v5015_v61 = vpop.f32.mrb[58].mxu1  ;;  %v5211_v37 = vpop.f32.mrb[58].mxu0 }
 0x225   : > { %v5278_v25 = vadd.f32 %v5211_v37, %v5015_v61  ;;  %v2208_v32 = vpop.f32.mrb[59].mxu1  ;;  %v3627_v52 = vpop.f32.mrb[59].mxu0 }
 0x226   : > { %v3909_v47 = vadd.f32 %v3908_v31, %v3846_v9  ;;  %v5279_v42 = vadd.f32 %v3627_v52, %v2208_v32  ;;  %v3776_v20 = vadd.f32 %v5276_v33, %v3775_v58 }
 0x227   : > { %v3849_v41 = vmul.f32 %v5278_v25, %v5278_v25 }
 0x228   : > { %v3777_v38 = vadd.f32 %v5279_v42, %v3776_v20  ;;  %v3848_v17 = vmul.f32 %v5279_v42, %v5279_v42  ;;  %v3910_v1 = vadd.f32 %v3909_v47, %v3847_v44  ;;  %v5018_v16 = vpop.f32.mrb[60].mxu1  ;;  %v5214_v5 = vpop.f32.mrb[60].mxu0 }
 0x229   : > { %v5280_v27 = vadd.f32 %v5214_v5, %v5018_v16  ;;  %v2218_v60 = vpop.f32.mrb[61].mxu1  ;;  %v3637_v57 = vpop.f32.mrb[61].mxu0 }
 0x22a   : > { %v3911_v24 = vadd.f32 %v3910_v1, %v3848_v17  ;;  %v5281_v3 = vadd.f32 %v3637_v57, %v2218_v60  ;;  %v3778_v6 = vadd.f32 %v5278_v25, %v3777_v38 }
 0x22b   : > { %v3851_v7 = vmul.f32 %v5280_v27, %v5280_v27 }
 0x22c   : > { %v3779_v45 = vadd.f32 %v5281_v3, %v3778_v6  ;;  %v3850_v22 = vmul.f32 %v5281_v3, %v5281_v3  ;;  %v3912_v11 = vadd.f32 %v3911_v24, %v3849_v41  ;;  %v5021_v40 = vpop.f32.mrb[62].mxu1  ;;  %v5217_v18 = vpop.f32.mrb[62].mxu0 }
 0x22d   : > { %v5282_v36 = vadd.f32 %v5217_v18, %v5021_v40  ;;  %v2228_v15 = vpop.f32.mrb[63].mxu1  ;;  %v3647_v53 = vpop.f32.mrb[63].mxu0 }
 0x22e   : > { %v3913_v8 = vadd.f32 %v3912_v11, %v3850_v22  ;;  %v5283_v29 = vadd.f32 %v3647_v53, %v2228_v15  ;;  %v3780_v50 = vadd.f32 %v5280_v27, %v3779_v45 }
 0x22f   : > { %v3853_v26 = vmul.f32 %v5282_v36, %v5282_v36 }
 0x230   : > { %v3781_v35 = vadd.f32 %v5283_v29, %v3780_v50  ;;  %v3852_v63 = vmul.f32 %v5283_v29, %v5283_v29  ;;  %v3914_v28 = vadd.f32 %v3913_v8, %v3851_v7 }
 0x232   : > { %v3782_v2 = vadd.f32 %v5282_v36, %v3781_v35  ;;  %v3915_v59 = vadd.f32 %v3914_v28, %v3852_v63 }
 0x234   : > { %v3783_v23 = vrot.slane %v3782_v2, 4  ;;  %v3916_v10 = vadd.f32 %v3915_v59, %v3853_v26 }
 0x236   : > { %v3784_v21 = vadd.f32 %v3783_v23, %v3782_v2  ;;  %v3917_v12 = vrot.slane %v3916_v10, 4 }
 0x238   : > { %v3785_v48 = vrot.slane %v3784_v21, 2  ;;  %v3918_v34 = vadd.f32 %v3917_v12, %v3916_v10 }
 0x23a   : > { %v3786_v54 = vadd.f32 %v3785_v48, %v3784_v21  ;;  %v3919_v49 = vrot.slane %v3918_v34, 2 }
 0x23c   : > { %v3787_v46 = vrot.slane %v3786_v54, 1  ;;  %v3920_v51 = vadd.f32 %v3919_v49, %v3918_v34 }
 0x23e   : > { %v3788_v56 = vadd.f32 %v3787_v46, %v3786_v54  ;;  %v3921_v13 = vrot.slane %v3920_v51, 1 }
 0x240   : > { %3789 = vst [vmem:[%s286_s26] sm:$0x1] %v3788_v56  ;;  %v3922_v0 = vadd.f32 %v3921_v13, %v3920_v51 }
 0x242   : > { %3923 = vst [vmem:[%s293_s29] sm:$0x1] %v3922_v0 }
 0x243 PF: > { %s15_s19 = sadd.s32 1, %s5584_s19   ;;  %s6941_s15 = smov %s5576_s17 }
 0x244   : > { %p12_p9 = scmp.ge.s32.totalorder %s15_s19, 6   ;;  %s6942_s16 = smov %s5580_s18 }
 0x245   : > { %s6943_s17 = smov %s6946_s20  ;;  %s6944_s18 = smov %s6950_s21 }
 0x246   :  { %14 = sbr.rel (!%p12_p9) target bundleno = 3 (0x3), region = 77 }

// kernel: conv_layer_forward.3
= control target key start
LH: loop header
LB: loop body
LE: loop exit
PB: predicated region body
PF: predicated region fallthrough
CT: control target
= control target key end

     0   :  { %s9365_s18 = smov 0   ;;  %s9367_s19 = smov 0   ;;  %s12116_s0 = inlined_call_operand.vmem [shape: f32[2,1536,4], index: 0, kind: input, shape index: {}, may-alias: {0,1}]   ;;  %s12117_s1 = inlined_call_operand.vmem [shape: f32[2,1536,4], index: 1, kind: input, shape index: {}, may-alias: {0,1}]   ;;  %s12118_s2 = inlined_call_operand.vmem [shape: f32[20,128], index: 2, kind: input, shape index: {}]   ;;  %s12119_s3 = inlined_call_operand.vmem [shape: f32[1,128], index: 3, kind: input, shape index: {}]   ;;  %s12120_s4 = inlined_call_operand.vmem [shape: f32[1,128], index: 4, kind: input, shape index: {}]   ;;  %s12121_s5 = inlined_call_operand.vmem [shape: f32[2,512,128], index: 5, kind: output, shape index: {}]  }
   0x1   :  { %s9369_s20 = smov 0   ;;  %s9371_s21 = smov 0  }
   0x2   :  { %s9373_s22 = smov 0  }
   0x3 LB: > { %s24_s23 = sadd.s32 1, %s9324_s20  ;;  %s27_s24 = sadd.s32 1, %s9328_s21  ;;  %s9332_s22 = sphi %s9373_s22, %s15_s22   ;;  %s9328_s21 = sphi %s9371_s21, %s12202_s21   ;;  %s9324_s20 = sphi %s9369_s20, %s12201_s20   ;;  %s9320_s19 = sphi %s9367_s19, %s12200_s19   ;;  %s9316_s18 = sphi %s9365_s18, %s12199_s18  }
   0x4   : > { %p25_p0 = scmp.ge.s32.totalorder %s24_s23, 2  ;;  %p7803_p1 = scmp.ge.s32.totalorder %s9332_s22, 1 }
   0x5   : > { %p229_p2 = scmp.lt.s32.totalorder %s9332_s22, 5 }
   0x6   : > { %s12204_s23 = smov (%p25_p0, %s24_s23), 0  ;;  %s12206_s24 = smov (!%p25_p0, %s27_s24), %s9328_s21 }
   0x7   : > { %p230_p3 = pnand %p7803_p1, %p229_p2  ;;  %p29_p4 = scmp.ge.s32.totalorder %s12206_s24, 2 }
   0x9   : > { %s12208_s24 = smov (%p29_p4, %s12206_s24), 0  ;;  %233 = sbr.rel (%p230_p3) target bundleno = 1094 (0x446), region = 40 }
  0x10   : > { %v372_v0 = vld [vmem:[%s12118_s2] sm:$0xff]  ;;  %vm701_vm0 = vcmask 1043456   ;;  %v9403_v1 = vld [vmem:[%s12118_s2 + $0x8] sm:$0xff]  ;;  %s7804_s29 = sshll.u32 %s9316_s18, 6  ;;  %p276_p5 = scmp.lt.s32.totalorder %s9320_s19, 1  ;;  %vm440_vm1 = vcmask 1046528  }
  0x11   : > { %v571_v2 = vrot.slane %v372_v0, 4  ;;  %8663 = vmatprep.subr.msk.mxu0 %vm701_vm0, %v9403_v1  ;;  %p278_p6 = scmp.lt.s32.totalorder %s7804_s29, 191  ;;  %v2444_v3 = vrot.slane %v9403_v1, 4  ;;  %s8141_s30 = sadd.s32 64, %s7804_s29  ;;  %vm572_vm2 = vcmask 31744   ;;  %vm1604_vm3 = vcmask 1045504  }
  0x12   : > { %8664 = vmatpush3.msk.msra.mxu0 %vm701_vm0, %v9403_v1  ;;  %s12210_s19 = smov (!%p276_p5, %s9320_s19), 1  ;;  %p289_p7 = scmp.lt.s32.totalorder %s8141_s30, 191  ;;  %v9474_v30 = vld [vmem:[%s12118_s2 + $0x10] sm:$0xf]  ;;  %vm2314_vm4 = vcmask 1044480   ;;  %vm5347_vm5 = vcmask 1041408  }
  0x13   : > { %8467 = vmatprep.subr.msk.mxu1 %vm701_vm0, %v571_v2  ;;  %s12212_s29 = smov (!%p278_p6, %s7804_s29), 191  ;;  %8761 = vmatprep.subr.msk.mxu0 %vm701_vm0, %v2444_v3  ;;  %s9215_s6 = smul.u32 192, %s12210_s19  ;;  %vm7396_vm6 = vcmask 1041409   ;;  %vm7398_vm7 = vcmask 1042434   ;;  %vm7400_vm8 = vcmask 1043459   ;;  %vm7402_vm9 = vcmask 1044484  }
  0x14   : > { %8468 = vmatpush3.msk.msra.mxu1 %vm701_vm0, %v571_v2  ;;  %s12214_s30 = smov (!%p289_p7, %s8141_s30), 191  ;;  %vm7404_vm10 = vcmask 1045509   ;;  %vm7406_vm11 = vcmask 1046534   ;;  %vm7408_vm12 = vcmask 1047559  }
  0x15   : > { %8565 = vmatprep.subr.msk.mxu1 %vm701_vm0, %v372_v0  ;;  %s281_s7 = sadd.s32 %s9215_s6, %s12212_s29  ;;  %s9449_s12 = sadd.s32 %s9215_s6, %s12214_s30 }
  0x16   : > { %s7805_s8 = sshll.u32 %s281_s7, 3  ;;  %s7807_s15 = sshll.u32 %s9449_s12, 3 }
  0x17   : > { %s9421_s11 = scalar_lea.vmem %s12116_s0, %s7805_s8  ;;  %s294_s25 = scalar_lea.vmem %s12117_s1, %s7807_s15 }
  0x18   : > { %v9424_v4 = vld [vmem:[%s9421_s11] sm:$0xff]  ;;  %v9427_v5 = vld [vmem:[%s9421_s11 + $0x8] sm:$0xff]  ;;  %v9430_v6 = vld [vmem:[%s9421_s11 + $0x10] sm:$0xff]  ;;  %s7808_s30 = sshll.u32 %s9316_s18, 5  ;;  %s7809_s7 = sshll.u32 %s12210_s19, 6 }
  0x19   : > { %v441_v7 = vrot.slane %v9424_v4, 1  ;;  %v442_v8 = vrot.slane %v9427_v5, 1  ;;  %v1605_v9 = vrot.slane %v9424_v4, 2  ;;  %v1606_v10 = vrot.slane %v9427_v5, 2  ;;  %v9437_v11 = vld [vmem:[%s9421_s11 + $0x18] sm:$0xff]  ;;  %v9440_v12 = vld [vmem:[%s9421_s11 + $0x20] sm:$0xff] }
  0x1a   : > { %v444_v13 = vrot.slane %v9430_v6, 1  ;;  %v1608_v14 = vrot.slane %v9430_v6, 2  ;;  %v446_v15 = vrot.slane %v9437_v11, 1  ;;  %v1610_v16 = vrot.slane %v9437_v11, 2  ;;  %v9447_v17 = vld [vmem:[%s9421_s11 + $0x28] sm:$0xff]  ;;  %v9456_v22 = vld [vmem:[%s9421_s11 + $0x30] sm:$0xff] }
  0x1b   : > { %v443_v18 = vsel %vm440_vm1, %v441_v7, %v442_v8  ;;  %v1607_v19 = vsel %vm1604_vm3, %v1605_v9, %v1606_v10  ;;  %v448_v20 = vrot.slane %v9440_v12, 1  ;;  %v1612_v21 = vrot.slane %v9440_v12, 2  ;;  %v9465_v27 = vld [vmem:[%s9421_s11 + $0x38] sm:$0xff]  ;;  %v9489_v39 = vld [vmem:[%s9421_s11 + $0x40] sm:$0xff]  ;;  %v9492_v40 = vld [vmem:[%s9421_s11 + $0x48] sm:$0xff]  ;;  %p10645_p8 = scmp.lt.s32.totalorder %s7808_s30, 63 }
  0x1c   : > { %8469 = vmatprep.mubr.msk.f32.mxu1 %vm572_vm2, %v443_v18  ;;  %8665 = vmatprep.mubr.msk.f32.mxu0 %vm572_vm2, %v1607_v19  ;;  %v445_v23 = vsel %vm440_vm1, %v442_v8, %v444_v13  ;;  %v1609_v24 = vsel %vm1604_vm3, %v1606_v10, %v1608_v14  ;;  %v447_v25 = vsel %vm440_vm1, %v444_v13, %v446_v15  ;;  %v450_v26 = vrot.slane %v9447_v17, 1  ;;  %v9511_v49 = vld [vmem:[%s9421_s11 + $0x50] sm:$0xff]  ;;  %v9514_v50 = vld [vmem:[%s9421_s11 + $0x58] sm:$0xff]  ;;  %v9529_v59 = vld [vmem:[%s9421_s11 + $0x60] sm:$0xff] }
  0x1d   : > { %8470 = vmatmul.mubr.msk.f32.vlgmr.msra.gmra.mrb[0].mxu1 %vm572_vm2, %v445_v23  ;;  %8666 = vmatmul.mubr.msk.f32.vlgmr.msra.gmra.mrb[0].mxu0 %vm572_vm2, %v1609_v24  ;;  %v1611_v28 = vsel %vm1604_vm3, %v1608_v14, %v1610_v16  ;;  %v1614_v29 = vrot.slane %v9447_v17, 2  ;;  %v449_v31 = vsel %vm440_vm1, %v446_v15, %v448_v20  ;;  %v1613_v32 = vsel %vm1604_vm3, %v1610_v16, %v1612_v21  ;;  %v9532_v60 = vld [vmem:[%s9421_s11 + $0x68] sm:$0xff]  ;;  %v9547_v9 = vld [vmem:[%s9421_s11 + $0x70] sm:$0xff]  ;;  %v9550_v10 = vld [vmem:[%s9421_s11 + $0x78] sm:$0xff]  ;;  %s12216_s30 = smov (!%p10645_p8, %s7808_s30), 63 }
  0x1e   : > { %8566 = vmatpush3.msk.msra.mxu1 %vm701_vm0, %v372_v0  ;;  %8762 = vmatpush3.msk.msra.mxu0 %vm701_vm0, %v2444_v3  ;;  %v452_v33 = vrot.slane %v9456_v22, 1  ;;  %v1616_v34 = vrot.slane %v9456_v22, 2  ;;  %v451_v35 = vsel %vm440_vm1, %v448_v20, %v450_v26  ;;  %v454_v37 = vrot.slane %v9465_v27, 1  ;;  %12143 = vst [vmem:[#allocation2_spill] sm:$0xff] %v9532_v60  ;;  %12144 = vst [vmem:[#allocation3_spill] sm:$0xff] %v9547_v9  ;;  %v9565_v23 = vld [vmem:[%s9421_s11 + $0x80] sm:$0xff]  ;;  %s10672_s18 = sadd.s32 %s7809_s7, %s12216_s30 }
  0x1f   : > { %8472 = vmatprep.mubr.msk.f32.mxu1 %vm572_vm2, %v447_v25  ;;  %8668 = vmatprep.mubr.msk.f32.mxu0 %vm572_vm2, %v1611_v28  ;;  %v1615_v36 = vsel %vm1604_vm3, %v1612_v21, %v1614_v29  ;;  %v1618_v38 = vrot.slane %v9465_v27, 2  ;;  %v456_v43 = vrot.slane %v9489_v39, 1  ;;  %v1620_v44 = vrot.slane %v9489_v39, 2  ;;  %12145 = vst [vmem:[#allocation4_spill] sm:$0xff] %v9550_v10  ;;  %12146 = vst [vmem:[#allocation5_spill] sm:$0xff] %v9565_v23  ;;  %v9568_v24 = vld [vmem:[%s9421_s11 + $0x88] sm:$0xff] }
  0x20   : > { %8859 = vmatprep.subr.msk.mxu0 %vm701_vm0, %v9474_v30  ;;  %8957 = vmatprep.subr.msk.mxu1 %vm701_vm0, %v9403_v1  ;;  %v453_v41 = vsel %vm440_vm1, %v450_v26, %v452_v33  ;;  %v1617_v42 = vsel %vm1604_vm3, %v1614_v29, %v1616_v34  ;;  %v455_v45 = vsel %vm440_vm1, %v452_v33, %v454_v37  ;;  %v458_v47 = vrot.slane %v9492_v40, 1  ;;  %s7810_s19 = sshll.u32 %s10672_s18, 3 }
  0x21   : > { %8473 = vmatmul.mubr.msk.f32.gmra.mrb[2].mxu1 %vm572_vm2, %v449_v31  ;;  %8669 = vmatmul.mubr.msk.f32.gmra.mrb[2].mxu0 %vm572_vm2, %v1613_v32  ;;  %v1619_v46 = vsel %vm1604_vm3, %v1616_v34, %v1618_v38  ;;  %v1622_v48 = vrot.slane %v9492_v40, 2  ;;  %v457_v51 = vsel %vm440_vm1, %v454_v37, %v456_v43  ;;  %v1621_v52 = vsel %vm1604_vm3, %v1618_v38, %v1620_v44  ;;  %s10694_s10 = scalar_lea.vmem %s12121_s5, %s7810_s19 }
  0x22   : > { %8475 = vmatprep.mubr.msk.f32.mxu1 %vm572_vm2, %v451_v35  ;;  %8671 = vmatprep.mubr.msk.f32.mxu0 %vm572_vm2, %v1615_v36  ;;  %v460_v53 = vrot.slane %v9511_v49, 1  ;;  %v1624_v54 = vrot.slane %v9511_v49, 2  ;;  %v459_v55 = vsel %vm440_vm1, %v456_v43, %v458_v47  ;;  %v462_v57 = vrot.slane %v9514_v50, 1  ;;  %12147 = vst [vmem:[#allocation6_spill] sm:$0xff] %v9568_v24  ;;  %v9583_v35 = vld [vmem:[%s9421_s11 + $0x90] sm:$0xff]  ;;  %v9586_v36 = vld [vmem:[%s9421_s11 + $0x98] sm:$0xff] }
  0x23   : > { %v1623_v56 = vsel %vm1604_vm3, %v1620_v44, %v1622_v48  ;;  %v1626_v58 = vrot.slane %v9514_v50, 2  ;;  %v464_v63 = vrot.slane %v9529_v59, 1  ;;  %v1628_v0 = vrot.slane %v9529_v59, 2  ;;  %12148 = vst [vmem:[#allocation7_spill] sm:$0xff] %v9583_v35  ;;  %12149 = vst [vmem:[#allocation8_spill] sm:$0xff] %v9586_v36 }
  0x24   : > { %v461_v61 = vsel %vm440_vm1, %v458_v47, %v460_v53  ;;  %v1625_v62 = vsel %vm1604_vm3, %v1622_v48, %v1624_v54  ;;  %v463_v2 = vsel %vm440_vm1, %v460_v53, %v462_v57  ;;  %v466_v7 = vrot.slane %v9532_v60, 1  ;;  %v9601_v47 = vld [vmem:[%s9421_s11 + $0xa0] sm:$0xff]  ;;  %v9604_v48 = vld [vmem:[%s9421_s11 + $0xa8] sm:$0xff] }
  0x25   : > { %8476 = vmatmul.mubr.msk.f32.gmra.mrb[4].mxu1 %vm572_vm2, %v453_v41  ;;  %8672 = vmatmul.mubr.msk.f32.gmra.mrb[4].mxu0 %vm572_vm2, %v1617_v42  ;;  %v1627_v3 = vsel %vm1604_vm3, %v1624_v54, %v1626_v58  ;;  %v1630_v8 = vrot.slane %v9532_v60, 2  ;;  %v465_v13 = vsel %vm440_vm1, %v462_v57, %v464_v63  ;;  %v1629_v14 = vsel %vm1604_vm3, %v1626_v58, %v1628_v0 }
  0x26   : > { %8478 = vmatprep.mubr.msk.f32.mxu1 %vm572_vm2, %v455_v45  ;;  %8674 = vmatprep.mubr.msk.f32.mxu0 %vm572_vm2, %v1619_v46  ;;  %v468_v15 = vrot.slane %v9547_v9, 1  ;;  %v1632_v16 = vrot.slane %v9547_v9, 2  ;;  %v467_v18 = vsel %vm440_vm1, %v464_v63, %v466_v7  ;;  %v470_v20 = vrot.slane %v9550_v10, 1  ;;  %12150 = vst [vmem:[#allocation9_spill] sm:$0xff] %v9601_v47  ;;  %12151 = vst [vmem:[#allocation10_spill] sm:$0xff] %v9604_v48 }
  0x27   : > { %v1631_v19 = vsel %vm1604_vm3, %v1628_v0, %v1630_v8  ;;  %v1634_v21 = vrot.slane %v9550_v10, 2  ;;  %v472_v28 = vrot.slane %v9565_v23, 1  ;;  %v1636_v29 = vrot.slane %v9565_v23, 2 }
  0x28   : > { %v469_v25 = vsel %vm440_vm1, %v466_v7, %v468_v15  ;;  %v1633_v26 = vsel %vm1604_vm3, %v1630_v8, %v1632_v16  ;;  %v471_v31 = vsel %vm440_vm1, %v468_v15, %v470_v20  ;;  %v474_v33 = vrot.slane %v9568_v24, 1  ;;  %v9637_v15 = vld [vmem:[%s9421_s11 + $0xc0] sm:$0xff] }
  0x29   : > { %8479 = vmatmul.mubr.msk.f32.gmra.mrb[6].mxu1 %vm572_vm2, %v457_v51  ;;  %8675 = vmatmul.mubr.msk.f32.gmra.mrb[6].mxu0 %vm572_vm2, %v1621_v52  ;;  %v1635_v32 = vsel %vm1604_vm3, %v1632_v16, %v1634_v21  ;;  %v1638_v34 = vrot.slane %v9568_v24, 2  ;;  %v473_v37 = vsel %vm440_vm1, %v470_v20, %v472_v28  ;;  %v1637_v38 = vsel %vm1604_vm3, %v1634_v21, %v1636_v29  ;;  %v9640_v16 = vld [vmem:[%s9421_s11 + $0xc8] sm:$0xff] }
  0x2a   : > { %8481 = vmatprep.mubr.msk.f32.mxu1 %vm572_vm2, %v459_v55  ;;  %8677 = vmatprep.mubr.msk.f32.mxu0 %vm572_vm2, %v1623_v56  ;;  %v476_v41 = vrot.slane %v9583_v35, 1  ;;  %v1640_v42 = vrot.slane %v9583_v35, 2  ;;  %v475_v43 = vsel %vm440_vm1, %v472_v28, %v474_v33  ;;  %v478_v45 = vrot.slane %v9586_v36, 1  ;;  %12154 = vst [vmem:[#allocation13_spill] sm:$0xff] %v9637_v15  ;;  %12155 = vst [vmem:[#allocation14_spill] sm:$0xff] %v9640_v16 }
  0x2b   : > { %v1639_v44 = vsel %vm1604_vm3, %v1636_v29, %v1638_v34  ;;  %v1642_v46 = vrot.slane %v9586_v36, 2  ;;  %v480_v53 = vrot.slane %v9601_v47, 1  ;;  %v1644_v54 = vrot.slane %v9601_v47, 2 }
  0x2c   : > { %v477_v51 = vsel %vm440_vm1, %v474_v33, %v476_v41  ;;  %v1641_v52 = vsel %vm1604_vm3, %v1638_v34, %v1640_v42  ;;  %v479_v55 = vsel %vm440_vm1, %v476_v41, %v478_v45  ;;  %v482_v57 = vrot.slane %v9604_v48, 1  ;;  %v9669_v41 = vld [vmem:[%s9421_s11 + $0xe0] sm:$0xff] }
  0x2d   : > { %8482 = vmatmul.mubr.msk.f32.gmra.mrb[8].mxu1 %vm572_vm2, %v461_v61  ;;  %8678 = vmatmul.mubr.msk.f32.gmra.mrb[8].mxu0 %vm572_vm2, %v1625_v62  ;;  %v1643_v56 = vsel %vm1604_vm3, %v1640_v42, %v1642_v46  ;;  %v1646_v58 = vrot.slane %v9604_v48, 2  ;;  %v9619_v61 = vld [vmem:[%s9421_s11 + $0xb0] sm:$0xff]  ;;  %v9622_v62 = vld [vmem:[%s9421_s11 + $0xb8] sm:$0xff]  ;;  %v481_v63 = vsel %vm440_vm1, %v478_v45, %v480_v53  ;;  %v1645_v0 = vsel %vm1604_vm3, %v1642_v46, %v1644_v54  ;;  %v9676_v46 = vld [vmem:[%s9421_s11 + $0xe8] sm:$0xff] }
  0x2e   : > { %8484 = vmatprep.mubr.msk.f32.mxu1 %vm572_vm2, %v463_v2  ;;  %8680 = vmatprep.mubr.msk.f32.mxu0 %vm572_vm2, %v1627_v3  ;;  %12152 = vst [vmem:[#allocation11_spill] sm:$0xff] %v9619_v61  ;;  %12153 = vst [vmem:[#allocation12_spill] sm:$0xff] %v9622_v62  ;;  %v484_v2 = vrot.slane %v9619_v61, 1  ;;  %v1648_v3 = vrot.slane %v9619_v61, 2  ;;  %v483_v7 = vsel %vm440_vm1, %v480_v53, %v482_v57  ;;  %v488_v20 = vrot.slane %v9637_v15, 1 }
  0x2f   : > { %v1647_v8 = vsel %vm1604_vm3, %v1644_v54, %v1646_v58  ;;  %v1652_v21 = vrot.slane %v9637_v15, 2  ;;  %v490_v28 = vrot.slane %v9640_v16, 1  ;;  %v1654_v29 = vrot.slane %v9640_v16, 2  ;;  %12158 = vst [vmem:[#allocation17_spill] sm:$0xff] %v9669_v41  ;;  %12159 = vst [vmem:[#allocation18_spill] sm:$0xff] %v9676_v46 }
  0x30   : > { %v1660_v54 = vrot.slane %v9669_v41, 2 }
  0x31   : > { %8485 = vmatmul.mubr.msk.f32.gmra.mrb[10].mxu1 %vm572_vm2, %v465_v13  ;;  %8681 = vmatmul.mubr.msk.f32.gmra.mrb[10].mxu0 %vm572_vm2, %v1629_v14  ;;  %v486_v13 = vrot.slane %v9622_v62, 1  ;;  %v1650_v14 = vrot.slane %v9622_v62, 2  ;;  %v491_v42 = vsel %vm440_vm1, %v488_v20, %v490_v28 }
  0x32   : > { %8487 = vmatprep.mubr.msk.f32.mxu1 %vm572_vm2, %v467_v18  ;;  %8683 = vmatprep.mubr.msk.f32.mxu0 %vm572_vm2, %v1631_v19  ;;  %v485_v18 = vsel %vm440_vm1, %v482_v57, %v484_v2  ;;  %v1649_v19 = vsel %vm1604_vm3, %v1646_v58, %v1648_v3  ;;  %v498_v57 = vrot.slane %v9676_v46, 1  ;;  %v1662_v58 = vrot.slane %v9676_v46, 2 }
  0x33   : > { %v489_v33 = vsel %vm440_vm1, %v486_v13, %v488_v20  ;;  %v1653_v34 = vsel %vm1604_vm3, %v1650_v14, %v1652_v21 }
  0x35   : > { %8488 = vmatmul.mubr.msk.f32.gmra.mrb[12].mxu1 %vm572_vm2, %v469_v25  ;;  %8684 = vmatmul.mubr.msk.f32.gmra.mrb[12].mxu0 %vm572_vm2, %v1633_v26  ;;  %v487_v25 = vsel %vm440_vm1, %v484_v2, %v486_v13  ;;  %v1651_v26 = vsel %vm1604_vm3, %v1648_v3, %v1650_v14  ;;  %v9706_v14 = vld [vmem:[%s9421_s11 + $0x100] sm:$0xff] }
  0x36   : > { %8490 = vmatprep.mubr.msk.f32.mxu1 %vm572_vm2, %v471_v31  ;;  %8686 = vmatprep.mubr.msk.f32.mxu0 %vm572_vm2, %v1635_v32  ;;  %v9655_v31 = vld [vmem:[%s9421_s11 + $0xd0] sm:$0xff]  ;;  %v9658_v32 = vld [vmem:[%s9421_s11 + $0xd8] sm:$0xff] }
  0x37   : > { %12156 = vst [vmem:[#allocation15_spill] sm:$0xff] %v9655_v31  ;;  %12157 = vst [vmem:[#allocation16_spill] sm:$0xff] %v9658_v32  ;;  %v1658_v45 = vrot.slane %v9658_v32, 2 }
  0x39   : > { %8491 = vmatmul.mubr.msk.f32.gmra.mrb[14].mxu1 %vm572_vm2, %v473_v37  ;;  %8687 = vmatmul.mubr.msk.f32.gmra.mrb[14].mxu0 %vm572_vm2, %v1637_v38  ;;  %v492_v37 = vrot.slane %v9655_v31, 1  ;;  %v1656_v38 = vrot.slane %v9655_v31, 2  ;;  %v1661_v3 = vsel %vm1604_vm3, %v1658_v45, %v1660_v54 }
  0x3a   : > { %8493 = vmatprep.mubr.msk.f32.mxu1 %vm572_vm2, %v475_v43  ;;  %8689 = vmatprep.mubr.msk.f32.mxu0 %vm572_vm2, %v1639_v44  ;;  %v1655_v43 = vsel %vm1604_vm3, %v1652_v21, %v1654_v29  ;;  %v494_v44 = vrot.slane %v9658_v32, 1  ;;  %v9712_v21 = vld [vmem:[%s9421_s11 + $0x108] sm:$0xff] }
  0x3b   : > { %v1657_v53 = vsel %vm1604_vm3, %v1654_v29, %v1656_v38 }
  0x3d   : > { %8494 = vmatmul.mubr.msk.f32.gmra.mrb[16].mxu1 %vm572_vm2, %v477_v51  ;;  %8690 = vmatmul.mubr.msk.f32.gmra.mrb[16].mxu0 %vm572_vm2, %v1641_v52  ;;  %v496_v51 = vrot.slane %v9669_v41, 1  ;;  %v493_v52 = vsel %vm440_vm1, %v490_v28, %v492_v37 }
  0x3e   : > { %8496 = vmatprep.mubr.msk.f32.mxu1 %vm572_vm2, %v479_v55  ;;  %8692 = vmatprep.mubr.msk.f32.mxu0 %vm572_vm2, %v1643_v56  ;;  %v495_v55 = vsel %vm440_vm1, %v492_v37, %v494_v44  ;;  %v1659_v56 = vsel %vm1604_vm3, %v1656_v38, %v1658_v45  ;;  %v506_v37 = vrot.slane %v9712_v21, 1  ;;  %v2315_v38 = vrot.slane %v9424_v4, 3 }
  0x3f   : > { %v497_v2 = vsel %vm440_vm1, %v494_v44, %v496_v51  ;;  %v9731_v44 = vld [vmem:[%s9421_s11 + $0x118] sm:$0xff] }
  0x41   : > { %8497 = vmatmul.mubr.msk.f32.gmra.mrb[18].mxu1 %vm572_vm2, %v481_v63  ;;  %8693 = vmatmul.mubr.msk.f32.gmra.mrb[18].mxu0 %vm572_vm2, %v1645_v0  ;;  %v9691_v63 = vld [vmem:[%s9421_s11 + $0xf0] sm:$0xff]  ;;  %v9694_v0 = vld [vmem:[%s9421_s11 + $0xf8] sm:$0xff] }
  0x42   : > { %8499 = vmatprep.mubr.msk.f32.mxu1 %vm572_vm2, %v483_v7  ;;  %8695 = vmatprep.mubr.msk.f32.mxu0 %vm572_vm2, %v1647_v8  ;;  %v500_v7 = vrot.slane %v9691_v63, 1  ;;  %v1664_v8 = vrot.slane %v9691_v63, 2  ;;  %v502_v13 = vrot.slane %v9694_v0, 1  ;;  %v1666_v20 = vrot.slane %v9694_v0, 2 }
  0x44   : > { %v1665_v28 = vsel %vm1604_vm3, %v1662_v58, %v1664_v8  ;;  %v503_v29 = vsel %vm440_vm1, %v500_v7, %v502_v13 }
  0x45   : > { %8500 = vmatmul.mubr.msk.f32.gmra.mrb[20].mxu1 %vm572_vm2, %v485_v18  ;;  %8696 = vmatmul.mubr.msk.f32.gmra.mrb[20].mxu0 %vm572_vm2, %v1649_v19  ;;  %v499_v18 = vsel %vm440_vm1, %v496_v51, %v498_v57  ;;  %v1663_v19 = vsel %vm1604_vm3, %v1660_v54, %v1662_v58  ;;  %v2320_v58 = vrot.slane %v9437_v11, 3 }
  0x46   : > { %8502 = vmatprep.mubr.msk.f32.mxu1 %vm572_vm2, %v487_v25  ;;  %8698 = vmatprep.mubr.msk.f32.mxu0 %vm572_vm2, %v1651_v26  ;;  %v504_v25 = vrot.slane %v9706_v14, 1  ;;  %v501_v26 = vsel %vm440_vm1, %v498_v57, %v500_v7  ;;  %v9747_v57 = vld [vmem:[%s9421_s11 + $0x120] sm:$0xff] }
  0x48   : > { %v505_v45 = vsel %vm440_vm1, %v502_v13, %v504_v25  ;;  %v507_v54 = vsel %vm440_vm1, %v504_v25, %v506_v37  ;;  %v2322_v13 = vrot.slane %v9440_v12, 3  ;;  %v9765_v25 = vld [vmem:[%s9421_s11 + $0x130] sm:$0xff] }
  0x49   : > { %8503 = vmatmul.mubr.msk.f32.gmra.mrb[22].mxu1 %vm572_vm2, %v489_v33  ;;  %8699 = vmatmul.mubr.msk.f32.gmra.mrb[22].mxu0 %vm572_vm2, %v1653_v34  ;;  %v12122_v33 = vrot.slane %v9706_v14, 2  ;;  %v1667_v34 = vsel %vm1604_vm3, %v1664_v8, %v1666_v20  ;;  %v512_v8 = vrot.slane %v9747_v57, 1 }
  0x4a   : > { %8505 = vmatprep.mubr.msk.f32.mxu1 %vm572_vm2, %v491_v42  ;;  %8701 = vmatprep.mubr.msk.f32.mxu0 %vm572_vm2, %v1655_v43  ;;  %v2316_v42 = vrot.slane %v9427_v5, 3  ;;  %v9728_v43 = vld [vmem:[%s9421_s11 + $0x110] sm:$0xff] }
  0x4b   : > { %v1669_v51 = vsel %vm1604_vm3, %v1666_v20, %v12122_v33  ;;  %v2324_v20 = vrot.slane %v9447_v17, 3 }
  0x4d   : > { %8506 = vmatmul.mubr.msk.f32.gmra.mrb[24].mxu1 %vm572_vm2, %v493_v52  ;;  %8702 = vmatmul.mubr.msk.f32.gmra.mrb[24].mxu0 %vm572_vm2, %v1657_v53  ;;  %v508_v52 = vrot.slane %v9728_v43, 1  ;;  %v2318_v53 = vrot.slane %v9430_v6, 3 }
  0x4e   : > { %8508 = vmatprep.mubr.msk.f32.mxu1 %vm572_vm2, %v495_v55  ;;  %8704 = vmatprep.mubr.msk.f32.mxu0 %vm572_vm2, %v1659_v56  ;;  %v2317_v55 = vsel %vm2314_vm4, %v2315_v38, %v2316_v42  ;;  %v510_v56 = vrot.slane %v9731_v44, 1  ;;  %v2326_v38 = vrot.slane %v9456_v22, 3 }
  0x4f   : > { %v2319_v7 = vsel %vm2314_vm4, %v2316_v42, %v2318_v53 }
  0x51   : > { %8509 = vmatmul.mubr.msk.f32.gmra.mrb[26].mxu1 %vm572_vm2, %v497_v2  ;;  %8705 = vmatmul.mubr.msk.f32.gmra.mrb[26].mxu0 %vm572_vm2, %v1661_v3  ;;  %v9751_v2 = vld [vmem:[%s9421_s11 + $0x128] sm:$0xff]  ;;  %v509_v3 = vsel %vm440_vm1, %v506_v37, %v508_v52  ;;  %v516_v37 = vrot.slane %v9765_v25, 1 }
  0x52   : > { %8511 = vmatprep.mubr.msk.f32.mxu1 %vm572_vm2, %v499_v18  ;;  %8707 = vmatprep.mubr.msk.f32.mxu0 %vm572_vm2, %v1663_v19  ;;  %v511_v18 = vsel %vm440_vm1, %v508_v52, %v510_v56  ;;  %v514_v19 = vrot.slane %v9751_v2, 1  ;;  %v9786_v52 = vld [vmem:[%s9421_s11 + $0x140] sm:$0xff] }
  0x54   : > { %v515_v42 = vsel %vm440_vm1, %v512_v8, %v514_v19 }
  0x55   : > { %8512 = vmatmul.mubr.msk.f32.gmra.mrb[28].mxu1 %vm572_vm2, %v501_v26  ;;  %8708 = vmatmul.mubr.msk.f32.gmra.mrb[28].mxu0 %vm572_vm2, %v1665_v28  ;;  %v2321_v26 = vsel %vm2314_vm4, %v2318_v53, %v2320_v58  ;;  %v9769_v28 = vld [vmem:[%s9421_s11 + $0x138] sm:$0xff]  ;;  %v9789_v53 = vld [vmem:[%s9421_s11 + $0x148] sm:$0xff] }
  0x56   : > { %8514 = vmatprep.mubr.msk.f32.mxu1 %vm572_vm2, %v503_v29  ;;  %8710 = vmatprep.mubr.msk.f32.mxu0 %vm572_vm2, %v1667_v34  ;;  %v513_v29 = vsel %vm440_vm1, %v510_v56, %v512_v8  ;;  %v2323_v34 = vsel %vm2314_vm4, %v2320_v58, %v2322_v13  ;;  %v520_v56 = vrot.slane %v9786_v52, 1  ;;  %v2330_v58 = vrot.slane %v9489_v39, 3 }
  0x57   : > { %v522_v8 = vrot.slane %v9789_v53, 1 }
  0x59   : > { %8515 = vmatmul.mubr.msk.f32.gmra.mrb[30].mxu1 %vm572_vm2, %v505_v45  ;;  %8711 = vmatmul.mubr.msk.f32.gmra.mrb[30].mxu0 %vm572_vm2, %v1669_v51  ;;  %v2325_v45 = vsel %vm2314_vm4, %v2322_v13, %v2324_v20  ;;  %v518_v51 = vrot.slane %v9769_v28, 1  ;;  %v2332_v13 = vrot.slane %v9492_v40, 3 }
  0x5a   : > { %8517 = vmatprep.mubr.msk.f32.mxu1 %vm572_vm2, %v507_v54  ;;  %8763 = vmatprep.mubr.msk.f32.mxu0 %vm572_vm2, %v2317_v55  ;;  %v517_v54 = vsel %vm440_vm1, %v514_v19, %v516_v37  ;;  %v2327_v55 = vsel %vm2314_vm4, %v2324_v20, %v2326_v38 }
  0x5b   : > { %v521_v19 = vsel %vm440_vm1, %v518_v51, %v520_v56 }
  0x5d   : > { %8518 = vmatmul.mubr.msk.f32.gmra.mrb[32].mxu1 %vm572_vm2, %v509_v3  ;;  %8764 = vmatmul.mubr.msk.f32.vlgmr.msra.gmra.mrb[0].mxu0 %vm572_vm2, %v2319_v7  ;;  %v519_v3 = vsel %vm440_vm1, %v516_v37, %v518_v51  ;;  %v523_v37 = vsel %vm440_vm1, %v520_v56, %v522_v8 }
  0x5e   : > { %8860 = vmatpush3.msk.msra.mxu0 %vm701_vm0, %v9474_v30  ;;  %8520 = vmatprep.mubr.msk.f32.mxu1 %vm572_vm2, %v511_v18  ;;  %v2328_v30 = vrot.slane %v9465_v27, 3  ;;  %v9804_v18 = vld [vmem:[%s9421_s11 + $0x150] sm:$0xff] }
  0x5f   : > { %8766 = vmatprep.mubr.msk.f32.mxu0 %vm572_vm2, %v2321_v26  ;;  %v9807_v26 = vld [vmem:[%s9421_s11 + $0x158] sm:$0xff] }
  0x60   : > { %v2329_v7 = vsel %vm2314_vm4, %v2326_v38, %v2328_v30  ;;  %v2331_v20 = vsel %vm2314_vm4, %v2328_v30, %v2330_v58  ;;  %v2333_v38 = vsel %vm2314_vm4, %v2330_v58, %v2332_v13  ;;  %v2338_v58 = vrot.slane %v9529_v59, 3 }
  0x61   : > { %8521 = vmatmul.mubr.msk.f32.gmra.mrb[34].mxu1 %vm572_vm2, %v513_v29  ;;  %8767 = vmatmul.mubr.msk.f32.gmra.mrb[2].mxu0 %vm572_vm2, %v2323_v34  ;;  %v524_v29 = vrot.slane %v9804_v18, 1  ;;  %v2334_v34 = vrot.slane %v9511_v49, 3 }
  0x62   : > { %8523 = vmatprep.mubr.msk.f32.mxu1 %vm572_vm2, %v515_v42  ;;  %8769 = vmatprep.mubr.msk.f32.mxu0 %vm572_vm2, %v2325_v45  ;;  %v526_v42 = vrot.slane %v9807_v26, 1  ;;  %v2336_v45 = vrot.slane %v9514_v50, 3 }
  0x63   : > { %v525_v51 = vsel %vm440_vm1, %v522_v8, %v524_v29  ;;  %v2335_v30 = vsel %vm2314_vm4, %v2332_v13, %v2334_v34 }
  0x64   : > { %v2339_v13 = vsel %vm2314_vm4, %v2336_v45, %v2338_v58 }
  0x65   : > { %8524 = vmatmul.mubr.msk.f32.gmra.mrb[36].mxu1 %vm572_vm2, %v517_v54  ;;  %8770 = vmatmul.mubr.msk.f32.gmra.mrb[4].mxu0 %vm572_vm2, %v2327_v55  ;;  %v9822_v54 = vld [vmem:[%s9421_s11 + $0x160] sm:$0xff]  ;;  %v9825_v55 = vld [vmem:[%s9421_s11 + $0x168] sm:$0xff] }
  0x66   : > { %8526 = vmatprep.mubr.msk.f32.mxu1 %vm572_vm2, %v519_v3  ;;  %8772 = vmatprep.mubr.msk.f32.mxu0 %vm572_vm2, %v2329_v7  ;;  %v528_v56 = vrot.slane %v9822_v54, 1  ;;  %v527_v3 = vsel %vm440_vm1, %v524_v29, %v526_v42  ;;  %v2337_v7 = vsel %vm2314_vm4, %v2334_v34, %v2336_v45  ;;  %v2342_v34 = vrot.slane %v9547_v9, 3 }
  0x68   : > { %v529_v8 = vsel %vm440_vm1, %v526_v42, %v528_v56 }
  0x69   : > { %8527 = vmatmul.mubr.msk.f32.gmra.mrb[38].mxu1 %vm572_vm2, %v521_v19  ;;  %8773 = vmatmul.mubr.msk.f32.gmra.mrb[6].mxu0 %vm572_vm2, %v2331_v20  ;;  %v530_v19 = vrot.slane %v9825_v55, 1  ;;  %v2340_v20 = vrot.slane %v9532_v60, 3 }
  0x6a   : > { %8529 = vmatprep.mubr.msk.f32.mxu1 %vm572_vm2, %v523_v37  ;;  %8775 = vmatprep.mubr.msk.f32.mxu0 %vm572_vm2, %v2333_v38  ;;  %v9840_v37 = vld [vmem:[%s9421_s11 + $0x170] sm:$0xff]  ;;  %v9843_v38 = vld [vmem:[%s9421_s11 + $0x178] sm:$0xff] }
  0x6b   : > { %v532_v29 = vrot.slane %v9840_v37, 1  ;;  %v531_v33 = vsel %vm440_vm1, %v528_v56, %v530_v19  ;;  %v2341_v60 = vsel %vm2314_vm4, %v2338_v58, %v2340_v20  ;;  %v2343_v45 = vsel %vm2314_vm4, %v2340_v20, %v2342_v34 }
  0x6c   : > { %v2346_v58 = vrot.slane %v9565_v23, 3 }
  0x6d   : > { %8530 = vmatmul.mubr.msk.f32.gmra.mrb[40].mxu1 %vm572_vm2, %v525_v51  ;;  %8776 = vmatmul.mubr.msk.f32.gmra.mrb[8].mxu0 %vm572_vm2, %v2335_v30  ;;  %v534_v51 = vrot.slane %v9843_v38, 1  ;;  %v2344_v30 = vrot.slane %v9550_v10, 3  ;;  %v533_v42 = vsel %vm440_vm1, %v530_v19, %v532_v29 }
  0x6e   : > { %8532 = vmatprep.mubr.msk.f32.mxu1 %vm572_vm2, %v527_v3  ;;  %8778 = vmatprep.mubr.msk.f32.mxu0 %vm572_vm2, %v2337_v7  ;;  %v9858_v3 = vld [vmem:[%s9421_s11 + $0x180] sm:$0xff]  ;;  %v9861_v7 = vld [vmem:[%s9421_s11 + $0x188] sm:$0xff] }
  0x6f   : > { %v536_v56 = vrot.slane %v9858_v3, 1  ;;  %v535_v10 = vsel %vm440_vm1, %v532_v29, %v534_v51  ;;  %v2345_v9 = vsel %vm2314_vm4, %v2342_v34, %v2344_v30  ;;  %v2347_v20 = vsel %vm2314_vm4, %v2344_v30, %v2346_v58 }
  0x70   : > { %v2350_v34 = vrot.slane %v9583_v35, 3 }
  0x71   : > { %8533 = vmatmul.mubr.msk.f32.gmra.mrb[42].mxu1 %vm572_vm2, %v529_v8  ;;  %8779 = vmatmul.mubr.msk.f32.gmra.mrb[10].mxu0 %vm572_vm2, %v2339_v13  ;;  %v538_v8 = vrot.slane %v9861_v7, 1  ;;  %v2348_v13 = vrot.slane %v9568_v24, 3  ;;  %v537_v19 = vsel %vm440_vm1, %v534_v51, %v536_v56 }
  0x72   : > { %8535 = vmatprep.mubr.msk.f32.mxu1 %vm572_vm2, %v531_v33  ;;  %8781 = vmatprep.mubr.msk.f32.mxu0 %vm572_vm2, %v2341_v60  ;;  %v9876_v33 = vld [vmem:[%s9421_s11 + $0x190] sm:$0xff]  ;;  %v9879_v60 = vld [vmem:[%s9421_s11 + $0x198] sm:$0xff] }
  0x73   : > { %v540_v29 = vrot.slane %v9876_v33, 1  ;;  %v539_v24 = vsel %vm440_vm1, %v536_v56, %v538_v8  ;;  %v2349_v23 = vsel %vm2314_vm4, %v2346_v58, %v2348_v13  ;;  %v2351_v30 = vsel %vm2314_vm4, %v2348_v13, %v2350_v34 }
  0x74   : > { %v2354_v58 = vrot.slane %v9601_v47, 3 }
  0x75   : > { %8536 = vmatmul.mubr.msk.f32.gmra.mrb[44].mxu1 %vm572_vm2, %v533_v42  ;;  %8782 = vmatmul.mubr.msk.f32.gmra.mrb[12].mxu0 %vm572_vm2, %v2343_v45  ;;  %v542_v42 = vrot.slane %v9879_v60, 1  ;;  %v2352_v45 = vrot.slane %v9586_v36, 3  ;;  %v541_v51 = vsel %vm440_vm1, %v538_v8, %v540_v29 }
  0x76   : > { %8538 = vmatprep.mubr.msk.f32.mxu1 %vm572_vm2, %v535_v10  ;;  %8784 = vmatprep.mubr.msk.f32.mxu0 %vm572_vm2, %v2345_v9  ;;  %v9894_v10 = vld [vmem:[%s9421_s11 + $0x1a0] sm:$0xff]  ;;  %v9897_v9 = vld [vmem:[%s9421_s11 + $0x1a8] sm:$0xff] }
  0x77   : > { %v544_v56 = vrot.slane %v9894_v10, 1  ;;  %v543_v36 = vsel %vm440_vm1, %v540_v29, %v542_v42  ;;  %v2353_v35 = vsel %vm2314_vm4, %v2350_v34, %v2352_v45  ;;  %v2355_v13 = vsel %vm2314_vm4, %v2352_v45, %v2354_v58 }
  0x78   : > { %v2358_v34 = vrot.slane %v9619_v61, 3 }
  0x79   : > { %8539 = vmatmul.mubr.msk.f32.gmra.mrb[46].mxu1 %vm572_vm2, %v537_v19  ;;  %8785 = vmatmul.mubr.msk.f32.gmra.mrb[14].mxu0 %vm572_vm2, %v2347_v20  ;;  %v546_v19 = vrot.slane %v9897_v9, 1  ;;  %v2356_v20 = vrot.slane %v9604_v48, 3  ;;  %v545_v8 = vsel %vm440_vm1, %v542_v42, %v544_v56 }
  0x7a   : > { %8541 = vmatprep.mubr.msk.f32.mxu1 %vm572_vm2, %v539_v24  ;;  %8787 = vmatprep.mubr.msk.f32.mxu0 %vm572_vm2, %v2349_v23  ;;  %v9912_v24 = vld [vmem:[%s9421_s11 + $0x1b0] sm:$0xff]  ;;  %v9915_v23 = vld [vmem:[%s9421_s11 + $0x1b8] sm:$0xff] }
  0x7b   : > { %v548_v29 = vrot.slane %v9912_v24, 1  ;;  %v547_v48 = vsel %vm440_vm1, %v544_v56, %v546_v19  ;;  %v2357_v47 = vsel %vm2314_vm4, %v2354_v58, %v2356_v20  ;;  %v2359_v45 = vsel %vm2314_vm4, %v2356_v20, %v2358_v34 }
  0x7c   : > { %v2362_v58 = vrot.slane %v9637_v15, 3 }
  0x7d   : > { %8542 = vmatmul.mubr.msk.f32.gmra.mrb[48].mxu1 %vm572_vm2, %v541_v51  ;;  %8788 = vmatmul.mubr.msk.f32.gmra.mrb[16].mxu0 %vm572_vm2, %v2351_v30  ;;  %v550_v51 = vrot.slane %v9915_v23, 1  ;;  %v2360_v30 = vrot.slane %v9622_v62, 3  ;;  %v549_v42 = vsel %vm440_vm1, %v546_v19, %v548_v29 }
  0x7e   : > { %8544 = vmatprep.mubr.msk.f32.mxu1 %vm572_vm2, %v543_v36  ;;  %8790 = vmatprep.mubr.msk.f32.mxu0 %vm572_vm2, %v2353_v35  ;;  %v9930_v36 = vld [vmem:[%s9421_s11 + $0x1c0] sm:$0xff]  ;;  %v9933_v35 = vld [vmem:[%s9421_s11 + $0x1c8] sm:$0xff] }
  0x7f   : > { %v552_v56 = vrot.slane %v9930_v36, 1  ;;  %v551_v62 = vsel %vm440_vm1, %v548_v29, %v550_v51  ;;  %v2361_v61 = vsel %vm2314_vm4, %v2358_v34, %v2360_v30  ;;  %v2363_v20 = vsel %vm2314_vm4, %v2360_v30, %v2362_v58 }
  0x80   : > { %v2366_v34 = vrot.slane %v9655_v31, 3 }
  0x81   : > { %8545 = vmatmul.mubr.msk.f32.gmra.mrb[50].mxu1 %vm572_vm2, %v545_v8  ;;  %8791 = vmatmul.mubr.msk.f32.gmra.mrb[18].mxu0 %vm572_vm2, %v2355_v13  ;;  %v554_v8 = vrot.slane %v9933_v35, 1  ;;  %v2364_v13 = vrot.slane %v9640_v16, 3  ;;  %v553_v19 = vsel %vm440_vm1, %v550_v51, %v552_v56 }
  0x82   : > { %8547 = vmatprep.mubr.msk.f32.mxu1 %vm572_vm2, %v547_v48  ;;  %8793 = vmatprep.mubr.msk.f32.mxu0 %vm572_vm2, %v2357_v47  ;;  %v9948_v48 = vld [vmem:[%s9421_s11 + $0x1d0] sm:$0xff]  ;;  %v9951_v47 = vld [vmem:[%s9421_s11 + $0x1d8] sm:$0xff] }
  0x83   : > { %12160 = vst [vmem:[#allocation19_spill] sm:$0xff] %v9951_v47  ;;  %v556_v29 = vrot.slane %v9948_v48, 1  ;;  %v555_v16 = vsel %vm440_vm1, %v552_v56, %v554_v8  ;;  %v2365_v15 = vsel %vm2314_vm4, %v2362_v58, %v2364_v13  ;;  %v2367_v30 = vsel %vm2314_vm4, %v2364_v13, %v2366_v34 }
  0x84   : > { %v2370_v58 = vrot.slane %v9669_v41, 3  ;;  %v10005_v41 = vld [vmem:[%s294_s25] sm:$0xff] }
  0x85   : > { %8548 = vmatmul.mubr.msk.f32.gmra.mrb[52].mxu1 %vm572_vm2, %v549_v42  ;;  %8794 = vmatmul.mubr.msk.f32.gmra.mrb[20].mxu0 %vm572_vm2, %v2359_v45  ;;  %v558_v42 = vrot.slane %v9951_v47, 1  ;;  %v2368_v45 = vrot.slane %v9658_v32, 3  ;;  %v557_v51 = vsel %vm440_vm1, %v554_v8, %v556_v29  ;;  %v9985_v47 = vld [vmem:[%s9421_s11 + $0x1f0] sm:$0xff] }
  0x86   : > { %8550 = vmatprep.mubr.msk.f32.mxu1 %vm572_vm2, %v551_v62  ;;  %8796 = vmatprep.mubr.msk.f32.mxu0 %vm572_vm2, %v2361_v61  ;;  %v9966_v62 = vld [vmem:[%s9421_s11 + $0x1e0] sm:$0xff]  ;;  %v9969_v61 = vld [vmem:[%s9421_s11 + $0x1e8] sm:$0xff]  ;;  %v564_v13 = vrot.slane %v9985_v47, 1 }
  0x87   : > { %v560_v56 = vrot.slane %v9966_v62, 1  ;;  %v559_v32 = vsel %vm440_vm1, %v556_v29, %v558_v42  ;;  %v2369_v31 = vsel %vm2314_vm4, %v2366_v34, %v2368_v45  ;;  %v2371_v8 = vsel %vm2314_vm4, %v2368_v45, %v2370_v58 }
  0x88   : > { %v2374_v29 = vrot.slane %v9691_v63, 3  ;;  %v2378_v45 = vrot.slane %v9706_v14, 3 }
  0x89   : > { %8551 = vmatmul.mubr.msk.f32.gmra.mrb[54].mxu1 %vm572_vm2, %v553_v19  ;;  %8797 = vmatmul.mubr.msk.f32.gmra.mrb[22].mxu0 %vm572_vm2, %v2363_v20  ;;  %v562_v19 = vrot.slane %v9969_v61, 1  ;;  %v2372_v20 = vrot.slane %v9676_v46, 3 }
  0x8a   : > { %8553 = vmatprep.mubr.msk.f32.mxu1 %vm572_vm2, %v555_v16  ;;  %8799 = vmatprep.mubr.msk.f32.mxu0 %vm572_vm2, %v2365_v15  ;;  %v9988_v16 = vld [vmem:[%s9421_s11 + $0x1f8] sm:$0xff]  ;;  %v561_v15 = vsel %vm440_vm1, %v558_v42, %v560_v56  ;;  %v568_v42 = vrot.slane %v10005_v41, 1 }
  0x8b   : > { %v563_v34 = vsel %vm440_vm1, %v560_v56, %v562_v19  ;;  %v2373_v46 = vsel %vm2314_vm4, %v2370_v58, %v2372_v20 }
  0x8d   : > { %8554 = vmatmul.mubr.msk.f32.gmra.mrb[56].mxu1 %vm572_vm2, %v557_v51  ;;  %8800 = vmatmul.mubr.msk.f32.gmra.mrb[24].mxu0 %vm572_vm2, %v2367_v30  ;;  %v566_v51 = vrot.slane %v9988_v16, 1  ;;  %v2376_v30 = vrot.slane %v9694_v0, 3 }
  0x8e   : > { %8556 = vmatprep.mubr.msk.f32.mxu1 %vm572_vm2, %v559_v32  ;;  %8802 = vmatprep.mubr.msk.f32.mxu0 %vm572_vm2, %v2369_v31  ;;  %v565_v31 = vsel %vm440_vm1, %v562_v19, %v564_v13  ;;  %v2375_v32 = vsel %vm2314_vm4, %v2372_v20, %v2374_v29  ;;  %v2382_v20 = vrot.slane %v9728_v43, 3 }
  0x8f   : > { %v567_v56 = vsel %vm440_vm1, %v564_v13, %v566_v51  ;;  %v2377_v58 = vsel %vm2314_vm4, %v2374_v29, %v2376_v30  ;;  %v2379_v19 = vsel %vm2314_vm4, %v2376_v30, %v2378_v45  ;;  %v2384_v13 = vrot.slane %v9731_v44, 3 }
  0x91   : > { %8557 = vmatmul.mubr.msk.f32.gmra.mrb[58].mxu1 %vm572_vm2, %v561_v15  ;;  %8803 = vmatmul.mubr.msk.f32.gmra.mrb[26].mxu0 %vm572_vm2, %v2371_v8  ;;  %v2380_v15 = vrot.slane %v9712_v21, 3  ;;  %v2385_v30 = vsel %vm2314_vm4, %v2382_v20, %v2384_v13 }
  0x92   : > { %8559 = vmatprep.mubr.msk.f32.mxu1 %vm572_vm2, %v563_v34  ;;  %8805 = vmatprep.mubr.msk.f32.mxu0 %vm572_vm2, %v2373_v46  ;;  %v569_v46 = vsel %vm440_vm1, %v566_v51, %v568_v42  ;;  %v2386_v34 = vrot.slane %v9747_v57, 3  ;;  %v2388_v51 = vrot.slane %v9751_v2, 3  ;;  %v2392_v42 = vrot.slane %v9769_v28, 3 }
  0x93   : > { %v2381_v8 = vsel %vm2314_vm4, %v2378_v45, %v2380_v15  ;;  %v2383_v29 = vsel %vm2314_vm4, %v2380_v15, %v2382_v20  ;;  %v2396_v45 = vrot.slane %v9789_v53, 3  ;;  %v2408_v20 = vrot.slane %v9843_v38, 3 }
  0x95   : > { %8560 = vmatmul.mubr.msk.f32.gmra.mrb[60].mxu1 %vm572_vm2, %v565_v31  ;;  %8806 = vmatmul.mubr.msk.f32.gmra.mrb[28].mxu0 %vm572_vm2, %v2375_v32  ;;  %v2390_v31 = vrot.slane %v9765_v25, 3  ;;  %v2389_v32 = vsel %vm2314_vm4, %v2386_v34, %v2388_v51 }
  0x96   : > { %8562 = vmatprep.mubr.msk.f32.mxu1 %vm572_vm2, %v567_v56  ;;  %8808 = vmatprep.mubr.msk.f32.mxu0 %vm572_vm2, %v2377_v58  ;;  %v2400_v58 = vrot.slane %v9807_v26, 3 }
  0x99   : > { %8563 = vmatmul.mubr.msk.f32.gmra.mrb[62].mxu1 %vm572_vm2, %v569_v46  ;;  %8809 = vmatmul.mubr.msk.f32.gmra.mrb[30].mxu0 %vm572_vm2, %v2379_v19  ;;  %v2404_v46 = vrot.slane %v9825_v55, 3 }
  0x9a   : > { %8567 = vmatprep.mubr.msk.f32.mxu1 %vm572_vm2, %v9424_v4  ;;  %8811 = vmatprep.mubr.msk.f32.mxu0 %vm572_vm2, %v2381_v8  ;;  %v2387_v4 = vsel %vm2314_vm4, %v2384_v13, %v2386_v34  ;;  %v2412_v13 = vrot.slane %v9861_v7, 3  ;;  %v2414_v34 = vrot.slane %v9876_v33, 3 }
  0x9d   : > { %8568 = vmatmul.mubr.msk.f32.vlgmr.msra.gmra.mrb[0].mxu1 %vm572_vm2, %v9427_v5  ;;  %8812 = vmatmul.mubr.msk.f32.gmra.mrb[32].mxu0 %vm572_vm2, %v2383_v29  ;;  %v2394_v5 = vrot.slane %v9786_v52, 3  ;;  %v12161_v29 = vld [vmem:[#allocation2_spill] sm:$0xff] }
  0x9e   : > { %8958 = vmatpush3.msk.msra.mxu1 %vm701_vm0, %v9403_v1  ;;  %8570 = vmatprep.mubr.msk.f32.mxu1 %vm572_vm2, %v9430_v6  ;;  %v2391_v1 = vsel %vm2314_vm4, %v2388_v51, %v2390_v31  ;;  %v2393_v6 = vsel %vm2314_vm4, %v2390_v31, %v2392_v42  ;;  %v12164_v31 = vld [vmem:[#allocation5_spill] sm:$0xff] }
  0x9f   : > { %8814 = vmatprep.mubr.msk.f32.mxu0 %vm572_vm2, %v2385_v30  ;;  %v2397_v56 = vsel %vm2314_vm4, %v2394_v5, %v2396_v45  ;;  %v2416_v30 = vrot.slane %v9879_v60, 3 }
  0xa1   : > { %8571 = vmatmul.mubr.msk.f32.gmra.mrb[2].mxu1 %vm572_vm2, %v9437_v11  ;;  %8815 = vmatmul.mubr.msk.f32.gmra.mrb[34].mxu0 %vm572_vm2, %v2387_v4  ;;  %v2395_v11 = vsel %vm2314_vm4, %v2392_v42, %v2394_v5  ;;  %v12163_v4 = vld [vmem:[#allocation4_spill] sm:$0xff]  ;;  %v2418_v42 = vrot.slane %v9894_v10, 3  ;;  %v2420_v5 = vrot.slane %v9897_v9, 3 }
  0xa2   : > { %8573 = vmatprep.mubr.msk.f32.mxu1 %vm572_vm2, %v9440_v12  ;;  %8817 = vmatprep.mubr.msk.f32.mxu0 %vm572_vm2, %v2389_v32  ;;  %v2398_v12 = vrot.slane %v9804_v18, 3  ;;  %v2415_v32 = vsel %vm2314_vm4, %v2412_v13, %v2414_v34 }
  0xa4   : > { %v2401_v15 = vsel %vm2314_vm4, %v2398_v12, %v2400_v58 }
  0xa5   : > { %8574 = vmatmul.mubr.msk.f32.gmra.mrb[4].mxu1 %vm572_vm2, %v9447_v17  ;;  %8818 = vmatmul.mubr.msk.f32.gmra.mrb[36].mxu0 %vm572_vm2, %v2391_v1  ;;  %v2399_v17 = vsel %vm2314_vm4, %v2396_v45, %v2398_v12  ;;  %v2417_v1 = vsel %vm2314_vm4, %v2414_v34, %v2416_v30  ;;  %v12166_v45 = vld [vmem:[#allocation7_spill] sm:$0xff]  ;;  %v2422_v12 = vrot.slane %v9912_v24, 3 }
  0xa6   : > { %8576 = vmatprep.mubr.msk.f32.mxu1 %vm572_vm2, %v9456_v22  ;;  %8820 = vmatprep.mubr.msk.f32.mxu0 %vm572_vm2, %v2393_v6  ;;  %v2402_v22 = vrot.slane %v9822_v54, 3  ;;  %v12165_v6 = vld [vmem:[#allocation6_spill] sm:$0xff] }
  0xa8   : > { %v2405_v19 = vsel %vm2314_vm4, %v2402_v22, %v2404_v46 }
  0xa9   : > { %8577 = vmatmul.mubr.msk.f32.gmra.mrb[6].mxu1 %vm572_vm2, %v9465_v27  ;;  %8821 = vmatmul.mubr.msk.f32.gmra.mrb[38].mxu0 %vm572_vm2, %v2395_v11  ;;  %v2403_v27 = vsel %vm2314_vm4, %v2400_v58, %v2402_v22  ;;  %v2419_v11 = vsel %vm2314_vm4, %v2416_v30, %v2418_v42  ;;  %v2424_v58 = vrot.slane %v9915_v23, 3  ;;  %v12168_v22 = vld [vmem:[#allocation9_spill] sm:$0xff] }
  0xaa   : > { %8579 = vmatprep.mubr.msk.f32.mxu1 %vm572_vm2, %v9489_v39  ;;  %8823 = vmatprep.mubr.msk.f32.mxu0 %vm572_vm2, %v2397_v56  ;;  %v2406_v39 = vrot.slane %v9840_v37, 3  ;;  %v2421_v56 = vsel %vm2314_vm4, %v2418_v42, %v2420_v5 }
  0xac   : > { %v2409_v8 = vsel %vm2314_vm4, %v2406_v39, %v2408_v20 }
  0xad   : > { %8580 = vmatmul.mubr.msk.f32.gmra.mrb[8].mxu1 %vm572_vm2, %v9492_v40  ;;  %8824 = vmatmul.mubr.msk.f32.gmra.mrb[40].mxu0 %vm572_vm2, %v2399_v17  ;;  %v2407_v40 = vsel %vm2314_vm4, %v2404_v46, %v2406_v39  ;;  %v12167_v17 = vld [vmem:[#allocation8_spill] sm:$0xff]  ;;  %v2426_v46 = vrot.slane %v9930_v36, 3  ;;  %v2428_v39 = vrot.slane %v9933_v35, 3 }
  0xae   : > { %8582 = vmatprep.mubr.msk.f32.mxu1 %vm572_vm2, %v9511_v49  ;;  %8826 = vmatprep.mubr.msk.f32.mxu0 %vm572_vm2, %v2401_v15  ;;  %v2410_v49 = vrot.slane %v9858_v3, 3  ;;  %v2423_v15 = vsel %vm2314_vm4, %v2420_v5, %v2422_v12 }
  0xb0   : > { %v2413_v51 = vsel %vm2314_vm4, %v2410_v49, %v2412_v13  ;;  %v12171_v13 = vld [vmem:[#allocation19_spill] sm:$0xff] }
  0xb1   : > { %8583 = vmatmul.mubr.msk.f32.gmra.mrb[10].mxu1 %vm572_vm2, %v9514_v50  ;;  %8827 = vmatmul.mubr.msk.f32.gmra.mrb[42].mxu0 %vm572_vm2, %v2403_v27  ;;  %v12162_v50 = vld [vmem:[#allocation3_spill] sm:$0xff]  ;;  %v2425_v27 = vsel %vm2314_vm4, %v2422_v12, %v2424_v58 }
  0xb2   : > { %8585 = vmatprep.mubr.msk.f32.mxu1 %vm572_vm2, %v9529_v59  ;;  %8829 = vmatprep.mubr.msk.f32.mxu0 %vm572_vm2, %v2405_v19  ;;  %v2411_v59 = vsel %vm2314_vm4, %v2408_v20, %v2410_v49  ;;  %v12169_v19 = vld [vmem:[#allocation10_spill] sm:$0xff]  ;;  %v12170_v20 = vld [vmem:[#allocation11_spill] sm:$0xff]  ;;  %v2430_v49 = vrot.slane %v9948_v48, 3 }
  0xb4   : > { %v2431_v34 = vsel %vm2314_vm4, %v2428_v39, %v2430_v49 }
  0xb5   : > { %8586 = vmatmul.mubr.msk.f32.gmra.mrb[12].mxu1 %vm572_vm2, %v12161_v29  ;;  %8830 = vmatmul.mubr.msk.f32.gmra.mrb[44].mxu0 %vm572_vm2, %v2407_v40  ;;  %v2427_v40 = vsel %vm2314_vm4, %v2424_v58, %v2426_v46  ;;  %v2432_v29 = vrot.slane %v12171_v13, 3 }
  0xb6   : > { %8588 = vmatprep.mubr.msk.f32.mxu1 %vm572_vm2, %v12162_v50  ;;  %8832 = vmatprep.mubr.msk.f32.mxu0 %vm572_vm2, %v2409_v8  ;;  %v2429_v8 = vsel %vm2314_vm4, %v2426_v46, %v2428_v39  ;;  %v12172_v50 = vld [vmem:[#allocation12_spill] sm:$0xff] }
  0xb7   : > { %v2433_v30 = vsel %vm2314_vm4, %v2430_v49, %v2432_v29  ;;  %v9260_v49 = vld [vmem:[%s9421_s11 + $0x18] sm:$0xff] }
  0xb9   : > { %8589 = vmatmul.mubr.msk.f32.gmra.mrb[14].mxu1 %vm572_vm2, %v12163_v4  ;;  %8833 = vmatmul.mubr.msk.f32.gmra.mrb[46].mxu0 %vm572_vm2, %v2411_v59  ;;  %v12173_v59 = vld [vmem:[#allocation13_spill] sm:$0xff]  ;;  %v2436_v4 = vrot.slane %v9969_v61, 3 }
  0xba   : > { %8591 = vmatprep.mubr.msk.f32.mxu1 %vm572_vm2, %v12164_v31  ;;  %8835 = vmatprep.mubr.msk.f32.mxu0 %vm572_vm2, %v2413_v51  ;;  %v2434_v51 = vrot.slane %v9966_v62, 3  ;;  %v12174_v31 = vld [vmem:[#allocation14_spill] sm:$0xff] }
  0xbc   : > { %v2435_v42 = vsel %vm2314_vm4, %v2432_v29, %v2434_v51  ;;  %v2437_v5 = vsel %vm2314_vm4, %v2434_v51, %v2436_v4  ;;  %v9262_v51 = vld [vmem:[%s9421_s11 + $0x28] sm:$0xff] }
  0xbd   : > { %8592 = vmatmul.mubr.msk.f32.gmra.mrb[16].mxu1 %vm572_vm2, %v12165_v6  ;;  %8836 = vmatmul.mubr.msk.f32.gmra.mrb[48].mxu0 %vm572_vm2, %v2415_v32  ;;  %v12175_v32 = vld [vmem:[#allocation15_spill] sm:$0xff]  ;;  %v2440_v6 = vrot.slane %v9988_v16, 3 }
  0xbe   : > { %8594 = vmatprep.mubr.msk.f32.mxu1 %vm572_vm2, %v12166_v45  ;;  %8838 = vmatprep.mubr.msk.f32.mxu0 %vm572_vm2, %v2417_v1  ;;  %v2438_v1 = vrot.slane %v9985_v47, 3  ;;  %v12176_v45 = vld [vmem:[#allocation16_spill] sm:$0xff] }
  0xc0   : > { %v2439_v12 = vsel %vm2314_vm4, %v2436_v4, %v2438_v1  ;;  %v2441_v58 = vsel %vm2314_vm4, %v2438_v1, %v2440_v6  ;;  %v9264_v1 = vld [vmem:[%s9421_s11 + $0x38] sm:$0xff] }
  0xc1   : > { %8595 = vmatmul.mubr.msk.f32.gmra.mrb[18].mxu1 %vm572_vm2, %v12167_v17  ;;  %8839 = vmatmul.mubr.msk.f32.gmra.mrb[50].mxu0 %vm572_vm2, %v2419_v11  ;;  %v12177_v11 = vld [vmem:[#allocation17_spill] sm:$0xff]  ;;  %v9257_v17 = vld [vmem:[%s9421_s11] sm:$0xff] }
  0xc2   : > { %8597 = vmatprep.mubr.msk.f32.mxu1 %vm572_vm2, %v12168_v22  ;;  %8841 = vmatprep.mubr.msk.f32.mxu0 %vm572_vm2, %v2421_v56  ;;  %v2442_v56 = vrot.slane %v10005_v41, 3  ;;  %v3024_v22 = vrot.slane %v9257_v17, 4 }
  0xc4   : > { %v2443_v39 = vsel %vm2314_vm4, %v2440_v6, %v2442_v56  ;;  %v9266_v56 = vld [vmem:[%s9421_s11 + $0x48] sm:$0xff] }
  0xc5   : > { %8598 = vmatmul.mubr.msk.f32.gmra.mrb[20].mxu1 %vm572_vm2, %v12169_v19  ;;  %8842 = vmatmul.mubr.msk.f32.gmra.mrb[52].mxu0 %vm572_vm2, %v2423_v15  ;;  %v9258_v15 = vld [vmem:[%s9421_s11 + $0x8] sm:$0xff]  ;;  %v9259_v19 = vld [vmem:[%s9421_s11 + $0x10] sm:$0xff] }
  0xc6   : > { %8600 = vmatprep.mubr.msk.f32.mxu1 %vm572_vm2, %v12170_v20  ;;  %8844 = vmatprep.mubr.msk.f32.mxu0 %vm572_vm2, %v2425_v27  ;;  %v3025_v46 = vrot.slane %v9258_v15, 4  ;;  %v12178_v27 = vld [vmem:[#allocation18_spill] sm:$0xff]  ;;  %v3027_v20 = vrot.slane %v9259_v19, 4 }
  0xc8   : > { %v3028_v29 = vsel %vm701_vm0, %v3025_v46, %v3027_v20 }
  0xc9   : > { %8601 = vmatmul.mubr.msk.f32.gmra.mrb[22].mxu1 %vm572_vm2, %v12172_v50  ;;  %8845 = vmatmul.mubr.msk.f32.gmra.mrb[54].mxu0 %vm572_vm2, %v2427_v40  ;;  %v3026_v40 = vsel %vm701_vm0, %v3024_v22, %v3025_v46  ;;  %v9261_v50 = vld [vmem:[%s9421_s11 + $0x20] sm:$0xff]  ;;  %v9267_v22 = vld [vmem:[%s9421_s11 + $0x50] sm:$0xff] }
  0xca   : > { %8603 = vmatprep.mubr.msk.f32.mxu1 %vm572_vm2, %v12173_v59  ;;  %8847 = vmatprep.mubr.msk.f32.mxu0 %vm572_vm2, %v2429_v8  ;;  %v3029_v8 = vrot.slane %v9260_v49, 4  ;;  %v3031_v59 = vrot.slane %v9261_v50, 4  ;;  %v3043_v15 = vrot.slane %v9267_v22, 4 }
  0xcc   : > { %v3032_v4 = vsel %vm701_vm0, %v3029_v8, %v3031_v59 }
  0xcd   : > { %8604 = vmatmul.mubr.msk.f32.gmra.mrb[24].mxu1 %vm572_vm2, %v12174_v31  ;;  %8848 = vmatmul.mubr.msk.f32.gmra.mrb[56].mxu0 %vm572_vm2, %v2431_v34  ;;  %v3030_v34 = vsel %vm701_vm0, %v3027_v20, %v3029_v8  ;;  %v9263_v31 = vld [vmem:[%s9421_s11 + $0x30] sm:$0xff] }
  0xce   : > { %8606 = vmatprep.mubr.msk.f32.mxu1 %vm572_vm2, %v12175_v32  ;;  %8850 = vmatprep.mubr.msk.f32.mxu0 %vm572_vm2, %v2433_v30  ;;  %v3033_v30 = vrot.slane %v9262_v51, 4  ;;  %v3035_v32 = vrot.slane %v9263_v31, 4 }
  0xd0   : > { %v3036_v6 = vsel %vm701_vm0, %v3033_v30, %v3035_v32 }
  0xd1   : > { %8607 = vmatmul.mubr.msk.f32.gmra.mrb[26].mxu1 %vm572_vm2, %v12176_v45  ;;  %8851 = vmatmul.mubr.msk.f32.gmra.mrb[58].mxu0 %vm572_vm2, %v2435_v42  ;;  %v3034_v42 = vsel %vm701_vm0, %v3031_v59, %v3033_v30  ;;  %v9265_v45 = vld [vmem:[%s9421_s11 + $0x40] sm:$0xff] }
  0xd2   : > { %8609 = vmatprep.mubr.msk.f32.mxu1 %vm572_vm2, %v12177_v11  ;;  %8853 = vmatprep.mubr.msk.f32.mxu0 %vm572_vm2, %v2437_v5  ;;  %v3037_v5 = vrot.slane %v9264_v1, 4  ;;  %v3039_v11 = vrot.slane %v9265_v45, 4 }
  0xd4   : > { %v3040_v17 = vsel %vm701_vm0, %v3037_v5, %v3039_v11 }
  0xd5   : > { %8610 = vmatmul.mubr.msk.f32.gmra.mrb[28].mxu1 %vm572_vm2, %v12178_v27  ;;  %8854 = vmatmul.mubr.msk.f32.gmra.mrb[60].mxu0 %vm572_vm2, %v2439_v12  ;;  %v3038_v12 = vsel %vm701_vm0, %v3035_v32, %v3037_v5 }
  0xd6   : > { %8612 = vmatprep.mubr.msk.f32.mxu1 %vm572_vm2, %v9691_v63  ;;  %8856 = vmatprep.mubr.msk.f32.mxu0 %vm572_vm2, %v2441_v58  ;;  %v3041_v58 = vrot.slane %v9266_v56, 4 }
  0xd8   : > { %v3042_v46 = vsel %vm701_vm0, %v3039_v11, %v3041_v58  ;;  %v3044_v20 = vsel %vm701_vm0, %v3041_v58, %v3043_v15 }
  0xd9   : > { %8613 = vmatmul.mubr.msk.f32.gmra.mrb[30].mxu1 %vm572_vm2, %v9694_v0  ;;  %8857 = vmatmul.mubr.msk.f32.gmra.mrb[62].mxu0 %vm572_vm2, %v2443_v39  ;;  %v9268_v39 = vld [vmem:[%s9421_s11 + $0x58] sm:$0xff] }
  0xda   : > { %8615 = vmatprep.mubr.msk.f32.mxu1 %vm572_vm2, %v9706_v14  ;;  %8861 = vmatprep.mubr.msk.f32.mxu0 %vm572_vm2, %v3026_v40  ;;  %v3045_v19 = vrot.slane %v9268_v39, 4  ;;  %v9269_v40 = vld [vmem:[%s9421_s11 + $0x60] sm:$0xff] }
  0xdb   : > { %v3047_v49 = vrot.slane %v9269_v40, 4 }
  0xdc   : > { %v3046_v8 = vsel %vm701_vm0, %v3043_v15, %v3045_v19 }
  0xdd   : > { %8616 = vmatmul.mubr.msk.f32.gmra.mrb[32].mxu1 %vm572_vm2, %v9712_v21  ;;  %8862 = vmatmul.mubr.msk.f32.vlgmr.msra.gmra.mrb[0].mxu0 %vm572_vm2, %v3028_v29  ;;  %v9270_v29 = vld [vmem:[%s9421_s11 + $0x68] sm:$0xff]  ;;  %v3048_v59 = vsel %vm701_vm0, %v3045_v19, %v3047_v49 }
  0xde   : > { %8618 = vmatprep.mubr.msk.f32.mxu1 %vm572_vm2, %v9728_v43  ;;  %8864 = vmatprep.mubr.msk.f32.mxu0 %vm572_vm2, %v3030_v34  ;;  %v3049_v50 = vrot.slane %v9270_v29, 4  ;;  %v9271_v34 = vld [vmem:[%s9421_s11 + $0x70] sm:$0xff] }
  0xdf   : > { %v3051_v51 = vrot.slane %v9271_v34, 4 }
  0xe0   : > { %v3050_v30 = vsel %vm701_vm0, %v3047_v49, %v3049_v50 }
  0xe1   : > { %8619 = vmatmul.mubr.msk.f32.gmra.mrb[34].mxu1 %vm572_vm2, %v9731_v44  ;;  %8865 = vmatmul.mubr.msk.f32.gmra.mrb[2].mxu0 %vm572_vm2, %v3032_v4  ;;  %v9272_v4 = vld [vmem:[%s9421_s11 + $0x78] sm:$0xff]  ;;  %v3052_v32 = vsel %vm701_vm0, %v3049_v50, %v3051_v51 }
  0xe2   : > { %8621 = vmatprep.mubr.msk.f32.mxu1 %vm572_vm2, %v9747_v57  ;;  %8867 = vmatprep.mubr.msk.f32.mxu0 %vm572_vm2, %v3034_v42  ;;  %v3053_v31 = vrot.slane %v9272_v4, 4  ;;  %v9273_v42 = vld [vmem:[%s9421_s11 + $0x80] sm:$0xff] }
  0xe3   : > { %v3055_v1 = vrot.slane %v9273_v42, 4 }
  0xe4   : > { %v3054_v5 = vsel %vm701_vm0, %v3051_v51, %v3053_v31 }
  0xe5   : > { %8622 = vmatmul.mubr.msk.f32.gmra.mrb[36].mxu1 %vm572_vm2, %v9751_v2  ;;  %8868 = vmatmul.mubr.msk.f32.gmra.mrb[4].mxu0 %vm572_vm2, %v3036_v6  ;;  %v9274_v6 = vld [vmem:[%s9421_s11 + $0x88] sm:$0xff]  ;;  %v3056_v11 = vsel %vm701_vm0, %v3053_v31, %v3055_v1 }
  0xe6   : > { %8624 = vmatprep.mubr.msk.f32.mxu1 %vm572_vm2, %v9765_v25  ;;  %8870 = vmatprep.mubr.msk.f32.mxu0 %vm572_vm2, %v3038_v12  ;;  %v3057_v45 = vrot.slane %v9274_v6, 4  ;;  %v9275_v12 = vld [vmem:[%s9421_s11 + $0x90] sm:$0xff] }
  0xe7   : > { %v3059_v56 = vrot.slane %v9275_v12, 4 }
  0xe8   : > { %v3058_v58 = vsel %vm701_vm0, %v3055_v1, %v3057_v45 }
  0xe9   : > { %8625 = vmatmul.mubr.msk.f32.gmra.mrb[38].mxu1 %vm572_vm2, %v9769_v28  ;;  %8871 = vmatmul.mubr.msk.f32.gmra.mrb[6].mxu0 %vm572_vm2, %v3040_v17  ;;  %v9276_v17 = vld [vmem:[%s9421_s11 + $0x98] sm:$0xff]  ;;  %v3060_v15 = vsel %vm701_vm0, %v3057_v45, %v3059_v56 }
  0xea   : > { %8627 = vmatprep.mubr.msk.f32.mxu1 %vm572_vm2, %v9786_v52  ;;  %8873 = vmatprep.mubr.msk.f32.mxu0 %vm572_vm2, %v3042_v46  ;;  %v3061_v22 = vrot.slane %v9276_v17, 4  ;;  %v9277_v46 = vld [vmem:[%s9421_s11 + $0xa0] sm:$0xff] }
  0xeb   : > { %v3063_v39 = vrot.slane %v9277_v46, 4 }
  0xec   : > { %v3062_v19 = vsel %vm701_vm0, %v3059_v56, %v3061_v22 }
  0xed   : > { %8628 = vmatmul.mubr.msk.f32.gmra.mrb[40].mxu1 %vm572_vm2, %v9789_v53  ;;  %8874 = vmatmul.mubr.msk.f32.gmra.mrb[8].mxu0 %vm572_vm2, %v3044_v20  ;;  %v9278_v20 = vld [vmem:[%s9421_s11 + $0xa8] sm:$0xff]  ;;  %v3064_v49 = vsel %vm701_vm0, %v3061_v22, %v3063_v39 }
  0xee   : > { %8630 = vmatprep.mubr.msk.f32.mxu1 %vm572_vm2, %v9804_v18  ;;  %8876 = vmatprep.mubr.msk.f32.mxu0 %vm572_vm2, %v3046_v8  ;;  %v3065_v40 = vrot.slane %v9278_v20, 4  ;;  %v9279_v8 = vld [vmem:[%s9421_s11 + $0xb0] sm:$0xff]  ;;  %v3085_v20 = vrot.slane %v9694_v0, 4  ;;  %v3089_v0 = vrot.slane %v9712_v21, 4 }
  0xef   : > { %v3067_v29 = vrot.slane %v9279_v8, 4 }
  0xf0   : > { %v3066_v50 = vsel %vm701_vm0, %v3063_v39, %v3065_v40  ;;  %v3083_v39 = vrot.slane %v9691_v63, 4 }
  0xf1   : > { %8631 = vmatmul.mubr.msk.f32.gmra.mrb[42].mxu1 %vm572_vm2, %v9807_v26  ;;  %8877 = vmatmul.mubr.msk.f32.gmra.mrb[10].mxu0 %vm572_vm2, %v3048_v59  ;;  %v9280_v59 = vld [vmem:[%s9421_s11 + $0xb8] sm:$0xff]  ;;  %v3068_v51 = vsel %vm701_vm0, %v3065_v40, %v3067_v29  ;;  %v3087_v40 = vrot.slane %v9706_v14, 4 }
  0xf2   : > { %8633 = vmatprep.mubr.msk.f32.mxu1 %vm572_vm2, %v9822_v54  ;;  %8879 = vmatprep.mubr.msk.f32.mxu0 %vm572_vm2, %v3050_v30  ;;  %v3069_v34 = vrot.slane %v9280_v59, 4  ;;  %v9281_v30 = vld [vmem:[%s9421_s11 + $0xc0] sm:$0xff]  ;;  %v3086_v63 = vsel %vm701_vm0, %v3083_v39, %v3085_v20  ;;  %v12179_v59 = vrot.slane %v9706_v14, 2 }
  0xf3   : > { %v3071_v4 = vrot.slane %v9281_v30, 4  ;;  %v3088_v8 = vsel %vm701_vm0, %v3085_v20, %v3087_v40  ;;  %v3093_v30 = vrot.slane %v9731_v44, 4  ;;  %v1688_v20 = vrot.slane %v9804_v18, 2 }
  0xf4   : > { %v3070_v31 = vsel %vm701_vm0, %v3067_v29, %v3069_v34  ;;  %v1672_v29 = vrot.slane %v9728_v43, 2 }
  0xf5   : > { %8634 = vmatmul.mubr.msk.f32.gmra.mrb[44].mxu1 %vm572_vm2, %v9825_v55  ;;  %8880 = vmatmul.mubr.msk.f32.gmra.mrb[12].mxu0 %vm572_vm2, %v3052_v32  ;;  %v9282_v32 = vld [vmem:[%s9421_s11 + $0xc8] sm:$0xff]  ;;  %v3072_v1 = vsel %vm701_vm0, %v3069_v34, %v3071_v4  ;;  %v3090_v34 = vsel %vm701_vm0, %v3087_v40, %v3089_v0 }
  0xf6   : > { %8636 = vmatprep.mubr.msk.f32.mxu1 %vm572_vm2, %v9840_v37  ;;  %8882 = vmatprep.mubr.msk.f32.mxu0 %vm572_vm2, %v3054_v5  ;;  %v3073_v42 = vrot.slane %v9282_v32, 4  ;;  %v9283_v5 = vld [vmem:[%s9421_s11 + $0xd0] sm:$0xff] }
  0xf7   : > { %v3075_v6 = vrot.slane %v9283_v5, 4 }
  0xf8   : > { %v3074_v45 = vsel %vm701_vm0, %v3071_v4, %v3073_v42  ;;  %v1676_v4 = vrot.slane %v9747_v57, 2 }
  0xf9   : > { %8637 = vmatmul.mubr.msk.f32.gmra.mrb[46].mxu1 %vm572_vm2, %v9843_v38  ;;  %8883 = vmatmul.mubr.msk.f32.gmra.mrb[14].mxu0 %vm572_vm2, %v3056_v11  ;;  %v9284_v11 = vld [vmem:[%s9421_s11 + $0xd8] sm:$0xff]  ;;  %v3076_v56 = vsel %vm701_vm0, %v3073_v42, %v3075_v6  ;;  %v1678_v42 = vrot.slane %v9751_v2, 2 }
  0xfa   : > { %8639 = vmatprep.mubr.msk.f32.mxu1 %vm572_vm2, %v9858_v3  ;;  %8885 = vmatprep.mubr.msk.f32.mxu0 %vm572_vm2, %v3058_v58  ;;  %v3077_v12 = vrot.slane %v9284_v11, 4  ;;  %v9285_v58 = vld [vmem:[%s9421_s11 + $0xe0] sm:$0xff] }
  0xfb   : > { %v3079_v17 = vrot.slane %v9285_v58, 4  ;;  %v1679_v11 = vsel %vm1604_vm3, %v1676_v4, %v1678_v42 }
  0xfc   : > { %v3078_v22 = vsel %vm701_vm0, %v3075_v6, %v3077_v12  ;;  %v1680_v6 = vrot.slane %v9765_v25, 2 }
  0xfd   : > { %8640 = vmatmul.mubr.msk.f32.gmra.mrb[48].mxu1 %vm572_vm2, %v9861_v7  ;;  %8886 = vmatmul.mubr.msk.f32.gmra.mrb[16].mxu0 %vm572_vm2, %v3060_v15  ;;  %v3081_v15 = vrot.slane %v12178_v27, 4  ;;  %v3080_v46 = vsel %vm701_vm0, %v3077_v12, %v3079_v17  ;;  %v1682_v12 = vrot.slane %v9769_v28, 2 }
  0xfe   : > { %8642 = vmatprep.mubr.msk.f32.mxu1 %vm572_vm2, %v9876_v33  ;;  %8888 = vmatprep.mubr.msk.f32.mxu0 %vm572_vm2, %v3062_v19  ;;  %v1681_v58 = vsel %vm1604_vm3, %v1678_v42, %v1680_v6 }
  0xff   : > { %v3082_v19 = vsel %vm701_vm0, %v3079_v17, %v3081_v15  ;;  %v3084_v27 = vsel %vm701_vm0, %v3081_v15, %v3083_v39  ;;  %v1684_v17 = vrot.slane %v9786_v52, 2  ;;  %v1683_v15 = vsel %vm1604_vm3, %v1680_v6, %v1682_v12 }
 0x100   : > { %v3105_v39 = vrot.slane %v9789_v53, 4  ;;  %v1704_v6 = vrot.slane %v9876_v33, 2 }
 0x101   : > { %8643 = vmatmul.mubr.msk.f32.gmra.mrb[50].mxu1 %vm572_vm2, %v9879_v60  ;;  %8889 = vmatmul.mubr.msk.f32.gmra.mrb[18].mxu0 %vm572_vm2, %v3064_v49  ;;  %v1670_v49 = vrot.slane %v9712_v21, 2 }
 0x102   : > { %8645 = vmatprep.mubr.msk.f32.mxu1 %vm572_vm2, %v9894_v10  ;;  %8891 = vmatprep.mubr.msk.f32.mxu0 %vm572_vm2, %v3066_v50  ;;  %v3091_v50 = vrot.slane %v9728_v43, 4 }
 0x103   : > { %v1671_v21 = vsel %vm1604_vm3, %v12179_v59, %v1670_v49  ;;  %v1673_v43 = vsel %vm1604_vm3, %v1670_v49, %v1672_v29  ;;  %v3109_v49 = vrot.slane %v9807_v26, 4  ;;  %v1694_v59 = vrot.slane %v9825_v55, 2 }
 0x104   : > { %v3092_v14 = vsel %vm701_vm0, %v3089_v0, %v3091_v50 }
 0x105   : > { %8646 = vmatmul.mubr.msk.f32.gmra.mrb[52].mxu1 %vm572_vm2, %v9897_v9  ;;  %8892 = vmatmul.mubr.msk.f32.gmra.mrb[20].mxu0 %vm572_vm2, %v3068_v51  ;;  %v1674_v51 = vrot.slane %v9731_v44, 2  ;;  %v3094_v44 = vsel %vm701_vm0, %v3091_v50, %v3093_v30 }
 0x106   : > { %8648 = vmatprep.mubr.msk.f32.mxu1 %vm572_vm2, %v9912_v24  ;;  %8894 = vmatprep.mubr.msk.f32.mxu0 %vm572_vm2, %v3070_v31  ;;  %v3095_v31 = vrot.slane %v9747_v57, 4 }
 0x107   : > { %v1675_v32 = vsel %vm1604_vm3, %v1672_v29, %v1674_v51  ;;  %v1677_v5 = vsel %vm1604_vm3, %v1674_v51, %v1676_v4  ;;  %v3111_v29 = vrot.slane %v9822_v54, 4  ;;  %v1696_v51 = vrot.slane %v9840_v37, 2 }
 0x108   : > { %v3096_v57 = vsel %vm701_vm0, %v3093_v30, %v3095_v31  ;;  %v3115_v30 = vrot.slane %v9840_v37, 4  ;;  %v3117_v4 = vrot.slane %v9843_v38, 4 }
 0x109   : > { %8649 = vmatmul.mubr.msk.f32.gmra.mrb[54].mxu1 %vm572_vm2, %v9915_v23  ;;  %8895 = vmatmul.mubr.msk.f32.gmra.mrb[22].mxu0 %vm572_vm2, %v3072_v1  ;;  %v3097_v1 = vrot.slane %v9751_v2, 4 }
 0x10a   : > { %8651 = vmatprep.mubr.msk.f32.mxu1 %vm572_vm2, %v9930_v36  ;;  %8897 = vmatprep.mubr.msk.f32.mxu0 %vm572_vm2, %v3074_v45  ;;  %v3099_v45 = vrot.slane %v9765_v25, 4 }
 0x10b   : > { %v3098_v2 = vsel %vm701_vm0, %v3095_v31, %v3097_v1  ;;  %v1697_v31 = vsel %vm1604_vm3, %v1694_v59, %v1696_v51 }
 0x10c   : > { %v3100_v25 = vsel %vm701_vm0, %v3097_v1, %v3099_v45  ;;  %v1702_v1 = vrot.slane %v9861_v7, 2 }
 0x10d   : > { %8652 = vmatmul.mubr.msk.f32.gmra.mrb[56].mxu1 %vm572_vm2, %v9933_v35  ;;  %8898 = vmatmul.mubr.msk.f32.gmra.mrb[24].mxu0 %vm572_vm2, %v3076_v56  ;;  %v3101_v56 = vrot.slane %v9769_v28, 4 }
 0x10e   : > { %8654 = vmatprep.mubr.msk.f32.mxu1 %vm572_vm2, %v9948_v48  ;;  %8900 = vmatprep.mubr.msk.f32.mxu0 %vm572_vm2, %v3078_v22  ;;  %v3103_v22 = vrot.slane %v9786_v52, 4 }
 0x10f   : > { %v3102_v28 = vsel %vm701_vm0, %v3099_v45, %v3101_v56  ;;  %v3123_v45 = vrot.slane %v9876_v33, 4 }
 0x110   : > { %v3104_v52 = vsel %vm701_vm0, %v3101_v56, %v3103_v22  ;;  %v1705_v56 = vsel %vm1604_vm3, %v1702_v1, %v1704_v6 }
 0x111   : > { %8655 = vmatmul.mubr.msk.f32.gmra.mrb[58].mxu1 %vm572_vm2, %v12171_v13  ;;  %8901 = vmatmul.mubr.msk.f32.gmra.mrb[26].mxu0 %vm572_vm2, %v3080_v46  ;;  %v1686_v46 = vrot.slane %v9789_v53, 2  ;;  %v3106_v53 = vsel %vm701_vm0, %v3103_v22, %v3105_v39  ;;  %v1710_v22 = vrot.slane %v9897_v9, 2 }
 0x112   : > { %8657 = vmatprep.mubr.msk.f32.mxu1 %vm572_vm2, %v9966_v62  ;;  %8903 = vmatprep.mubr.msk.f32.mxu0 %vm572_vm2, %v3082_v19  ;;  %v1685_v19 = vsel %vm1604_vm3, %v1682_v12, %v1684_v17  ;;  %v3125_v12 = vrot.slane %v9879_v60, 4 }
 0x113   : > { %v1687_v40 = vsel %vm1604_vm3, %v1684_v17, %v1686_v46  ;;  %v1689_v0 = vsel %vm1604_vm3, %v1686_v46, %v1688_v20  ;;  %v1712_v46 = vrot.slane %v9912_v24, 2 }
 0x115   : > { %8658 = vmatmul.mubr.msk.f32.gmra.mrb[60].mxu1 %vm572_vm2, %v9969_v61  ;;  %8904 = vmatmul.mubr.msk.f32.gmra.mrb[28].mxu0 %vm572_vm2, %v3084_v27  ;;  %v3107_v27 = vrot.slane %v9804_v18, 4 }
 0x116   : > { %8660 = vmatprep.mubr.msk.f32.mxu1 %vm572_vm2, %v9985_v47  ;;  %8906 = vmatprep.mubr.msk.f32.mxu0 %vm572_vm2, %v3086_v63  ;;  %v1690_v63 = vrot.slane %v9807_v26, 2 }
 0x117   : > { %v3108_v18 = vsel %vm701_vm0, %v3105_v39, %v3107_v27  ;;  %v3110_v26 = vsel %vm701_vm0, %v3107_v27, %v3109_v49  ;;  %v3131_v39 = vrot.slane %v9912_v24, 4  ;;  %v1713_v27 = vsel %vm1604_vm3, %v1710_v22, %v1712_v46 }
 0x118   : > { %v1691_v50 = vsel %vm1604_vm3, %v1688_v20, %v1690_v63  ;;  %v3133_v20 = vrot.slane %v9915_v23, 4 }
 0x119   : > { %8661 = vmatmul.mubr.msk.f32.gmra.mrb[62].mxu1 %vm572_vm2, %v9988_v16  ;;  %8907 = vmatmul.mubr.msk.f32.gmra.mrb[30].mxu0 %vm572_vm2, %v3088_v8  ;;  %v1692_v8 = vrot.slane %v9822_v54, 2  ;;  %v3112_v54 = vsel %vm701_vm0, %v3109_v49, %v3111_v29  ;;  %v1718_v49 = vrot.slane %v9933_v35, 2 }
 0x11a   : > { %8713 = vmatprep.mubr.msk.f32.mxu1 %vm572_vm2, %v1671_v21  ;;  %8909 = vmatprep.mubr.msk.f32.mxu0 %vm572_vm2, %v3090_v34  ;;  %v3113_v21 = vrot.slane %v9825_v55, 4 }
 0x11b   : > { %v1693_v34 = vsel %vm1604_vm3, %v1690_v63, %v1692_v8 }
 0x11c   : > { %v3114_v55 = vsel %vm701_vm0, %v3111_v29, %v3113_v21  ;;  %v3116_v37 = vsel %vm701_vm0, %v3113_v21, %v3115_v30  ;;  %v3139_v29 = vrot.slane %v9948_v48, 4 }
 0x11d   : > { %8714 = vmatmul.mubr.msk.f32.vlgmr.msra.gmra.mrb[32].mxu1 %vm572_vm2, %v1673_v43  ;;  %8910 = vmatmul.mubr.msk.f32.gmra.mrb[32].mxu0 %vm572_vm2, %v3092_v14  ;;  %v1695_v43 = vsel %vm1604_vm3, %v1692_v8, %v1694_v59  ;;  %v1698_v14 = vrot.slane %v9843_v38, 2  ;;  %v3118_v38 = vsel %vm701_vm0, %v3115_v30, %v3117_v4  ;;  %v1720_v8 = vrot.slane %v9948_v48, 2 }
 0x11e   : > { %8716 = vmatprep.mubr.msk.f32.mxu1 %vm572_vm2, %v1675_v32  ;;  %8912 = vmatprep.mubr.msk.f32.mxu0 %vm572_vm2, %v3094_v44  ;;  %v1700_v32 = vrot.slane %v9858_v3, 2  ;;  %v3119_v44 = vrot.slane %v9858_v3, 4  ;;  %v3141_v59 = vrot.slane %v12171_v13, 4  ;;  %v1726_v30 = vrot.slane %v9969_v61, 2 }
 0x11f   : > { %v1699_v42 = vsel %vm1604_vm3, %v1696_v51, %v1698_v14  ;;  %v1721_v21 = vsel %vm1604_vm3, %v1718_v49, %v1720_v8 }
 0x120   : > { %v3120_v3 = vsel %vm701_vm0, %v3117_v4, %v3119_v44  ;;  %v3147_v4 = vrot.slane %v9985_v47, 4 }
 0x121   : > { %8717 = vmatmul.mubr.msk.f32.gmra.mrb[34].mxu1 %vm572_vm2, %v1677_v5  ;;  %8913 = vmatmul.mubr.msk.f32.gmra.mrb[34].mxu0 %vm572_vm2, %v3096_v57  ;;  %v3121_v5 = vrot.slane %v9861_v7, 4  ;;  %v1701_v57 = vsel %vm1604_vm3, %v1698_v14, %v1700_v32  ;;  %v1728_v14 = vrot.slane %v9985_v47, 2 }
 0x122   : > { %8719 = vmatprep.mubr.msk.f32.mxu1 %vm572_vm2, %v1679_v11  ;;  %8915 = vmatprep.mubr.msk.f32.mxu0 %vm572_vm2, %v3098_v2  ;;  %v1703_v11 = vsel %vm1604_vm3, %v1700_v32, %v1702_v1  ;;  %v1706_v2 = vrot.slane %v9879_v60, 2  ;;  %v3126_v60 = vsel %vm701_vm0, %v3123_v45, %v3125_v12  ;;  %v3149_v32 = vrot.slane %v9988_v16, 4 }
 0x123   : > { %v3122_v7 = vsel %vm701_vm0, %v3119_v44, %v3121_v5  ;;  %v3124_v33 = vsel %vm701_vm0, %v3121_v5, %v3123_v45  ;;  %v1729_v44 = vsel %vm1604_vm3, %v1726_v30, %v1728_v14 }
 0x124   : > { %v1707_v17 = vsel %vm1604_vm3, %v1704_v6, %v1706_v2 }
 0x125   : > { %8720 = vmatmul.mubr.msk.f32.gmra.mrb[36].mxu1 %vm572_vm2, %v1681_v58  ;;  %8916 = vmatmul.mubr.msk.f32.gmra.mrb[36].mxu0 %vm572_vm2, %v3100_v25  ;;  %v1708_v58 = vrot.slane %v9894_v10, 2  ;;  %v3127_v25 = vrot.slane %v9894_v10, 4 }
 0x126   : > { %8722 = vmatprep.mubr.msk.f32.mxu1 %vm572_vm2, %v1683_v15  ;;  %8918 = vmatprep.mubr.msk.f32.mxu0 %vm572_vm2, %v3102_v28  ;;  %v3129_v15 = vrot.slane %v9897_v9, 4 }
 0x127   : > { %v1709_v28 = vsel %vm1604_vm3, %v1706_v2, %v1708_v58  ;;  %v3128_v10 = vsel %vm701_vm0, %v3125_v12, %v3127_v25 }
 0x128   : > { %v3130_v9 = vsel %vm701_vm0, %v3127_v25, %v3129_v15  ;;  %v3132_v24 = vsel %vm701_vm0, %v3129_v15, %v3131_v39 }
 0x129   : > { %8723 = vmatmul.mubr.msk.f32.gmra.mrb[38].mxu1 %vm572_vm2, %v1685_v19  ;;  %8919 = vmatmul.mubr.msk.f32.gmra.mrb[38].mxu0 %vm572_vm2, %v3104_v52  ;;  %v1711_v19 = vsel %vm1604_vm3, %v1708_v58, %v1710_v22  ;;  %v1714_v52 = vrot.slane %v9915_v23, 2  ;;  %v3134_v23 = vsel %vm701_vm0, %v3131_v39, %v3133_v20 }
 0x12a   : > { %8725 = vmatprep.mubr.msk.f32.mxu1 %vm572_vm2, %v1687_v40  ;;  %8921 = vmatprep.mubr.msk.f32.mxu0 %vm572_vm2, %v3106_v53  ;;  %v1716_v40 = vrot.slane %v9930_v36, 2  ;;  %v3135_v53 = vrot.slane %v9930_v36, 4 }
 0x12b   : > { %v1715_v63 = vsel %vm1604_vm3, %v1712_v46, %v1714_v52 }
 0x12c   : > { %v3136_v36 = vsel %vm701_vm0, %v3133_v20, %v3135_v53 }
 0x12d   : > { %8726 = vmatmul.mubr.msk.f32.gmra.mrb[40].mxu1 %vm572_vm2, %v1689_v0  ;;  %8922 = vmatmul.mubr.msk.f32.gmra.mrb[40].mxu0 %vm572_vm2, %v3108_v18  ;;  %v3137_v0 = vrot.slane %v9933_v35, 4  ;;  %v1717_v18 = vsel %vm1604_vm3, %v1714_v52, %v1716_v40 }
 0x12e   : > { %8728 = vmatprep.mubr.msk.f32.mxu1 %vm572_vm2, %v1691_v50  ;;  %8924 = vmatprep.mubr.msk.f32.mxu0 %vm572_vm2, %v3110_v26  ;;  %v1719_v50 = vsel %vm1604_vm3, %v1716_v40, %v1718_v49  ;;  %v1722_v26 = vrot.slane %v12171_v13, 2  ;;  %v3142_v13 = vsel %vm701_vm0, %v3139_v29, %v3141_v59 }
 0x12f   : > { %v3138_v35 = vsel %vm701_vm0, %v3135_v53, %v3137_v0  ;;  %v3140_v48 = vsel %vm701_vm0, %v3137_v0, %v3139_v29 }
 0x130   : > { %v1723_v51 = vsel %vm1604_vm3, %v1720_v8, %v1722_v26  ;;  %v4007_v8 = vlaneseq }
 0x131   : > { %8729 = vmatmul.mubr.msk.f32.gmra.mrb[42].mxu1 %vm572_vm2, %v1693_v34  ;;  %8925 = vmatmul.mubr.msk.f32.gmra.mrb[42].mxu0 %vm572_vm2, %v3112_v54  ;;  %v1724_v34 = vrot.slane %v9966_v62, 2  ;;  %v3143_v54 = vrot.slane %v9966_v62, 4 }
 0x132   : > { %8731 = vmatprep.mubr.msk.f32.mxu1 %vm572_vm2, %v1695_v43  ;;  %8927 = vmatprep.mubr.msk.f32.mxu0 %vm572_vm2, %v3114_v55  ;;  %v3145_v43 = vrot.slane %v9969_v61, 4 }
 0x133   : > { %v1725_v55 = vsel %vm1604_vm3, %v1722_v26, %v1724_v34  ;;  %v3144_v62 = vsel %vm701_vm0, %v3141_v59, %v3143_v54  ;;  %v4008_v59 = vshrl.u32 %v4007_v8, 7 }
 0x134   : > { %v3146_v61 = vsel %vm701_vm0, %v3143_v54, %v3145_v43  ;;  %v3148_v47 = vsel %vm701_vm0, %v3145_v43, %v3147_v4 }
 0x135   : > { %8732 = vmatmul.mubr.msk.f32.gmra.mrb[44].mxu1 %vm572_vm2, %v1697_v31  ;;  %8928 = vmatmul.mubr.msk.f32.gmra.mrb[44].mxu0 %vm572_vm2, %v3116_v37  ;;  %v1727_v31 = vsel %vm1604_vm3, %v1724_v34, %v1726_v30  ;;  %v1730_v37 = vrot.slane %v9988_v16, 2  ;;  %v3150_v16 = vsel %vm701_vm0, %v3147_v4, %v3149_v32 }
 0x136   : > { %8734 = vmatprep.mubr.msk.f32.mxu1 %vm572_vm2, %v1699_v42  ;;  %8930 = vmatprep.mubr.msk.f32.mxu0 %vm572_vm2, %v3118_v38  ;;  %v1732_v42 = vrot.slane %v10005_v41, 2  ;;  %v3151_v38 = vrot.slane %v10005_v41, 4 }
 0x137   : > { %v1731_v1 = vsel %vm1604_vm3, %v1728_v14, %v1730_v37 }
 0x138   : > { %v1733_v5 = vsel %vm1604_vm3, %v1730_v37, %v1732_v42 }
 0x139   : > { %8735 = vmatmul.mubr.msk.f32.gmra.mrb[46].mxu1 %vm572_vm2, %v1701_v57  ;;  %8931 = vmatmul.mubr.msk.f32.gmra.mrb[46].mxu0 %vm572_vm2, %v3120_v3  ;;  %v3152_v57 = vsel %vm701_vm0, %v3149_v32, %v3151_v38 }
 0x13a   : > { %8737 = vmatprep.mubr.msk.f32.mxu1 %vm572_vm2, %v1703_v11  ;;  %8933 = vmatprep.mubr.msk.f32.mxu0 %vm572_vm2, %v3122_v7 }
 0x13d   : > { %8738 = vmatmul.mubr.msk.f32.gmra.mrb[48].mxu1 %vm572_vm2, %v1705_v56  ;;  %8934 = vmatmul.mubr.msk.f32.gmra.mrb[48].mxu0 %vm572_vm2, %v3124_v33 }
 0x13e   : > { %8740 = vmatprep.mubr.msk.f32.mxu1 %vm572_vm2, %v1707_v17  ;;  %8936 = vmatprep.mubr.msk.f32.mxu0 %vm572_vm2, %v3126_v60 }
 0x141   : > { %8741 = vmatmul.mubr.msk.f32.gmra.mrb[50].mxu1 %vm572_vm2, %v1709_v28  ;;  %8937 = vmatmul.mubr.msk.f32.gmra.mrb[50].mxu0 %vm572_vm2, %v3128_v10 }
 0x142   : > { %8743 = vmatprep.mubr.msk.f32.mxu1 %vm572_vm2, %v1711_v19  ;;  %8939 = vmatprep.mubr.msk.f32.mxu0 %vm572_vm2, %v3130_v9 }
 0x145   : > { %8744 = vmatmul.mubr.msk.f32.gmra.mrb[52].mxu1 %vm572_vm2, %v1713_v27  ;;  %8940 = vmatmul.mubr.msk.f32.gmra.mrb[52].mxu0 %vm572_vm2, %v3132_v24 }
 0x146   : > { %8746 = vmatprep.mubr.msk.f32.mxu1 %vm572_vm2, %v1715_v63  ;;  %8942 = vmatprep.mubr.msk.f32.mxu0 %vm572_vm2, %v3134_v23 }
 0x149   : > { %8747 = vmatmul.mubr.msk.f32.gmra.mrb[54].mxu1 %vm572_vm2, %v1717_v18  ;;  %8943 = vmatmul.mubr.msk.f32.gmra.mrb[54].mxu0 %vm572_vm2, %v3136_v36  ;;  %v9334_v18 = vmov 1983009808  }
 0x14a   : > { %8749 = vmatprep.mubr.msk.f32.mxu1 %vm572_vm2, %v1719_v50  ;;  %8945 = vmatprep.mubr.msk.f32.mxu0 %vm572_vm2, %v3138_v35  ;;  %v4005_v36 = vunpack.c.l.s4 %v9334_v18  ;;  %v10597_v50 = vld [vmem:[%s12119_s3] ss:$0 sm:$0xff] }
 0x14c   : > { %v4006_v26 = vunpack.c.0.s8 %v4005_v36 }
 0x14d   : > { %8750 = vmatmul.mubr.msk.f32.gmra.mrb[56].mxu1 %vm572_vm2, %v1721_v21  ;;  %8946 = vmatmul.mubr.msk.f32.gmra.mrb[56].mxu0 %vm572_vm2, %v3140_v48  ;;  %v10602_v48 = vld [vmem:[%s12120_s4] ss:$0 sm:$0xff] }
 0x14e   : > { %8752 = vmatprep.mubr.msk.f32.mxu1 %vm572_vm2, %v1723_v51  ;;  %8948 = vmatprep.mubr.msk.f32.mxu0 %vm572_vm2, %v3142_v13  ;;  %v10607_v43 = vsub.s32 %v4006_v26, %v4008_v59 }
 0x151   : > { %8753 = vmatmul.mubr.msk.f32.gmra.mrb[58].mxu1 %vm572_vm2, %v1725_v55  ;;  %8949 = vmatmul.mubr.msk.f32.gmra.mrb[58].mxu0 %vm572_vm2, %v3144_v62 }
 0x152   : > { %8755 = vmatprep.mubr.msk.f32.mxu1 %vm572_vm2, %v1727_v31  ;;  %8951 = vmatprep.mubr.msk.f32.mxu0 %vm572_vm2, %v3146_v61 }
 0x155   : > { %8756 = vmatmul.mubr.msk.f32.gmra.mrb[60].mxu1 %vm572_vm2, %v1729_v44  ;;  %8952 = vmatmul.mubr.msk.f32.gmra.mrb[60].mxu0 %vm572_vm2, %v3148_v47 }
 0x156   : > { %8758 = vmatprep.mubr.msk.f32.mxu1 %vm572_vm2, %v1731_v1  ;;  %8954 = vmatprep.mubr.msk.f32.mxu0 %vm572_vm2, %v3150_v16 }
 0x159   : > { %8759 = vmatmul.mubr.msk.f32.gmra.mrb[62].mxu1 %vm572_vm2, %v1733_v5  ;;  %8955 = vmatmul.mubr.msk.f32.gmra.mrb[62].mxu0 %vm572_vm2, %v3152_v57 }
 0x170   : > { %v8569_v41 = vpop.f32.mrb[0].mxu1 }
 0x171   : > { %v1285_v3 = vpop.f32.mrb[1].mxu1 }
 0x174   : > { %v8572_v6 = vpop.f32.mrb[2].mxu1 }
 0x175   : > { %v1295_v45 = vpop.f32.mrb[3].mxu1 }
 0x178   : > { %v8575_v11 = vpop.f32.mrb[4].mxu1 }
 0x179   : > { %v1305_v7 = vpop.f32.mrb[5].mxu1 }
 0x17c   : > { %v10542_v2 = vpop.f32.mrb[6].mxu1 }
 0x17d   : > { %v10544_v12 = vpop.f32.mrb[7].mxu1 }
 0x180   : > { %v10546_v56 = vpop.f32.mrb[8].mxu1 }
 0x181   : > { %v10548_v33 = vpop.f32.mrb[9].mxu1 }
 0x184   : > { %v10550_v58 = vpop.f32.mrb[10].mxu1 }
 0x185   : > { %v10552_v25 = vpop.f32.mrb[11].mxu1 }
 0x188   : > { %v10554_v17 = vpop.f32.mrb[12].mxu1 }
 0x189   : > { %v10556_v60 = vpop.f32.mrb[13].mxu1 }
 0x18c   : > { %v10558_v22 = vpop.f32.mrb[14].mxu1 }
 0x18d   : > { %v10560_v15 = vpop.f32.mrb[15].mxu1 }
 0x190   : > { %v10562_v28 = vpop.f32.mrb[16].mxu1 }
 0x191   : > { %v10564_v10 = vpop.f32.mrb[17].mxu1 }
 0x194   : > { %v10566_v46 = vpop.f32.mrb[18].mxu1 }
 0x195   : > { %v10568_v39 = vpop.f32.mrb[19].mxu1 }
 0x198   : > { %v10570_v19 = vpop.f32.mrb[20].mxu1 }
 0x199   : > { %v10572_v9 = vpop.f32.mrb[21].mxu1 }
 0x19c   : > { %v10574_v52 = vpop.f32.mrb[22].mxu1 }
 0x19d   : > { %v10576_v20 = vpop.f32.mrb[23].mxu1 }
 0x1a0   : > { %v10578_v27 = vpop.f32.mrb[24].mxu1 }
 0x1a1   : > { %12180 = vst [vmem:[#allocation2_spill] sm:$0xff] %v10578_v27  ;;  %v10580_v24 = vpop.f32.mrb[25].mxu1 }
 0x1a2   : > { %12181 = vst [vmem:[#allocation3_spill] sm:$0xff] %v10580_v24 }
 0x1a4   : > { %v10582_v40 = vpop.f32.mrb[26].mxu1 }
 0x1a5   : > { %12182 = vst [vmem:[#allocation4_spill] sm:$0xff] %v10582_v40  ;;  %v10584_v53 = vpop.f32.mrb[27].mxu1 }
 0x1a6   : > { %12183 = vst [vmem:[#allocation5_spill] sm:$0xff] %v10584_v53 }
 0x1a8   : > { %v10586_v63 = vpop.f32.mrb[28].mxu1 }
 0x1a9   : > { %12184 = vst [vmem:[#allocation6_spill] sm:$0xff] %v10586_v63  ;;  %v10588_v23 = vpop.f32.mrb[29].mxu1 }
 0x1aa   : > { %12185 = vst [vmem:[#allocation7_spill] sm:$0xff] %v10588_v23 }
 0x1ac   : > { %v10590_v49 = vpop.f32.mrb[30].mxu1 }
 0x1ad   : > { %12186 = vst [vmem:[#allocation8_spill] sm:$0xff] %v10590_v49  ;;  %v10592_v0 = vpop.f32.mrb[31].mxu1 }
 0x1ae   : > { %12187 = vst [vmem:[#allocation9_spill] sm:$0xff] %v10592_v0 }
 0x1b0   : > { %v8863_v29 = vpop.f32.mrb[0].mxu0 }
 0x1b1   : > { %v8959_v35 = vadd.f32 %v8863_v29, %v8569_v41  ;;  %v3350_v21 = vpop.f32.mrb[1].mxu0 }
 0x1b2   : > { %v8960_v34 = vadd.f32 %v3350_v21, %v1285_v3 }
 0x1b3   : > { %v3741_v54 = vmul.f32 %v8959_v35, %v10597_v50 }
 0x1b4   : > { %v3740_v51 = vmul.f32 %v8960_v34, %v10597_v50  ;;  %v8866_v13 = vpop.f32.mrb[2].mxu0 }
 0x1b5   : > { %v3812_v30 = vadd.f32 %v10602_v48, %v3741_v54  ;;  %v8961_v55 = vadd.f32 %v8866_v13, %v8572_v6  ;;  %v3360_v62 = vpop.f32.mrb[3].mxu0 }
 0x1b6   : > { %v3811_v14 = vadd.f32 %v10602_v48, %v3740_v51  ;;  %v8962_v4 = vadd.f32 %v3360_v62, %v1295_v45 }
 0x1b7   : > { %v3876_v31 = vmax.f32 %v3812_v30, 0.0  ;;  %v3743_v61 = vmul.f32 %v8961_v55, %v10597_v50 }
 0x1b8   : > { %v3875_v37 = vmax.f32 %v3811_v14, 0.0  ;;  %v3742_v32 = vmul.f32 %v8962_v4, %v10597_v50  ;;  %v8869_v44 = vpop.f32.mrb[4].mxu0 }
 0x1b9   : > { %v4020_v47 = vcombine.high %v3876_v31, %v3876_v31  ;;  %v4027_v42 = vrot.slane %v3876_v31, %v10607_v43  ;;  %v3814_v38 = vadd.f32 %v10602_v48, %v3743_v61  ;;  %v10614_v1 = vadd.f32 %v8869_v44, %v8575_v11  ;;  %v3370_v16 = vpop.f32.mrb[5].mxu0 }
 0x1ba   : > { %v4003_v5 = vcombine.high %v3875_v37, %v3875_v37  ;;  %v4010_v57 = vrot.slane %v3875_v37, %v10607_v43  ;;  %v10618_v41 = vadd.f32 %v10602_v48, %v3742_v32  ;;  %v10620_v3 = vadd.f32 %v3370_v16, %v1305_v7 }
 0x1bb   : > { %v4034_v6 = vrot.slane %v4020_v47, %v10607_v43  ;;  %v4035_v45 = vcombine.high %v4027_v42, %v4027_v42  ;;  %v5376_v18 = vsel %vm5347_vm5, %v4027_v42, -inf  ;;  %v10624_v36 = vmax.f32 %v3814_v38, 0.0 }
 0x1bc   : > { %v5377_v8 = vrot.slane %v5376_v18, 4  ;;  %v4017_v11 = vrot.slane %v4003_v5, %v10607_v43  ;;  %v4018_v29 = vcombine.high %v4010_v57, %v4010_v57  ;;  %v5348_v35 = vsel %vm5347_vm5, %v4010_v57, -inf  ;;  %v10628_v26 = vpop.f32.mrb[6].mxu0 }
 0x1bd   : > { %v4036_v59 = vcombine.high %v4034_v6, %v4034_v6  ;;  %v5383_v21 = vsel %vm5347_vm5, %v4035_v45, -inf  ;;  %v5390_v7 = vsel %vm5347_vm5, %v4034_v6, -inf  ;;  %v5349_v34 = vrot.slane %v5348_v35, 4  ;;  %v10632_v54 = vpop.f32.mrb[7].mxu0 }
 0x1be   : > { %v5378_v51 = vmax.f32 %v5376_v18, %v5377_v8  ;;  %v5384_v13 = vrot.slane %v5383_v21, 4  ;;  %v5391_v30 = vrot.slane %v5390_v7, 4  ;;  %v4019_v55 = vcombine.high %v4017_v11, %v4017_v11 }
 0x1bf   : > { %v5397_v62 = vsel %vm5347_vm5, %v4036_v59, -inf  ;;  %v5350_v14 = vmax.f32 %v5348_v35, %v5349_v34  ;;  %v5355_v4 = vsel %vm5347_vm5, %v4018_v29, -inf  ;;  %v5362_v31 = vsel %vm5347_vm5, %v4017_v11, -inf }
 0x1c0   : > { %v5379_v61 = vrot.slane %v5378_v51, 2  ;;  %v5385_v37 = vmax.f32 %v5383_v21, %v5384_v13  ;;  %v5392_v32 = vmax.f32 %v5390_v7, %v5391_v30  ;;  %v5398_v44 = vrot.slane %v5397_v62, 4  ;;  %v10638_v47 = vpop.f32.mrb[8].mxu0 }
 0x1c1   : > { %v5351_v42 = vrot.slane %v5350_v14, 2  ;;  %v5356_v38 = vrot.slane %v5355_v4, 4  ;;  %v5363_v16 = vrot.slane %v5362_v31, 4  ;;  %v5369_v5 = vsel %vm5347_vm5, %v4019_v55, -inf  ;;  %v10641_v57 = vpop.f32.mrb[9].mxu0 }
 0x1c2   : > { %v5380_v6 = vmax.f32 %v5378_v51, %v5379_v61  ;;  %v5386_v45 = vrot.slane %v5385_v37, 2  ;;  %v5393_v18 = vrot.slane %v5392_v32, 2  ;;  %v5399_v8 = vmax.f32 %v5397_v62, %v5398_v44 }
 0x1c3   : > { %v5352_v11 = vmax.f32 %v5350_v14, %v5351_v42  ;;  %v5357_v29 = vmax.f32 %v5355_v4, %v5356_v38  ;;  %v5364_v35 = vmax.f32 %v5362_v31, %v5363_v16  ;;  %v5370_v59 = vrot.slane %v5369_v5, 4 }
 0x1c4   : > { %v5381_v21 = vrot.slane %v5380_v6, 1  ;;  %v5387_v7 = vmax.f32 %v5385_v37, %v5386_v45  ;;  %v5394_v34 = vmax.f32 %v5392_v32, %v5393_v18  ;;  %v5400_v51 = vrot.slane %v5399_v8, 2  ;;  %v10649_v13 = vpop.f32.mrb[10].mxu0 }
 0x1c5   : > { %v5353_v30 = vrot.slane %v5352_v11, 1  ;;  %v5358_v55 = vrot.slane %v5357_v29, 2  ;;  %v5365_v62 = vrot.slane %v5364_v35, 2  ;;  %v5371_v61 = vmax.f32 %v5369_v5, %v5370_v59  ;;  %v10651_v14 = vpop.f32.mrb[11].mxu0 }
 0x1c6   : > { %v5382_v4 = vmax.f32 %v5380_v6, %v5381_v21  ;;  %v5388_v31 = vrot.slane %v5387_v7, 1  ;;  %v5395_v44 = vrot.slane %v5394_v34, 1  ;;  %v5401_v42 = vmax.f32 %v5399_v8, %v5400_v51 }
 0x1c7   : > { %v5354_v37 = vmax.f32 %v5352_v11, %v5353_v30  ;;  %v5359_v32 = vmax.f32 %v5357_v29, %v5358_v55  ;;  %v5366_v38 = vmax.f32 %v5364_v35, %v5365_v62  ;;  %v5372_v16 = vrot.slane %v5371_v61, 2 }
 0x1c8   : > { %v5389_v45 = vmax.f32 %v5387_v7, %v5388_v31  ;;  %v5396_v18 = vmax.f32 %v5394_v34, %v5395_v44  ;;  %v5402_v5 = vrot.slane %v5401_v42, 1  ;;  %v4054_v6 = vcombine.high %v10624_v36, %v10624_v36  ;;  %v10660_v59 = vpop.f32.mrb[12].mxu0 }
 0x1c9   : > { %v5360_v8 = vrot.slane %v5359_v32, 1  ;;  %v5367_v21 = vrot.slane %v5366_v38, 1  ;;  %v5373_v51 = vmax.f32 %v5371_v61, %v5372_v16  ;;  %v4061_v11 = vrot.slane %v10624_v36, %v10607_v43  ;;  %v10664_v29 = vpop.f32.mrb[13].mxu0 }
 0x1ca   : > { %v5403_v35 = vmax.f32 %v5401_v42, %v5402_v5  ;;  %v4068_v7 = vrot.slane %v4054_v6, %v10607_v43  ;;  %v3877_v34 = vmax.f32 %v10618_v41, 0.0  ;;  %v10670_v30 = vmul.f32 %v10614_v1, %v10597_v50 }
 0x1cb   : > { %v5361_v55 = vmax.f32 %v5359_v32, %v5360_v8  ;;  %v5368_v62 = vmax.f32 %v5366_v38, %v5367_v21  ;;  %v5374_v61 = vrot.slane %v5373_v51, 1  ;;  %v4069_v31 = vcombine.high %v4061_v11, %v4061_v11 }
 0x1cc   : > { %v4070_v44 = vcombine.high %v4068_v7, %v4068_v7  ;;  %v5432_v36 = vsel %vm5347_vm5, %v4061_v11, -inf  ;;  %v5446_v42 = vsel %vm5347_vm5, %v4068_v7, -inf  ;;  %v4037_v16 = vcombine.high %v3877_v34, %v3877_v34  ;;  %v10676_v5 = vpop.f32.mrb[14].mxu0 }
 0x1cd   : > { %v5375_v41 = vmax.f32 %v5373_v51, %v5374_v61  ;;  %v7397_v6 = vsel %vm7396_vm6, %v5361_v55, %v5354_v37  ;;  %v5433_v1 = vrot.slane %v5432_v36, 4  ;;  %v5439_v0 = vsel %vm5347_vm5, %v4069_v31, -inf  ;;  %v10680_v49 = vpop.f32.mrb[15].mxu0 }
 0x1ce   : > { %v7399_v32 = vsel %vm7398_vm7, %v5368_v62, %v7397_v6  ;;  %v5440_v38 = vrot.slane %v5439_v0, 4  ;;  %v5447_v8 = vrot.slane %v5446_v42, 4  ;;  %v5453_v21 = vsel %vm5347_vm5, %v4070_v44, -inf }
 0x1cf   : > { %v7401_v11 = vsel %vm7400_vm8, %v5375_v41, %v7399_v32  ;;  %v5434_v7 = vmax.f32 %v5432_v36, %v5433_v1  ;;  %v5454_v23 = vrot.slane %v5453_v21, 4  ;;  %v4044_v51 = vrot.slane %v3877_v34, %v10607_v43 }
 0x1d0   : > { %v7403_v37 = vsel %vm7402_vm9, %v5382_v4, %v7401_v11  ;;  %v5441_v55 = vmax.f32 %v5439_v0, %v5440_v38  ;;  %v5448_v61 = vmax.f32 %v5446_v42, %v5447_v8  ;;  %v4051_v31 = vrot.slane %v4037_v16, %v10607_v43  ;;  %v10689_v63 = vpop.f32.mrb[16].mxu0 }
 0x1d1   : > { %v7405_v62 = vsel %vm7404_vm10, %v5389_v45, %v7403_v37  ;;  %v5435_v44 = vrot.slane %v5434_v7, 2  ;;  %v5455_v36 = vmax.f32 %v5453_v21, %v5454_v23  ;;  %v4052_v41 = vcombine.high %v4044_v51, %v4044_v51  ;;  %v10697_v34 = vpop.f32.mrb[17].mxu0 }
 0x1d2   : > { %v7407_v0 = vsel %vm7406_vm11, %v5396_v18, %v7405_v62  ;;  %v5442_v4 = vrot.slane %v5441_v55, 2  ;;  %v5449_v42 = vrot.slane %v5448_v61, 2  ;;  %v4053_v16 = vcombine.high %v4051_v31, %v4051_v31 }
 0x1d3   : > { %v7409_v6 = vsel %vm7408_vm12, %v5403_v35, %v7407_v0  ;;  %v5436_v1 = vmax.f32 %v5434_v7, %v5435_v44  ;;  %v5456_v32 = vrot.slane %v5455_v36, 2  ;;  %v5404_v38 = vsel %vm5347_vm5, %v4044_v51, -inf }
 0x1d4   : > { %7659 = vst [vmem:[%s10694_s10] sm:$0xff] %v7409_v6  ;;  %v5443_v8 = vmax.f32 %v5441_v55, %v5442_v4  ;;  %v5450_v11 = vmax.f32 %v5448_v61, %v5449_v42  ;;  %v5405_v45 = vrot.slane %v5404_v38, 4  ;;  %v5411_v23 = vsel %vm5347_vm5, %v4052_v41, -inf  ;;  %v10716_v6 = vpop.f32.mrb[18].mxu0 }
 0x1d5   : > { %v5437_v21 = vrot.slane %v5436_v1, 1  ;;  %v5457_v37 = vmax.f32 %v5455_v36, %v5456_v32  ;;  %v5412_v53 = vrot.slane %v5411_v23, 4  ;;  %v5418_v18 = vsel %vm5347_vm5, %v4051_v31, -inf }
 0x1d6   : > { %v5444_v62 = vrot.slane %v5443_v8, 1  ;;  %v5451_v40 = vrot.slane %v5450_v11, 1  ;;  %v5406_v24 = vmax.f32 %v5404_v38, %v5405_v45  ;;  %v5419_v27 = vrot.slane %v5418_v18, 4 }
 0x1d7   : > { %v10705_v35 = vmax.f32 %v5436_v1, %v5437_v21  ;;  %v5458_v7 = vrot.slane %v5457_v37, 1  ;;  %v5413_v44 = vmax.f32 %v5411_v23, %v5412_v53  ;;  %v5425_v51 = vsel %vm5347_vm5, %v4053_v16, -inf }
 0x1d8   : > { %v10708_v55 = vmax.f32 %v5443_v8, %v5444_v62  ;;  %v10710_v61 = vmax.f32 %v5450_v11, %v5451_v40  ;;  %v5407_v41 = vrot.slane %v5406_v24, 2  ;;  %v5420_v0 = vmax.f32 %v5418_v18, %v5419_v27 }
 0x1d9   : > { %v10712_v36 = vmax.f32 %v5457_v37, %v5458_v7  ;;  %v5414_v4 = vrot.slane %v5413_v44, 2  ;;  %v5426_v31 = vrot.slane %v5425_v51, 4  ;;  %v3816_v42 = vadd.f32 %v10602_v48, %v10670_v30 }
 0x1da   : > { %v5408_v1 = vmax.f32 %v5406_v24, %v5407_v41  ;;  %v5421_v32 = vrot.slane %v5420_v0, 2  ;;  %v3744_v53 = vmul.f32 %v10620_v3, %v10597_v50  ;;  %v8965_v40 = vadd.f32 %v10628_v26, %v10542_v2 }
 0x1db   : > { %v5415_v16 = vmax.f32 %v5413_v44, %v5414_v4  ;;  %v5427_v38 = vmax.f32 %v5425_v51, %v5426_v31  ;;  %v3880_v27 = vmax.f32 %v3816_v42, 0.0  ;;  %v10724_v8 = vadd.f32 %v10632_v54, %v10544_v12 }
 0x1dc   : > { %v5409_v11 = vrot.slane %v5408_v1, 1  ;;  %v5422_v45 = vmax.f32 %v5420_v0, %v5421_v32  ;;  %v3815_v30 = vadd.f32 %v10602_v48, %v3744_v53  ;;  %v3747_v24 = vmul.f32 %v8965_v40, %v10597_v50 }
 0x1dd   : > { %v5416_v23 = vrot.slane %v5415_v16, 1  ;;  %v5428_v21 = vrot.slane %v5427_v38, 2  ;;  %v4088_v37 = vcombine.high %v3880_v27, %v3880_v27  ;;  %v4095_v3 = vrot.slane %v3880_v27, %v10607_v43  ;;  %v10740_v27 = vpop.f32.mrb[19].mxu0 }
 0x1de   : > { %v5410_v18 = vmax.f32 %v5408_v1, %v5409_v11  ;;  %v5423_v2 = vrot.slane %v5422_v45, 1  ;;  %v3879_v26 = vmax.f32 %v3815_v30, 0.0  ;;  %v10730_v62 = vadd.f32 %v10602_v48, %v3747_v24 }
 0x1df   : > { %v5417_v7 = vmax.f32 %v5415_v16, %v5416_v23  ;;  %v5429_v12 = vmax.f32 %v5427_v38, %v5428_v21  ;;  %v4102_v54 = vrot.slane %v4088_v37, %v10607_v43  ;;  %v4103_v44 = vcombine.high %v4095_v3, %v4095_v3 }
 0x1e0   : > { %v5424_v51 = vmax.f32 %v5422_v45, %v5423_v2  ;;  %v5488_v41 = vsel %vm5347_vm5, %v4095_v3, -inf  ;;  %v4071_v0 = vcombine.high %v3879_v26, %v3879_v26  ;;  %v4078_v4 = vrot.slane %v3879_v26, %v10607_v43 }
 0x1e1   : > { %v5430_v31 = vrot.slane %v5429_v12, 1  ;;  %v7410_v42 = vsel %vm7396_vm6, %v5417_v7, %v5410_v18  ;;  %v4104_v1 = vcombine.high %v4102_v54, %v4102_v54  ;;  %v5489_v32 = vrot.slane %v5488_v41, 4 }
 0x1e2   : > { %v7411_v53 = vsel %vm7398_vm7, %v5424_v51, %v7410_v42  ;;  %v5495_v40 = vsel %vm5347_vm5, %v4103_v44, -inf  ;;  %v5502_v16 = vsel %vm5347_vm5, %v4102_v54, -inf  ;;  %v4085_v38 = vrot.slane %v4071_v0, %v10607_v43 }
 0x1e3   : > { %v5431_v11 = vmax.f32 %v5429_v12, %v5430_v31  ;;  %v5490_v45 = vmax.f32 %v5488_v41, %v5489_v32  ;;  %v5496_v30 = vrot.slane %v5495_v40, 4  ;;  %v5503_v24 = vrot.slane %v5502_v16, 4 }
 0x1e4   : > { %v5509_v23 = vsel %vm5347_vm5, %v4104_v1, -inf  ;;  %v4086_v21 = vcombine.high %v4078_v4, %v4078_v4  ;;  %v4087_v37 = vcombine.high %v4085_v38, %v4085_v38  ;;  %v5460_v3 = vsel %vm5347_vm5, %v4078_v4, -inf }
 0x1e5   : > { %v7412_v18 = vsel %vm7400_vm8, %v5431_v11, %v7411_v53  ;;  %v5491_v2 = vrot.slane %v5490_v45, 2  ;;  %v5497_v26 = vmax.f32 %v5495_v40, %v5496_v30  ;;  %v5504_v7 = vmax.f32 %v5502_v16, %v5503_v24 }
 0x1e6   : > { %v7413_v54 = vsel %vm7402_vm9, %v10705_v35, %v7412_v18  ;;  %v5510_v44 = vrot.slane %v5509_v23, 4  ;;  %v5461_v12 = vrot.slane %v5460_v3, 4  ;;  %v5467_v51 = vsel %vm5347_vm5, %v4086_v21, -inf }
 0x1e7   : > { %v7414_v41 = vsel %vm7404_vm10, %v10708_v55, %v7413_v54  ;;  %v5492_v0 = vmax.f32 %v5490_v45, %v5491_v2  ;;  %v5498_v31 = vrot.slane %v5497_v26, 2  ;;  %v5505_v42 = vrot.slane %v5504_v7, 2 }
 0x1e8   : > { %v7415_v4 = vsel %vm7406_vm11, %v10710_v61, %v7414_v41  ;;  %v5511_v1 = vmax.f32 %v5509_v23, %v5510_v44  ;;  %v5462_v32 = vmax.f32 %v5460_v3, %v5461_v12  ;;  %v5468_v53 = vrot.slane %v5467_v51, 4 }
 0x1e9   : > { %v7416_v35 = vsel %vm7408_vm12, %v10712_v36, %v7415_v4  ;;  %v5493_v40 = vrot.slane %v5492_v0, 1  ;;  %v5499_v16 = vmax.f32 %v5497_v26, %v5498_v31  ;;  %v5506_v11 = vmax.f32 %v5504_v7, %v5505_v42 }
 0x1ea   : > { %7660 = vst [vmem:[%s10694_s10 + $0x8] sm:$0xff] %v7416_v35  ;;  %v5512_v30 = vrot.slane %v5511_v1, 2  ;;  %v5463_v24 = vrot.slane %v5462_v32, 2  ;;  %v5469_v21 = vmax.f32 %v5467_v51, %v5468_v53  ;;  %v5474_v55 = vsel %vm5347_vm5, %v4085_v38, -inf }
 0x1eb   : > { %v10756_v45 = vmax.f32 %v5492_v0, %v5493_v40  ;;  %v5500_v18 = vrot.slane %v5499_v16, 1  ;;  %v5507_v2 = vrot.slane %v5506_v11, 1  ;;  %v5475_v61 = vrot.slane %v5474_v55, 4 }
 0x1ec   : > { %v5513_v23 = vmax.f32 %v5511_v1, %v5512_v30  ;;  %v5464_v3 = vmax.f32 %v5462_v32, %v5463_v24  ;;  %v5470_v54 = vrot.slane %v5469_v21, 2  ;;  %v5481_v44 = vsel %vm5347_vm5, %v4087_v37, -inf  ;;  %v10764_v32 = vpop.f32.mrb[20].mxu0 }
 0x1ed   : > { %v5501_v36 = vmax.f32 %v5499_v16, %v5500_v18  ;;  %v5508_v12 = vmax.f32 %v5506_v11, %v5507_v2  ;;  %v5476_v26 = vmax.f32 %v5474_v55, %v5475_v61  ;;  %v5482_v7 = vrot.slane %v5481_v44, 4 }
 0x1ee   : > { %v5514_v41 = vrot.slane %v5513_v23, 1  ;;  %v5465_v31 = vrot.slane %v5464_v3, 1  ;;  %v5471_v42 = vmax.f32 %v5469_v21, %v5470_v54  ;;  %v3882_v51 = vmax.f32 %v10730_v62, 0.0 }
 0x1ef   : > { %v5477_v38 = vrot.slane %v5476_v26, 2  ;;  %v5483_v0 = vmax.f32 %v5481_v44, %v5482_v7  ;;  %v3746_v4 = vmul.f32 %v10724_v8, %v10597_v50  ;;  %v8967_v1 = vadd.f32 %v10638_v47, %v10546_v56 }
 0x1f0   : > { %v5515_v37 = vmax.f32 %v5513_v23, %v5514_v41  ;;  %v5466_v53 = vmax.f32 %v5464_v3, %v5465_v31  ;;  %v5472_v35 = vrot.slane %v5471_v42, 1  ;;  %v4122_v40 = vcombine.high %v3882_v51, %v3882_v51 }
 0x1f1   : > { %v5478_v16 = vmax.f32 %v5476_v26, %v5477_v38  ;;  %v5484_v11 = vrot.slane %v5483_v0, 2  ;;  %v4129_v30 = vrot.slane %v3882_v51, %v10607_v43  ;;  %v3817_v62 = vadd.f32 %v10602_v48, %v3746_v4 }
 0x1f2   : > { %v5473_v24 = vmax.f32 %v5471_v42, %v5472_v35  ;;  %v4136_v21 = vrot.slane %v4122_v40, %v10607_v43  ;;  %v3749_v8 = vmul.f32 %v8967_v1, %v10597_v50  ;;  %v10772_v56 = vadd.f32 %v10641_v57, %v10548_v33  ;;  %v10780_v1 = vpop.f32.mrb[21].mxu0 }
 0x1f3   : > { %v5479_v47 = vrot.slane %v5478_v16, 1  ;;  %v5485_v55 = vmax.f32 %v5483_v0, %v5484_v11  ;;  %v4137_v18 = vcombine.high %v4129_v30, %v4129_v30  ;;  %v5544_v2 = vsel %vm5347_vm5, %v4129_v30, -inf }
 0x1f4   : > { %v7417_v61 = vsel %vm7396_vm6, %v5473_v24, %v5466_v53  ;;  %v4138_v23 = vcombine.high %v4136_v21, %v4136_v21  ;;  %v5545_v3 = vrot.slane %v5544_v2, 4  ;;  %v5558_v54 = vsel %vm5347_vm5, %v4136_v21, -inf }
 0x1f5   : > { %v5480_v44 = vmax.f32 %v5478_v16, %v5479_v47  ;;  %v5486_v26 = vrot.slane %v5485_v55, 1  ;;  %v5551_v7 = vsel %vm5347_vm5, %v4137_v18, -inf  ;;  %v5559_v41 = vrot.slane %v5558_v54, 4 }
 0x1f6   : > { %v5546_v31 = vmax.f32 %v5544_v2, %v5545_v3  ;;  %v5552_v42 = vrot.slane %v5551_v7, 4  ;;  %v5565_v33 = vsel %vm5347_vm5, %v4138_v23, -inf  ;;  %v3881_v57 = vmax.f32 %v3817_v62, 0.0 }
 0x1f7   : > { %v5487_v51 = vmax.f32 %v5485_v55, %v5486_v26  ;;  %v7418_v38 = vsel %vm7398_vm7, %v5480_v44, %v7417_v61  ;;  %v5560_v0 = vmax.f32 %v5558_v54, %v5559_v41  ;;  %v5566_v4 = vrot.slane %v5565_v33, 4 }
 0x1f8   : > { %v5547_v53 = vrot.slane %v5546_v31, 2  ;;  %v5553_v35 = vmax.f32 %v5551_v7, %v5552_v42  ;;  %v4105_v40 = vcombine.high %v3881_v57, %v3881_v57  ;;  %v4112_v16 = vrot.slane %v3881_v57, %v10607_v43 }
 0x1f9   : > { %v7419_v11 = vsel %vm7400_vm8, %v5487_v51, %v7418_v38  ;;  %v5561_v30 = vrot.slane %v5560_v0, 2  ;;  %v5567_v24 = vmax.f32 %v5565_v33, %v5566_v4  ;;  %v3820_v21 = vadd.f32 %v10602_v48, %v3749_v8 }
 0x1fa   : > { %v7420_v62 = vsel %vm7402_vm9, %v10756_v45, %v7419_v11  ;;  %v5548_v47 = vmax.f32 %v5546_v31, %v5547_v53  ;;  %v5554_v55 = vrot.slane %v5553_v35, 2  ;;  %v4119_v18 = vrot.slane %v4105_v40, %v10607_v43 }
 0x1fb   : > { %v7421_v2 = vsel %vm7404_vm10, %v5501_v36, %v7420_v62  ;;  %v5562_v61 = vmax.f32 %v5560_v0, %v5561_v30  ;;  %v5568_v23 = vrot.slane %v5567_v24, 2  ;;  %v4120_v3 = vcombine.high %v4112_v16, %v4112_v16 }
 0x1fc   : > { %v7422_v54 = vsel %vm7406_vm11, %v5508_v12, %v7421_v2  ;;  %v5549_v44 = vrot.slane %v5548_v47, 1  ;;  %v5555_v26 = vmax.f32 %v5553_v35, %v5554_v55  ;;  %v4121_v7 = vcombine.high %v4119_v18, %v4119_v18 }
 0x1fd   : > { %v7423_v8 = vsel %vm7408_vm12, %v5515_v37, %v7422_v54  ;;  %v5563_v41 = vrot.slane %v5562_v61, 1  ;;  %v5569_v42 = vmax.f32 %v5567_v24, %v5568_v23  ;;  %v5516_v45 = vsel %vm5347_vm5, %v4112_v16, -inf }
 0x1fe   : > { %7661 = vst [vmem:[%s10694_s10 + $0x10] sm:$0xff] %v7423_v8  ;;  %v10793_v31 = vmax.f32 %v5548_v47, %v5549_v44  ;;  %v5556_v33 = vrot.slane %v5555_v26, 1  ;;  %v5517_v57 = vrot.slane %v5516_v45, 4  ;;  %v5523_v36 = vsel %vm5347_vm5, %v4120_v3, -inf  ;;  %v10809_v3 = vpop.f32.mrb[22].mxu0 }
 0x1ff   : > { %v10796_v51 = vmax.f32 %v5562_v61, %v5563_v41  ;;  %v5570_v38 = vrot.slane %v5569_v42, 1  ;;  %v5524_v12 = vrot.slane %v5523_v36, 4  ;;  %v5530_v0 = vsel %vm5347_vm5, %v4119_v18, -inf }
 0x200   : > { %v10799_v4 = vmax.f32 %v5555_v26, %v5556_v33  ;;  %v5518_v37 = vmax.f32 %v5516_v45, %v5517_v57  ;;  %v5531_v53 = vrot.slane %v5530_v0, 4  ;;  %v5537_v35 = vsel %vm5347_vm5, %v4121_v7, -inf }
 0x201   : > { %v10802_v40 = vmax.f32 %v5569_v42, %v5570_v38  ;;  %v5525_v16 = vmax.f32 %v5523_v36, %v5524_v12  ;;  %v5538_v11 = vrot.slane %v5537_v35, 4  ;;  %v3884_v30 = vmax.f32 %v3820_v21, 0.0 }
 0x202   : > { %v5519_v24 = vrot.slane %v5518_v37, 2  ;;  %v5532_v62 = vmax.f32 %v5530_v0, %v5531_v53  ;;  %v3748_v47 = vmul.f32 %v10772_v56, %v10597_v50  ;;  %v8969_v55 = vadd.f32 %v10649_v13, %v10550_v58 }
 0x203   : > { %v5526_v18 = vrot.slane %v5525_v16, 2  ;;  %v5539_v2 = vmax.f32 %v5537_v35, %v5538_v11  ;;  %v4156_v61 = vcombine.high %v3884_v30, %v3884_v30  ;;  %v4163_v23 = vrot.slane %v3884_v30, %v10607_v43 }
 0x204   : > { %v5520_v54 = vmax.f32 %v5518_v37, %v5519_v24  ;;  %v5533_v44 = vrot.slane %v5532_v62, 2  ;;  %v3819_v26 = vadd.f32 %v10602_v48, %v3748_v47  ;;  %v10813_v21 = vmul.f32 %v8969_v55, %v10597_v50  ;;  %v10819_v24 = vpop.f32.mrb[23].mxu0 }
 0x205   : > { %v5527_v7 = vmax.f32 %v5525_v16, %v5526_v18  ;;  %v5540_v8 = vrot.slane %v5539_v2, 2  ;;  %v4170_v56 = vrot.slane %v4156_v61, %v10607_v43  ;;  %v4171_v41 = vcombine.high %v4163_v23, %v4163_v23 }
 0x206   : > { %v5521_v58 = vrot.slane %v5520_v54, 1  ;;  %v5534_v13 = vmax.f32 %v5532_v62, %v5533_v44  ;;  %v5600_v42 = vsel %vm5347_vm5, %v4163_v23, -inf  ;;  %v3883_v45 = vmax.f32 %v3819_v26, 0.0 }
 0x207   : > { %v5528_v33 = vrot.slane %v5527_v7, 1  ;;  %v5541_v57 = vmax.f32 %v5539_v2, %v5540_v8  ;;  %v4172_v36 = vcombine.high %v4170_v56, %v4170_v56  ;;  %v5601_v38 = vrot.slane %v5600_v42, 4 }
 0x208   : > { %v5522_v12 = vmax.f32 %v5520_v54, %v5521_v58  ;;  %v5535_v0 = vrot.slane %v5534_v13, 1  ;;  %v5607_v37 = vsel %vm5347_vm5, %v4171_v41, -inf  ;;  %v5614_v53 = vsel %vm5347_vm5, %v4170_v56, -inf }
 0x209   : > { %v5529_v35 = vmax.f32 %v5527_v7, %v5528_v33  ;;  %v5542_v16 = vrot.slane %v5541_v57, 1  ;;  %v5602_v11 = vmax.f32 %v5600_v42, %v5601_v38  ;;  %v5608_v30 = vrot.slane %v5607_v37, 4 }
 0x20a   : > { %v5536_v62 = vmax.f32 %v5534_v13, %v5535_v0  ;;  %v5615_v47 = vrot.slane %v5614_v53, 4  ;;  %v5621_v55 = vsel %vm5347_vm5, %v4172_v36, -inf  ;;  %v4139_v18 = vcombine.high %v3883_v45, %v3883_v45 }
 0x20b   : > { %v5543_v2 = vmax.f32 %v5541_v57, %v5542_v16  ;;  %v7424_v61 = vsel %vm7396_vm6, %v5529_v35, %v5522_v12  ;;  %v5603_v23 = vrot.slane %v5602_v11, 2  ;;  %v5609_v54 = vmax.f32 %v5607_v37, %v5608_v30 }
 0x20c   : > { %v7425_v44 = vsel %vm7398_vm7, %v5536_v62, %v7424_v61  ;;  %v5616_v26 = vmax.f32 %v5614_v53, %v5615_v47  ;;  %v5622_v8 = vrot.slane %v5621_v55, 4  ;;  %v4146_v7 = vrot.slane %v3883_v45, %v10607_v43 }
 0x20d   : > { %v7426_v56 = vsel %vm7400_vm8, %v5543_v2, %v7425_v44  ;;  %v5604_v41 = vmax.f32 %v5602_v11, %v5603_v23  ;;  %v5610_v58 = vrot.slane %v5609_v54, 2  ;;  %v4153_v13 = vrot.slane %v4139_v18, %v10607_v43 }
 0x20e   : > { %v7427_v42 = vsel %vm7402_vm9, %v10793_v31, %v7426_v56  ;;  %v5617_v33 = vrot.slane %v5616_v26, 2  ;;  %v5623_v57 = vmax.f32 %v5621_v55, %v5622_v8  ;;  %v4154_v36 = vcombine.high %v4146_v7, %v4146_v7 }
 0x20f   : > { %v7428_v38 = vsel %vm7404_vm10, %v10799_v4, %v7427_v42  ;;  %v5605_v12 = vrot.slane %v5604_v41, 1  ;;  %v5611_v0 = vmax.f32 %v5609_v54, %v5610_v58  ;;  %v4155_v37 = vcombine.high %v4153_v13, %v4153_v13 }
 0x210   : > { %v7429_v45 = vsel %vm7406_vm11, %v10796_v51, %v7428_v38  ;;  %v5618_v53 = vmax.f32 %v5616_v26, %v5617_v33  ;;  %v5624_v35 = vrot.slane %v5623_v57, 2  ;;  %v5572_v16 = vsel %vm5347_vm5, %v4146_v7, -inf }
 0x211   : > { %v7430_v31 = vsel %vm7408_vm12, %v10802_v40, %v7429_v45  ;;  %v10836_v11 = vmax.f32 %v5604_v41, %v5605_v12  ;;  %v5612_v30 = vrot.slane %v5611_v0, 1  ;;  %v5573_v62 = vrot.slane %v5572_v16, 4 }
 0x212   : > { %7662 = vst [vmem:[%s10694_s10 + $0x18] sm:$0xff] %v7430_v31  ;;  %v5619_v47 = vrot.slane %v5618_v53, 1  ;;  %v5625_v4 = vmax.f32 %v5623_v57, %v5624_v35  ;;  %v5579_v55 = vsel %vm5347_vm5, %v4154_v36, -inf  ;;  %v5586_v18 = vsel %vm5347_vm5, %v4153_v13, -inf }
 0x213   : > { %v10841_v2 = vmax.f32 %v5611_v0, %v5612_v30  ;;  %v5574_v51 = vmax.f32 %v5572_v16, %v5573_v62  ;;  %v5580_v61 = vrot.slane %v5579_v55, 4  ;;  %v5587_v23 = vrot.slane %v5586_v18, 4 }
 0x214   : > { %v10843_v54 = vmax.f32 %v5618_v53, %v5619_v47  ;;  %v5626_v44 = vrot.slane %v5625_v4, 1  ;;  %v5593_v40 = vsel %vm5347_vm5, %v4155_v37, -inf  ;;  %v3822_v26 = vadd.f32 %v10602_v48, %v10813_v21 }
 0x215   : > { %v5575_v8 = vrot.slane %v5574_v51, 2  ;;  %v5581_v7 = vmax.f32 %v5579_v55, %v5580_v61  ;;  %v5588_v56 = vmax.f32 %v5586_v18, %v5587_v23  ;;  %v5594_v41 = vrot.slane %v5593_v40, 4 }
 0x216   : > { %v10848_v58 = vmax.f32 %v5625_v4, %v5626_v44  ;;  %v3886_v13 = vmax.f32 %v3822_v26, 0.0  ;;  %v8970_v42 = vadd.f32 %v10651_v14, %v10552_v25  ;;  %v8971_v33 = vadd.f32 %v10660_v59, %v10554_v17  ;;  %v10859_v25 = vpop.f32.mrb[24].mxu0 }
 0x217   : > { %v5576_v57 = vmax.f32 %v5574_v51, %v5575_v8  ;;  %v5582_v36 = vrot.slane %v5581_v7, 2  ;;  %v5589_v38 = vrot.slane %v5588_v56, 2  ;;  %v5595_v12 = vmax.f32 %v5593_v40, %v5594_v41  ;;  %v10866_v23 = vpop.f32.mrb[25].mxu0 }
 0x218   : > { %v4190_v0 = vcombine.high %v3886_v13, %v3886_v13  ;;  %v4197_v21 = vrot.slane %v3886_v13, %v10607_v43  ;;  %v3750_v37 = vmul.f32 %v8970_v42, %v10597_v50  ;;  %v10857_v45 = vmul.f32 %v8971_v33, %v10597_v50 }
 0x219   : > { %v5577_v53 = vrot.slane %v5576_v57, 1  ;;  %v5583_v35 = vmax.f32 %v5581_v7, %v5582_v36  ;;  %v5590_v16 = vmax.f32 %v5588_v56, %v5589_v38  ;;  %v5596_v31 = vrot.slane %v5595_v12, 2 }
 0x21a   : > { %v4204_v17 = vrot.slane %v4190_v0, %v10607_v43  ;;  %v4205_v14 = vcombine.high %v4197_v21, %v4197_v21  ;;  %v5656_v59 = vsel %vm5347_vm5, %v4197_v21, -inf  ;;  %v3821_v30 = vadd.f32 %v10602_v48, %v3750_v37 }
 0x21b   : > { %v5578_v62 = vmax.f32 %v5576_v57, %v5577_v53  ;;  %v5584_v47 = vrot.slane %v5583_v35, 1  ;;  %v5591_v4 = vrot.slane %v5590_v16, 1  ;;  %v5597_v55 = vmax.f32 %v5595_v12, %v5596_v31 }
 0x21c   : > { %v4206_v18 = vcombine.high %v4204_v17, %v4204_v17  ;;  %v5657_v50 = vrot.slane %v5656_v59, 4  ;;  %v5663_v51 = vsel %vm5347_vm5, %v4205_v14, -inf  ;;  %v5670_v61 = vsel %vm5347_vm5, %v4204_v17, -inf }
 0x21d   : > { %v5585_v44 = vmax.f32 %v5583_v35, %v5584_v47  ;;  %v5592_v40 = vmax.f32 %v5590_v16, %v5591_v4  ;;  %v5598_v26 = vrot.slane %v5597_v55, 1  ;;  %v5664_v8 = vrot.slane %v5663_v51, 4 }
 0x21e   : > { %v5658_v7 = vmax.f32 %v5656_v59, %v5657_v50  ;;  %v5671_v56 = vrot.slane %v5670_v61, 4  ;;  %v5677_v41 = vsel %vm5347_vm5, %v4206_v18, -inf  ;;  %v3885_v13 = vmax.f32 %v3821_v30, 0.0 }
 0x21f   : > { %v5599_v42 = vmax.f32 %v5597_v55, %v5598_v26  ;;  %v7431_v33 = vsel %vm7396_vm6, %v5585_v44, %v5578_v62  ;;  %v5665_v57 = vmax.f32 %v5663_v51, %v5664_v8  ;;  %v5678_v36 = vrot.slane %v5677_v41, 4 }
 0x220   : > { %v7432_v38 = vsel %vm7398_vm7, %v5592_v40, %v7431_v33  ;;  %v5659_v12 = vrot.slane %v5658_v7, 2  ;;  %v5672_v0 = vmax.f32 %v5670_v61, %v5671_v56  ;;  %v4173_v21 = vcombine.high %v3885_v13, %v3885_v13 }
 0x221   : > { %v7433_v37 = vsel %vm7400_vm8, %v5599_v42, %v7432_v38  ;;  %v5666_v53 = vrot.slane %v5665_v57, 2  ;;  %v5679_v35 = vmax.f32 %v5677_v41, %v5678_v36  ;;  %v4180_v16 = vrot.slane %v3885_v13, %v10607_v43 }
 0x222   : > { %v7434_v31 = vsel %vm7402_vm9, %v10836_v11, %v7433_v37  ;;  %v5660_v17 = vmax.f32 %v5658_v7, %v5659_v12  ;;  %v5673_v14 = vrot.slane %v5672_v0, 2  ;;  %v4187_v59 = vrot.slane %v4173_v21, %v10607_v43 }
 0x223   : > { %v7435_v30 = vsel %vm7404_vm10, %v10841_v2, %v7434_v31  ;;  %v5667_v62 = vmax.f32 %v5665_v57, %v5666_v53  ;;  %v5680_v47 = vrot.slane %v5679_v35, 2  ;;  %v4188_v4 = vcombine.high %v4180_v16, %v4180_v16 }
 0x224   : > { %v7436_v55 = vsel %vm7406_vm11, %v10843_v54, %v7435_v30  ;;  %v5661_v18 = vrot.slane %v5660_v17, 1  ;;  %v5674_v50 = vmax.f32 %v5672_v0, %v5673_v14  ;;  %v4189_v51 = vcombine.high %v4187_v59, %v4187_v59 }
 0x225   : > { %v7437_v11 = vsel %vm7408_vm12, %v10848_v58, %v7436_v55  ;;  %v5668_v61 = vrot.slane %v5667_v62, 1  ;;  %v5681_v44 = vmax.f32 %v5679_v35, %v5680_v47  ;;  %v5628_v40 = vsel %vm5347_vm5, %v4180_v16, -inf }
 0x226   : > { %7663 = vst [vmem:[%s10694_s10 + $0x20] sm:$0xff] %v7437_v11  ;;  %v10884_v26 = vmax.f32 %v5660_v17, %v5661_v18  ;;  %v5675_v2 = vrot.slane %v5674_v50, 1  ;;  %v5629_v8 = vrot.slane %v5628_v40, 4  ;;  %v5635_v7 = vsel %vm5347_vm5, %v4188_v4, -inf  ;;  %v10918_v4 = vld [vmem:[%s12120_s4] ss:$0 sm:$0xff] }
 0x227   : > { %v10887_v56 = vmax.f32 %v5667_v62, %v5668_v61  ;;  %v5682_v54 = vrot.slane %v5681_v44, 1  ;;  %v5636_v41 = vrot.slane %v5635_v7, 4  ;;  %v5642_v13 = vsel %vm5347_vm5, %v4187_v59, -inf  ;;  %v10905_v59 = vpop.f32.mrb[26].mxu0 }
 0x228   : > { %v10890_v42 = vmax.f32 %v5674_v50, %v5675_v2  ;;  %v5630_v58 = vmax.f32 %v5628_v40, %v5629_v8  ;;  %v5643_v33 = vrot.slane %v5642_v13, 4  ;;  %v5649_v57 = vsel %vm5347_vm5, %v4189_v51, -inf }
 0x229   : > { %v10893_v36 = vmax.f32 %v5681_v44, %v5682_v54  ;;  %v5637_v38 = vmax.f32 %v5635_v7, %v5636_v41  ;;  %v5650_v12 = vrot.slane %v5649_v57, 4  ;;  %v3824_v0 = vadd.f32 %v10602_v48, %v10857_v45  ;;  %v10910_v48 = vld [vmem:[%s12119_s3] ss:$0 sm:$0xff] }
 0x22a   : > { %v5631_v21 = vrot.slane %v5630_v58, 2  ;;  %v5644_v37 = vmax.f32 %v5642_v13, %v5643_v33  ;;  %v8972_v53 = vadd.f32 %v10664_v29, %v10556_v60  ;;  %v8973_v35 = vadd.f32 %v10676_v5, %v10558_v22 }
 0x22b   : > { %v5638_v16 = vrot.slane %v5637_v38, 2  ;;  %v5651_v31 = vmax.f32 %v5649_v57, %v5650_v12  ;;  %v3888_v17 = vmax.f32 %v3824_v0, 0.0  ;;  %v10903_v14 = vadd.f32 %v10680_v49, %v10560_v15 }
 0x22c   : > { %v5632_v30 = vmax.f32 %v5630_v58, %v5631_v21  ;;  %v5645_v62 = vrot.slane %v5644_v37, 2  ;;  %v3752_v60 = vmul.f32 %v10910_v48, %v8972_v53  ;;  %v3755_v22 = vmul.f32 %v10910_v48, %v8973_v35 }
 0x22d   : > { %v5639_v29 = vmax.f32 %v5637_v38, %v5638_v16  ;;  %v5652_v5 = vrot.slane %v5651_v31, 2  ;;  %v4224_v45 = vcombine.high %v3888_v17, %v3888_v17  ;;  %v4231_v47 = vrot.slane %v3888_v17, %v10607_v43 }
 0x22e   : > { %v5633_v15 = vrot.slane %v5632_v30, 1  ;;  %v5646_v49 = vmax.f32 %v5644_v37, %v5645_v62  ;;  %v3823_v55 = vadd.f32 %v10918_v4, %v3752_v60  ;;  %v10922_v18 = vadd.f32 %v10918_v4, %v3755_v22  ;;  %v10933_v22 = vpop.f32.mrb[27].mxu0 }
 0x22f   : > { %v5640_v50 = vrot.slane %v5639_v29, 1  ;;  %v5653_v51 = vmax.f32 %v5651_v31, %v5652_v5  ;;  %v4238_v11 = vrot.slane %v4224_v45, %v10607_v43  ;;  %v4239_v61 = vcombine.high %v4231_v47, %v4231_v47 }
 0x230   : > { %v5634_v44 = vmax.f32 %v5632_v30, %v5633_v15  ;;  %v5647_v40 = vrot.slane %v5646_v49, 1  ;;  %v5712_v2 = vsel %vm5347_vm5, %v4231_v47, -inf  ;;  %v3887_v8 = vmax.f32 %v3823_v55, 0.0 }
 0x231   : > { %v5641_v7 = vmax.f32 %v5639_v29, %v5640_v50  ;;  %v5654_v54 = vrot.slane %v5653_v51, 1  ;;  %v4240_v41 = vcombine.high %v4238_v11, %v4238_v11  ;;  %v5713_v13 = vrot.slane %v5712_v2, 4 }
 0x232   : > { %v5648_v58 = vmax.f32 %v5646_v49, %v5647_v40  ;;  %v5719_v33 = vsel %vm5347_vm5, %v4239_v61, -inf  ;;  %v5726_v57 = vsel %vm5347_vm5, %v4238_v11, -inf  ;;  %v4207_v38 = vcombine.high %v3887_v8, %v3887_v8 }
 0x233   : > { %v5655_v12 = vmax.f32 %v5653_v51, %v5654_v54  ;;  %v7438_v0 = vsel %vm7396_vm6, %v5641_v7, %v5634_v44  ;;  %v5714_v21 = vmax.f32 %v5712_v2, %v5713_v13  ;;  %v5720_v37 = vrot.slane %v5719_v33, 4 }
 0x234   : > { %v7439_v53 = vsel %vm7398_vm7, %v5648_v58, %v7438_v0  ;;  %v5727_v35 = vrot.slane %v5726_v57, 4  ;;  %v5733_v16 = vsel %vm5347_vm5, %v4240_v41, -inf  ;;  %v4214_v31 = vrot.slane %v3887_v8, %v10607_v43 }
 0x235   : > { %v7440_v17 = vsel %vm7400_vm8, %v5655_v12, %v7439_v53  ;;  %v5715_v30 = vrot.slane %v5714_v21, 2  ;;  %v5721_v62 = vmax.f32 %v5719_v33, %v5720_v37  ;;  %v5734_v60 = vrot.slane %v5733_v16, 4 }
 0x236   : > { %v7441_v29 = vsel %vm7402_vm9, %v10884_v26, %v7440_v17  ;;  %v5728_v5 = vmax.f32 %v5726_v57, %v5727_v35  ;;  %v4221_v45 = vrot.slane %v4207_v38, %v10607_v43  ;;  %v4222_v47 = vcombine.high %v4214_v31, %v4214_v31 }
 0x237   : > { %v7442_v15 = vsel %vm7404_vm10, %v10887_v56, %v7441_v29  ;;  %v5716_v49 = vmax.f32 %v5714_v21, %v5715_v30  ;;  %v5722_v55 = vrot.slane %v5721_v62, 2  ;;  %v5735_v50 = vmax.f32 %v5733_v16, %v5734_v60 }
 0x238   : > { %v7443_v51 = vsel %vm7406_vm11, %v10890_v42, %v7442_v15  ;;  %v5729_v11 = vrot.slane %v5728_v5, 2  ;;  %v4223_v61 = vcombine.high %v4221_v45, %v4221_v45  ;;  %v5684_v44 = vsel %vm5347_vm5, %v4214_v31, -inf }
 0x239   : > { %v7444_v26 = vsel %vm7408_vm12, %v10893_v36, %v7443_v51  ;;  %v5717_v40 = vrot.slane %v5716_v49, 1  ;;  %v5723_v2 = vmax.f32 %v5721_v62, %v5722_v55  ;;  %v5736_v8 = vrot.slane %v5735_v50, 2 }
 0x23a   : > { %7664 = vst [vmem:[%s10694_s10 + $0x28] sm:$0xff] %v7444_v26  ;;  %v5730_v7 = vmax.f32 %v5728_v5, %v5729_v11  ;;  %v5685_v54 = vrot.slane %v5684_v44, 4  ;;  %v5691_v56 = vsel %vm5347_vm5, %v4222_v47, -inf  ;;  %v5698_v41 = vsel %vm5347_vm5, %v4221_v45, -inf  ;;  %v10954_v5 = vpop.f32.mrb[28].mxu0 }
 0x23b   : > { %v10948_v13 = vmax.f32 %v5716_v49, %v5717_v40  ;;  %v5724_v42 = vrot.slane %v5723_v2, 1  ;;  %v5737_v58 = vmax.f32 %v5735_v50, %v5736_v8  ;;  %v5692_v33 = vrot.slane %v5691_v56, 4 }
 0x23c   : > { %v5731_v57 = vrot.slane %v5730_v7, 1  ;;  %v5686_v38 = vmax.f32 %v5684_v44, %v5685_v54  ;;  %v5699_v12 = vrot.slane %v5698_v41, 4  ;;  %v5705_v36 = vsel %vm5347_vm5, %v4223_v61, -inf }
 0x23d   : > { %v5725_v0 = vmax.f32 %v5723_v2, %v5724_v42  ;;  %v5738_v21 = vrot.slane %v5737_v58, 1  ;;  %v5693_v37 = vmax.f32 %v5691_v56, %v5692_v33  ;;  %v5706_v53 = vrot.slane %v5705_v36, 4 }
 0x23e   : > { %v5732_v35 = vmax.f32 %v5730_v7, %v5731_v57  ;;  %v5687_v16 = vrot.slane %v5686_v38, 2  ;;  %v5700_v31 = vmax.f32 %v5698_v41, %v5699_v12  ;;  %v3890_v17 = vmax.f32 %v10922_v18, 0.0 }
 0x23f   : > { %v5739_v30 = vmax.f32 %v5737_v58, %v5738_v21  ;;  %v5694_v62 = vrot.slane %v5693_v37, 2  ;;  %v5707_v60 = vmax.f32 %v5705_v36, %v5706_v53  ;;  %v3754_v29 = vmul.f32 %v10910_v48, %v10903_v14  ;;  %v10966_v36 = vpop.f32.mrb[29].mxu0 }
 0x240   : > { %v5688_v45 = vmax.f32 %v5686_v38, %v5687_v16  ;;  %v5701_v47 = vrot.slane %v5700_v31, 2  ;;  %v4258_v15 = vcombine.high %v3890_v17, %v3890_v17  ;;  %v4265_v49 = vrot.slane %v3890_v17, %v10607_v43 }
 0x241   : > { %v5695_v55 = vmax.f32 %v5693_v37, %v5694_v62  ;;  %v5708_v50 = vrot.slane %v5707_v60, 2  ;;  %v3825_v51 = vadd.f32 %v10918_v4, %v3754_v29  ;;  %v10960_v18 = vadd.f32 %v10689_v63, %v10562_v28 }
 0x242   : > { %v5689_v11 = vrot.slane %v5688_v45, 1  ;;  %v5702_v61 = vmax.f32 %v5700_v31, %v5701_v47  ;;  %v4272_v44 = vrot.slane %v4258_v15, %v10607_v43  ;;  %v4273_v14 = vcombine.high %v4265_v49, %v4265_v49 }
 0x243   : > { %v5696_v26 = vrot.slane %v5695_v55, 1  ;;  %v5709_v40 = vmax.f32 %v5707_v60, %v5708_v50  ;;  %v5768_v2 = vsel %vm5347_vm5, %v4265_v49, -inf  ;;  %v3889_v8 = vmax.f32 %v3825_v51, 0.0 }
 0x244   : > { %v5690_v7 = vmax.f32 %v5688_v45, %v5689_v11  ;;  %v5703_v54 = vrot.slane %v5702_v61, 1  ;;  %v4274_v56 = vcombine.high %v4272_v44, %v4272_v44  ;;  %v5769_v41 = vrot.slane %v5768_v2, 4 }
 0x245   : > { %v5697_v42 = vmax.f32 %v5695_v55, %v5696_v26  ;;  %v5710_v58 = vrot.slane %v5709_v40, 1  ;;  %v5775_v33 = vsel %vm5347_vm5, %v4273_v14, -inf  ;;  %v5782_v28 = vsel %vm5347_vm5, %v4272_v44, -inf }
 0x246   : > { %v5704_v63 = vmax.f32 %v5702_v61, %v5703_v54  ;;  %v5770_v57 = vmax.f32 %v5768_v2, %v5769_v41  ;;  %v5776_v38 = vrot.slane %v5775_v33, 4  ;;  %v5783_v12 = vrot.slane %v5782_v28, 4 }
 0x247   : > { %v5711_v21 = vmax.f32 %v5709_v40, %v5710_v58  ;;  %v7445_v37 = vsel %vm7396_vm6, %v5697_v42, %v5690_v7  ;;  %v5789_v53 = vsel %vm5347_vm5, %v4274_v56, -inf  ;;  %v4241_v16 = vcombine.high %v3889_v8, %v3889_v8 }
 0x248   : > { %v7446_v31 = vsel %vm7398_vm7, %v5704_v63, %v7445_v37  ;;  %v5771_v17 = vrot.slane %v5770_v57, 2  ;;  %v5777_v62 = vmax.f32 %v5775_v33, %v5776_v38  ;;  %v5784_v60 = vmax.f32 %v5782_v28, %v5783_v12 }
 0x249   : > { %v7447_v29 = vsel %vm7400_vm8, %v5711_v21, %v7446_v31  ;;  %v5790_v45 = vrot.slane %v5789_v53, 4  ;;  %v4248_v47 = vrot.slane %v3889_v8, %v10607_v43  ;;  %v4255_v15 = vrot.slane %v4241_v16, %v10607_v43 }
 0x24a   : > { %v7448_v49 = vsel %vm7402_vm9, %v10948_v13, %v7447_v29  ;;  %v5772_v55 = vmax.f32 %v5770_v57, %v5771_v17  ;;  %v5778_v50 = vrot.slane %v5777_v62, 2  ;;  %v5785_v51 = vrot.slane %v5784_v60, 2 }
 0x24b   : > { %v7449_v11 = vsel %vm7404_vm10, %v5725_v0, %v7448_v49  ;;  %v5791_v61 = vmax.f32 %v5789_v53, %v5790_v45  ;;  %v4256_v44 = vcombine.high %v4248_v47, %v4248_v47  ;;  %v4257_v14 = vcombine.high %v4255_v15, %v4255_v15 }
 0x24c   : > { %v7450_v26 = vsel %vm7406_vm11, %v5732_v35, %v7449_v11  ;;  %v5773_v40 = vrot.slane %v5772_v55, 1  ;;  %v5779_v2 = vmax.f32 %v5777_v62, %v5778_v50  ;;  %v5786_v7 = vmax.f32 %v5784_v60, %v5785_v51 }
 0x24d   : > { %v7451_v8 = vsel %vm7408_vm12, %v5739_v30, %v7450_v26  ;;  %v5792_v54 = vrot.slane %v5791_v61, 2  ;;  %v5740_v56 = vsel %vm5347_vm5, %v4248_v47, -inf  ;;  %v5747_v13 = vsel %vm5347_vm5, %v4256_v44, -inf }
 0x24e   : > { %7665 = vst [vmem:[%s10694_s10 + $0x30] sm:$0xff] %v7451_v8  ;;  %v10982_v41 = vmax.f32 %v5772_v55, %v5773_v40  ;;  %v5780_v42 = vrot.slane %v5779_v2, 1  ;;  %v5787_v0 = vrot.slane %v5786_v7, 1  ;;  %v5741_v58 = vrot.slane %v5740_v56, 4 }
 0x24f   : > { %v5793_v33 = vmax.f32 %v5791_v61, %v5792_v54  ;;  %v5748_v28 = vrot.slane %v5747_v13, 4  ;;  %v5754_v35 = vsel %vm5347_vm5, %v4255_v15, -inf  ;;  %v5761_v63 = vsel %vm5347_vm5, %v4257_v14, -inf }
 0x250   : > { %v10986_v57 = vmax.f32 %v5779_v2, %v5780_v42  ;;  %v10988_v30 = vmax.f32 %v5786_v7, %v5787_v0  ;;  %v5742_v38 = vmax.f32 %v5740_v56, %v5741_v58  ;;  %v5755_v12 = vrot.slane %v5754_v35, 4 }
 0x251   : > { %v5794_v21 = vrot.slane %v5793_v33, 1  ;;  %v5749_v37 = vmax.f32 %v5747_v13, %v5748_v28  ;;  %v5762_v53 = vrot.slane %v5761_v63, 4  ;;  %v3757_v16 = vmul.f32 %v10910_v48, %v10960_v18  ;;  %v10999_v18 = vpop.f32.mrb[30].mxu0 }
 0x252   : > { %v5743_v31 = vrot.slane %v5742_v38, 2  ;;  %v5756_v17 = vmax.f32 %v5754_v35, %v5755_v12  ;;  %v8976_v62 = vadd.f32 %v10697_v34, %v10564_v10  ;;  %v8977_v60 = vadd.f32 %v10716_v6, %v10566_v46 }
 0x253   : > { %v5795_v29 = vmax.f32 %v5793_v33, %v5794_v21  ;;  %v5750_v45 = vrot.slane %v5749_v37, 2  ;;  %v5763_v47 = vmax.f32 %v5761_v63, %v5762_v53  ;;  %v3828_v15 = vadd.f32 %v10918_v4, %v3757_v16 }
 0x254   : > { %v5744_v49 = vmax.f32 %v5742_v38, %v5743_v31  ;;  %v5757_v55 = vrot.slane %v5756_v17, 2  ;;  %v3756_v50 = vmul.f32 %v10910_v48, %v8976_v62  ;;  %v3759_v51 = vmul.f32 %v10910_v48, %v8977_v60 }
 0x255   : > { %v5751_v11 = vmax.f32 %v5749_v37, %v5750_v45  ;;  %v5764_v61 = vrot.slane %v5763_v47, 2  ;;  %v3892_v44 = vmax.f32 %v3828_v15, 0.0  ;;  %v11003_v10 = vadd.f32 %v10740_v27, %v10568_v39 }
 0x256   : > { %v5745_v46 = vrot.slane %v5744_v49, 1  ;;  %v5758_v34 = vmax.f32 %v5756_v17, %v5757_v55  ;;  %v3827_v6 = vadd.f32 %v10918_v4, %v3756_v50  ;;  %v3830_v14 = vadd.f32 %v10918_v4, %v3759_v51 }
 0x257   : > { %v5752_v26 = vrot.slane %v5751_v11, 1  ;;  %v5765_v40 = vmax.f32 %v5763_v47, %v5764_v61  ;;  %v4292_v2 = vcombine.high %v3892_v44, %v3892_v44  ;;  %v4299_v7 = vrot.slane %v3892_v44, %v10607_v43  ;;  %v11019_v47 = vpop.f32.mrb[31].mxu0 }
 0x258   : > { %v5746_v8 = vmax.f32 %v5744_v49, %v5745_v46  ;;  %v5759_v54 = vrot.slane %v5758_v34, 1  ;;  %v3891_v56 = vmax.f32 %v3827_v6, 0.0  ;;  %v11008_v13 = vmax.f32 %v3830_v14, 0.0 }
 0x259   : > { %v5753_v42 = vmax.f32 %v5751_v11, %v5752_v26  ;;  %v5766_v0 = vrot.slane %v5765_v40, 1  ;;  %v4306_v39 = vrot.slane %v4292_v2, %v10607_v43  ;;  %v4307_v27 = vcombine.high %v4299_v7, %v4299_v7 }
 0x25a   : > { %v5760_v58 = vmax.f32 %v5758_v34, %v5759_v54  ;;  %v5824_v33 = vsel %vm5347_vm5, %v4299_v7, -inf  ;;  %v4275_v28 = vcombine.high %v3891_v56, %v3891_v56  ;;  %v4282_v35 = vrot.slane %v3891_v56, %v10607_v43 }
 0x25b   : > { %v5767_v63 = vmax.f32 %v5765_v40, %v5766_v0  ;;  %v7452_v38 = vsel %vm7396_vm6, %v5753_v42, %v5746_v8  ;;  %v4308_v12 = vcombine.high %v4306_v39, %v4306_v39  ;;  %v5825_v21 = vrot.slane %v5824_v33, 4 }
 0x25c   : > { %v7453_v37 = vsel %vm7398_vm7, %v5760_v58, %v7452_v38  ;;  %v5831_v53 = vsel %vm5347_vm5, %v4307_v27, -inf  ;;  %v5838_v16 = vsel %vm5347_vm5, %v4306_v39, -inf  ;;  %v4289_v31 = vrot.slane %v4275_v28, %v10607_v43 }
 0x25d   : > { %v7454_v17 = vsel %vm7400_vm8, %v5767_v63, %v7453_v37  ;;  %v5826_v62 = vmax.f32 %v5824_v33, %v5825_v21  ;;  %v5832_v60 = vrot.slane %v5831_v53, 4  ;;  %v5839_v45 = vrot.slane %v5838_v16, 4 }
 0x25e   : > { %v7455_v15 = vsel %vm7402_vm9, %v10982_v41, %v7454_v17  ;;  %v5845_v49 = vsel %vm5347_vm5, %v4308_v12, -inf  ;;  %v4290_v55 = vcombine.high %v4282_v35, %v4282_v35  ;;  %v4291_v50 = vcombine.high %v4289_v31, %v4289_v31 }
 0x25f   : > { %v7456_v51 = vsel %vm7404_vm10, %v10986_v57, %v7455_v15  ;;  %v5827_v11 = vrot.slane %v5826_v62, 2  ;;  %v5833_v61 = vmax.f32 %v5831_v53, %v5832_v60  ;;  %v5840_v44 = vmax.f32 %v5838_v16, %v5839_v45 }
 0x260   : > { %v7457_v46 = vsel %vm7406_vm11, %v10988_v30, %v7456_v51  ;;  %v5846_v34 = vrot.slane %v5845_v49, 4  ;;  %v5796_v6 = vsel %vm5347_vm5, %v4282_v35, -inf  ;;  %v5803_v14 = vsel %vm5347_vm5, %v4290_v55, -inf  ;;  %v11038_v55 = vpop.f32.mrb[32].mxu0 }
 0x261   : > { %v7458_v41 = vsel %vm7408_vm12, %v5795_v29, %v7457_v46  ;;  %v5828_v26 = vmax.f32 %v5826_v62, %v5827_v11  ;;  %v5834_v40 = vrot.slane %v5833_v61, 2  ;;  %v5841_v2 = vrot.slane %v5840_v44, 2 }
 0x262   : > { %7666 = vst [vmem:[%s10694_s10 + $0x38] sm:$0xff] %v7458_v41  ;;  %v5847_v7 = vmax.f32 %v5845_v49, %v5846_v34  ;;  %v5797_v8 = vrot.slane %v5796_v6, 4  ;;  %v5804_v57 = vrot.slane %v5803_v14, 4  ;;  %v5810_v54 = vsel %vm5347_vm5, %v4289_v31, -inf  ;;  %v11036_v49 = vpop.f32.mrb[32].mxu1 }
 0x263   : > { %v5829_v56 = vrot.slane %v5828_v26, 1  ;;  %v5835_v42 = vmax.f32 %v5833_v61, %v5834_v40  ;;  %v5842_v0 = vmax.f32 %v5840_v44, %v5841_v2  ;;  %v5811_v30 = vrot.slane %v5810_v54, 4 }
 0x264   : > { %v5848_v39 = vrot.slane %v5847_v7, 2  ;;  %v5798_v27 = vmax.f32 %v5796_v6, %v5797_v8  ;;  %v5805_v58 = vmax.f32 %v5803_v14, %v5804_v57  ;;  %v5817_v33 = vsel %vm5347_vm5, %v4291_v50, -inf }
 0x265   : > { %v5830_v28 = vmax.f32 %v5828_v26, %v5829_v56  ;;  %v5836_v29 = vrot.slane %v5835_v42, 1  ;;  %v5843_v35 = vrot.slane %v5842_v0, 1  ;;  %v5812_v63 = vmax.f32 %v5810_v54, %v5811_v30 }
 0x266   : > { %v5849_v38 = vmax.f32 %v5847_v7, %v5848_v39  ;;  %v5799_v12 = vrot.slane %v5798_v27, 2  ;;  %v5806_v21 = vrot.slane %v5805_v58, 2  ;;  %v5818_v37 = vrot.slane %v5817_v33, 4 }
 0x267   : > { %v5837_v53 = vmax.f32 %v5835_v42, %v5836_v29  ;;  %v5844_v16 = vmax.f32 %v5842_v0, %v5843_v35  ;;  %v5813_v31 = vrot.slane %v5812_v63, 2  ;;  %v4326_v17 = vcombine.high %v11008_v13, %v11008_v13 }
 0x268   : > { %v5850_v62 = vrot.slane %v5849_v38, 1  ;;  %v5800_v60 = vmax.f32 %v5798_v27, %v5799_v12  ;;  %v5807_v45 = vmax.f32 %v5805_v58, %v5806_v21  ;;  %v5819_v15 = vmax.f32 %v5817_v33, %v5818_v37  ;;  %v11054_v21 = vpop.f32.mrb[33].mxu1  ;;  %v11056_v37 = vpop.f32.mrb[33].mxu0 }
 0x269   : > { %v5814_v50 = vmax.f32 %v5812_v63, %v5813_v31  ;;  %v4333_v51 = vrot.slane %v11008_v13, %v10607_v43  ;;  %v4340_v11 = vrot.slane %v4326_v17, %v10607_v43  ;;  %v3758_v61 = vmul.f32 %v10910_v48, %v11003_v10 }
 0x26a   : > { %v5851_v44 = vmax.f32 %v5849_v38, %v5850_v62  ;;  %v5801_v46 = vrot.slane %v5800_v60, 1  ;;  %v5808_v34 = vrot.slane %v5807_v45, 1  ;;  %v5820_v6 = vrot.slane %v5819_v15, 2 }
 0x26b   : > { %v5815_v14 = vrot.slane %v5814_v50, 1  ;;  %v4341_v41 = vcombine.high %v4333_v51, %v4333_v51  ;;  %v4342_v26 = vcombine.high %v4340_v11, %v4340_v11  ;;  %v5880_v40 = vsel %vm5347_vm5, %v4333_v51, -inf }
 0x26c   : > { %v5802_v2 = vmax.f32 %v5800_v60, %v5801_v46  ;;  %v5809_v7 = vmax.f32 %v5807_v45, %v5808_v34  ;;  %v5821_v8 = vmax.f32 %v5819_v15, %v5820_v6  ;;  %v5881_v57 = vrot.slane %v5880_v40, 4 }
 0x26d   : > { %v5816_v54 = vmax.f32 %v5814_v50, %v5815_v14  ;;  %v5887_v13 = vsel %vm5347_vm5, %v4341_v41, -inf  ;;  %v5894_v56 = vsel %vm5347_vm5, %v4340_v11, -inf  ;;  %v5901_v10 = vsel %vm5347_vm5, %v4342_v26, -inf }
 0x26e   : > { %v5822_v42 = vrot.slane %v5821_v8, 1  ;;  %v7459_v0 = vsel %vm7396_vm6, %v5809_v7, %v5802_v2  ;;  %v5882_v30 = vmax.f32 %v5880_v40, %v5881_v57  ;;  %v5888_v39 = vrot.slane %v5887_v13, 4 }
 0x26f   : > { %v7460_v27 = vsel %vm7398_vm7, %v5816_v54, %v7459_v0  ;;  %v5895_v58 = vrot.slane %v5894_v56, 4  ;;  %v5902_v33 = vrot.slane %v5901_v10, 4  ;;  %v3829_v29 = vadd.f32 %v10918_v4, %v3758_v61 }
 0x270   : > { %v5823_v35 = vmax.f32 %v5821_v8, %v5822_v42  ;;  %v5883_v63 = vrot.slane %v5882_v30, 2  ;;  %v5889_v38 = vmax.f32 %v5887_v13, %v5888_v39  ;;  %v8979_v12 = vadd.f32 %v10764_v32, %v10570_v19 }
 0x271   : > { %v5896_v31 = vmax.f32 %v5894_v56, %v5895_v58  ;;  %v5903_v17 = vmax.f32 %v5901_v10, %v5902_v33  ;;  %v3893_v62 = vmax.f32 %v3829_v29, 0.0  ;;  %v8980_v60 = vadd.f32 %v10780_v1, %v10572_v9 }
 0x272   : > { %v7461_v45 = vsel %vm7400_vm8, %v5823_v35, %v7460_v27  ;;  %v5884_v15 = vmax.f32 %v5882_v30, %v5883_v63  ;;  %v5890_v50 = vrot.slane %v5889_v38, 2  ;;  %v3761_v51 = vmul.f32 %v10910_v48, %v8979_v12  ;;  %v11085_v12 = vpop.f32.mrb[34].mxu1 }
 0x273   : > { %v7462_v11 = vsel %vm7402_vm9, %v5830_v28, %v7461_v45  ;;  %v5897_v19 = vrot.slane %v5896_v31, 2  ;;  %v5904_v32 = vrot.slane %v5903_v17, 2  ;;  %v4309_v61 = vcombine.high %v3893_v62, %v3893_v62 }
 0x274   : > { %v7463_v46 = vsel %vm7404_vm10, %v5837_v53, %v7462_v11  ;;  %v5885_v34 = vrot.slane %v5884_v15, 1  ;;  %v5891_v6 = vmax.f32 %v5889_v38, %v5890_v50  ;;  %v4316_v14 = vrot.slane %v3893_v62, %v10607_v43 }
 0x275   : > { %v7464_v9 = vsel %vm7406_vm11, %v5844_v16, %v7463_v46  ;;  %v5898_v1 = vmax.f32 %v5896_v31, %v5897_v19  ;;  %v5905_v41 = vmax.f32 %v5903_v17, %v5904_v32  ;;  %v4323_v26 = vrot.slane %v4309_v61, %v10607_v43  ;;  %v11087_v31 = vpop.f32.mrb[34].mxu0 }
 0x276   : > { %v7465_v40 = vsel %vm7408_vm12, %v5851_v44, %v7464_v9  ;;  %v11068_v2 = vmax.f32 %v5884_v15, %v5885_v34  ;;  %v5892_v28 = vrot.slane %v5891_v6, 1  ;;  %v4324_v7 = vcombine.high %v4316_v14, %v4316_v14 }
 0x277   : > { %7667 = vst [vmem:[%s10694_s10 + $0x40] sm:$0xff] %v7465_v40  ;;  %v5899_v8 = vrot.slane %v5898_v1, 1  ;;  %v5906_v57 = vrot.slane %v5905_v41, 1  ;;  %v4325_v53 = vcombine.high %v4323_v26, %v4323_v26  ;;  %v5852_v54 = vsel %vm5347_vm5, %v4316_v14, -inf }
 0x278   : > { %v11072_v13 = vmax.f32 %v5891_v6, %v5892_v28  ;;  %v5853_v56 = vrot.slane %v5852_v54, 4  ;;  %v5859_v16 = vsel %vm5347_vm5, %v4324_v7, -inf  ;;  %v5866_v10 = vsel %vm5347_vm5, %v4323_v26, -inf }
 0x279   : > { %v11076_v42 = vmax.f32 %v5898_v1, %v5899_v8  ;;  %v11078_v44 = vmax.f32 %v5905_v41, %v5906_v57  ;;  %v5860_v0 = vrot.slane %v5859_v16, 4  ;;  %v5867_v30 = vrot.slane %v5866_v10, 4 }
 0x27a   : > { %v5854_v39 = vmax.f32 %v5852_v54, %v5853_v56  ;;  %v5873_v27 = vsel %vm5347_vm5, %v4325_v53, -inf  ;;  %v3832_v58 = vadd.f32 %v10918_v4, %v3761_v51  ;;  %v3760_v33 = vmul.f32 %v10910_v48, %v8980_v60 }
 0x27b   : > { %v5861_v29 = vmax.f32 %v5859_v16, %v5860_v0  ;;  %v5868_v35 = vmax.f32 %v5866_v10, %v5867_v30  ;;  %v5874_v63 = vrot.slane %v5873_v27, 4  ;;  %v8981_v38 = vadd.f32 %v10809_v3, %v10574_v52 }
 0x27c   : > { %v5855_v17 = vrot.slane %v5854_v39, 2  ;;  %v3896_v62 = vmax.f32 %v3832_v58, 0.0  ;;  %v3831_v45 = vadd.f32 %v10918_v4, %v3760_v33  ;;  %v11092_v15 = vadd.f32 %v10819_v24, %v10576_v20  ;;  %v11106_v58 = vpop.f32.mrb[35].mxu0 }
 0x27d   : > { %v5862_v50 = vrot.slane %v5861_v29, 2  ;;  %v5869_v60 = vrot.slane %v5868_v35, 2  ;;  %v5875_v51 = vmax.f32 %v5873_v27, %v5874_v63  ;;  %v3763_v11 = vmul.f32 %v10910_v48, %v8981_v38  ;;  %v11104_v27 = vpop.f32.mrb[35].mxu1 }
 0x27e   : > { %v5856_v19 = vmax.f32 %v5854_v39, %v5855_v17  ;;  %v4360_v32 = vcombine.high %v3896_v62, %v3896_v62  ;;  %v4367_v52 = vrot.slane %v3896_v62, %v10607_v43  ;;  %v3895_v3 = vmax.f32 %v3831_v45, 0.0 }
 0x27f   : > { %v5863_v61 = vmax.f32 %v5861_v29, %v5862_v50  ;;  %v5870_v46 = vmax.f32 %v5868_v35, %v5869_v60  ;;  %v5876_v34 = vrot.slane %v5875_v51, 2  ;;  %v11097_v6 = vadd.f32 %v10918_v4, %v3763_v11 }
 0x280   : > { %v5857_v14 = vrot.slane %v5856_v19, 1  ;;  %v4374_v20 = vrot.slane %v4360_v32, %v10607_v43  ;;  %v4375_v24 = vcombine.high %v4367_v52, %v4367_v52  ;;  %v5936_v9 = vsel %vm5347_vm5, %v4367_v52, -inf }
 0x281   : > { %v5864_v1 = vrot.slane %v5863_v61, 1  ;;  %v5871_v41 = vrot.slane %v5870_v46, 1  ;;  %v5877_v26 = vmax.f32 %v5875_v51, %v5876_v34  ;;  %v5937_v40 = vrot.slane %v5936_v9, 4 }
 0x282   : > { %v5858_v28 = vmax.f32 %v5856_v19, %v5857_v14  ;;  %v4376_v7 = vcombine.high %v4374_v20, %v4374_v20  ;;  %v5943_v8 = vsel %vm5347_vm5, %v4375_v24, -inf  ;;  %v5950_v57 = vsel %vm5347_vm5, %v4374_v20, -inf }
 0x283   : > { %v5865_v53 = vmax.f32 %v5863_v61, %v5864_v1  ;;  %v5872_v54 = vmax.f32 %v5870_v46, %v5871_v41  ;;  %v5878_v56 = vrot.slane %v5877_v26, 1  ;;  %v5938_v16 = vmax.f32 %v5936_v9, %v5937_v40 }
 0x284   : > { %v5944_v10 = vrot.slane %v5943_v8, 4  ;;  %v5951_v0 = vrot.slane %v5950_v57, 4  ;;  %v5957_v30 = vsel %vm5347_vm5, %v4376_v7, -inf  ;;  %v4343_v39 = vcombine.high %v3895_v3, %v3895_v3 }
 0x285   : > { %v5879_v33 = vmax.f32 %v5877_v26, %v5878_v56  ;;  %v7466_v29 = vsel %vm7396_vm6, %v5865_v53, %v5858_v28  ;;  %v5939_v35 = vrot.slane %v5938_v16, 2  ;;  %v5958_v63 = vrot.slane %v5957_v30, 4 }
 0x286   : > { %v7467_v38 = vsel %vm7398_vm7, %v5872_v54, %v7466_v29  ;;  %v5945_v17 = vmax.f32 %v5943_v8, %v5944_v10  ;;  %v5952_v62 = vmax.f32 %v5950_v57, %v5951_v0  ;;  %v4350_v45 = vrot.slane %v3895_v3, %v10607_v43 }
 0x287   : > { %v7468_v50 = vsel %vm7400_vm8, %v5879_v33, %v7467_v38  ;;  %v5940_v60 = vmax.f32 %v5938_v16, %v5939_v35  ;;  %v5959_v51 = vmax.f32 %v5957_v30, %v5958_v63  ;;  %v4357_v11 = vrot.slane %v4343_v39, %v10607_v43 }
 0x288   : > { %v7469_v19 = vsel %vm7402_vm9, %v11068_v2, %v7468_v50  ;;  %v5946_v32 = vrot.slane %v5945_v17, 2  ;;  %v5953_v52 = vrot.slane %v5952_v62, 2  ;;  %v4358_v61 = vcombine.high %v4350_v45, %v4350_v45 }
 0x289   : > { %v7470_v46 = vsel %vm7404_vm10, %v11072_v13, %v7469_v19  ;;  %v5941_v34 = vrot.slane %v5940_v60, 1  ;;  %v5960_v14 = vrot.slane %v5959_v51, 2  ;;  %v4359_v20 = vcombine.high %v4357_v11, %v4357_v11 }
 0x28a   : > { %v7471_v3 = vsel %vm7406_vm11, %v11076_v42, %v7470_v46  ;;  %v5947_v24 = vmax.f32 %v5945_v17, %v5946_v32  ;;  %v5954_v9 = vmax.f32 %v5952_v62, %v5953_v52  ;;  %v5908_v1 = vsel %vm5347_vm5, %v4350_v45, -inf  ;;  %v11138_v17 = vpop.f32.mrb[36].mxu1  ;;  %v11140_v62 = vpop.f32.mrb[36].mxu0 }
 0x28b   : > { %v7472_v2 = vsel %vm7408_vm12, %v11078_v44, %v7471_v3  ;;  %v11122_v41 = vmax.f32 %v5940_v60, %v5941_v34  ;;  %v5961_v26 = vmax.f32 %v5959_v51, %v5960_v14  ;;  %v5909_v40 = vrot.slane %v5908_v1, 4 }
 0x28c   : > { %7668 = vst [vmem:[%s10694_s10 + $0x48] sm:$0xff] %v7472_v2  ;;  %v5948_v28 = vrot.slane %v5947_v24, 1  ;;  %v5955_v13 = vrot.slane %v5954_v9, 1  ;;  %v5915_v7 = vsel %vm5347_vm5, %v4358_v61, -inf  ;;  %v5922_v8 = vsel %vm5347_vm5, %v4357_v11, -inf }
 0x28d   : > { %v5962_v57 = vrot.slane %v5961_v26, 1  ;;  %v5910_v42 = vmax.f32 %v5908_v1, %v5909_v40  ;;  %v5916_v53 = vrot.slane %v5915_v7, 4  ;;  %v5923_v54 = vrot.slane %v5922_v8, 4 }
 0x28e   : > { %v11127_v56 = vmax.f32 %v5947_v24, %v5948_v28  ;;  %v11129_v16 = vmax.f32 %v5954_v9, %v5955_v13  ;;  %v5929_v44 = vsel %vm5347_vm5, %v4359_v20, -inf  ;;  %v3898_v10 = vmax.f32 %v11097_v6, 0.0  ;;  %v12189_v6 = vld [vmem:[#allocation2_spill] sm:$0xff] }
 0x28f   : > { %v11133_v0 = vmax.f32 %v5961_v26, %v5962_v57  ;;  %v5911_v30 = vrot.slane %v5910_v42, 2  ;;  %v5917_v39 = vmax.f32 %v5915_v7, %v5916_v53  ;;  %v5924_v33 = vmax.f32 %v5922_v8, %v5923_v54 }
 0x290   : > { %v5930_v29 = vrot.slane %v5929_v44, 4  ;;  %v4394_v35 = vcombine.high %v3898_v10, %v3898_v10  ;;  %v4401_v63 = vrot.slane %v3898_v10, %v10607_v43  ;;  %v3762_v38 = vmul.f32 %v10910_v48, %v11092_v15 }
 0x291   : > { %v5912_v45 = vmax.f32 %v5910_v42, %v5911_v30  ;;  %v5918_v50 = vrot.slane %v5917_v39, 2  ;;  %v5925_v60 = vrot.slane %v5924_v33, 2  ;;  %v8983_v51 = vadd.f32 %v10859_v25, %v12189_v6  ;;  %v11155_v6 = vpop.f32.mrb[37].mxu0 }
 0x292   : > { %v5931_v11 = vmax.f32 %v5929_v44, %v5930_v29  ;;  %v4408_v19 = vrot.slane %v4394_v35, %v10607_v43  ;;  %v4409_v32 = vcombine.high %v4401_v63, %v4401_v63  ;;  %v5992_v52 = vsel %vm5347_vm5, %v4401_v63, -inf }
 0x293   : > { %v5913_v61 = vrot.slane %v5912_v45, 1  ;;  %v5919_v46 = vmax.f32 %v5917_v39, %v5918_v50  ;;  %v5926_v34 = vmax.f32 %v5924_v33, %v5925_v60  ;;  %v5993_v15 = vrot.slane %v5992_v52, 4  ;;  %v11153_v60 = vpop.f32.mrb[37].mxu1 }
 0x294   : > { %v5932_v14 = vrot.slane %v5931_v11, 2  ;;  %v4410_v20 = vcombine.high %v4408_v19, %v4408_v19  ;;  %v5999_v3 = vsel %vm5347_vm5, %v4409_v32, -inf  ;;  %v6006_v24 = vsel %vm5347_vm5, %v4408_v19, -inf }
 0x295   : > { %v5914_v9 = vmax.f32 %v5912_v45, %v5913_v61  ;;  %v5920_v1 = vrot.slane %v5919_v46, 1  ;;  %v5927_v2 = vrot.slane %v5926_v34, 1  ;;  %v5994_v25 = vmax.f32 %v5992_v52, %v5993_v15 }
 0x296   : > { %v5933_v26 = vmax.f32 %v5931_v11, %v5932_v14  ;;  %v6000_v40 = vrot.slane %v5999_v3, 4  ;;  %v6007_v28 = vrot.slane %v6006_v24, 4  ;;  %v6013_v13 = vsel %vm5347_vm5, %v4410_v20, -inf }
 0x297   : > { %v5921_v7 = vmax.f32 %v5919_v46, %v5920_v1  ;;  %v5928_v8 = vmax.f32 %v5926_v34, %v5927_v2  ;;  %v5995_v57 = vrot.slane %v5994_v25, 2  ;;  %v6014_v42 = vrot.slane %v6013_v13, 4  ;;  %v12190_v34 = vld [vmem:[#allocation3_spill] sm:$0xff] }
 0x298   : > { %v5934_v53 = vrot.slane %v5933_v26, 1  ;;  %v6001_v54 = vmax.f32 %v5999_v3, %v6000_v40  ;;  %v6008_v44 = vmax.f32 %v6006_v24, %v6007_v28  ;;  %v3833_v10 = vadd.f32 %v10918_v4, %v3762_v38 }
 0x299   : > { %v7473_v30 = vsel %vm7396_vm6, %v5921_v7, %v5914_v9  ;;  %v5996_v39 = vmax.f32 %v5994_v25, %v5995_v57  ;;  %v6015_v33 = vmax.f32 %v6013_v13, %v6014_v42  ;;  %v3765_v29 = vmul.f32 %v10910_v48, %v8983_v51 }
 0x29a   : > { %v5935_v35 = vmax.f32 %v5933_v26, %v5934_v53  ;;  %v7474_v63 = vsel %vm7398_vm7, %v5928_v8, %v7473_v30  ;;  %v6002_v45 = vrot.slane %v6001_v54, 2  ;;  %v6009_v50 = vrot.slane %v6008_v44, 2 }
 0x29b   : > { %v5997_v11 = vrot.slane %v5996_v39, 1  ;;  %v6016_v19 = vrot.slane %v6015_v33, 2  ;;  %v3897_v32 = vmax.f32 %v3833_v10, 0.0  ;;  %v3836_v38 = vadd.f32 %v10918_v4, %v3765_v29 }
 0x29c   : > { %v7475_v52 = vsel %vm7400_vm8, %v5935_v35, %v7474_v63  ;;  %v6003_v61 = vmax.f32 %v6001_v54, %v6002_v45  ;;  %v6010_v46 = vmax.f32 %v6008_v44, %v6009_v50  ;;  %v8984_v51 = vadd.f32 %v10866_v23, %v12190_v34  ;;  %v11187_v45 = vpop.f32.mrb[38].mxu1  ;;  %v11189_v50 = vpop.f32.mrb[38].mxu0 }
 0x29d   : > { %v7476_v15 = vsel %vm7402_vm9, %v11122_v41, %v7475_v52  ;;  %v11163_v14 = vmax.f32 %v5996_v39, %v5997_v11  ;;  %v6017_v20 = vmax.f32 %v6015_v33, %v6016_v19  ;;  %v4377_v3 = vcombine.high %v3897_v32, %v3897_v32 }
 0x29e   : > { %v7477_v24 = vsel %vm7404_vm10, %v11127_v56, %v7476_v15  ;;  %v6004_v9 = vrot.slane %v6003_v61, 1  ;;  %v6011_v1 = vrot.slane %v6010_v46, 1  ;;  %v4384_v2 = vrot.slane %v3897_v32, %v10607_v43 }
 0x29f   : > { %v7478_v25 = vsel %vm7406_vm11, %v11129_v16, %v7477_v24  ;;  %v6018_v26 = vrot.slane %v6017_v20, 1  ;;  %v4391_v23 = vrot.slane %v4377_v3, %v10607_v43  ;;  %v3900_v40 = vmax.f32 %v3836_v38, 0.0 }
 0x2a0   : > { %v7479_v41 = vsel %vm7408_vm12, %v11133_v0, %v7478_v25  ;;  %v11173_v28 = vmax.f32 %v6003_v61, %v6004_v9  ;;  %v11175_v13 = vmax.f32 %v6010_v46, %v6011_v1  ;;  %v4392_v7 = vcombine.high %v4384_v2, %v4384_v2 }
 0x2a1   : > { %7669 = vst [vmem:[%s10694_s10 + $0x50] sm:$0xff] %v7479_v41  ;;  %v11178_v56 = vmax.f32 %v6017_v20, %v6018_v26  ;;  %v4393_v8 = vcombine.high %v4391_v23, %v4391_v23  ;;  %v5964_v57 = vsel %vm5347_vm5, %v4384_v2, -inf  ;;  %v5978_v16 = vsel %vm5347_vm5, %v4391_v23, -inf }
 0x2a2   : > { %v5965_v42 = vrot.slane %v5964_v57, 4  ;;  %v5971_v53 = vsel %vm5347_vm5, %v4392_v7, -inf  ;;  %v5979_v54 = vrot.slane %v5978_v16, 4  ;;  %v4428_v44 = vcombine.high %v3900_v40, %v3900_v40 }
 0x2a3   : > { %v5972_v10 = vrot.slane %v5971_v53, 4  ;;  %v5985_v0 = vsel %vm5347_vm5, %v4393_v8, -inf  ;;  %v4435_v30 = vrot.slane %v3900_v40, %v10607_v43  ;;  %v3764_v39 = vmul.f32 %v10910_v48, %v8984_v51 }
 0x2a4   : > { %v5966_v33 = vmax.f32 %v5964_v57, %v5965_v42  ;;  %v5980_v29 = vmax.f32 %v5978_v16, %v5979_v54  ;;  %v5986_v35 = vrot.slane %v5985_v0, 4  ;;  %v4442_v63 = vrot.slane %v4428_v44, %v10607_v43 }
 0x2a5   : > { %v5973_v11 = vmax.f32 %v5971_v53, %v5972_v10  ;;  %v4443_v19 = vcombine.high %v4435_v30, %v4435_v30  ;;  %v6048_v32 = vsel %vm5347_vm5, %v4435_v30, -inf  ;;  %v3835_v38 = vadd.f32 %v10918_v4, %v3764_v39 }
 0x2a6   : > { %v5967_v52 = vrot.slane %v5966_v33, 2  ;;  %v5981_v61 = vrot.slane %v5980_v29, 2  ;;  %v5987_v46 = vmax.f32 %v5985_v0, %v5986_v35  ;;  %v4444_v34 = vcombine.high %v4442_v63, %v4442_v63  ;;  %v11198_v35 = vpop.f32.mrb[39].mxu0 }
 0x2a7   : > { %v5974_v48 = vrot.slane %v5973_v11, 2  ;;  %v6049_v51 = vrot.slane %v6048_v32, 4  ;;  %v6055_v15 = vsel %vm5347_vm5, %v4443_v19, -inf  ;;  %v6062_v20 = vsel %vm5347_vm5, %v4442_v63, -inf }
 0x2a8   : > { %v5968_v3 = vmax.f32 %v5966_v33, %v5967_v52  ;;  %v5982_v24 = vmax.f32 %v5980_v29, %v5981_v61  ;;  %v5988_v9 = vrot.slane %v5987_v46, 2  ;;  %v6056_v1 = vrot.slane %v6055_v15, 4  ;;  %v11196_v29 = vpop.f32.mrb[39].mxu1 }
 0x2a9   : > { %v5975_v2 = vmax.f32 %v5973_v11, %v5974_v48  ;;  %v6050_v25 = vmax.f32 %v6048_v32, %v6049_v51  ;;  %v6063_v26 = vrot.slane %v6062_v20, 4  ;;  %v6069_v23 = vsel %vm5347_vm5, %v4444_v34, -inf  ;;  %v12191_v32 = vld [vmem:[#allocation4_spill] sm:$0xff] }
 0x2aa   : > { %v5969_v4 = vrot.slane %v5968_v3, 1  ;;  %v5983_v40 = vrot.slane %v5982_v24, 1  ;;  %v5989_v41 = vmax.f32 %v5987_v46, %v5988_v9  ;;  %v6057_v7 = vmax.f32 %v6055_v15, %v6056_v1 }
 0x2ab   : > { %v5976_v8 = vrot.slane %v5975_v2, 1  ;;  %v6051_v57 = vrot.slane %v6050_v25, 2  ;;  %v6064_v16 = vmax.f32 %v6062_v20, %v6063_v26  ;;  %v6070_v42 = vrot.slane %v6069_v23, 4 }
 0x2ac   : > { %v5970_v53 = vmax.f32 %v5968_v3, %v5969_v4  ;;  %v5984_v54 = vmax.f32 %v5982_v24, %v5983_v40  ;;  %v5990_v44 = vrot.slane %v5989_v41, 1  ;;  %v6058_v10 = vrot.slane %v6057_v7, 2 }
 0x2ad   : > { %v5977_v0 = vmax.f32 %v5975_v2, %v5976_v8  ;;  %v6052_v30 = vmax.f32 %v6050_v25, %v6051_v57  ;;  %v6065_v39 = vrot.slane %v6064_v16, 2  ;;  %v6071_v33 = vmax.f32 %v6069_v23, %v6070_v42 }
 0x2ae   : > { %v5991_v63 = vmax.f32 %v5989_v41, %v5990_v44  ;;  %v6059_v11 = vmax.f32 %v6057_v7, %v6058_v10  ;;  %v3899_v19 = vmax.f32 %v3835_v38, 0.0  ;;  %v8985_v52 = vadd.f32 %v10905_v59, %v12191_v32 }
 0x2af   : > { %v7480_v61 = vsel %vm7396_vm6, %v5977_v0, %v5970_v53  ;;  %v6053_v46 = vrot.slane %v6052_v30, 1  ;;  %v6066_v34 = vmax.f32 %v6064_v16, %v6065_v39  ;;  %v6072_v48 = vrot.slane %v6071_v33, 2 }
 0x2b0   : > { %v7481_v51 = vsel %vm7398_vm7, %v5984_v54, %v7480_v61  ;;  %v6060_v15 = vrot.slane %v6059_v11, 1  ;;  %v4411_v20 = vcombine.high %v3899_v19, %v3899_v19  ;;  %v4418_v3 = vrot.slane %v3899_v19, %v10607_v43  ;;  %v11241_v61 = vld [vmem:[%s12120_s4] ss:$0 sm:$0xff] }
 0x2b1   : > { %v7482_v24 = vsel %vm7400_vm8, %v5991_v63, %v7481_v51  ;;  %v11206_v9 = vmax.f32 %v6052_v30, %v6053_v46  ;;  %v6067_v1 = vrot.slane %v6066_v34, 1  ;;  %v6073_v38 = vmax.f32 %v6071_v33, %v6072_v48  ;;  %v12193_v63 = vld [vmem:[#allocation6_spill] sm:$0xff]  ;;  %v11246_v48 = vpop.f32.mrb[40].mxu1  ;;  %v11248_v51 = vpop.f32.mrb[40].mxu0 }
 0x2b2   : > { %v7483_v59 = vsel %vm7402_vm9, %v11163_v14, %v7482_v24  ;;  %v11210_v2 = vmax.f32 %v6059_v11, %v6060_v15  ;;  %v4425_v25 = vrot.slane %v4411_v20, %v10607_v43  ;;  %v4426_v26 = vcombine.high %v4418_v3, %v4418_v3 }
 0x2b3   : > { %v7484_v23 = vsel %vm7404_vm10, %v11173_v28, %v7483_v59  ;;  %v11215_v4 = vmax.f32 %v6066_v34, %v6067_v1  ;;  %v6074_v40 = vrot.slane %v6073_v38, 1  ;;  %v6020_v41 = vsel %vm5347_vm5, %v4418_v3, -inf  ;;  %v12194_v34 = vld [vmem:[#allocation7_spill] sm:$0xff] }
 0x2b4   : > { %v7485_v7 = vsel %vm7406_vm11, %v11175_v13, %v7484_v23  ;;  %v4427_v8 = vcombine.high %v4425_v25, %v4425_v25  ;;  %v6021_v57 = vrot.slane %v6020_v41, 4  ;;  %v6027_v14 = vsel %vm5347_vm5, %v4426_v26, -inf  ;;  %v11231_v13 = vld [vmem:[%s12119_s3] ss:$0 sm:$0xff] }
 0x2b5   : > { %v7486_v16 = vsel %vm7408_vm12, %v11178_v56, %v7485_v7  ;;  %v11223_v42 = vmax.f32 %v6073_v38, %v6074_v40  ;;  %v6028_v53 = vrot.slane %v6027_v14, 4  ;;  %v6034_v28 = vsel %vm5347_vm5, %v4425_v25, -inf  ;;  %v12192_v56 = vld [vmem:[#allocation5_spill] sm:$0xff] }
 0x2b6   : > { %7670 = vst [vmem:[%s10694_s10 + $0x58] sm:$0xff] %v7486_v16  ;;  %v6022_v54 = vmax.f32 %v6020_v41, %v6021_v57  ;;  %v6035_v44 = vrot.slane %v6034_v28, 4  ;;  %v6041_v10 = vsel %vm5347_vm5, %v4427_v8, -inf  ;;  %v3767_v0 = vmul.f32 %v11231_v13, %v8985_v52 }
 0x2b7   : > { %v6029_v30 = vmax.f32 %v6027_v14, %v6028_v53  ;;  %v6042_v39 = vrot.slane %v6041_v10, 4  ;;  %v8986_v33 = vadd.f32 %v10933_v22, %v12192_v56  ;;  %v8987_v11 = vadd.f32 %v10954_v5, %v12193_v63 }
 0x2b8   : > { %v6023_v19 = vrot.slane %v6022_v54, 2  ;;  %v6036_v32 = vmax.f32 %v6034_v28, %v6035_v44  ;;  %v3838_v46 = vadd.f32 %v11241_v61, %v3767_v0  ;;  %v8988_v52 = vadd.f32 %v10966_v36, %v12194_v34 }
 0x2b9   : > { %v6030_v22 = vrot.slane %v6029_v30, 2  ;;  %v6043_v15 = vmax.f32 %v6041_v10, %v6042_v39  ;;  %v3766_v5 = vmul.f32 %v11231_v13, %v8986_v33  ;;  %v3769_v20 = vmul.f32 %v11231_v13, %v8987_v11 }
 0x2ba   : > { %v6024_v3 = vmax.f32 %v6022_v54, %v6023_v19  ;;  %v6037_v24 = vrot.slane %v6036_v32, 2  ;;  %v3902_v1 = vmax.f32 %v3838_v46, 0.0  ;;  %v11253_v38 = vmul.f32 %v11231_v13, %v8988_v52 }
 0x2bb   : > { %v6031_v59 = vmax.f32 %v6029_v30, %v6030_v22  ;;  %v6044_v25 = vrot.slane %v6043_v15, 2  ;;  %v3837_v36 = vadd.f32 %v11241_v61, %v3766_v5  ;;  %v3840_v26 = vadd.f32 %v11241_v61, %v3769_v20 }
 0x2bc   : > { %v6025_v23 = vrot.slane %v6024_v3, 1  ;;  %v6038_v40 = vmax.f32 %v6036_v32, %v6037_v24  ;;  %v4462_v41 = vcombine.high %v3902_v1, %v3902_v1  ;;  %v4469_v7 = vrot.slane %v3902_v1, %v10607_v43 }
 0x2bd   : > { %v6032_v8 = vrot.slane %v6031_v59, 1  ;;  %v6045_v57 = vmax.f32 %v6043_v15, %v6044_v25  ;;  %v3901_v14 = vmax.f32 %v3837_v36, 0.0  ;;  %v11258_v16 = vmax.f32 %v3840_v26, 0.0 }
 0x2be   : > { %v6026_v53 = vmax.f32 %v6024_v3, %v6025_v23  ;;  %v6039_v28 = vrot.slane %v6038_v40, 1  ;;  %v4476_v54 = vrot.slane %v4462_v41, %v10607_v43  ;;  %v4477_v44 = vcombine.high %v4469_v7, %v4469_v7  ;;  %v11272_v23 = vpop.f32.mrb[41].mxu1 }
 0x2bf   : > { %v6033_v10 = vmax.f32 %v6031_v59, %v6032_v8  ;;  %v6046_v0 = vrot.slane %v6045_v57, 1  ;;  %v6104_v30 = vsel %vm5347_vm5, %v4469_v7, -inf  ;;  %v4445_v39 = vcombine.high %v3901_v14, %v3901_v14 }
 0x2c0   : > { %v6040_v56 = vmax.f32 %v6038_v40, %v6039_v28  ;;  %v4478_v33 = vcombine.high %v4476_v54, %v4476_v54  ;;  %v6105_v63 = vrot.slane %v6104_v30, 4  ;;  %v6111_v11 = vsel %vm5347_vm5, %v4477_v44, -inf  ;;  %v11274_v40 = vpop.f32.mrb[41].mxu0 }
 0x2c1   : > { %v6047_v19 = vmax.f32 %v6045_v57, %v6046_v0  ;;  %v7487_v32 = vsel %vm7396_vm6, %v6033_v10, %v6026_v53  ;;  %v6112_v46 = vrot.slane %v6111_v11, 4  ;;  %v6118_v34 = vsel %vm5347_vm5, %v4476_v54, -inf }
 0x2c2   : > { %v7488_v52 = vsel %vm7398_vm7, %v6040_v56, %v7487_v32  ;;  %v6106_v22 = vmax.f32 %v6104_v30, %v6105_v63  ;;  %v6119_v15 = vrot.slane %v6118_v34, 4  ;;  %v6125_v5 = vsel %vm5347_vm5, %v4478_v33, -inf }
 0x2c3   : > { %v7489_v20 = vsel %vm7400_vm8, %v6047_v19, %v7488_v52  ;;  %v6113_v3 = vmax.f32 %v6111_v11, %v6112_v46  ;;  %v6126_v24 = vrot.slane %v6125_v5, 4  ;;  %v4452_v1 = vrot.slane %v3901_v14, %v10607_v43 }
 0x2c4   : > { %v7490_v59 = vsel %vm7402_vm9, %v11206_v9, %v7489_v20  ;;  %v6107_v25 = vrot.slane %v6106_v22, 2  ;;  %v6120_v36 = vmax.f32 %v6118_v34, %v6119_v15  ;;  %v4459_v26 = vrot.slane %v4445_v39, %v10607_v43 }
 0x2c5   : > { %v7491_v41 = vsel %vm7404_vm10, %v11210_v2, %v7490_v59  ;;  %v6114_v7 = vrot.slane %v6113_v3, 2  ;;  %v6127_v8 = vmax.f32 %v6125_v5, %v6126_v24  ;;  %v4460_v57 = vcombine.high %v4452_v1, %v4452_v1  ;;  %v11295_v59 = vpop.f32.mrb[42].mxu0 }
 0x2c6   : > { %v7492_v14 = vsel %vm7406_vm11, %v11215_v4, %v7491_v41  ;;  %v6108_v53 = vmax.f32 %v6106_v22, %v6107_v25  ;;  %v6121_v9 = vrot.slane %v6120_v36, 2  ;;  %v4461_v28 = vcombine.high %v4459_v26, %v4459_v26 }
 0x2c7   : > { %v7493_v54 = vsel %vm7408_vm12, %v11223_v42, %v7492_v14  ;;  %v6115_v44 = vmax.f32 %v6113_v3, %v6114_v7  ;;  %v6128_v10 = vrot.slane %v6127_v8, 2  ;;  %v6076_v0 = vsel %vm5347_vm5, %v4452_v1, -inf  ;;  %v11293_v1 = vpop.f32.mrb[42].mxu1 }
 0x2c8   : > { %7671 = vst [vmem:[%s10694_s10 + $0x60] sm:$0xff] %v7493_v54  ;;  %v6109_v30 = vrot.slane %v6108_v53, 1  ;;  %v6122_v39 = vmax.f32 %v6120_v36, %v6121_v9  ;;  %v6077_v2 = vrot.slane %v6076_v0, 4  ;;  %v6083_v56 = vsel %vm5347_vm5, %v4460_v57, -inf }
 0x2c9   : > { %v6116_v33 = vrot.slane %v6115_v44, 1  ;;  %v6129_v63 = vmax.f32 %v6127_v8, %v6128_v10  ;;  %v6084_v11 = vrot.slane %v6083_v56, 4  ;;  %v6090_v4 = vsel %vm5347_vm5, %v4459_v26, -inf }
 0x2ca   : > { %v11286_v19 = vmax.f32 %v6108_v53, %v6109_v30  ;;  %v6123_v32 = vrot.slane %v6122_v39, 1  ;;  %v6078_v46 = vmax.f32 %v6076_v0, %v6077_v2  ;;  %v6091_v42 = vrot.slane %v6090_v4, 4 }
 0x2cb   : > { %v11288_v34 = vmax.f32 %v6115_v44, %v6116_v33  ;;  %v6130_v52 = vrot.slane %v6129_v63, 1  ;;  %v6085_v22 = vmax.f32 %v6083_v56, %v6084_v11  ;;  %v6097_v15 = vsel %vm5347_vm5, %v4461_v28, -inf }
 0x2cc   : > { %v11291_v5 = vmax.f32 %v6122_v39, %v6123_v32  ;;  %v6079_v20 = vrot.slane %v6078_v46, 2  ;;  %v6092_v3 = vmax.f32 %v6090_v4, %v6091_v42  ;;  %v6098_v24 = vrot.slane %v6097_v15, 4 }
 0x2cd   : > { %v11297_v25 = vmax.f32 %v6129_v63, %v6130_v52  ;;  %v6086_v36 = vrot.slane %v6085_v22, 2  ;;  %v4496_v26 = vcombine.high %v11258_v16, %v11258_v16  ;;  %v4503_v41 = vrot.slane %v11258_v16, %v10607_v43 }
 0x2ce   : > { %v6080_v7 = vmax.f32 %v6078_v46, %v6079_v20  ;;  %v6093_v8 = vrot.slane %v6092_v3, 2  ;;  %v6099_v57 = vmax.f32 %v6097_v15, %v6098_v24  ;;  %v3839_v14 = vadd.f32 %v11241_v61, %v11253_v38 }
 0x2cf   : > { %v6087_v53 = vmax.f32 %v6085_v22, %v6086_v36  ;;  %v4510_v9 = vrot.slane %v4496_v26, %v10607_v43  ;;  %v4511_v28 = vcombine.high %v4503_v41, %v4503_v41  ;;  %v6160_v54 = vsel %vm5347_vm5, %v4503_v41, -inf  ;;  %v11311_v41 = vpop.f32.mrb[43].mxu1 }
 0x2d0   : > { %v6081_v44 = vrot.slane %v6080_v7, 1  ;;  %v6094_v10 = vmax.f32 %v6092_v3, %v6093_v8  ;;  %v6100_v0 = vrot.slane %v6099_v57, 2  ;;  %v6161_v30 = vrot.slane %v6160_v54, 4 }
 0x2d1   : > { %v6088_v39 = vrot.slane %v6087_v53, 1  ;;  %v4512_v2 = vcombine.high %v4510_v9, %v4510_v9  ;;  %v6167_v16 = vsel %vm5347_vm5, %v4511_v28, -inf  ;;  %v6174_v56 = vsel %vm5347_vm5, %v4510_v9, -inf }
 0x2d2   : > { %v6082_v33 = vmax.f32 %v6080_v7, %v6081_v44  ;;  %v6095_v63 = vrot.slane %v6094_v10, 1  ;;  %v6101_v11 = vmax.f32 %v6099_v57, %v6100_v0  ;;  %v6162_v38 = vmax.f32 %v6160_v54, %v6161_v30  ;;  %v11313_v7 = vpop.f32.mrb[43].mxu0 }
 0x2d3   : > { %v6089_v4 = vmax.f32 %v6087_v53, %v6088_v39  ;;  %v6168_v32 = vrot.slane %v6167_v16, 4  ;;  %v6175_v46 = vrot.slane %v6174_v56, 4  ;;  %v6181_v42 = vsel %vm5347_vm5, %v4512_v2, -inf  ;;  %v12195_v2 = vld [vmem:[#allocation8_spill] sm:$0xff] }
 0x2d4   : > { %v6096_v52 = vmax.f32 %v6094_v10, %v6095_v63  ;;  %v6102_v22 = vrot.slane %v6101_v11, 1  ;;  %v6163_v15 = vrot.slane %v6162_v38, 2  ;;  %v6182_v20 = vrot.slane %v6181_v42, 4 }
 0x2d5   : > { %v7494_v3 = vsel %vm7396_vm6, %v6089_v4, %v6082_v33  ;;  %v6169_v24 = vmax.f32 %v6167_v16, %v6168_v32  ;;  %v6176_v36 = vmax.f32 %v6174_v56, %v6175_v46  ;;  %v3903_v26 = vmax.f32 %v3839_v14, 0.0 }
 0x2d6   : > { %v6103_v8 = vmax.f32 %v6101_v11, %v6102_v22  ;;  %v7495_v57 = vsel %vm7398_vm7, %v6096_v52, %v7494_v3  ;;  %v6164_v53 = vmax.f32 %v6162_v38, %v6163_v15  ;;  %v6183_v9 = vmax.f32 %v6181_v42, %v6182_v20 }
 0x2d7   : > { %v6170_v28 = vrot.slane %v6169_v24, 2  ;;  %v6177_v54 = vrot.slane %v6176_v36, 2  ;;  %v4479_v44 = vcombine.high %v3903_v26, %v3903_v26  ;;  %v4486_v10 = vrot.slane %v3903_v26, %v10607_v43 }
 0x2d8   : > { %v7496_v0 = vsel %vm7400_vm8, %v6103_v8, %v7495_v57  ;;  %v6165_v30 = vrot.slane %v6164_v53, 1  ;;  %v6184_v39 = vrot.slane %v6183_v9, 2  ;;  %v8989_v14 = vadd.f32 %v10999_v18, %v12195_v2 }
 0x2d9   : > { %v7497_v16 = vsel %vm7402_vm9, %v11286_v19, %v7496_v0  ;;  %v6171_v56 = vmax.f32 %v6169_v24, %v6170_v28  ;;  %v6178_v33 = vmax.f32 %v6176_v36, %v6177_v54  ;;  %v4493_v63 = vrot.slane %v4479_v44, %v10607_v43  ;;  %v12196_v44 = vld [vmem:[#allocation9_spill] sm:$0xff] }
 0x2da   : > { %v7498_v11 = vsel %vm7404_vm10, %v11288_v34, %v7497_v16  ;;  %v11325_v38 = vmax.f32 %v6164_v53, %v6165_v30  ;;  %v6185_v4 = vmax.f32 %v6183_v9, %v6184_v39  ;;  %v4494_v32 = vcombine.high %v4486_v10, %v4486_v10 }
 0x2db   : > { %v7499_v46 = vsel %vm7406_vm11, %v11291_v5, %v7498_v11  ;;  %v6172_v42 = vrot.slane %v6171_v56, 1  ;;  %v6179_v18 = vrot.slane %v6178_v33, 1  ;;  %v4495_v52 = vcombine.high %v4493_v63, %v4493_v63 }
 0x2dc   : > { %v7500_v19 = vsel %vm7408_vm12, %v11297_v25, %v7499_v46  ;;  %v6186_v22 = vrot.slane %v6185_v4, 1  ;;  %v6132_v15 = vsel %vm5347_vm5, %v4486_v10, -inf  ;;  %v6139_v20 = vsel %vm5347_vm5, %v4494_v32, -inf }
 0x2dd   : > { %7672 = vst [vmem:[%s10694_s10 + $0x68] sm:$0xff] %v7500_v19  ;;  %v11334_v34 = vmax.f32 %v6171_v56, %v6172_v42  ;;  %v11336_v3 = vmax.f32 %v6178_v33, %v6179_v18  ;;  %v6133_v24 = vrot.slane %v6132_v15, 4  ;;  %v6140_v36 = vrot.slane %v6139_v20, 4 }
 0x2de   : > { %v11338_v26 = vmax.f32 %v6185_v4, %v6186_v22  ;;  %v6146_v5 = vsel %vm5347_vm5, %v4493_v63, -inf  ;;  %v6153_v8 = vsel %vm5347_vm5, %v4495_v52, -inf  ;;  %v3771_v25 = vmul.f32 %v11231_v13, %v8989_v14  ;;  %v11355_v4 = vpop.f32.mrb[44].mxu1 }
 0x2df   : > { %v6134_v57 = vmax.f32 %v6132_v15, %v6133_v24  ;;  %v6141_v53 = vmax.f32 %v6139_v20, %v6140_v36  ;;  %v6147_v9 = vrot.slane %v6146_v5, 4  ;;  %v6154_v28 = vrot.slane %v6153_v8, 4 }
 0x2e0   : > { %v3842_v54 = vadd.f32 %v11241_v61, %v3771_v25  ;;  %v8990_v10 = vadd.f32 %v11019_v47, %v12196_v44  ;;  %v8991_v0 = vadd.f32 %v11038_v55, %v11036_v49  ;;  %v8992_v30 = vadd.f32 %v11056_v37, %v11054_v21  ;;  %v11357_v47 = vpop.f32.mrb[44].mxu0 }
 0x2e1   : > { %v6135_v39 = vrot.slane %v6134_v57, 2  ;;  %v6142_v2 = vrot.slane %v6141_v53, 2  ;;  %v6148_v16 = vmax.f32 %v6146_v5, %v6147_v9  ;;  %v6155_v56 = vmax.f32 %v6153_v8, %v6154_v28 }
 0x2e2   : > { %v3906_v14 = vmax.f32 %v3842_v54, 0.0  ;;  %v3770_v33 = vmul.f32 %v11231_v13, %v8990_v10  ;;  %v3773_v63 = vmul.f32 %v11231_v13, %v8991_v0  ;;  %v11353_v11 = vmul.f32 %v11231_v13, %v8992_v30 }
 0x2e3   : > { %v6136_v49 = vmax.f32 %v6134_v57, %v6135_v39  ;;  %v6143_v55 = vmax.f32 %v6141_v53, %v6142_v2  ;;  %v6149_v32 = vrot.slane %v6148_v16, 2  ;;  %v6156_v21 = vrot.slane %v6155_v56, 2 }
 0x2e4   : > { %v4530_v37 = vcombine.high %v3906_v14, %v3906_v14  ;;  %v4537_v46 = vrot.slane %v3906_v14, %v10607_v43  ;;  %v3841_v42 = vadd.f32 %v11241_v61, %v3770_v33  ;;  %v11362_v18 = vadd.f32 %v11241_v61, %v3773_v63  ;;  %v11370_v33 = vpop.f32.mrb[45].mxu1  ;;  %v11372_v63 = vpop.f32.mrb[45].mxu0 }
 0x2e5   : > { %v6137_v52 = vrot.slane %v6136_v49, 1  ;;  %v6144_v19 = vrot.slane %v6143_v55, 1  ;;  %v6150_v22 = vmax.f32 %v6148_v16, %v6149_v32  ;;  %v6157_v15 = vmax.f32 %v6155_v56, %v6156_v21 }
 0x2e6   : > { %v4544_v20 = vrot.slane %v4530_v37, %v10607_v43  ;;  %v4545_v24 = vcombine.high %v4537_v46, %v4537_v46  ;;  %v6216_v36 = vsel %vm5347_vm5, %v4537_v46, -inf  ;;  %v3905_v5 = vmax.f32 %v3841_v42, 0.0 }
 0x2e7   : > { %v6138_v8 = vmax.f32 %v6136_v49, %v6137_v52  ;;  %v6145_v25 = vmax.f32 %v6143_v55, %v6144_v19  ;;  %v6151_v57 = vrot.slane %v6150_v22, 1  ;;  %v6158_v53 = vrot.slane %v6157_v15, 1 }
 0x2e8   : > { %v4546_v9 = vcombine.high %v4544_v20, %v4544_v20  ;;  %v6217_v28 = vrot.slane %v6216_v36, 4  ;;  %v6223_v54 = vsel %vm5347_vm5, %v4545_v24, -inf  ;;  %v6230_v44 = vsel %vm5347_vm5, %v4544_v20, -inf }
 0x2e9   : > { %v6152_v10 = vmax.f32 %v6150_v22, %v6151_v57  ;;  %v6159_v0 = vmax.f32 %v6157_v15, %v6158_v53  ;;  %v7501_v30 = vsel %vm7396_vm6, %v6145_v25, %v6138_v8  ;;  %v6224_v39 = vrot.slane %v6223_v54, 4 }
 0x2ea   : > { %v6218_v2 = vmax.f32 %v6216_v36, %v6217_v28  ;;  %v6231_v16 = vrot.slane %v6230_v44, 4  ;;  %v6237_v56 = vsel %vm5347_vm5, %v4546_v9, -inf  ;;  %v4513_v14 = vcombine.high %v3905_v5, %v3905_v5 }
 0x2eb   : > { %v7502_v49 = vsel %vm7398_vm7, %v6152_v10, %v7501_v30  ;;  %v6225_v55 = vmax.f32 %v6223_v54, %v6224_v39  ;;  %v6238_v32 = vrot.slane %v6237_v56, 4  ;;  %v4520_v21 = vrot.slane %v3905_v5, %v10607_v43 }
 0x2ec   : > { %v7503_v37 = vsel %vm7400_vm8, %v6159_v0, %v7502_v49  ;;  %v6219_v46 = vrot.slane %v6218_v2, 2  ;;  %v6232_v42 = vmax.f32 %v6230_v44, %v6231_v16  ;;  %v4527_v52 = vrot.slane %v4513_v14, %v10607_v43 }
 0x2ed   : > { %v7504_v19 = vsel %vm7402_vm9, %v11325_v38, %v7503_v37  ;;  %v6226_v22 = vrot.slane %v6225_v55, 2  ;;  %v6239_v15 = vmax.f32 %v6237_v56, %v6238_v32  ;;  %v4528_v20 = vcombine.high %v4520_v21, %v4520_v21 }
 0x2ee   : > { %v7505_v24 = vsel %vm7404_vm10, %v11334_v34, %v7504_v19  ;;  %v6220_v36 = vmax.f32 %v6218_v2, %v6219_v46  ;;  %v6233_v8 = vrot.slane %v6232_v42, 2  ;;  %v4529_v25 = vcombine.high %v4527_v52, %v4527_v52 }
 0x2ef   : > { %v7506_v5 = vsel %vm7406_vm11, %v11336_v3, %v7505_v24  ;;  %v6227_v57 = vmax.f32 %v6225_v55, %v6226_v22  ;;  %v6240_v53 = vrot.slane %v6239_v15, 2  ;;  %v6188_v9 = vsel %vm5347_vm5, %v4520_v21, -inf }
 0x2f0   : > { %v7507_v38 = vsel %vm7408_vm12, %v11338_v26, %v7506_v5  ;;  %v6221_v28 = vrot.slane %v6220_v36, 1  ;;  %v6234_v54 = vmax.f32 %v6232_v42, %v6233_v8  ;;  %v6189_v44 = vrot.slane %v6188_v9, 4  ;;  %v11406_v8 = vpop.f32.mrb[46].mxu0 }
 0x2f1   : > { %7673 = vst [vmem:[%s10694_s10 + $0x70] sm:$0xff] %v7507_v38  ;;  %v6228_v10 = vrot.slane %v6227_v57, 1  ;;  %v6241_v0 = vmax.f32 %v6239_v15, %v6240_v53  ;;  %v6195_v34 = vsel %vm5347_vm5, %v4528_v20, -inf  ;;  %v6202_v30 = vsel %vm5347_vm5, %v4527_v52, -inf }
 0x2f2   : > { %v11390_v39 = vmax.f32 %v6220_v36, %v6221_v28  ;;  %v6235_v3 = vrot.slane %v6234_v54, 1  ;;  %v6190_v2 = vmax.f32 %v6188_v9, %v6189_v44  ;;  %v6196_v16 = vrot.slane %v6195_v34, 4  ;;  %v11404_v36 = vpop.f32.mrb[46].mxu1 }
 0x2f3   : > { %v11392_v56 = vmax.f32 %v6227_v57, %v6228_v10  ;;  %v6242_v14 = vrot.slane %v6241_v0, 1  ;;  %v6203_v49 = vrot.slane %v6202_v30, 4  ;;  %v6209_v26 = vsel %vm5347_vm5, %v4529_v25, -inf }
 0x2f4   : > { %v11395_v55 = vmax.f32 %v6234_v54, %v6235_v3  ;;  %v6191_v32 = vrot.slane %v6190_v2, 2  ;;  %v6197_v21 = vmax.f32 %v6195_v34, %v6196_v16  ;;  %v6210_v37 = vrot.slane %v6209_v26, 4 }
 0x2f5   : > { %v11397_v46 = vmax.f32 %v6241_v0, %v6242_v14  ;;  %v6204_v42 = vmax.f32 %v6202_v30, %v6203_v49  ;;  %v3908_v52 = vmax.f32 %v11362_v18, 0.0  ;;  %v3843_v19 = vadd.f32 %v11241_v61, %v11353_v11 }
 0x2f6   : > { %v6192_v22 = vmax.f32 %v6190_v2, %v6191_v32  ;;  %v6198_v15 = vrot.slane %v6197_v21, 2  ;;  %v6211_v20 = vmax.f32 %v6209_v26, %v6210_v37  ;;  %v8993_v24 = vadd.f32 %v11087_v31, %v11085_v12  ;;  %v11418_v37 = vpop.f32.mrb[47].mxu0 }
 0x2f7   : > { %v6205_v25 = vrot.slane %v6204_v42, 2  ;;  %v4564_v5 = vcombine.high %v3908_v52, %v3908_v52  ;;  %v4571_v57 = vrot.slane %v3908_v52, %v10607_v43  ;;  %v3907_v53 = vmax.f32 %v3843_v19, 0.0 }
 0x2f8   : > { %v6193_v9 = vrot.slane %v6192_v22, 1  ;;  %v6199_v18 = vmax.f32 %v6197_v21, %v6198_v15  ;;  %v6212_v38 = vrot.slane %v6211_v20, 2  ;;  %v11410_v11 = vmul.f32 %v11231_v13, %v8993_v24  ;;  %v11416_v21 = vpop.f32.mrb[47].mxu1 }
 0x2f9   : > { %v6206_v28 = vmax.f32 %v6204_v42, %v6205_v25  ;;  %v4578_v54 = vrot.slane %v4564_v5, %v10607_v43  ;;  %v4579_v44 = vcombine.high %v4571_v57, %v4571_v57  ;;  %v6272_v12 = vsel %vm5347_vm5, %v4571_v57, -inf }
 0x2fa   : > { %v6194_v31 = vmax.f32 %v6192_v22, %v6193_v9  ;;  %v6200_v10 = vrot.slane %v6199_v18, 1  ;;  %v6213_v0 = vmax.f32 %v6211_v20, %v6212_v38  ;;  %v6273_v34 = vrot.slane %v6272_v12, 4 }
 0x2fb   : > { %v6207_v30 = vrot.slane %v6206_v28, 1  ;;  %v4580_v3 = vcombine.high %v4578_v54, %v4578_v54  ;;  %v6279_v2 = vsel %vm5347_vm5, %v4579_v44, -inf  ;;  %v6286_v16 = vsel %vm5347_vm5, %v4578_v54, -inf }
 0x2fc   : > { %v6201_v14 = vmax.f32 %v6199_v18, %v6200_v10  ;;  %v6214_v49 = vrot.slane %v6213_v0, 1  ;;  %v6274_v26 = vmax.f32 %v6272_v12, %v6273_v34  ;;  %v6280_v32 = vrot.slane %v6279_v2, 4 }
 0x2fd   : > { %v6208_v42 = vmax.f32 %v6206_v28, %v6207_v30  ;;  %v6287_v52 = vrot.slane %v6286_v16, 4  ;;  %v6293_v19 = vsel %vm5347_vm5, %v4580_v3, -inf  ;;  %v4547_v22 = vcombine.high %v3907_v53, %v3907_v53 }
 0x2fe   : > { %v6215_v15 = vmax.f32 %v6213_v0, %v6214_v49  ;;  %v7508_v20 = vsel %vm7396_vm6, %v6201_v14, %v6194_v31  ;;  %v6275_v24 = vrot.slane %v6274_v26, 2  ;;  %v6281_v25 = vmax.f32 %v6279_v2, %v6280_v32 }
 0x2ff   : > { %v7509_v5 = vsel %vm7398_vm7, %v6208_v42, %v7508_v20  ;;  %v6288_v57 = vmax.f32 %v6286_v16, %v6287_v52  ;;  %v6294_v9 = vrot.slane %v6293_v19, 4  ;;  %v4554_v18 = vrot.slane %v3907_v53, %v10607_v43 }
 0x300   : > { %v7510_v38 = vsel %vm7400_vm8, %v6215_v15, %v7509_v5  ;;  %v6276_v54 = vmax.f32 %v6274_v26, %v6275_v24  ;;  %v6282_v44 = vrot.slane %v6281_v25, 2  ;;  %v4561_v28 = vrot.slane %v4547_v22, %v10607_v43 }
 0x301   : > { %v7511_v12 = vsel %vm7402_vm9, %v11390_v39, %v7510_v38  ;;  %v6289_v10 = vrot.slane %v6288_v57, 2  ;;  %v6295_v31 = vmax.f32 %v6293_v19, %v6294_v9  ;;  %v4562_v0 = vcombine.high %v4554_v18, %v4554_v18 }
 0x302   : > { %v7512_v34 = vsel %vm7404_vm10, %v11392_v56, %v7511_v12  ;;  %v6277_v30 = vrot.slane %v6276_v54, 1  ;;  %v6283_v3 = vmax.f32 %v6281_v25, %v6282_v44  ;;  %v4563_v2 = vcombine.high %v4561_v28, %v4561_v28 }
 0x303   : > { %v7513_v53 = vsel %vm7406_vm11, %v11395_v55, %v7512_v34  ;;  %v6290_v16 = vmax.f32 %v6288_v57, %v6289_v10  ;;  %v6296_v14 = vrot.slane %v6295_v31, 2  ;;  %v6244_v49 = vsel %vm5347_vm5, %v4554_v18, -inf }
 0x304   : > { %v7514_v39 = vsel %vm7408_vm12, %v11397_v46, %v7513_v53  ;;  %v11435_v26 = vmax.f32 %v6276_v54, %v6277_v30  ;;  %v6284_v32 = vrot.slane %v6283_v3, 1  ;;  %v6245_v42 = vrot.slane %v6244_v49, 4 }
 0x305   : > { %7674 = vst [vmem:[%s10694_s10 + $0x78] sm:$0xff] %v7514_v39  ;;  %v6291_v52 = vrot.slane %v6290_v16, 1  ;;  %v6297_v56 = vmax.f32 %v6295_v31, %v6296_v14  ;;  %v6251_v19 = vsel %vm5347_vm5, %v4562_v0, -inf  ;;  %v6258_v22 = vsel %vm5347_vm5, %v4561_v28, -inf }
 0x306   : > { %v11440_v15 = vmax.f32 %v6283_v3, %v6284_v32  ;;  %v6246_v55 = vmax.f32 %v6244_v49, %v6245_v42  ;;  %v6252_v20 = vrot.slane %v6251_v19, 4  ;;  %v6259_v24 = vrot.slane %v6258_v22, 4 }
 0x307   : > { %v11442_v25 = vmax.f32 %v6290_v16, %v6291_v52  ;;  %v6298_v5 = vrot.slane %v6297_v56, 1  ;;  %v6265_v46 = vsel %vm5347_vm5, %v4563_v2, -inf  ;;  %v3846_v57 = vadd.f32 %v11241_v61, %v11410_v11 }
 0x308   : > { %v6247_v9 = vrot.slane %v6246_v55, 2  ;;  %v6253_v18 = vmax.f32 %v6251_v19, %v6252_v20  ;;  %v6260_v38 = vmax.f32 %v6258_v22, %v6259_v24  ;;  %v6266_v54 = vrot.slane %v6265_v46, 4 }
 0x309   : > { %v11447_v44 = vmax.f32 %v6297_v56, %v6298_v5  ;;  %v3910_v28 = vmax.f32 %v3846_v57, 0.0  ;;  %v8994_v12 = vadd.f32 %v11106_v58, %v11104_v27  ;;  %v8995_v10 = vadd.f32 %v11140_v62, %v11138_v17  ;;  %v11458_v27 = vpop.f32.mrb[48].mxu1  ;;  %v11460_v58 = vpop.f32.mrb[48].mxu0 }
 0x30a   : > { %v6248_v31 = vmax.f32 %v6246_v55, %v6247_v9  ;;  %v6254_v0 = vrot.slane %v6253_v18, 2  ;;  %v6261_v34 = vrot.slane %v6260_v38, 2  ;;  %v6267_v30 = vmax.f32 %v6265_v46, %v6266_v54  ;;  %v11467_v46 = vpop.f32.mrb[49].mxu1  ;;  %v11469_v57 = vpop.f32.mrb[49].mxu0 }
 0x30b   : > { %v4598_v3 = vcombine.high %v3910_v28, %v3910_v28  ;;  %v4605_v11 = vrot.slane %v3910_v28, %v10607_v43  ;;  %v3774_v2 = vmul.f32 %v11231_v13, %v8994_v12  ;;  %v11456_v53 = vmul.f32 %v11231_v13, %v8995_v10 }
 0x30c   : > { %v6249_v16 = vrot.slane %v6248_v31, 1  ;;  %v6255_v14 = vmax.f32 %v6253_v18, %v6254_v0  ;;  %v6262_v49 = vmax.f32 %v6260_v38, %v6261_v34  ;;  %v6268_v39 = vrot.slane %v6267_v30, 2 }
 0x30d   : > { %v4612_v17 = vrot.slane %v4598_v3, %v10607_v43  ;;  %v4613_v62 = vcombine.high %v4605_v11, %v4605_v11  ;;  %v6328_v32 = vsel %vm5347_vm5, %v4605_v11, -inf  ;;  %v3845_v42 = vadd.f32 %v11241_v61, %v3774_v2 }
 0x30e   : > { %v6250_v52 = vmax.f32 %v6248_v31, %v6249_v16  ;;  %v6256_v56 = vrot.slane %v6255_v14, 1  ;;  %v6263_v19 = vrot.slane %v6262_v49, 1  ;;  %v6269_v22 = vmax.f32 %v6267_v30, %v6268_v39 }
 0x30f   : > { %v4614_v55 = vcombine.high %v4612_v17, %v4612_v17  ;;  %v6329_v20 = vrot.slane %v6328_v32, 4  ;;  %v6335_v24 = vsel %vm5347_vm5, %v4613_v62, -inf  ;;  %v6342_v5 = vsel %vm5347_vm5, %v4612_v17, -inf }
 0x310   : > { %v6257_v9 = vmax.f32 %v6255_v14, %v6256_v56  ;;  %v6264_v18 = vmax.f32 %v6262_v49, %v6263_v19  ;;  %v6270_v38 = vrot.slane %v6269_v22, 1  ;;  %v6336_v54 = vrot.slane %v6335_v24, 4 }
 0x311   : > { %v6330_v28 = vmax.f32 %v6328_v32, %v6329_v20  ;;  %v6343_v12 = vrot.slane %v6342_v5, 4  ;;  %v6349_v10 = vsel %vm5347_vm5, %v4614_v55, -inf  ;;  %v3909_v31 = vmax.f32 %v3845_v42, 0.0 }
 0x312   : > { %v6271_v0 = vmax.f32 %v6269_v22, %v6270_v38  ;;  %v7515_v34 = vsel %vm7396_vm6, %v6257_v9, %v6250_v52  ;;  %v6337_v30 = vmax.f32 %v6335_v24, %v6336_v54  ;;  %v6350_v3 = vrot.slane %v6349_v10, 4 }
 0x313   : > { %v7516_v11 = vsel %vm7398_vm7, %v6264_v18, %v7515_v34  ;;  %v6331_v2 = vrot.slane %v6330_v28, 2  ;;  %v6344_v16 = vmax.f32 %v6342_v5, %v6343_v12  ;;  %v4581_v39 = vcombine.high %v3909_v31, %v3909_v31 }
 0x314   : > { %v7517_v14 = vsel %vm7400_vm8, %v6271_v0, %v7516_v11  ;;  %v6338_v49 = vrot.slane %v6337_v30, 2  ;;  %v6351_v17 = vmax.f32 %v6349_v10, %v6350_v3  ;;  %v4588_v62 = vrot.slane %v3909_v31, %v10607_v43 }
 0x315   : > { %v7518_v32 = vsel %vm7402_vm9, %v11435_v26, %v7517_v14  ;;  %v6332_v42 = vmax.f32 %v6330_v28, %v6331_v2  ;;  %v6345_v56 = vrot.slane %v6344_v16, 2  ;;  %v4595_v52 = vrot.slane %v4581_v39, %v10607_v43 }
 0x316   : > { %v7519_v19 = vsel %vm7404_vm10, %v11440_v15, %v7518_v32  ;;  %v6339_v22 = vmax.f32 %v6337_v30, %v6338_v49  ;;  %v6352_v55 = vrot.slane %v6351_v17, 2  ;;  %v4596_v20 = vcombine.high %v4588_v62, %v4588_v62 }
 0x317   : > { %v7520_v24 = vsel %vm7406_vm11, %v11442_v25, %v7519_v19  ;;  %v6333_v5 = vrot.slane %v6332_v42, 1  ;;  %v6346_v9 = vmax.f32 %v6344_v16, %v6345_v56  ;;  %v4597_v18 = vcombine.high %v4595_v52, %v4595_v52 }
 0x318   : > { %v7521_v26 = vsel %vm7408_vm12, %v11447_v44, %v7520_v24  ;;  %v6340_v38 = vrot.slane %v6339_v22, 1  ;;  %v6353_v54 = vmax.f32 %v6351_v17, %v6352_v55  ;;  %v6300_v28 = vsel %vm5347_vm5, %v4588_v62, -inf  ;;  %v11508_v55 = vpop.f32.mrb[50].mxu1 }
 0x319   : > { %7675 = vst [vmem:[%s10694_s10 + $0x80] sm:$0xff] %v7521_v26  ;;  %v11487_v12 = vmax.f32 %v6332_v42, %v6333_v5  ;;  %v6347_v15 = vrot.slane %v6346_v9, 1  ;;  %v6301_v10 = vrot.slane %v6300_v28, 4  ;;  %v6307_v31 = vsel %vm5347_vm5, %v4596_v20, -inf  ;;  %v11510_v20 = vpop.f32.mrb[50].mxu0 }
 0x31a   : > { %v11490_v0 = vmax.f32 %v6339_v22, %v6340_v38  ;;  %v6354_v25 = vrot.slane %v6353_v54, 1  ;;  %v6308_v34 = vrot.slane %v6307_v31, 4  ;;  %v6314_v30 = vsel %vm5347_vm5, %v4595_v52, -inf }
 0x31b   : > { %v11493_v3 = vmax.f32 %v6346_v9, %v6347_v15  ;;  %v6302_v44 = vmax.f32 %v6300_v28, %v6301_v10  ;;  %v6315_v11 = vrot.slane %v6314_v30, 4  ;;  %v6321_v2 = vsel %vm5347_vm5, %v4597_v18, -inf }
 0x31c   : > { %v11496_v16 = vmax.f32 %v6353_v54, %v6354_v25  ;;  %v6309_v39 = vmax.f32 %v6307_v31, %v6308_v34  ;;  %v6322_v14 = vrot.slane %v6321_v2, 4  ;;  %v3848_v49 = vadd.f32 %v11241_v61, %v11456_v53 }
 0x31d   : > { %v6303_v17 = vrot.slane %v6302_v44, 2  ;;  %v6316_v62 = vmax.f32 %v6314_v30, %v6315_v11  ;;  %v8996_v32 = vadd.f32 %v11155_v6, %v11153_v60  ;;  %v8997_v42 = vadd.f32 %v11189_v50, %v11187_v45 }
 0x31e   : > { %v6310_v56 = vrot.slane %v6309_v39, 2  ;;  %v6323_v52 = vmax.f32 %v6321_v2, %v6322_v14  ;;  %v3912_v19 = vmax.f32 %v3848_v49, 0.0  ;;  %v11506_v22 = vadd.f32 %v11198_v35, %v11196_v29 }
 0x31f   : > { %v6304_v53 = vmax.f32 %v6302_v44, %v6303_v17  ;;  %v6317_v24 = vrot.slane %v6316_v62, 2  ;;  %v3776_v5 = vmul.f32 %v11231_v13, %v8996_v32  ;;  %v3779_v60 = vmul.f32 %v11231_v13, %v8997_v42 }
 0x320   : > { %v6311_v6 = vmax.f32 %v6309_v39, %v6310_v56  ;;  %v6324_v9 = vrot.slane %v6323_v52, 2  ;;  %v4632_v45 = vcombine.high %v3912_v19, %v3912_v19  ;;  %v4639_v50 = vrot.slane %v3912_v19, %v10607_v43 }
 0x321   : > { %v6305_v18 = vrot.slane %v6304_v53, 1  ;;  %v6318_v26 = vmax.f32 %v6316_v62, %v6317_v24  ;;  %v3847_v29 = vadd.f32 %v11241_v61, %v3776_v5  ;;  %v11517_v35 = vadd.f32 %v11241_v61, %v3779_v60 }
 0x322   : > { %v6312_v38 = vrot.slane %v6311_v6, 1  ;;  %v6325_v54 = vmax.f32 %v6323_v52, %v6324_v9  ;;  %v4646_v28 = vrot.slane %v4632_v45, %v10607_v43  ;;  %v4647_v15 = vcombine.high %v4639_v50, %v4639_v50  ;;  %v11530_v9 = vpop.f32.mrb[51].mxu0 }
 0x323   : > { %v6306_v10 = vmax.f32 %v6304_v53, %v6305_v18  ;;  %v6319_v31 = vrot.slane %v6318_v26, 1  ;;  %v6384_v13 = vsel %vm5347_vm5, %v4639_v50, -inf  ;;  %v3911_v25 = vmax.f32 %v3847_v29, 0.0 }
 0x324   : > { %v6313_v34 = vmax.f32 %v6311_v6, %v6312_v38  ;;  %v6326_v30 = vrot.slane %v6325_v54, 1  ;;  %v4648_v44 = vcombine.high %v4646_v28, %v4646_v28  ;;  %v6385_v11 = vrot.slane %v6384_v13, 4  ;;  %v11528_v6 = vpop.f32.mrb[51].mxu1 }
 0x325   : > { %v6320_v2 = vmax.f32 %v6318_v26, %v6319_v31  ;;  %v6391_v39 = vsel %vm5347_vm5, %v4647_v15, -inf  ;;  %v6398_v61 = vsel %vm5347_vm5, %v4646_v28, -inf  ;;  %v4615_v14 = vcombine.high %v3911_v25, %v3911_v25 }
 0x326   : > { %v6327_v49 = vmax.f32 %v6325_v54, %v6326_v30  ;;  %v7522_v17 = vsel %vm7396_vm6, %v6313_v34, %v6306_v10  ;;  %v6386_v62 = vmax.f32 %v6384_v13, %v6385_v11  ;;  %v6392_v32 = vrot.slane %v6391_v39, 4 }
 0x327   : > { %v7523_v42 = vsel %vm7398_vm7, %v6320_v2, %v7522_v17  ;;  %v6399_v56 = vrot.slane %v6398_v61, 4  ;;  %v6405_v52 = vsel %vm5347_vm5, %v4648_v44, -inf  ;;  %v4622_v19 = vrot.slane %v3911_v25, %v10607_v43 }
 0x328   : > { %v7524_v53 = vsel %vm7400_vm8, %v6327_v49, %v7523_v42  ;;  %v6387_v24 = vrot.slane %v6386_v62, 2  ;;  %v6393_v5 = vmax.f32 %v6391_v39, %v6392_v32  ;;  %v6406_v60 = vrot.slane %v6405_v52, 4 }
 0x329   : > { %v7525_v45 = vsel %vm7402_vm9, %v11487_v12, %v7524_v53  ;;  %v6400_v50 = vmax.f32 %v6398_v61, %v6399_v56  ;;  %v4629_v18 = vrot.slane %v4615_v14, %v10607_v43  ;;  %v4630_v26 = vcombine.high %v4622_v19, %v4622_v19 }
 0x32a   : > { %v7526_v29 = vsel %vm7404_vm10, %v11490_v0, %v7525_v45  ;;  %v6388_v38 = vmax.f32 %v6386_v62, %v6387_v24  ;;  %v6394_v54 = vrot.slane %v6393_v5, 2  ;;  %v6407_v28 = vmax.f32 %v6405_v52, %v6406_v60 }
 0x32b   : > { %v7527_v15 = vsel %vm7406_vm11, %v11493_v3, %v7526_v29  ;;  %v6401_v10 = vrot.slane %v6400_v50, 2  ;;  %v4631_v31 = vcombine.high %v4629_v18, %v4629_v18  ;;  %v6356_v13 = vsel %vm5347_vm5, %v4622_v19, -inf  ;;  %v11562_v29 = vpop.f32.mrb[52].mxu1 }
 0x32c   : > { %v7528_v12 = vsel %vm7408_vm12, %v11496_v16, %v7527_v15  ;;  %v6389_v25 = vrot.slane %v6388_v38, 1  ;;  %v6395_v34 = vmax.f32 %v6393_v5, %v6394_v54  ;;  %v6408_v30 = vrot.slane %v6407_v28, 2 }
 0x32d   : > { %7676 = vst [vmem:[%s10694_s10 + $0x88] sm:$0xff] %v7528_v12  ;;  %v6402_v44 = vmax.f32 %v6400_v50, %v6401_v10  ;;  %v6357_v11 = vrot.slane %v6356_v13, 4  ;;  %v6363_v0 = vsel %vm5347_vm5, %v4630_v26, -inf  ;;  %v6370_v2 = vsel %vm5347_vm5, %v4629_v18, -inf  ;;  %v11558_v18 = vld [vmem:[%s12119_s3] ss:$0 sm:$0xff] }
 0x32e   : > { %v11545_v39 = vmax.f32 %v6388_v38, %v6389_v25  ;;  %v6396_v3 = vrot.slane %v6395_v34, 1  ;;  %v6409_v61 = vmax.f32 %v6407_v28, %v6408_v30  ;;  %v6364_v14 = vrot.slane %v6363_v0, 4  ;;  %v11564_v38 = vpop.f32.mrb[52].mxu0 }
 0x32f   : > { %v6403_v49 = vrot.slane %v6402_v44, 1  ;;  %v6358_v17 = vmax.f32 %v6356_v13, %v6357_v11  ;;  %v6371_v62 = vrot.slane %v6370_v2, 4  ;;  %v6377_v16 = vsel %vm5347_vm5, %v4631_v31, -inf  ;;  %v11570_v13 = vld [vmem:[%s12120_s4] ss:$0 sm:$0xff] }
 0x330   : > { %v11548_v32 = vmax.f32 %v6395_v34, %v6396_v3  ;;  %v6410_v42 = vrot.slane %v6409_v61, 1  ;;  %v6365_v56 = vmax.f32 %v6363_v0, %v6364_v14  ;;  %v6378_v52 = vrot.slane %v6377_v16, 4 }
 0x331   : > { %v11550_v19 = vmax.f32 %v6402_v44, %v6403_v49  ;;  %v6359_v53 = vrot.slane %v6358_v17, 2  ;;  %v6372_v24 = vmax.f32 %v6370_v2, %v6371_v62  ;;  %v3914_v5 = vmax.f32 %v11517_v35, 0.0 }
 0x332   : > { %v11553_v60 = vmax.f32 %v6409_v61, %v6410_v42  ;;  %v6366_v45 = vrot.slane %v6365_v56, 2  ;;  %v6379_v50 = vmax.f32 %v6377_v16, %v6378_v52  ;;  %v3778_v26 = vmul.f32 %v11558_v18, %v11506_v22 }
 0x333   : > { %v6360_v54 = vmax.f32 %v6358_v17, %v6359_v53  ;;  %v6373_v28 = vrot.slane %v6372_v24, 2  ;;  %v4666_v15 = vcombine.high %v3914_v5, %v3914_v5  ;;  %v4673_v35 = vrot.slane %v3914_v5, %v10607_v43  ;;  %v11583_v5 = vpop.f32.mrb[53].mxu0 }
 0x334   : > { %v6367_v10 = vmax.f32 %v6365_v56, %v6366_v45  ;;  %v6380_v31 = vrot.slane %v6379_v50, 2  ;;  %v3849_v12 = vadd.f32 %v11570_v13, %v3778_v26  ;;  %v11575_v22 = vadd.f32 %v11248_v51, %v11246_v48 }
 0x335   : > { %v6361_v25 = vrot.slane %v6360_v54, 1  ;;  %v6374_v34 = vmax.f32 %v6372_v24, %v6373_v28  ;;  %v4680_v30 = vrot.slane %v4666_v15, %v10607_v43  ;;  %v4681_v44 = vcombine.high %v4673_v35, %v4673_v35  ;;  %v11581_v24 = vpop.f32.mrb[53].mxu1 }
 0x336   : > { %v6368_v11 = vrot.slane %v6367_v10, 1  ;;  %v6381_v0 = vmax.f32 %v6379_v50, %v6380_v31  ;;  %v6440_v2 = vsel %vm5347_vm5, %v4673_v35, -inf  ;;  %v3913_v3 = vmax.f32 %v3849_v12, 0.0 }
 0x337   : > { %v6362_v61 = vmax.f32 %v6360_v54, %v6361_v25  ;;  %v6375_v14 = vrot.slane %v6374_v34, 1  ;;  %v4682_v49 = vcombine.high %v4680_v30, %v4680_v30  ;;  %v6441_v17 = vrot.slane %v6440_v2, 4 }
 0x338   : > { %v6369_v62 = vmax.f32 %v6367_v10, %v6368_v11  ;;  %v6382_v16 = vrot.slane %v6381_v0, 1  ;;  %v6447_v42 = vsel %vm5347_vm5, %v4681_v44, -inf  ;;  %v6454_v48 = vsel %vm5347_vm5, %v4680_v30, -inf }
 0x339   : > { %v6376_v51 = vmax.f32 %v6374_v34, %v6375_v14  ;;  %v6442_v56 = vmax.f32 %v6440_v2, %v6441_v17  ;;  %v6448_v52 = vrot.slane %v6447_v42, 4  ;;  %v6455_v53 = vrot.slane %v6454_v48, 4 }
 0x33a   : > { %v6383_v45 = vmax.f32 %v6381_v0, %v6382_v16  ;;  %v7529_v50 = vsel %vm7396_vm6, %v6369_v62, %v6362_v61  ;;  %v6461_v26 = vsel %vm5347_vm5, %v4682_v49, -inf  ;;  %v4649_v54 = vcombine.high %v3913_v3, %v3913_v3 }
 0x33b   : > { %v7530_v28 = vsel %vm7398_vm7, %v6376_v51, %v7529_v50  ;;  %v6443_v15 = vrot.slane %v6442_v56, 2  ;;  %v6449_v35 = vmax.f32 %v6447_v42, %v6448_v52  ;;  %v6456_v10 = vmax.f32 %v6454_v48, %v6455_v53 }
 0x33c   : > { %v7531_v31 = vsel %vm7400_vm8, %v6383_v45, %v7530_v28  ;;  %v6462_v12 = vrot.slane %v6461_v26, 4  ;;  %v4656_v25 = vrot.slane %v3913_v3, %v10607_v43  ;;  %v4663_v34 = vrot.slane %v4649_v54, %v10607_v43 }
 0x33d   : > { %v7532_v30 = vsel %vm7402_vm9, %v11545_v39, %v7531_v31  ;;  %v6444_v44 = vmax.f32 %v6442_v56, %v6443_v15  ;;  %v6450_v11 = vrot.slane %v6449_v35, 2  ;;  %v6457_v0 = vrot.slane %v6456_v10, 2 }
 0x33e   : > { %v7533_v2 = vsel %vm7404_vm10, %v11548_v32, %v7532_v30  ;;  %v6463_v61 = vmax.f32 %v6461_v26, %v6462_v12  ;;  %v4664_v14 = vcombine.high %v4656_v25, %v4656_v25  ;;  %v4665_v49 = vcombine.high %v4663_v34, %v4663_v34 }
 0x33f   : > { %v7534_v17 = vsel %vm7406_vm11, %v11550_v19, %v7533_v2  ;;  %v6445_v62 = vrot.slane %v6444_v44, 1  ;;  %v6451_v3 = vmax.f32 %v6449_v35, %v6450_v11  ;;  %v6458_v16 = vmax.f32 %v6456_v10, %v6457_v0 }
 0x340   : > { %v7535_v42 = vsel %vm7408_vm12, %v11553_v60, %v7534_v17  ;;  %v6464_v39 = vrot.slane %v6463_v61, 2  ;;  %v6412_v48 = vsel %vm5347_vm5, %v4656_v25, -inf  ;;  %v6419_v51 = vsel %vm5347_vm5, %v4664_v14, -inf }
 0x341   : > { %7677 = vst [vmem:[%s10694_s10 + $0x90] sm:$0xff] %v7535_v42  ;;  %v11602_v56 = vmax.f32 %v6444_v44, %v6445_v62  ;;  %v6452_v32 = vrot.slane %v6451_v3, 1  ;;  %v6459_v52 = vrot.slane %v6458_v16, 1  ;;  %v6413_v53 = vrot.slane %v6412_v48, 4 }
 0x342   : > { %v6465_v45 = vmax.f32 %v6463_v61, %v6464_v39  ;;  %v6420_v50 = vrot.slane %v6419_v51, 4  ;;  %v6426_v19 = vsel %vm5347_vm5, %v4663_v34, -inf  ;;  %v6433_v26 = vsel %vm5347_vm5, %v4665_v49, -inf }
 0x343   : > { %v11606_v54 = vmax.f32 %v6451_v3, %v6452_v32  ;;  %v11608_v60 = vmax.f32 %v6458_v16, %v6459_v52  ;;  %v6414_v28 = vmax.f32 %v6412_v48, %v6413_v53  ;;  %v6427_v15 = vrot.slane %v6426_v19, 4  ;;  %v11621_v3 = vpop.f32.mrb[54].mxu0 }
 0x344   : > { %v6466_v35 = vrot.slane %v6465_v45, 1  ;;  %v6421_v10 = vmax.f32 %v6419_v51, %v6420_v50  ;;  %v6434_v31 = vrot.slane %v6433_v26, 4  ;;  %v3781_v12 = vmul.f32 %v11558_v18, %v11575_v22  ;;  %v11619_v22 = vpop.f32.mrb[54].mxu1 }
 0x345   : > { %v6415_v25 = vrot.slane %v6414_v28, 2  ;;  %v6428_v30 = vmax.f32 %v6426_v19, %v6427_v15  ;;  %v9000_v44 = vadd.f32 %v11274_v40, %v11272_v23  ;;  %v9001_v34 = vadd.f32 %v11295_v59, %v11293_v1 }
 0x346   : > { %v6467_v11 = vmax.f32 %v6465_v45, %v6466_v35  ;;  %v6422_v0 = vrot.slane %v6421_v10, 2  ;;  %v6435_v2 = vmax.f32 %v6433_v26, %v6434_v31  ;;  %v3852_v61 = vadd.f32 %v11570_v13, %v3781_v12 }
 0x347   : > { %v6416_v14 = vmax.f32 %v6414_v28, %v6415_v25  ;;  %v6429_v49 = vrot.slane %v6428_v30, 2  ;;  %v3780_v17 = vmul.f32 %v11558_v18, %v9000_v44  ;;  %v3783_v62 = vmul.f32 %v11558_v18, %v9001_v34 }
 0x348   : > { %v6423_v16 = vmax.f32 %v6421_v10, %v6422_v0  ;;  %v6436_v23 = vrot.slane %v6435_v2, 2  ;;  %v3916_v40 = vmax.f32 %v3852_v61, 0.0  ;;  %v11625_v1 = vadd.f32 %v11313_v7, %v11311_v41 }
 0x349   : > { %v6417_v59 = vrot.slane %v6416_v14, 1  ;;  %v6430_v42 = vmax.f32 %v6428_v30, %v6429_v49  ;;  %v3851_v39 = vadd.f32 %v11570_v13, %v3780_v17  ;;  %v3854_v48 = vadd.f32 %v11570_v13, %v3783_v62 }
 0x34a   : > { %v6424_v51 = vrot.slane %v6423_v16, 1  ;;  %v6437_v32 = vmax.f32 %v6435_v2, %v6436_v23  ;;  %v4700_v52 = vcombine.high %v3916_v40, %v3916_v40  ;;  %v4707_v53 = vrot.slane %v3916_v40, %v10607_v43  ;;  %v11641_v23 = vpop.f32.mrb[55].mxu1  ;;  %v11643_v40 = vpop.f32.mrb[55].mxu0 }
 0x34b   : > { %v6418_v45 = vmax.f32 %v6416_v14, %v6417_v59  ;;  %v6431_v50 = vrot.slane %v6430_v42, 1  ;;  %v3915_v19 = vmax.f32 %v3851_v39, 0.0  ;;  %v11630_v26 = vmax.f32 %v3854_v48, 0.0 }
 0x34c   : > { %v6425_v28 = vmax.f32 %v6423_v16, %v6424_v51  ;;  %v6438_v15 = vrot.slane %v6437_v32, 1  ;;  %v4714_v41 = vrot.slane %v4700_v52, %v10607_v43  ;;  %v4715_v7 = vcombine.high %v4707_v53, %v4707_v53 }
 0x34d   : > { %v6432_v35 = vmax.f32 %v6430_v42, %v6431_v50  ;;  %v6496_v10 = vsel %vm5347_vm5, %v4707_v53, -inf  ;;  %v4683_v31 = vcombine.high %v3915_v19, %v3915_v19  ;;  %v4690_v12 = vrot.slane %v3915_v19, %v10607_v43 }
 0x34e   : > { %v6439_v25 = vmax.f32 %v6437_v32, %v6438_v15  ;;  %v7536_v30 = vsel %vm7396_vm6, %v6425_v28, %v6418_v45  ;;  %v4716_v44 = vcombine.high %v4714_v41, %v4714_v41  ;;  %v6497_v34 = vrot.slane %v6496_v10, 4 }
 0x34f   : > { %v7537_v0 = vsel %vm7398_vm7, %v6432_v35, %v7536_v30  ;;  %v6503_v2 = vsel %vm5347_vm5, %v4715_v7, -inf  ;;  %v6510_v61 = vsel %vm5347_vm5, %v4714_v41, -inf  ;;  %v4697_v14 = vrot.slane %v4683_v31, %v10607_v43 }
 0x350   : > { %v7538_v49 = vsel %vm7400_vm8, %v6439_v25, %v7537_v0  ;;  %v6498_v17 = vmax.f32 %v6496_v10, %v6497_v34  ;;  %v6504_v62 = vrot.slane %v6503_v2, 4  ;;  %v6511_v16 = vrot.slane %v6510_v61, 4 }
 0x351   : > { %v7539_v59 = vsel %vm7402_vm9, %v11602_v56, %v7538_v49  ;;  %v6517_v42 = vsel %vm5347_vm5, %v4716_v44, -inf  ;;  %v4698_v39 = vcombine.high %v4690_v12, %v4690_v12  ;;  %v4699_v48 = vcombine.high %v4697_v14, %v4697_v14 }
 0x352   : > { %v7540_v51 = vsel %vm7404_vm10, %v11606_v54, %v7539_v59  ;;  %v6499_v32 = vrot.slane %v6498_v17, 2  ;;  %v6505_v52 = vmax.f32 %v6503_v2, %v6504_v62  ;;  %v6512_v53 = vmax.f32 %v6510_v61, %v6511_v16 }
 0x353   : > { %v7541_v45 = vsel %vm7406_vm11, %v11608_v60, %v7540_v51  ;;  %v6518_v50 = vrot.slane %v6517_v42, 4  ;;  %v6468_v19 = vsel %vm5347_vm5, %v4690_v12, -inf  ;;  %v6475_v28 = vsel %vm5347_vm5, %v4698_v39, -inf }
 0x354   : > { %v7542_v56 = vsel %vm7408_vm12, %v6467_v11, %v7541_v45  ;;  %v6500_v15 = vmax.f32 %v6498_v17, %v6499_v32  ;;  %v6506_v41 = vrot.slane %v6505_v52, 2  ;;  %v6513_v7 = vrot.slane %v6512_v53, 2 }
 0x355   : > { %7678 = vst [vmem:[%s10694_s10 + $0x98] sm:$0xff] %v7542_v56  ;;  %v6519_v35 = vmax.f32 %v6517_v42, %v6518_v50  ;;  %v6469_v10 = vrot.slane %v6468_v19, 4  ;;  %v6476_v54 = vrot.slane %v6475_v28, 4  ;;  %v6482_v31 = vsel %vm5347_vm5, %v4697_v14, -inf }
 0x356   : > { %v6501_v25 = vrot.slane %v6500_v15, 1  ;;  %v6507_v30 = vmax.f32 %v6505_v52, %v6506_v41  ;;  %v6514_v44 = vmax.f32 %v6512_v53, %v6513_v7  ;;  %v6483_v60 = vrot.slane %v6482_v31, 4 }
 0x357   : > { %v6520_v34 = vrot.slane %v6519_v35, 2  ;;  %v6470_v0 = vmax.f32 %v6468_v19, %v6469_v10  ;;  %v6477_v12 = vmax.f32 %v6475_v28, %v6476_v54  ;;  %v6489_v2 = vsel %vm5347_vm5, %v4699_v48, -inf  ;;  %v11660_v19 = vpop.f32.mrb[56].mxu1  ;;  %v11662_v48 = vpop.f32.mrb[56].mxu0 }
 0x358   : > { %v6502_v61 = vmax.f32 %v6500_v15, %v6501_v25  ;;  %v6508_v11 = vrot.slane %v6507_v30, 1  ;;  %v6515_v49 = vrot.slane %v6514_v44, 1  ;;  %v6484_v17 = vmax.f32 %v6482_v31, %v6483_v60 }
 0x359   : > { %v6521_v62 = vmax.f32 %v6519_v35, %v6520_v34  ;;  %v6471_v16 = vrot.slane %v6470_v0, 2  ;;  %v6478_v59 = vrot.slane %v6477_v12, 2  ;;  %v6490_v42 = vrot.slane %v6489_v2, 4 }
 0x35a   : > { %v6509_v39 = vmax.f32 %v6507_v30, %v6508_v11  ;;  %v6516_v51 = vmax.f32 %v6514_v44, %v6515_v49  ;;  %v6485_v14 = vrot.slane %v6484_v17, 2  ;;  %v4734_v32 = vcombine.high %v11630_v26, %v11630_v26 }
 0x35b   : > { %v6522_v52 = vrot.slane %v6521_v62, 1  ;;  %v6472_v53 = vmax.f32 %v6470_v0, %v6471_v16  ;;  %v6479_v45 = vmax.f32 %v6477_v12, %v6478_v59  ;;  %v6491_v50 = vmax.f32 %v6489_v2, %v6490_v42 }
 0x35c   : > { %v6486_v28 = vmax.f32 %v6484_v17, %v6485_v14  ;;  %v4741_v56 = vrot.slane %v11630_v26, %v10607_v43  ;;  %v4748_v15 = vrot.slane %v4734_v32, %v10607_v43  ;;  %v3782_v41 = vmul.f32 %v11558_v18, %v11625_v1 }
 0x35d   : > { %v6523_v7 = vmax.f32 %v6521_v62, %v6522_v52  ;;  %v6473_v35 = vrot.slane %v6472_v53, 1  ;;  %v6480_v10 = vrot.slane %v6479_v45, 1  ;;  %v6492_v54 = vrot.slane %v6491_v50, 2 }
 0x35e   : > { %v6487_v31 = vrot.slane %v6486_v28, 1  ;;  %v4749_v25 = vcombine.high %v4741_v56, %v4741_v56  ;;  %v4750_v30 = vcombine.high %v4748_v15, %v4748_v15  ;;  %v6552_v44 = vsel %vm5347_vm5, %v4741_v56, -inf  ;;  %v11680_v56 = vpop.f32.mrb[57].mxu0 }
 0x35f   : > { %v6474_v60 = vmax.f32 %v6472_v53, %v6473_v35  ;;  %v6481_v34 = vmax.f32 %v6479_v45, %v6480_v10  ;;  %v6493_v0 = vmax.f32 %v6491_v50, %v6492_v54  ;;  %v6553_v12 = vrot.slane %v6552_v44, 4 }
 0x360   : > { %v6488_v2 = vmax.f32 %v6486_v28, %v6487_v31  ;;  %v6559_v26 = vsel %vm5347_vm5, %v4749_v25, -inf  ;;  %v6566_v11 = vsel %vm5347_vm5, %v4748_v15, -inf  ;;  %v6573_v1 = vsel %vm5347_vm5, %v4750_v30, -inf  ;;  %v11678_v28 = vpop.f32.mrb[57].mxu1 }
 0x361   : > { %v6494_v49 = vrot.slane %v6493_v0, 1  ;;  %v7543_v17 = vsel %vm7396_vm6, %v6481_v34, %v6474_v60  ;;  %v6554_v62 = vmax.f32 %v6552_v44, %v6553_v12  ;;  %v6560_v16 = vrot.slane %v6559_v26, 4 }
 0x362   : > { %v7544_v59 = vsel %vm7398_vm7, %v6488_v2, %v7543_v17  ;;  %v6567_v42 = vrot.slane %v6566_v11, 4  ;;  %v6574_v14 = vrot.slane %v6573_v1, 4  ;;  %v3853_v32 = vadd.f32 %v11570_v13, %v3782_v41 }
 0x363   : > { %v6495_v52 = vmax.f32 %v6493_v0, %v6494_v49  ;;  %v6555_v53 = vrot.slane %v6554_v62, 2  ;;  %v6561_v45 = vmax.f32 %v6559_v26, %v6560_v16  ;;  %v9003_v50 = vadd.f32 %v11357_v47, %v11355_v4 }
 0x364   : > { %v6568_v15 = vmax.f32 %v6566_v11, %v6567_v42  ;;  %v6575_v35 = vmax.f32 %v6573_v1, %v6574_v14  ;;  %v3917_v10 = vmax.f32 %v3853_v32, 0.0  ;;  %v9004_v54 = vadd.f32 %v11372_v63, %v11370_v33 }
 0x365   : > { %v7545_v31 = vsel %vm7400_vm8, %v6495_v52, %v7544_v59  ;;  %v6556_v25 = vmax.f32 %v6554_v62, %v6555_v53  ;;  %v6562_v41 = vrot.slane %v6561_v45, 2  ;;  %v3785_v30 = vmul.f32 %v11558_v18, %v9003_v50 }
 0x366   : > { %v7546_v44 = vsel %vm7402_vm9, %v6502_v61, %v7545_v31  ;;  %v6569_v4 = vrot.slane %v6568_v15, 2  ;;  %v6576_v47 = vrot.slane %v6575_v35, 2  ;;  %v4717_v60 = vcombine.high %v3917_v10, %v3917_v10 }
 0x367   : > { %v7547_v34 = vsel %vm7404_vm10, %v6509_v39, %v7546_v44  ;;  %v6557_v0 = vrot.slane %v6556_v25, 1  ;;  %v6563_v12 = vmax.f32 %v6561_v45, %v6562_v41  ;;  %v4724_v2 = vrot.slane %v3917_v10, %v10607_v43 }
 0x368   : > { %v7548_v33 = vsel %vm7406_vm11, %v6516_v51, %v7547_v34  ;;  %v6570_v63 = vmax.f32 %v6568_v15, %v6569_v4  ;;  %v6577_v26 = vmax.f32 %v6575_v35, %v6576_v47  ;;  %v4731_v11 = vrot.slane %v4717_v60, %v10607_v43  ;;  %v11709_v4 = vpop.f32.mrb[58].mxu1  ;;  %v11711_v47 = vpop.f32.mrb[58].mxu0 }
 0x369   : > { %v7549_v1 = vsel %vm7408_vm12, %v6523_v7, %v7548_v33  ;;  %v11692_v49 = vmax.f32 %v6556_v25, %v6557_v0  ;;  %v6564_v61 = vrot.slane %v6563_v12, 1  ;;  %v4732_v17 = vcombine.high %v4724_v2, %v4724_v2 }
 0x36a   : > { %7679 = vst [vmem:[%s10694_s10 + $0xa0] sm:$0xff] %v7549_v1  ;;  %v6571_v62 = vrot.slane %v6570_v63, 1  ;;  %v6578_v16 = vrot.slane %v6577_v26, 1  ;;  %v4733_v39 = vcombine.high %v4731_v11, %v4731_v11  ;;  %v6524_v59 = vsel %vm5347_vm5, %v4724_v2, -inf }
 0x36b   : > { %v11696_v42 = vmax.f32 %v6563_v12, %v6564_v61  ;;  %v6525_v14 = vrot.slane %v6524_v59, 4  ;;  %v6531_v51 = vsel %vm5347_vm5, %v4732_v17, -inf  ;;  %v6538_v32 = vsel %vm5347_vm5, %v4731_v11, -inf }
 0x36c   : > { %v11700_v52 = vmax.f32 %v6570_v63, %v6571_v62  ;;  %v11702_v7 = vmax.f32 %v6577_v26, %v6578_v16  ;;  %v6532_v53 = vrot.slane %v6531_v51, 4  ;;  %v6539_v45 = vrot.slane %v6538_v32, 4 }
 0x36d   : > { %v6526_v50 = vmax.f32 %v6524_v59, %v6525_v14  ;;  %v6545_v15 = vsel %vm5347_vm5, %v4733_v39, -inf  ;;  %v3856_v35 = vadd.f32 %v11570_v13, %v3785_v30  ;;  %v3784_v10 = vmul.f32 %v11558_v18, %v9004_v54 }
 0x36e   : > { %v6533_v31 = vmax.f32 %v6531_v51, %v6532_v53  ;;  %v6540_v25 = vmax.f32 %v6538_v32, %v6539_v45  ;;  %v6546_v41 = vrot.slane %v6545_v15, 4  ;;  %v9005_v44 = vadd.f32 %v11406_v8, %v11404_v36 }
 0x36f   : > { %v6527_v60 = vrot.slane %v6526_v50, 2  ;;  %v3920_v34 = vmax.f32 %v3856_v35, 0.0  ;;  %v3855_v0 = vadd.f32 %v11570_v13, %v3784_v10  ;;  %v11716_v12 = vadd.f32 %v11418_v37, %v11416_v21 }
 0x370   : > { %v6534_v30 = vrot.slane %v6533_v31, 2  ;;  %v6541_v54 = vrot.slane %v6540_v25, 2  ;;  %v6547_v2 = vmax.f32 %v6545_v15, %v6546_v41  ;;  %v3787_v33 = vmul.f32 %v11558_v18, %v9005_v44 }
 0x371   : > { %v6528_v63 = vmax.f32 %v6526_v50, %v6527_v60  ;;  %v4768_v26 = vcombine.high %v3920_v34, %v3920_v34  ;;  %v4775_v36 = vrot.slane %v3920_v34, %v10607_v43  ;;  %v3919_v8 = vmax.f32 %v3855_v0, 0.0  ;;  %v11728_v34 = vpop.f32.mrb[59].mxu1  ;;  %v11730_v0 = vpop.f32.mrb[59].mxu0 }
 0x372   : > { %v6535_v11 = vmax.f32 %v6533_v31, %v6534_v30  ;;  %v6542_v1 = vmax.f32 %v6540_v25, %v6541_v54  ;;  %v6548_v61 = vrot.slane %v6547_v2, 2  ;;  %v11721_v17 = vadd.f32 %v11570_v13, %v3787_v33 }
 0x373   : > { %v6529_v62 = vrot.slane %v6528_v63, 1  ;;  %v4782_v21 = vrot.slane %v4768_v26, %v10607_v43  ;;  %v4783_v37 = vcombine.high %v4775_v36, %v4775_v36  ;;  %v6608_v16 = vsel %vm5347_vm5, %v4775_v36, -inf }
 0x374   : > { %v6536_v39 = vrot.slane %v6535_v11, 1  ;;  %v6543_v59 = vrot.slane %v6542_v1, 1  ;;  %v6549_v14 = vmax.f32 %v6547_v2, %v6548_v61  ;;  %v6609_v51 = vrot.slane %v6608_v16, 4 }
 0x375   : > { %v6530_v32 = vmax.f32 %v6528_v63, %v6529_v62  ;;  %v4784_v53 = vcombine.high %v4782_v21, %v4782_v21  ;;  %v6615_v45 = vsel %vm5347_vm5, %v4783_v37, -inf  ;;  %v6622_v50 = vsel %vm5347_vm5, %v4782_v21, -inf }
 0x376   : > { %v6537_v15 = vmax.f32 %v6535_v11, %v6536_v39  ;;  %v6544_v35 = vmax.f32 %v6542_v1, %v6543_v59  ;;  %v6550_v10 = vrot.slane %v6549_v14, 1  ;;  %v6610_v31 = vmax.f32 %v6608_v16, %v6609_v51 }
 0x377   : > { %v6616_v25 = vrot.slane %v6615_v45, 4  ;;  %v6623_v41 = vrot.slane %v6622_v50, 4  ;;  %v6629_v44 = vsel %vm5347_vm5, %v4784_v53, -inf  ;;  %v4751_v60 = vcombine.high %v3919_v8, %v3919_v8 }
 0x378   : > { %v6551_v30 = vmax.f32 %v6549_v14, %v6550_v10  ;;  %v7550_v54 = vsel %vm7396_vm6, %v6537_v15, %v6530_v32  ;;  %v6611_v2 = vrot.slane %v6610_v31, 2  ;;  %v6630_v33 = vrot.slane %v6629_v44, 4 }
 0x379   : > { %v7551_v63 = vsel %vm7398_vm7, %v6544_v35, %v7550_v54  ;;  %v6617_v26 = vmax.f32 %v6615_v45, %v6616_v25  ;;  %v6624_v36 = vmax.f32 %v6622_v50, %v6623_v41  ;;  %v4758_v11 = vrot.slane %v3919_v8, %v10607_v43 }
 0x37a   : > { %v7552_v1 = vsel %vm7400_vm8, %v6551_v30, %v7551_v63  ;;  %v6612_v61 = vmax.f32 %v6610_v31, %v6611_v2  ;;  %v6631_v62 = vmax.f32 %v6629_v44, %v6630_v33  ;;  %v4765_v21 = vrot.slane %v4751_v60, %v10607_v43 }
 0x37b   : > { %v7553_v37 = vsel %vm7402_vm9, %v11692_v49, %v7552_v1  ;;  %v6618_v16 = vrot.slane %v6617_v26, 2  ;;  %v6625_v39 = vrot.slane %v6624_v36, 2  ;;  %v4766_v59 = vcombine.high %v4758_v11, %v4758_v11 }
 0x37c   : > { %v7554_v14 = vsel %vm7404_vm10, %v11696_v42, %v7553_v37  ;;  %v6613_v51 = vrot.slane %v6612_v61, 1  ;;  %v6632_v32 = vrot.slane %v6631_v62, 2  ;;  %v4767_v53 = vcombine.high %v4765_v21, %v4765_v21 }
 0x37d   : > { %v7555_v8 = vsel %vm7406_vm11, %v11700_v52, %v7554_v14  ;;  %v6619_v45 = vmax.f32 %v6617_v26, %v6618_v16  ;;  %v6626_v50 = vmax.f32 %v6624_v36, %v6625_v39  ;;  %v6580_v15 = vsel %vm5347_vm5, %v4758_v11, -inf  ;;  %v11762_v16 = vpop.f32.mrb[60].mxu1  ;;  %v11764_v39 = vpop.f32.mrb[60].mxu0 }
 0x37e   : > { %v7556_v49 = vsel %vm7408_vm12, %v11702_v7, %v7555_v8  ;;  %v11746_v35 = vmax.f32 %v6612_v61, %v6613_v51  ;;  %v6633_v10 = vmax.f32 %v6631_v62, %v6632_v32  ;;  %v6581_v31 = vrot.slane %v6580_v15, 4 }
 0x37f   : > { %7680 = vst [vmem:[%s10694_s10 + $0xa8] sm:$0xff] %v7556_v49  ;;  %v6620_v25 = vrot.slane %v6619_v45, 1  ;;  %v6627_v42 = vrot.slane %v6626_v50, 1  ;;  %v6587_v41 = vsel %vm5347_vm5, %v4766_v59, -inf  ;;  %v6594_v44 = vsel %vm5347_vm5, %v4765_v21, -inf }
 0x380   : > { %v6634_v60 = vrot.slane %v6633_v10, 1  ;;  %v6582_v52 = vmax.f32 %v6580_v15, %v6581_v31  ;;  %v6588_v30 = vrot.slane %v6587_v41, 4  ;;  %v6595_v54 = vrot.slane %v6594_v44, 4 }
 0x381   : > { %v11751_v2 = vmax.f32 %v6619_v45, %v6620_v25  ;;  %v11753_v33 = vmax.f32 %v6626_v50, %v6627_v42  ;;  %v6601_v7 = vsel %vm5347_vm5, %v4767_v53, -inf  ;;  %v3922_v63 = vmax.f32 %v11721_v17, 0.0 }
 0x382   : > { %v11757_v26 = vmax.f32 %v6633_v10, %v6634_v60  ;;  %v6583_v36 = vrot.slane %v6582_v52, 2  ;;  %v6589_v11 = vmax.f32 %v6587_v41, %v6588_v30  ;;  %v6596_v1 = vmax.f32 %v6594_v44, %v6595_v54 }
 0x383   : > { %v6602_v61 = vrot.slane %v6601_v7, 4  ;;  %v4802_v62 = vcombine.high %v3922_v63, %v3922_v63  ;;  %v4809_v21 = vrot.slane %v3922_v63, %v10607_v43  ;;  %v3786_v37 = vmul.f32 %v11558_v18, %v11716_v12 }
 0x384   : > { %v6584_v59 = vmax.f32 %v6582_v52, %v6583_v36  ;;  %v6590_v14 = vrot.slane %v6589_v11, 2  ;;  %v6597_v51 = vrot.slane %v6596_v1, 2  ;;  %v9007_v17 = vadd.f32 %v11460_v58, %v11458_v27 }
 0x385   : > { %v6603_v32 = vmax.f32 %v6601_v7, %v6602_v61  ;;  %v4816_v53 = vrot.slane %v4802_v62, %v10607_v43  ;;  %v4817_v8 = vcombine.high %v4809_v21, %v4809_v21  ;;  %v6664_v45 = vsel %vm5347_vm5, %v4809_v21, -inf }
 0x386   : > { %v6585_v50 = vrot.slane %v6584_v59, 1  ;;  %v6591_v15 = vmax.f32 %v6589_v11, %v6590_v14  ;;  %v6598_v49 = vmax.f32 %v6596_v1, %v6597_v51  ;;  %v6665_v12 = vrot.slane %v6664_v45, 4 }
 0x387   : > { %v6604_v10 = vrot.slane %v6603_v32, 2  ;;  %v4818_v31 = vcombine.high %v4816_v53, %v4816_v53  ;;  %v6671_v25 = vsel %vm5347_vm5, %v4817_v8, -inf  ;;  %v6678_v42 = vsel %vm5347_vm5, %v4816_v53, -inf }
 0x388   : > { %v6586_v41 = vmax.f32 %v6584_v59, %v6585_v50  ;;  %v6592_v44 = vrot.slane %v6591_v15, 1  ;;  %v6599_v60 = vrot.slane %v6598_v49, 1  ;;  %v6666_v27 = vmax.f32 %v6664_v45, %v6665_v12 }
 0x389   : > { %v6605_v58 = vmax.f32 %v6603_v32, %v6604_v10  ;;  %v6672_v52 = vrot.slane %v6671_v25, 4  ;;  %v6679_v30 = vrot.slane %v6678_v42, 4  ;;  %v6685_v54 = vsel %vm5347_vm5, %v4818_v31, -inf }
 0x38a   : > { %v6593_v7 = vmax.f32 %v6591_v15, %v6592_v44  ;;  %v6600_v63 = vmax.f32 %v6598_v49, %v6599_v60  ;;  %v6667_v36 = vrot.slane %v6666_v27, 2  ;;  %v6686_v11 = vrot.slane %v6685_v54, 4  ;;  %v11777_v15 = vpop.f32.mrb[61].mxu1  ;;  %v11779_v49 = vpop.f32.mrb[61].mxu0 }
 0x38b   : > { %v6606_v1 = vrot.slane %v6605_v58, 1  ;;  %v6673_v61 = vmax.f32 %v6671_v25, %v6672_v52  ;;  %v6680_v62 = vmax.f32 %v6678_v42, %v6679_v30  ;;  %v3857_v21 = vadd.f32 %v11570_v13, %v3786_v37 }
 0x38c   : > { %v7557_v14 = vsel %vm7396_vm6, %v6593_v7, %v6586_v41  ;;  %v6668_v59 = vmax.f32 %v6666_v27, %v6667_v36  ;;  %v6687_v51 = vmax.f32 %v6685_v54, %v6686_v11  ;;  %v3789_v53 = vmul.f32 %v11558_v18, %v9007_v17 }
 0x38d   : > { %v6607_v32 = vmax.f32 %v6605_v58, %v6606_v1  ;;  %v7558_v8 = vsel %vm7398_vm7, %v6600_v63, %v7557_v14  ;;  %v6674_v45 = vrot.slane %v6673_v61, 2  ;;  %v6681_v50 = vrot.slane %v6680_v62, 2 }
 0x38e   : > { %v6669_v12 = vrot.slane %v6668_v59, 1  ;;  %v6688_v10 = vrot.slane %v6687_v51, 2  ;;  %v3921_v31 = vmax.f32 %v3857_v21, 0.0  ;;  %v3860_v37 = vadd.f32 %v11570_v13, %v3789_v53 }
 0x38f   : > { %v7559_v25 = vsel %vm7400_vm8, %v6607_v32, %v7558_v8  ;;  %v6675_v42 = vmax.f32 %v6673_v61, %v6674_v45  ;;  %v6682_v41 = vmax.f32 %v6680_v62, %v6681_v50  ;;  %v9008_v17 = vadd.f32 %v11469_v57, %v11467_v46 }
 0x390   : > { %v7560_v44 = vsel %vm7402_vm9, %v11746_v35, %v7559_v25  ;;  %v11787_v60 = vmax.f32 %v6668_v59, %v6669_v12  ;;  %v6689_v27 = vmax.f32 %v6687_v51, %v6688_v10  ;;  %v4785_v58 = vcombine.high %v3921_v31, %v3921_v31  ;;  %v11813_v25 = vpop.f32.mrb[62].mxu0 }
 0x391   : > { %v7561_v52 = vsel %vm7404_vm10, %v11751_v2, %v7560_v44  ;;  %v6676_v30 = vrot.slane %v6675_v42, 1  ;;  %v6683_v54 = vrot.slane %v6682_v41, 1  ;;  %v4792_v7 = vrot.slane %v3921_v31, %v10607_v43  ;;  %12197 = vst [vmem:[#allocation10_spill] sm:$0xff] %v11813_v25 }
 0x392   : > { %v7562_v63 = vsel %vm7406_vm11, %v11753_v33, %v7561_v52  ;;  %v6690_v36 = vrot.slane %v6689_v27, 1  ;;  %v4799_v46 = vrot.slane %v4785_v58, %v10607_v43  ;;  %v3924_v57 = vmax.f32 %v3860_v37, 0.0  ;;  %v11811_v37 = vpop.f32.mrb[62].mxu1 }
 0x393   : > { %v7563_v35 = vsel %vm7408_vm12, %v11757_v26, %v7562_v63  ;;  %v11797_v11 = vmax.f32 %v6675_v42, %v6676_v30  ;;  %v11799_v1 = vmax.f32 %v6682_v41, %v6683_v54  ;;  %v4800_v61 = vcombine.high %v4792_v7, %v4792_v7 }
 0x394   : > { %7681 = vst [vmem:[%s10694_s10 + $0xb0] sm:$0xff] %v7563_v35  ;;  %v11802_v2 = vmax.f32 %v6689_v27, %v6690_v36  ;;  %v4801_v62 = vcombine.high %v4799_v46, %v4799_v46  ;;  %v6636_v21 = vsel %vm5347_vm5, %v4792_v7, -inf  ;;  %v6650_v33 = vsel %vm5347_vm5, %v4799_v46, -inf }
 0x395   : > { %v6637_v14 = vrot.slane %v6636_v21, 4  ;;  %v6643_v59 = vsel %vm5347_vm5, %v4800_v61, -inf  ;;  %v6651_v51 = vrot.slane %v6650_v33, 4  ;;  %v4836_v53 = vcombine.high %v3924_v57, %v3924_v57 }
 0x396   : > { %v6644_v32 = vrot.slane %v6643_v59, 4  ;;  %v6657_v26 = vsel %vm5347_vm5, %v4801_v62, -inf  ;;  %v4843_v8 = vrot.slane %v3924_v57, %v10607_v43  ;;  %v3788_v45 = vmul.f32 %v11558_v18, %v9008_v17 }
 0x397   : > { %v6638_v50 = vmax.f32 %v6636_v21, %v6637_v14  ;;  %v6652_v12 = vmax.f32 %v6650_v33, %v6651_v51  ;;  %v6658_v10 = vrot.slane %v6657_v26, 4  ;;  %v4850_v31 = vrot.slane %v4836_v53, %v10607_v43 }
 0x398   : > { %v6645_v42 = vmax.f32 %v6643_v59, %v6644_v32  ;;  %v4851_v41 = vcombine.high %v4843_v8, %v4843_v8  ;;  %v6720_v44 = vsel %vm5347_vm5, %v4843_v8, -inf  ;;  %v3859_v27 = vadd.f32 %v11570_v13, %v3788_v45 }
 0x399   : > { %v6639_v58 = vrot.slane %v6638_v50, 2  ;;  %v6653_v52 = vrot.slane %v6652_v12, 2  ;;  %v6659_v30 = vmax.f32 %v6657_v26, %v6658_v10  ;;  %v4852_v54 = vcombine.high %v4850_v31, %v4850_v31 }
 0x39a   : > { %v6646_v17 = vrot.slane %v6645_v42, 2  ;;  %v6721_v7 = vrot.slane %v6720_v44, 4  ;;  %v6727_v63 = vsel %vm5347_vm5, %v4851_v41, -inf  ;;  %v6734_v36 = vsel %vm5347_vm5, %v4850_v31, -inf }
 0x39b   : > { %v6640_v46 = vmax.f32 %v6638_v50, %v6639_v58  ;;  %v6654_v57 = vmax.f32 %v6652_v12, %v6653_v52  ;;  %v6660_v35 = vrot.slane %v6659_v30, 2  ;;  %v6728_v61 = vrot.slane %v6727_v63, 4 }
 0x39c   : > { %v6647_v62 = vmax.f32 %v6645_v42, %v6646_v17  ;;  %v6722_v21 = vmax.f32 %v6720_v44, %v6721_v7  ;;  %v6735_v33 = vrot.slane %v6734_v36, 4  ;;  %v6741_v14 = vsel %vm5347_vm5, %v4852_v54, -inf  ;;  %v11820_v44 = vpop.f32.mrb[63].mxu1  ;;  %v11822_v17 = vpop.f32.mrb[63].mxu0 }
 0x39d   : > { %v6641_v59 = vrot.slane %v6640_v46, 1  ;;  %v6655_v51 = vrot.slane %v6654_v57, 1  ;;  %v6661_v53 = vmax.f32 %v6659_v30, %v6660_v35  ;;  %v6729_v32 = vmax.f32 %v6727_v63, %v6728_v61 }
 0x39e   : > { %v6648_v26 = vrot.slane %v6647_v62, 1  ;;  %v6723_v8 = vrot.slane %v6722_v21, 2  ;;  %v6736_v45 = vmax.f32 %v6734_v36, %v6735_v33  ;;  %v6742_v10 = vrot.slane %v6741_v14, 4 }
 0x39f   : > { %v6642_v41 = vmax.f32 %v6640_v46, %v6641_v59  ;;  %v6656_v25 = vmax.f32 %v6654_v57, %v6655_v51  ;;  %v6662_v31 = vrot.slane %v6661_v53, 1  ;;  %v6730_v50 = vrot.slane %v6729_v32, 2 }
 0x3a0   : > { %v6649_v12 = vmax.f32 %v6647_v62, %v6648_v26  ;;  %v6724_v58 = vmax.f32 %v6722_v21, %v6723_v8  ;;  %v6737_v52 = vrot.slane %v6736_v45, 2  ;;  %v6743_v42 = vmax.f32 %v6741_v14, %v6742_v10 }
 0x3a1   : > { %v6663_v54 = vmax.f32 %v6661_v53, %v6662_v31  ;;  %v6731_v7 = vmax.f32 %v6729_v32, %v6730_v50  ;;  %v3923_v30 = vmax.f32 %v3859_v27, 0.0  ;;  %v9009_v63 = vadd.f32 %v11510_v20, %v11508_v55 }
 0x3a2   : > { %v7564_v36 = vsel %vm7396_vm6, %v6649_v12, %v6642_v41  ;;  %v6725_v46 = vrot.slane %v6724_v58, 1  ;;  %v6738_v57 = vmax.f32 %v6736_v45, %v6737_v52  ;;  %v6744_v35 = vrot.slane %v6743_v42, 2 }
 0x3a3   : > { %v7565_v61 = vsel %vm7398_vm7, %v6656_v25, %v7564_v36  ;;  %v6732_v62 = vrot.slane %v6731_v7, 1  ;;  %v4819_v21 = vcombine.high %v3923_v30, %v3923_v30  ;;  %v4826_v33 = vrot.slane %v3923_v30, %v10607_v43 }
 0x3a4   : > { %v7566_v14 = vsel %vm7400_vm8, %v6663_v54, %v7565_v61  ;;  %v11830_v59 = vmax.f32 %v6724_v58, %v6725_v46  ;;  %v6739_v51 = vrot.slane %v6738_v57, 1  ;;  %v6745_v27 = vmax.f32 %v6743_v42, %v6744_v35 }
 0x3a5   : > { %v7567_v55 = vsel %vm7402_vm9, %v11787_v60, %v7566_v14  ;;  %v11834_v20 = vmax.f32 %v6731_v7, %v6732_v62  ;;  %v4833_v53 = vrot.slane %v4819_v21, %v10607_v43  ;;  %v4834_v32 = vcombine.high %v4826_v33, %v4826_v33 }
 0x3a6   : > { %v7568_v25 = vsel %vm7404_vm10, %v11797_v11, %v7567_v55  ;;  %v11839_v26 = vmax.f32 %v6738_v57, %v6739_v51  ;;  %v6746_v8 = vrot.slane %v6745_v27, 1  ;;  %v6692_v45 = vsel %vm5347_vm5, %v4826_v33, -inf }
 0x3a7   : > { %v7569_v10 = vsel %vm7406_vm11, %v11799_v1, %v7568_v25  ;;  %v4835_v41 = vcombine.high %v4833_v53, %v4833_v53  ;;  %v6693_v31 = vrot.slane %v6692_v45, 4  ;;  %v6699_v60 = vsel %vm5347_vm5, %v4834_v32, -inf }
 0x3a8   : > { %v7570_v50 = vsel %vm7408_vm12, %v11802_v2, %v7569_v10  ;;  %v11847_v12 = vmax.f32 %v6745_v27, %v6746_v8  ;;  %v6700_v58 = vrot.slane %v6699_v60, 4  ;;  %v6706_v11 = vsel %vm5347_vm5, %v4833_v53, -inf }
 0x3a9   : > { %7682 = vst [vmem:[%s10694_s10 + $0xb8] sm:$0xff] %v7570_v50  ;;  %v6694_v52 = vmax.f32 %v6692_v45, %v6693_v31  ;;  %v6707_v42 = vrot.slane %v6706_v11, 4  ;;  %v6713_v54 = vsel %vm5347_vm5, %v4835_v41, -inf  ;;  %v3791_v7 = vmul.f32 %v11558_v18, %v9009_v63  ;;  %v11863_v18 = vld [vmem:[%s12119_s3] ss:$0 sm:$0xff] }
 0x3aa   : > { %v6701_v1 = vmax.f32 %v6699_v60, %v6700_v58  ;;  %v6714_v30 = vrot.slane %v6713_v54, 4  ;;  %v9010_v36 = vadd.f32 %v11530_v9, %v11528_v6  ;;  %v9011_v2 = vadd.f32 %v11564_v38, %v11562_v29 }
 0x3ab   : > { %v6695_v46 = vrot.slane %v6694_v52, 2  ;;  %v6708_v57 = vmax.f32 %v6706_v11, %v6707_v42  ;;  %v3862_v35 = vadd.f32 %v11570_v13, %v3791_v7  ;;  %v9012_v61 = vadd.f32 %v11583_v5, %v11581_v24  ;;  %v11873_v24 = vld [vmem:[%s12120_s4] ss:$0 sm:$0xff] }
 0x3ac   : > { %v6702_v62 = vrot.slane %v6701_v1, 2  ;;  %v6715_v21 = vmax.f32 %v6713_v54, %v6714_v30  ;;  %v3790_v63 = vmul.f32 %v11863_v18, %v9010_v36  ;;  %v3793_v6 = vmul.f32 %v11863_v18, %v9011_v2 }
 0x3ad   : > { %v6696_v9 = vmax.f32 %v6694_v52, %v6695_v46  ;;  %v6709_v29 = vrot.slane %v6708_v57, 2  ;;  %v3926_v38 = vmax.f32 %v3862_v35, 0.0  ;;  %v11868_v33 = vmul.f32 %v11863_v18, %v9012_v61 }
 0x3ae   : > { %v6703_v13 = vmax.f32 %v6701_v1, %v6702_v62  ;;  %v6716_v14 = vrot.slane %v6715_v21, 2  ;;  %v3861_v5 = vadd.f32 %v11873_v24, %v3790_v63  ;;  %v3864_v51 = vadd.f32 %v11873_v24, %v3793_v6 }
 0x3af   : > { %v6697_v27 = vrot.slane %v6696_v9, 1  ;;  %v6710_v55 = vmax.f32 %v6708_v57, %v6709_v29  ;;  %v4870_v53 = vcombine.high %v3926_v38, %v3926_v38  ;;  %v4877_v32 = vrot.slane %v3926_v38, %v10607_v43 }
 0x3b0   : > { %v6704_v25 = vrot.slane %v6703_v13, 1  ;;  %v6717_v8 = vmax.f32 %v6715_v21, %v6716_v14  ;;  %v3925_v45 = vmax.f32 %v3861_v5, 0.0  ;;  %v11878_v10 = vmax.f32 %v3864_v51, 0.0 }
 0x3b1   : > { %v6698_v41 = vmax.f32 %v6696_v9, %v6697_v27  ;;  %v6711_v31 = vrot.slane %v6710_v55, 1  ;;  %v4884_v60 = vrot.slane %v4870_v53, %v10607_v43  ;;  %v4885_v50 = vcombine.high %v4877_v32, %v4877_v32 }
 0x3b2   : > { %v6705_v58 = vmax.f32 %v6703_v13, %v6704_v25  ;;  %v6718_v11 = vrot.slane %v6717_v8, 1  ;;  %v6776_v52 = vsel %vm5347_vm5, %v4877_v32, -inf  ;;  %v4853_v42 = vcombine.high %v3925_v45, %v3925_v45 }
 0x3b3   : > { %v6712_v54 = vmax.f32 %v6710_v55, %v6711_v31  ;;  %v4886_v7 = vcombine.high %v4884_v60, %v4884_v60  ;;  %v6777_v1 = vrot.slane %v6776_v52, 4  ;;  %v6783_v30 = vsel %vm5347_vm5, %v4885_v50, -inf }
 0x3b4   : > { %v6719_v36 = vmax.f32 %v6717_v8, %v6718_v11  ;;  %v7571_v2 = vsel %vm7396_vm6, %v6705_v58, %v6698_v41  ;;  %v6784_v46 = vrot.slane %v6783_v30, 4  ;;  %v6790_v57 = vsel %vm5347_vm5, %v4884_v60, -inf }
 0x3b5   : > { %v7572_v35 = vsel %vm7398_vm7, %v6712_v54, %v7571_v2  ;;  %v6778_v61 = vmax.f32 %v6776_v52, %v6777_v1  ;;  %v6791_v62 = vrot.slane %v6790_v57, 4  ;;  %v6797_v21 = vsel %vm5347_vm5, %v4886_v7, -inf }
 0x3b6   : > { %v7573_v63 = vsel %vm7400_vm8, %v6719_v36, %v7572_v35  ;;  %v6785_v6 = vmax.f32 %v6783_v30, %v6784_v46  ;;  %v6798_v9 = vrot.slane %v6797_v21, 4  ;;  %v4860_v29 = vrot.slane %v3925_v45, %v10607_v43 }
 0x3b7   : > { %v7574_v38 = vsel %vm7402_vm9, %v11830_v59, %v7573_v63  ;;  %v6779_v13 = vrot.slane %v6778_v61, 2  ;;  %v6792_v14 = vmax.f32 %v6790_v57, %v6791_v62  ;;  %v4867_v5 = vrot.slane %v4853_v42, %v10607_v43 }
 0x3b8   : > { %v7575_v51 = vsel %vm7404_vm10, %v11834_v20, %v7574_v38  ;;  %v6786_v27 = vrot.slane %v6785_v6, 2  ;;  %v6799_v55 = vmax.f32 %v6797_v21, %v6798_v9  ;;  %v4868_v53 = vcombine.high %v4860_v29, %v4860_v29 }
 0x3b9   : > { %v7576_v32 = vsel %vm7406_vm11, %v11839_v26, %v7575_v51  ;;  %v6780_v25 = vmax.f32 %v6778_v61, %v6779_v13  ;;  %v6793_v8 = vrot.slane %v6792_v14, 2  ;;  %v4869_v45 = vcombine.high %v4867_v5, %v4867_v5 }
 0x3ba   : > { %v7577_v59 = vsel %vm7408_vm12, %v11847_v12, %v7576_v32  ;;  %v6787_v41 = vmax.f32 %v6785_v6, %v6786_v27  ;;  %v6800_v31 = vrot.slane %v6799_v55, 2  ;;  %v6748_v60 = vsel %vm5347_vm5, %v4860_v29, -inf }
 0x3bb   : > { %7683 = vst [vmem:[%s10694_s10 + $0xc0] sm:$0xff] %v7577_v59  ;;  %v6781_v50 = vrot.slane %v6780_v25, 1  ;;  %v6794_v58 = vmax.f32 %v6792_v14, %v6793_v8  ;;  %v6749_v20 = vrot.slane %v6748_v60, 4  ;;  %v6755_v11 = vsel %vm5347_vm5, %v4868_v53, -inf }
 0x3bc   : > { %v6788_v52 = vrot.slane %v6787_v41, 1  ;;  %v6801_v42 = vmax.f32 %v6799_v55, %v6800_v31  ;;  %v6756_v54 = vrot.slane %v6755_v11, 4  ;;  %v6762_v26 = vsel %vm5347_vm5, %v4867_v5, -inf }
 0x3bd   : > { %v6782_v7 = vmax.f32 %v6780_v25, %v6781_v50  ;;  %v6795_v1 = vrot.slane %v6794_v58, 1  ;;  %v6750_v30 = vmax.f32 %v6748_v60, %v6749_v20  ;;  %v6763_v36 = vrot.slane %v6762_v26, 4 }
 0x3be   : > { %v6789_v12 = vmax.f32 %v6787_v41, %v6788_v52  ;;  %v6802_v2 = vrot.slane %v6801_v42, 1  ;;  %v6757_v46 = vmax.f32 %v6755_v11, %v6756_v54  ;;  %v6769_v57 = vsel %vm5347_vm5, %v4869_v45, -inf }
 0x3bf   : > { %v6796_v35 = vmax.f32 %v6794_v58, %v6795_v1  ;;  %v6751_v61 = vrot.slane %v6750_v30, 2  ;;  %v6764_v62 = vmax.f32 %v6762_v26, %v6763_v36  ;;  %v6770_v21 = vrot.slane %v6769_v57, 4 }
 0x3c0   : > { %v6803_v63 = vmax.f32 %v6801_v42, %v6802_v2  ;;  %v6758_v6 = vrot.slane %v6757_v46, 2  ;;  %v4904_v9 = vcombine.high %v11878_v10, %v11878_v10  ;;  %v4911_v29 = vrot.slane %v11878_v10, %v10607_v43 }
 0x3c1   : > { %v6752_v38 = vmax.f32 %v6750_v30, %v6751_v61  ;;  %v6765_v13 = vrot.slane %v6764_v62, 2  ;;  %v6771_v14 = vmax.f32 %v6769_v57, %v6770_v21  ;;  %v3863_v5 = vadd.f32 %v11873_v24, %v11868_v33 }
 0x3c2   : > { %v6759_v51 = vmax.f32 %v6757_v46, %v6758_v6  ;;  %v4918_v27 = vrot.slane %v4904_v9, %v10607_v43  ;;  %v4919_v55 = vcombine.high %v4911_v29, %v4911_v29  ;;  %v6832_v53 = vsel %vm5347_vm5, %v4911_v29, -inf }
 0x3c3   : > { %v6753_v32 = vrot.slane %v6752_v38, 1  ;;  %v6766_v25 = vmax.f32 %v6764_v62, %v6765_v13  ;;  %v6772_v8 = vrot.slane %v6771_v14, 2  ;;  %v6833_v45 = vrot.slane %v6832_v53, 4 }
 0x3c4   : > { %v6760_v59 = vrot.slane %v6759_v51, 1  ;;  %v4920_v41 = vcombine.high %v4918_v27, %v4918_v27  ;;  %v6839_v10 = vsel %vm5347_vm5, %v4919_v55, -inf  ;;  %v6846_v31 = vsel %vm5347_vm5, %v4918_v27, -inf }
 0x3c5   : > { %v6754_v60 = vmax.f32 %v6752_v38, %v6753_v32  ;;  %v6767_v50 = vrot.slane %v6766_v25, 1  ;;  %v6773_v58 = vmax.f32 %v6771_v14, %v6772_v8  ;;  %v6834_v33 = vmax.f32 %v6832_v53, %v6833_v45 }
 0x3c6   : > { %v6761_v20 = vmax.f32 %v6759_v51, %v6760_v59  ;;  %v6840_v11 = vrot.slane %v6839_v10, 4  ;;  %v6847_v52 = vrot.slane %v6846_v31, 4  ;;  %v6853_v42 = vsel %vm5347_vm5, %v4920_v41, -inf }
 0x3c7   : > { %v6768_v54 = vmax.f32 %v6766_v25, %v6767_v50  ;;  %v6774_v26 = vrot.slane %v6773_v58, 1  ;;  %v6835_v1 = vrot.slane %v6834_v33, 2  ;;  %v6854_v30 = vrot.slane %v6853_v42, 4 }
 0x3c8   : > { %v7578_v36 = vsel %vm7396_vm6, %v6761_v20, %v6754_v60  ;;  %v6841_v2 = vmax.f32 %v6839_v10, %v6840_v11  ;;  %v6848_v46 = vmax.f32 %v6846_v31, %v6847_v52  ;;  %v3927_v57 = vmax.f32 %v3863_v5, 0.0 }
 0x3c9   : > { %v6775_v61 = vmax.f32 %v6773_v58, %v6774_v26  ;;  %v7579_v62 = vsel %vm7398_vm7, %v6768_v54, %v7578_v36  ;;  %v6836_v21 = vmax.f32 %v6834_v33, %v6835_v1  ;;  %v6855_v6 = vmax.f32 %v6853_v42, %v6854_v30 }
 0x3ca   : > { %v6842_v9 = vrot.slane %v6841_v2, 2  ;;  %v6849_v29 = vrot.slane %v6848_v46, 2  ;;  %v4887_v38 = vcombine.high %v3927_v57, %v3927_v57  ;;  %v4894_v13 = vrot.slane %v3927_v57, %v10607_v43 }
 0x3cb   : > { %v7580_v14 = vsel %vm7400_vm8, %v6775_v61, %v7579_v62  ;;  %v6837_v51 = vrot.slane %v6836_v21, 1  ;;  %v6856_v27 = vrot.slane %v6855_v6, 2  ;;  %v9013_v55 = vadd.f32 %v11621_v3, %v11619_v22 }
 0x3cc   : > { %v7581_v53 = vsel %vm7402_vm9, %v6782_v7, %v7580_v14  ;;  %v6843_v5 = vmax.f32 %v6841_v2, %v6842_v9  ;;  %v6850_v32 = vmax.f32 %v6848_v46, %v6849_v29  ;;  %v4901_v25 = vrot.slane %v4887_v38, %v10607_v43 }
 0x3cd   : > { %v7582_v8 = vsel %vm7404_vm10, %v6789_v12, %v7581_v53  ;;  %v11923_v45 = vmax.f32 %v6836_v21, %v6837_v51  ;;  %v6857_v59 = vmax.f32 %v6855_v6, %v6856_v27  ;;  %v4902_v41 = vcombine.high %v4894_v13, %v4894_v13 }
 0x3ce   : > { %v7583_v10 = vsel %vm7406_vm11, %v6796_v35, %v7582_v8  ;;  %v6844_v31 = vrot.slane %v6843_v5, 1  ;;  %v6851_v60 = vrot.slane %v6850_v32, 1  ;;  %v4903_v50 = vcombine.high %v4901_v25, %v4901_v25 }
 0x3cf   : > { %v7584_v22 = vsel %vm7408_vm12, %v6803_v63, %v7583_v10  ;;  %v6858_v3 = vrot.slane %v6857_v59, 1  ;;  %v6804_v7 = vsel %vm5347_vm5, %v4894_v13, -inf  ;;  %v6811_v58 = vsel %vm5347_vm5, %v4902_v41, -inf }
 0x3d0   : > { %7684 = vst [vmem:[%s10694_s10 + $0xc8] sm:$0xff] %v7584_v22  ;;  %v11930_v33 = vmax.f32 %v6843_v5, %v6844_v31  ;;  %v11932_v12 = vmax.f32 %v6850_v32, %v6851_v60  ;;  %v6805_v20 = vrot.slane %v6804_v7, 4  ;;  %v6812_v11 = vrot.slane %v6811_v58, 4 }
 0x3d1   : > { %v11934_v52 = vmax.f32 %v6857_v59, %v6858_v3  ;;  %v6818_v35 = vsel %vm5347_vm5, %v4901_v25, -inf  ;;  %v6825_v42 = vsel %vm5347_vm5, %v4903_v50, -inf  ;;  %v3795_v63 = vmul.f32 %v11863_v18, %v9013_v55 }
 0x3d2   : > { %v6806_v54 = vmax.f32 %v6804_v7, %v6805_v20  ;;  %v6813_v26 = vmax.f32 %v6811_v58, %v6812_v11  ;;  %v6819_v1 = vrot.slane %v6818_v35, 4  ;;  %v6826_v30 = vrot.slane %v6825_v42, 4 }
 0x3d3   : > { %v3866_v36 = vadd.f32 %v11873_v24, %v3795_v63  ;;  %v9014_v2 = vadd.f32 %v11643_v40, %v11641_v23  ;;  %v9015_v46 = vadd.f32 %v11662_v48, %v11660_v19  ;;  %v9016_v57 = vadd.f32 %v11680_v56, %v11678_v28 }
 0x3d4   : > { %v6807_v61 = vrot.slane %v6806_v54, 2  ;;  %v6814_v62 = vrot.slane %v6813_v26, 2  ;;  %v6820_v21 = vmax.f32 %v6818_v35, %v6819_v1  ;;  %v6827_v6 = vmax.f32 %v6825_v42, %v6826_v30 }
 0x3d5   : > { %v3930_v9 = vmax.f32 %v3866_v36, 0.0  ;;  %v3794_v29 = vmul.f32 %v11863_v18, %v9014_v2  ;;  %v3797_v38 = vmul.f32 %v11863_v18, %v9015_v46  ;;  %v11949_v13 = vmul.f32 %v11863_v18, %v9016_v57 }
 0x3d6   : > { %v6808_v14 = vmax.f32 %v6806_v54, %v6807_v61  ;;  %v6815_v23 = vmax.f32 %v6813_v26, %v6814_v62  ;;  %v6821_v40 = vrot.slane %v6820_v21, 2  ;;  %v6828_v51 = vrot.slane %v6827_v6, 2 }
 0x3d7   : > { %v4938_v19 = vcombine.high %v3930_v9, %v3930_v9  ;;  %v4945_v48 = vrot.slane %v3930_v9, %v10607_v43  ;;  %v3865_v28 = vadd.f32 %v11873_v24, %v3794_v29  ;;  %v11954_v56 = vadd.f32 %v11873_v24, %v3797_v38 }
 0x3d8   : > { %v6809_v27 = vrot.slane %v6808_v14, 1  ;;  %v6816_v55 = vrot.slane %v6815_v23, 1  ;;  %v6822_v53 = vmax.f32 %v6820_v21, %v6821_v40  ;;  %v6829_v5 = vmax.f32 %v6827_v6, %v6828_v51 }
 0x3d9   : > { %v4952_v32 = vrot.slane %v4938_v19, %v10607_v43  ;;  %v4953_v25 = vcombine.high %v4945_v48, %v4945_v48  ;;  %v6888_v8 = vsel %vm5347_vm5, %v4945_v48, -inf  ;;  %v3929_v59 = vmax.f32 %v3865_v28, 0.0 }
 0x3da   : > { %v6810_v41 = vmax.f32 %v6808_v14, %v6809_v27  ;;  %v6817_v10 = vmax.f32 %v6815_v23, %v6816_v55  ;;  %v6823_v31 = vrot.slane %v6822_v53, 1  ;;  %v6830_v60 = vrot.slane %v6829_v5, 1 }
 0x3db   : > { %v4954_v50 = vcombine.high %v4952_v32, %v4952_v32  ;;  %v6889_v22 = vrot.slane %v6888_v8, 4  ;;  %v6895_v3 = vsel %vm5347_vm5, %v4953_v25, -inf  ;;  %v6902_v7 = vsel %vm5347_vm5, %v4952_v32, -inf }
 0x3dc   : > { %v6824_v58 = vmax.f32 %v6822_v53, %v6823_v31  ;;  %v6831_v20 = vmax.f32 %v6829_v5, %v6830_v60  ;;  %v7585_v11 = vsel %vm7396_vm6, %v6817_v10, %v6810_v41  ;;  %v6896_v35 = vrot.slane %v6895_v3, 4 }
 0x3dd   : > { %v6890_v42 = vmax.f32 %v6888_v8, %v6889_v22  ;;  %v6903_v63 = vrot.slane %v6902_v7, 4  ;;  %v6909_v54 = vsel %vm5347_vm5, %v4954_v50, -inf  ;;  %v4921_v26 = vcombine.high %v3929_v59, %v3929_v59 }
 0x3de   : > { %v7586_v1 = vsel %vm7398_vm7, %v6824_v58, %v7585_v11  ;;  %v6897_v30 = vmax.f32 %v6895_v3, %v6896_v35  ;;  %v6910_v36 = vrot.slane %v6909_v54, 4  ;;  %v4928_v2 = vrot.slane %v3929_v59, %v10607_v43 }
 0x3df   : > { %v7587_v46 = vsel %vm7400_vm8, %v6831_v20, %v7586_v1  ;;  %v6891_v57 = vrot.slane %v6890_v42, 2  ;;  %v6904_v61 = vmax.f32 %v6902_v7, %v6903_v63  ;;  %v4935_v62 = vrot.slane %v4921_v26, %v10607_v43 }
 0x3e0   : > { %v7588_v21 = vsel %vm7402_vm9, %v11923_v45, %v7587_v46  ;;  %v6898_v6 = vrot.slane %v6897_v30, 2  ;;  %v6911_v9 = vmax.f32 %v6909_v54, %v6910_v36  ;;  %v4936_v29 = vcombine.high %v4928_v2, %v4928_v2 }
 0x3e1   : > { %v7589_v38 = vsel %vm7404_vm10, %v11930_v33, %v7588_v21  ;;  %v6892_v14 = vmax.f32 %v6890_v42, %v6891_v57  ;;  %v6905_v23 = vrot.slane %v6904_v61, 2  ;;  %v4937_v40 = vcombine.high %v4935_v62, %v4935_v62 }
 0x3e2   : > { %v7590_v51 = vsel %vm7406_vm11, %v11932_v12, %v7589_v38  ;;  %v6899_v19 = vmax.f32 %v6897_v30, %v6898_v6  ;;  %v6912_v48 = vrot.slane %v6911_v9, 2  ;;  %v6860_v28 = vsel %vm5347_vm5, %v4928_v2, -inf }
 0x3e3   : > { %v7591_v45 = vsel %vm7408_vm12, %v11934_v52, %v7590_v51  ;;  %v6893_v27 = vrot.slane %v6892_v14, 1  ;;  %v6906_v55 = vmax.f32 %v6904_v61, %v6905_v23  ;;  %v6861_v53 = vrot.slane %v6860_v28, 4 }
 0x3e4   : > { %7685 = vst [vmem:[%s10694_s10 + $0xd0] sm:$0xff] %v7591_v45  ;;  %v6900_v5 = vrot.slane %v6899_v19, 1  ;;  %v6913_v32 = vmax.f32 %v6911_v9, %v6912_v48  ;;  %v6867_v33 = vsel %vm5347_vm5, %v4936_v29, -inf  ;;  %v6874_v25 = vsel %vm5347_vm5, %v4935_v62, -inf }
 0x3e5   : > { %v6894_v8 = vmax.f32 %v6892_v14, %v6893_v27  ;;  %v6907_v59 = vrot.slane %v6906_v55, 1  ;;  %v6862_v12 = vmax.f32 %v6860_v28, %v6861_v53  ;;  %v6868_v41 = vrot.slane %v6867_v33, 4 }
 0x3e6   : > { %v6901_v10 = vmax.f32 %v6899_v19, %v6900_v5  ;;  %v6914_v31 = vrot.slane %v6913_v32, 1  ;;  %v6875_v60 = vrot.slane %v6874_v25, 4  ;;  %v6881_v50 = vsel %vm5347_vm5, %v4937_v40, -inf }
 0x3e7   : > { %v6908_v52 = vmax.f32 %v6906_v55, %v6907_v59  ;;  %v6863_v22 = vrot.slane %v6862_v12, 2  ;;  %v6869_v3 = vmax.f32 %v6867_v33, %v6868_v41  ;;  %v6882_v7 = vrot.slane %v6881_v50, 4 }
 0x3e8   : > { %v6915_v58 = vmax.f32 %v6913_v32, %v6914_v31  ;;  %v6876_v20 = vmax.f32 %v6874_v25, %v6875_v60  ;;  %v3932_v11 = vmax.f32 %v11954_v56, 0.0  ;;  %v3867_v35 = vadd.f32 %v11873_v24, %v11949_v13 }
 0x3e9   : > { %v6864_v42 = vmax.f32 %v6862_v12, %v6863_v22  ;;  %v6870_v63 = vrot.slane %v6869_v3, 2  ;;  %v6883_v54 = vmax.f32 %v6881_v50, %v6882_v7  ;;  %v9017_v26 = vadd.f32 %v11711_v47, %v11709_v4 }
 0x3ea   : > { %v6877_v1 = vrot.slane %v6876_v20, 2  ;;  %v4972_v30 = vcombine.high %v3932_v11, %v3932_v11  ;;  %v4979_v36 = vrot.slane %v3932_v11, %v10607_v43  ;;  %v3931_v2 = vmax.f32 %v3867_v35, 0.0 }
 0x3eb   : > { %v6865_v46 = vrot.slane %v6864_v42, 1  ;;  %v6871_v57 = vmax.f32 %v6869_v3, %v6870_v63  ;;  %v6884_v61 = vrot.slane %v6883_v54, 2  ;;  %v3799_v62 = vmul.f32 %v11863_v18, %v9017_v26 }
 0x3ec   : > { %v6878_v56 = vmax.f32 %v6876_v20, %v6877_v1  ;;  %v4986_v21 = vrot.slane %v4972_v30, %v10607_v43  ;;  %v4987_v13 = vcombine.high %v4979_v36, %v4979_v36  ;;  %v6944_v6 = vsel %vm5347_vm5, %v4979_v36, -inf }
 0x3ed   : > { %v6866_v9 = vmax.f32 %v6864_v42, %v6865_v46  ;;  %v6872_v29 = vrot.slane %v6871_v57, 1  ;;  %v6885_v38 = vmax.f32 %v6883_v54, %v6884_v61  ;;  %v6945_v4 = vrot.slane %v6944_v6, 4 }
 0x3ee   : > { %v6879_v47 = vrot.slane %v6878_v56, 1  ;;  %v4988_v14 = vcombine.high %v4986_v21, %v4986_v21  ;;  %v6951_v23 = vsel %vm5347_vm5, %v4987_v13, -inf  ;;  %v6958_v40 = vsel %vm5347_vm5, %v4986_v21, -inf }
 0x3ef   : > { %v6873_v51 = vmax.f32 %v6871_v57, %v6872_v29  ;;  %v6886_v19 = vrot.slane %v6885_v38, 1  ;;  %v6946_v48 = vmax.f32 %v6944_v6, %v6945_v4  ;;  %v6952_v28 = vrot.slane %v6951_v23, 4 }
 0x3f0   : > { %v6880_v45 = vmax.f32 %v6878_v56, %v6879_v47  ;;  %v6959_v27 = vrot.slane %v6958_v40, 4  ;;  %v6965_v55 = vsel %vm5347_vm5, %v4988_v14, -inf  ;;  %v4955_v53 = vcombine.high %v3931_v2, %v3931_v2 }
 0x3f1   : > { %v6887_v5 = vmax.f32 %v6885_v38, %v6886_v19  ;;  %v7592_v32 = vsel %vm7396_vm6, %v6873_v51, %v6866_v9  ;;  %v6947_v33 = vrot.slane %v6946_v48, 2  ;;  %v6953_v25 = vmax.f32 %v6951_v23, %v6952_v28 }
 0x3f2   : > { %v7593_v59 = vsel %vm7398_vm7, %v6880_v45, %v7592_v32  ;;  %v6960_v12 = vmax.f32 %v6958_v40, %v6959_v27  ;;  %v6966_v41 = vrot.slane %v6965_v55, 4  ;;  %v4962_v31 = vrot.slane %v3931_v2, %v10607_v43 }
 0x3f3   : > { %v7594_v60 = vsel %vm7400_vm8, %v6887_v5, %v7593_v59  ;;  %v6948_v50 = vmax.f32 %v6946_v48, %v6947_v33  ;;  %v6954_v22 = vrot.slane %v6953_v25, 2  ;;  %v4969_v3 = vrot.slane %v4955_v53, %v10607_v43 }
 0x3f4   : > { %v7595_v7 = vsel %vm7402_vm9, %v6894_v8, %v7594_v60  ;;  %v6961_v20 = vrot.slane %v6960_v12, 2  ;;  %v6967_v11 = vmax.f32 %v6965_v55, %v6966_v41  ;;  %v4970_v35 = vcombine.high %v4962_v31, %v4962_v31 }
 0x3f5   : > { %v7596_v42 = vsel %vm7404_vm10, %v6901_v10, %v7595_v7  ;;  %v6949_v63 = vrot.slane %v6948_v50, 1  ;;  %v6955_v54 = vmax.f32 %v6953_v25, %v6954_v22  ;;  %v4971_v26 = vcombine.high %v4969_v3, %v4969_v3 }
 0x3f6   : > { %v7597_v1 = vsel %vm7406_vm11, %v6908_v52, %v7596_v42  ;;  %v6962_v30 = vmax.f32 %v6960_v12, %v6961_v20  ;;  %v6968_v36 = vrot.slane %v6967_v11, 2  ;;  %v6916_v2 = vsel %vm5347_vm5, %v4962_v31, -inf }
 0x3f7   : > { %v7598_v46 = vsel %vm7408_vm12, %v6915_v58, %v7597_v1  ;;  %v6956_v57 = vrot.slane %v6955_v54, 1  ;;  %v6917_v61 = vrot.slane %v6916_v2, 4  ;;  %v6923_v21 = vsel %vm5347_vm5, %v4970_v35, -inf }
 0x3f8   : > { %7686 = vst [vmem:[%s10694_s10 + $0xd8] sm:$0xff] %v7598_v46  ;;  %v6963_v8 = vrot.slane %v6962_v30, 1  ;;  %v6969_v56 = vmax.f32 %v6967_v11, %v6968_v36  ;;  %v6930_v10 = vsel %vm5347_vm5, %v4969_v3, -inf  ;;  %v6950_v13 = vmax.f32 %v6948_v50, %v6949_v63 }
 0x3f9   : > { %v6918_v6 = vmax.f32 %v6916_v2, %v6917_v61  ;;  %v6924_v9 = vrot.slane %v6923_v21, 4  ;;  %v6931_v29 = vrot.slane %v6930_v10, 4  ;;  %v6957_v52 = vmax.f32 %v6955_v54, %v6956_v57 }
 0x3fa   : > { %v6970_v38 = vrot.slane %v6969_v56, 1  ;;  %v6937_v4 = vsel %vm5347_vm5, %v4971_v26, -inf  ;;  %v3870_v47 = vadd.f32 %v11873_v24, %v3799_v62  ;;  %v6964_v51 = vmax.f32 %v6962_v30, %v6963_v8 }
 0x3fb   : > { %v6919_v58 = vrot.slane %v6918_v6, 2  ;;  %v6925_v14 = vmax.f32 %v6923_v21, %v6924_v9  ;;  %v6932_v23 = vmax.f32 %v6930_v10, %v6931_v29  ;;  %v6938_v40 = vrot.slane %v6937_v4, 4 }
 0x3fc   : > { %v3934_v19 = vmax.f32 %v3870_v47, 0.0  ;;  %v9018_v48 = vadd.f32 %v11730_v0, %v11728_v34  ;;  %v9019_v28 = vadd.f32 %v11764_v39, %v11762_v16  ;;  %v6971_v5 = vmax.f32 %v6969_v56, %v6970_v38 }
 0x3fd   : > { %v6920_v45 = vmax.f32 %v6918_v6, %v6919_v58  ;;  %v6926_v27 = vrot.slane %v6925_v14, 2  ;;  %v6933_v55 = vrot.slane %v6932_v23, 2  ;;  %v6939_v53 = vmax.f32 %v6937_v4, %v6938_v40 }
 0x3fe   : > { %v5006_v32 = vcombine.high %v3934_v19, %v3934_v19  ;;  %v5013_v62 = vrot.slane %v3934_v19, %v10607_v43  ;;  %v3798_v33 = vmul.f32 %v11863_v18, %v9018_v48 }
 0x3ff   : > { %v6921_v25 = vrot.slane %v6920_v45, 1  ;;  %v6927_v59 = vmax.f32 %v6925_v14, %v6926_v27  ;;  %v6934_v12 = vmax.f32 %v6932_v23, %v6933_v55  ;;  %v6940_v41 = vrot.slane %v6939_v53, 2 }
 0x400   : > { %v5020_v31 = vrot.slane %v5006_v32, %v10607_v43  ;;  %v5021_v34 = vcombine.high %v5013_v62, %v5013_v62  ;;  %v7000_v0 = vsel %vm5347_vm5, %v5013_v62, -inf  ;;  %v3869_v16 = vadd.f32 %v11873_v24, %v3798_v33 }
 0x401   : > { %v6922_v39 = vmax.f32 %v6920_v45, %v6921_v25  ;;  %v6928_v60 = vrot.slane %v6927_v59, 1  ;;  %v6935_v50 = vrot.slane %v6934_v12, 1  ;;  %v6941_v22 = vmax.f32 %v6939_v53, %v6940_v41 }
 0x402   : > { %v5022_v3 = vcombine.high %v5020_v31, %v5020_v31  ;;  %v7001_v7 = vrot.slane %v7000_v0, 4  ;;  %v7007_v20 = vsel %vm5347_vm5, %v5021_v34, -inf  ;;  %v7014_v11 = vsel %vm5347_vm5, %v5020_v31, -inf }
 0x403   : > { %v6929_v35 = vmax.f32 %v6927_v59, %v6928_v60  ;;  %v6936_v42 = vmax.f32 %v6934_v12, %v6935_v50  ;;  %v6942_v63 = vrot.slane %v6941_v22, 1  ;;  %v7008_v54 = vrot.slane %v7007_v20, 4 }
 0x404   : > { %v7002_v26 = vmax.f32 %v7000_v0, %v7001_v7  ;;  %v7015_v1 = vrot.slane %v7014_v11, 4  ;;  %v7021_v30 = vsel %vm5347_vm5, %v5022_v3, -inf  ;;  %v3933_v36 = vmax.f32 %v3869_v16, 0.0  ;;  %v12198_v7 = vld [vmem:[#allocation10_spill] sm:$0xff] }
 0x405   : > { %v6943_v2 = vmax.f32 %v6941_v22, %v6942_v63  ;;  %v7599_v46 = vsel %vm7396_vm6, %v6929_v35, %v6922_v39  ;;  %v7009_v57 = vmax.f32 %v7007_v20, %v7008_v54  ;;  %v7022_v61 = vrot.slane %v7021_v30, 4 }
 0x406   : > { %v7600_v8 = vsel %vm7398_vm7, %v6936_v42, %v7599_v46  ;;  %v7003_v56 = vrot.slane %v7002_v26, 2  ;;  %v7016_v21 = vmax.f32 %v7014_v11, %v7015_v1  ;;  %v4989_v10 = vcombine.high %v3933_v36, %v3933_v36 }
 0x407   : > { %v7601_v6 = vsel %vm7400_vm8, %v6943_v2, %v7600_v8  ;;  %v7010_v9 = vrot.slane %v7009_v57, 2  ;;  %v7023_v29 = vmax.f32 %v7021_v30, %v7022_v61  ;;  %v4996_v38 = vrot.slane %v3933_v36, %v10607_v43 }
 0x408   : > { %v7602_v4 = vsel %vm7402_vm9, %v6950_v13, %v7601_v6  ;;  %v7004_v47 = vmax.f32 %v7002_v26, %v7003_v56  ;;  %v7017_v58 = vrot.slane %v7016_v21, 2  ;;  %v5003_v14 = vrot.slane %v4989_v10, %v10607_v43 }
 0x409   : > { %v7603_v23 = vsel %vm7404_vm10, %v6957_v52, %v7602_v4  ;;  %v7011_v40 = vmax.f32 %v7009_v57, %v7010_v9  ;;  %v7024_v19 = vrot.slane %v7023_v29, 2  ;;  %v5004_v48 = vcombine.high %v4996_v38, %v4996_v38 }
 0x40a   : > { %v7604_v45 = vsel %vm7406_vm11, %v6964_v51, %v7603_v23  ;;  %v7005_v27 = vrot.slane %v7004_v47, 1  ;;  %v7018_v55 = vmax.f32 %v7016_v21, %v7017_v58  ;;  %v5005_v53 = vcombine.high %v5003_v14, %v5003_v14 }
 0x40b   : > { %v7605_v32 = vsel %vm7408_vm12, %v6971_v5, %v7604_v45  ;;  %v7012_v62 = vrot.slane %v7011_v40, 1  ;;  %v6972_v13 = vsel %vm5347_vm5, %v4996_v38, -inf  ;;  %v3801_v33 = vmul.f32 %v11863_v18, %v9019_v28 }
 0x40c   : > { %7687 = vst [vmem:[%s10694_s10 + $0xe0] sm:$0xff] %v7605_v32  ;;  %v6973_v25 = vrot.slane %v6972_v13, 4  ;;  %v6979_v59 = vsel %vm5347_vm5, %v5004_v48, -inf  ;;  %v7006_v52 = vmax.f32 %v7004_v47, %v7005_v27  ;;  %v12031_v12 = vmax.f32 %v7023_v29, %v7024_v19 }
 0x40d   : > { %v6980_v41 = vrot.slane %v6979_v59, 4  ;;  %v6986_v51 = vsel %vm5347_vm5, %v5003_v14, -inf  ;;  %v7019_v31 = vrot.slane %v7018_v55, 1  ;;  %v6993_v5 = vsel %vm5347_vm5, %v5005_v53, -inf }
 0x40e   : > { %v6974_v34 = vmax.f32 %v6972_v13, %v6973_v25  ;;  %v6987_v0 = vrot.slane %v6986_v51, 4  ;;  %v7013_v16 = vmax.f32 %v7011_v40, %v7012_v62  ;;  %v6994_v60 = vrot.slane %v6993_v5, 4 }
 0x40f   : > { %v6981_v39 = vmax.f32 %v6979_v59, %v6980_v41  ;;  %v3872_v28 = vadd.f32 %v11873_v24, %v3801_v33  ;;  %v9020_v3 = vadd.f32 %v11779_v49, %v11777_v15  ;;  %v9021_v20 = vadd.f32 %v12198_v7, %v11811_v37 }
 0x410   : > { %v6975_v50 = vrot.slane %v6974_v34, 2  ;;  %v6988_v22 = vmax.f32 %v6986_v51, %v6987_v0  ;;  %v6995_v35 = vmax.f32 %v6993_v5, %v6994_v60  ;;  %v12042_v63 = vadd.f32 %v11822_v17, %v11820_v44 }
 0x411   : > { %v6982_v11 = vrot.slane %v6981_v39, 2  ;;  %v3936_v42 = vmax.f32 %v3872_v28, 0.0  ;;  %v7026_v54 = vrot.slane %v12031_v12, 1  ;;  %v3800_v30 = vmul.f32 %v11863_v18, %v9020_v3 }
 0x412   : > { %v6976_v26 = vmax.f32 %v6974_v34, %v6975_v50  ;;  %v6989_v1 = vrot.slane %v6988_v22, 2  ;;  %v6996_v2 = vrot.slane %v6995_v35, 2  ;;  %v7020_v49 = vmax.f32 %v7018_v55, %v7019_v31 }
 0x413   : > { %v6983_v36 = vmax.f32 %v6981_v39, %v6982_v11  ;;  %v5040_v46 = vcombine.high %v3936_v42, %v3936_v42  ;;  %v5047_v15 = vrot.slane %v3936_v42, %v10607_v43  ;;  %v3871_v61 = vadd.f32 %v11873_v24, %v3800_v30 }
 0x414   : > { %v6977_v37 = vrot.slane %v6976_v26, 1  ;;  %v6990_v57 = vmax.f32 %v6988_v22, %v6989_v1  ;;  %v6997_v56 = vmax.f32 %v6995_v35, %v6996_v2  ;;  %v3803_v59 = vmul.f32 %v11863_v18, %v9021_v20 }
 0x415   : > { %v6984_v8 = vrot.slane %v6983_v36, 1  ;;  %v5054_v44 = vrot.slane %v5040_v46, %v10607_v43  ;;  %v5055_v17 = vcombine.high %v5047_v15, %v5047_v15  ;;  %v7056_v6 = vsel %vm5347_vm5, %v5047_v15, -inf }
 0x416   : > { %v6978_v21 = vmax.f32 %v6976_v26, %v6977_v37  ;;  %v6991_v10 = vrot.slane %v6990_v57, 1  ;;  %v3935_v9 = vmax.f32 %v3871_v61, 0.0  ;;  %v6998_v38 = vrot.slane %v6997_v56, 1 }
 0x417   : > { %v6985_v29 = vmax.f32 %v6983_v36, %v6984_v8  ;;  %v5056_v4 = vcombine.high %v5054_v44, %v5054_v44  ;;  %v7057_v47 = vrot.slane %v7056_v6, 4  ;;  %v7063_v14 = vsel %vm5347_vm5, %v5055_v17, -inf }
 0x418   : > { %v6992_v58 = vmax.f32 %v6990_v57, %v6991_v10  ;;  %v7070_v23 = vsel %vm5347_vm5, %v5054_v44, -inf  ;;  %v5023_v40 = vcombine.high %v3935_v9, %v3935_v9  ;;  %v6999_v19 = vmax.f32 %v6997_v56, %v6998_v38 }
 0x419   : > { %v7606_v48 = vsel %vm7396_vm6, %v6985_v29, %v6978_v21  ;;  %v7058_v45 = vmax.f32 %v7056_v6, %v7057_v47  ;;  %v7064_v27 = vrot.slane %v7063_v14, 4  ;;  %v7071_v53 = vrot.slane %v7070_v23, 4 }
 0x41a   : > { %v7607_v55 = vsel %vm7398_vm7, %v6992_v58, %v7606_v48  ;;  %v7077_v32 = vsel %vm5347_vm5, %v5056_v4, -inf  ;;  %v5030_v62 = vrot.slane %v3935_v9, %v10607_v43  ;;  %v5037_v31 = vrot.slane %v5023_v40, %v10607_v43 }
 0x41b   : > { %v7608_v13 = vsel %vm7400_vm8, %v6999_v19, %v7607_v55  ;;  %v7059_v33 = vrot.slane %v7058_v45, 2  ;;  %v7078_v25 = vrot.slane %v7077_v32, 4  ;;  %v7065_v51 = vmax.f32 %v7063_v14, %v7064_v27 }
 0x41c   : > { %v7609_v41 = vsel %vm7402_vm9, %v7006_v52, %v7608_v13  ;;  %v5038_v34 = vcombine.high %v5030_v62, %v5030_v62  ;;  %v7027_v0 = vmax.f32 %v12031_v12, %v7026_v54  ;;  %v7072_v39 = vmax.f32 %v7070_v23, %v7071_v53 }
 0x41d   : > { %v7610_v5 = vsel %vm7404_vm10, %v7013_v16, %v7609_v41  ;;  %v5039_v28 = vcombine.high %v5037_v31, %v5037_v31  ;;  %v7028_v50 = vsel %vm5347_vm5, %v5030_v62, -inf  ;;  %v7060_v3 = vmax.f32 %v7058_v45, %v7059_v33 }
 0x41e   : > { %v7611_v60 = vsel %vm7406_vm11, %v7020_v49, %v7610_v5  ;;  %v7079_v7 = vmax.f32 %v7077_v32, %v7078_v25  ;;  %v3874_v52 = vadd.f32 %v11873_v24, %v3803_v59  ;;  %v7066_v20 = vrot.slane %v7065_v51, 2 }
 0x41f   : > { %v7612_v22 = vsel %vm7408_vm12, %v7027_v0, %v7611_v60  ;;  %v7029_v11 = vrot.slane %v7028_v50, 4  ;;  %v7035_v35 = vsel %vm5347_vm5, %v5038_v34, -inf  ;;  %v7042_v12 = vsel %vm5347_vm5, %v5037_v31, -inf }
 0x420   : > { %7688 = vst [vmem:[%s10694_s10 + $0xe8] sm:$0xff] %v7612_v22  ;;  %v7073_v16 = vrot.slane %v7072_v39, 2  ;;  %v7036_v42 = vrot.slane %v7035_v35, 4  ;;  %v7043_v26 = vrot.slane %v7042_v12, 4  ;;  %v7049_v1 = vsel %vm5347_vm5, %v5039_v28, -inf }
 0x421   : > { %v7030_v54 = vmax.f32 %v7028_v50, %v7029_v11  ;;  %v7061_v30 = vrot.slane %v7060_v3, 1  ;;  %v7080_v36 = vrot.slane %v7079_v7, 2  ;;  %v7050_v46 = vrot.slane %v7049_v1, 4 }
 0x422   : > { %v7037_v2 = vmax.f32 %v7035_v35, %v7036_v42  ;;  %v7067_v15 = vmax.f32 %v7065_v51, %v7066_v20  ;;  %v7044_v37 = vmax.f32 %v7042_v12, %v7043_v26  ;;  %v3938_v57 = vmax.f32 %v3874_v52, 0.0 }
 0x423   : > { %v7031_v49 = vrot.slane %v7030_v54, 2  ;;  %v7074_v61 = vmax.f32 %v7072_v39, %v7073_v16  ;;  %v7051_v56 = vmax.f32 %v7049_v1, %v7050_v46  ;;  %v3802_v44 = vmul.f32 %v11863_v18, %v12042_v63 }
 0x424   : > { %v7038_v8 = vrot.slane %v7037_v2, 2  ;;  %v7045_v21 = vrot.slane %v7044_v37, 2  ;;  %v5074_v10 = vcombine.high %v3938_v57, %v3938_v57  ;;  %v5081_v6 = vrot.slane %v3938_v57, %v10607_v43 }
 0x425   : > { %v7032_v17 = vmax.f32 %v7030_v54, %v7031_v49  ;;  %v7081_v9 = vmax.f32 %v7079_v7, %v7080_v36  ;;  %v7052_v38 = vrot.slane %v7051_v56, 2  ;;  %v3873_v4 = vadd.f32 %v11873_v24, %v3802_v44 }
 0x426   : > { %v7039_v29 = vmax.f32 %v7037_v2, %v7038_v8  ;;  %v7046_v58 = vmax.f32 %v7044_v37, %v7045_v21  ;;  %v5088_v14 = vrot.slane %v5074_v10, %v10607_v43  ;;  %v5089_v23 = vcombine.high %v5081_v6, %v5081_v6 }
 0x427   : > { %v7033_v47 = vrot.slane %v7032_v17, 1  ;;  %v7053_v19 = vmax.f32 %v7051_v56, %v7052_v38  ;;  %v3937_v48 = vmax.f32 %v3873_v4, 0.0  ;;  %v7062_v45 = vmax.f32 %v7060_v3, %v7061_v30 }
 0x428   : > { %v7040_v40 = vrot.slane %v7039_v29, 1  ;;  %v7068_v18 = vrot.slane %v7067_v15, 1  ;;  %v7047_v63 = vrot.slane %v7046_v58, 1  ;;  %v5090_v27 = vcombine.high %v5088_v14, %v5088_v14 }
 0x429   : > { %v7034_v55 = vmax.f32 %v7032_v17, %v7033_v47  ;;  %v7054_v32 = vrot.slane %v7053_v19, 1  ;;  %v7112_v62 = vsel %vm5347_vm5, %v5081_v6, -inf  ;;  %v7075_v13 = vrot.slane %v7074_v61, 1 }
 0x42a   : > { %v7041_v53 = vmax.f32 %v7039_v29, %v7040_v40  ;;  %v7082_v33 = vrot.slane %v7081_v9, 1  ;;  %v7048_v24 = vmax.f32 %v7046_v58, %v7047_v63  ;;  %v7119_v25 = vsel %vm5347_vm5, %v5089_v23, -inf }
 0x42b   : > { %v7055_v59 = vmax.f32 %v7053_v19, %v7054_v32  ;;  %v7126_v51 = vsel %vm5347_vm5, %v5088_v14, -inf  ;;  %v5057_v31 = vcombine.high %v3937_v48, %v3937_v48  ;;  %v7069_v34 = vmax.f32 %v7067_v15, %v7068_v18 }
 0x42c   : > { %v7613_v41 = vsel %vm7396_vm6, %v7041_v53, %v7034_v55  ;;  %v7113_v5 = vrot.slane %v7112_v62, 4  ;;  %v7133_v39 = vsel %vm5347_vm5, %v5090_v27, -inf  ;;  %v7120_v28 = vrot.slane %v7119_v25, 4 }
 0x42d   : > { %v7614_v0 = vsel %vm7398_vm7, %v7048_v24, %v7613_v41  ;;  %v5064_v50 = vrot.slane %v3937_v48, %v10607_v43  ;;  %v5071_v22 = vrot.slane %v5057_v31, %v10607_v43  ;;  %v7076_v3 = vmax.f32 %v7074_v61, %v7075_v13 }
 0x42e   : > { %v7615_v60 = vsel %vm7400_vm8, %v7055_v59, %v7614_v0  ;;  %v7083_v7 = vmax.f32 %v7081_v9, %v7082_v33  ;;  %v7127_v20 = vrot.slane %v7126_v51, 4  ;;  %v7134_v35 = vrot.slane %v7133_v39, 4 }
 0x42f   : > { %v7616_v52 = vsel %vm7402_vm9, %v7062_v45, %v7615_v60  ;;  %v5072_v12 = vcombine.high %v5064_v50, %v5064_v50  ;;  %v5073_v16 = vcombine.high %v5071_v22, %v5071_v22  ;;  %v7114_v54 = vmax.f32 %v7112_v62, %v7113_v5 }
 0x430   : > { %v7617_v11 = vsel %vm7404_vm10, %v7069_v34, %v7616_v52  ;;  %v7121_v1 = vmax.f32 %v7119_v25, %v7120_v28  ;;  %v7084_v30 = vsel %vm5347_vm5, %v5064_v50, -inf  ;;  %v7128_v36 = vmax.f32 %v7126_v51, %v7127_v20 }
 0x431   : > { %v7618_v42 = vsel %vm7406_vm11, %v7076_v3, %v7617_v11  ;;  %v7091_v43 = vsel %vm5347_vm5, %v5072_v12, -inf  ;;  %v7085_v2 = vrot.slane %v7084_v30, 4  ;;  %v7135_v46 = vmax.f32 %v7133_v39, %v7134_v35 }
 0x432   : > { %v7619_v26 = vsel %vm7408_vm12, %v7083_v7, %v7618_v42  ;;  %v7092_v15 = vrot.slane %v7091_v43, 4  ;;  %v7098_v49 = vsel %vm5347_vm5, %v5071_v22, -inf  ;;  %v7105_v37 = vsel %vm5347_vm5, %v5073_v16, -inf }
 0x433   : > { %7689 = vst [vmem:[%s10694_s10 + $0xf0] sm:$0xff] %v7619_v26  ;;  %v7115_v57 = vrot.slane %v7114_v54, 2  ;;  %v7086_v61 = vmax.f32 %v7084_v30, %v7085_v2  ;;  %v7099_v8 = vrot.slane %v7098_v49, 4  ;;  %v7122_v56 = vrot.slane %v7121_v1, 2 }
 0x434   : > { %v7093_v44 = vmax.f32 %v7091_v43, %v7092_v15  ;;  %v7106_v17 = vrot.slane %v7105_v37, 4  ;;  %v7129_v21 = vrot.slane %v7128_v36, 2  ;;  %v7136_v9 = vrot.slane %v7135_v46, 2 }
 0x435   : > { %v7087_v10 = vrot.slane %v7086_v61, 2  ;;  %v7100_v6 = vmax.f32 %v7098_v49, %v7099_v8  ;;  %v7116_v4 = vmax.f32 %v7114_v54, %v7115_v57  ;;  %v7123_v14 = vmax.f32 %v7121_v1, %v7122_v56 }
 0x436   : > { %v7094_v29 = vrot.slane %v7093_v44, 2  ;;  %v7107_v38 = vmax.f32 %v7105_v37, %v7106_v17  ;;  %v7130_v19 = vmax.f32 %v7128_v36, %v7129_v21  ;;  %v7137_v18 = vmax.f32 %v7135_v46, %v7136_v9 }
 0x437   : > { %v7088_v47 = vmax.f32 %v7086_v61, %v7087_v10  ;;  %v7101_v58 = vrot.slane %v7100_v6, 2  ;;  %v7117_v55 = vrot.slane %v7116_v4, 1  ;;  %v7124_v32 = vrot.slane %v7123_v14, 1 }
 0x438   : > { %v7095_v23 = vmax.f32 %v7093_v44, %v7094_v29  ;;  %v7108_v40 = vrot.slane %v7107_v38, 2  ;;  %v7131_v24 = vrot.slane %v7130_v19, 1  ;;  %v7138_v59 = vrot.slane %v7137_v18, 1 }
 0x439   : > { %v7089_v48 = vrot.slane %v7088_v47, 1  ;;  %v7102_v45 = vmax.f32 %v7100_v6, %v7101_v58  ;;  %v7118_v31 = vmax.f32 %v7116_v4, %v7117_v55  ;;  %v7125_v0 = vmax.f32 %v7123_v14, %v7124_v32 }
 0x43a   : > { %v7096_v63 = vrot.slane %v7095_v23, 1  ;;  %v7109_v27 = vmax.f32 %v7107_v38, %v7108_v40  ;;  %v7132_v39 = vmax.f32 %v7130_v19, %v7131_v24  ;;  %v7139_v28 = vmax.f32 %v7137_v18, %v7138_v59 }
 0x43b   : > { %v7103_v53 = vrot.slane %v7102_v45, 1  ;;  %v7090_v62 = vmax.f32 %v7088_v47, %v7089_v48 }
 0x43c   : > { %v7097_v13 = vmax.f32 %v7095_v23, %v7096_v63  ;;  %v7110_v33 = vrot.slane %v7109_v27, 1 }
 0x43d   : > { %v7104_v25 = vmax.f32 %v7102_v45, %v7103_v53 }
 0x43e   : > { %v7111_v41 = vmax.f32 %v7109_v27, %v7110_v33  ;;  %v7620_v51 = vsel %vm7396_vm6, %v7097_v13, %v7090_v62 }
 0x43f   : > { %v7621_v34 = vsel %vm7398_vm7, %v7104_v25, %v7620_v51 }
 0x440   : > { %v7622_v5 = vsel %vm7400_vm8, %v7111_v41, %v7621_v34 }
 0x441   : > { %v7623_v60 = vsel %vm7402_vm9, %v7118_v31, %v7622_v5 }
 0x442   : > { %v7624_v50 = vsel %vm7404_vm10, %v7125_v0, %v7623_v60 }
 0x443   : > { %v7625_v22 = vsel %vm7406_vm11, %v7132_v39, %v7624_v50 }
 0x444   : > { %v7626_v3 = vsel %vm7408_vm12, %v7139_v28, %v7625_v22 }
 0x445   : > { %7690 = vst [vmem:[%s10694_s10 + $0xf8] sm:$0xff] %v7626_v3 }
 0x446 PF: > { %s15_s22 = sadd.s32 1, %s9332_s22   ;;  %s12199_s18 = smov %s9324_s20 }
 0x447   : > { %p12_p9 = scmp.ge.s32.totalorder %s15_s22, 6   ;;  %s12200_s19 = smov %s9328_s21 }
 0x448   : > { %s12201_s20 = smov %s12204_s23  ;;  %s12202_s21 = smov %s12208_s24 }
 0x449   :  { %14 = sbr.rel (!%p12_p9) target bundleno = 3 (0x3), region = 73 }

</bundles_post_ra>
